<compile_context>
chip_gen: v7x
topology: tpu7x:2x2x1
jax: 0.10.0
libtpu: 0.0.40
codegen_flags: <defaults>
</compile_context>

<pallas_src>
import functools
import math

import jax
import jax.numpy as jnp
from jax import lax
from jax.experimental import pallas as pl

# ---- small, TPU-friendly configuration consistent with the module's structure ----
MAX_LENS = 8          # max_lens
MEM_LEN = 2           # memory_length
D_MODEL = 64          # d_model
NUM_HEAD = 2          # num_head (head_dim = 32)
FFN_HIDDEN = 4 * D_MODEL
VOCAB = 256           # vocab_size
NUM_LAYER = 2         # num_layer
BATCH = 2             # batch_size
SEQ_TOTAL = 16        # total input length (2 full blocks of MAX_LENS)

T_FULL = MAX_LENS + 2 * (MEM_LEN + 2)   # sequence length seen by every decoder layer (16)
NEG = -1e30                             # stands in for -inf in the additive mask


# ----------------------------------------------------------------------------------
# The fused per-block kernel
# ----------------------------------------------------------------------------------
def block_forward_kernel(ids_ref, mem_ref, mt_ref, mask_ref, emb_ref,
                         p_tok_ref, p_mem_ref, p_mt_ref, e_main_ref, e_mem_ref,
                         ln1w_ref, ln1b_ref, wqkv_ref, bqkv_ref, wo_ref, bo_ref,
                         ln2w_ref, ln2b_ref, w1_ref, b1_ref, w2_ref, b2_ref,
                         logits_ref, newmem_ref, *, num_head, num_layer):
    f32 = jnp.float32
    emb = emb_ref[...].astype(f32)                     # (V, D) bf16 table -> f32
    V, D = emb.shape
    BS = ids_ref.shape[0]                              # B * MAX_LENS
    hd = D // num_head
    scale = 1.0 / math.sqrt(hd)
    dims_nt = (((1,), (1,)), ((), ()))                 # contract last dims: A @ B.T, no transpose

    # ---- embedding lookup fused in-kernel as a one-hot matmul (MXU, no gather) ----
    iota = lax.broadcasted_iota(jnp.int32, (BS, V), 1)
    onehot = jnp.where(ids_ref[...] == iota, 1.0, 0.0)                        # (B*S, V)
    x_emb = jnp.dot(onehot, emb, preferred_element_type=f32)                  # (B*S, D)

    # ---- assemble [mt, mem, mt, tok, mt, mem, mt] per batch, flattened to (B*T, D),
    #      with constant placement matmuls (no unaligned sublane concat/stores) ----
    x = (jnp.dot(p_tok_ref[...], x_emb, preferred_element_type=f32)
         + jnp.dot(p_mem_ref[...], mem_ref[...], preferred_element_type=f32)
         + p_mt_ref[...] * mt_ref[...])                                       # (B*T, D)

    mask = mask_ref[...]                               # (B*T, B*T) block-diag additive mask

    def layer_norm(v, w, b):
        mu = jnp.mean(v, axis=-1, keepdims=True)
        var = jnp.mean(jnp.square(v - mu), axis=-1, keepdims=True)
        return (v - mu) * lax.rsqrt(var + 1e-5) * w + b

    for l in range(num_layer):                         # static unrolled loop over layers
        # --- pre-LN multi-head self-attention with fused QKV projection ---
        xn = layer_norm(x, ln1w_ref[l], ln1b_ref[l])
        qkv = jnp.dot(xn, wqkv_ref[l], preferred_element_type=f32) + bqkv_ref[l]  # (B*T, 3D)
        heads = []
        for h in range(num_head):                      # static unrolled loop over heads
            qh = qkv[:, h * hd:(h + 1) * hd]
            kh = qkv[:, D + h * hd:D + (h + 1) * hd]
            vh = qkv[:, 2 * D + h * hd:2 * D + (h + 1) * hd]
            s = lax.dot_general(qh, kh, dims_nt, preferred_element_type=f32) * scale + mask
            s = s - jnp.max(s, axis=-1, keepdims=True)
            p = jnp.exp(s)
            denom = jnp.sum(p, axis=-1, keepdims=True)
            o_h = jnp.dot(p, vh, preferred_element_type=f32)
            heads.append(o_h * pl.reciprocal(denom, approx=True))
        attn = jnp.concatenate(heads, axis=-1)                                    # (B*T, D)
        x = x + jnp.dot(attn, wo_ref[l], preferred_element_type=f32) + bo_ref[l]

        # --- PositionWiseFFN (the spec module): linear1 -> GELU -> linear2 ---
        xn2 = layer_norm(x, ln2w_ref[l], ln2b_ref[l])
        h1 = jnp.dot(xn2, w1_ref[l], preferred_element_type=f32) + b1_ref[l]
        # TODO(synk): nn.GELU() default is exact erf-GELU; erf has no Mosaic lowering, so
        # the tanh approximation is used (difference is below bf16 rounding in practice).
        h1 = jax.nn.gelu(h1, approximate=True)
        x = x + jnp.dot(h1, w2_ref[l], preferred_element_type=f32) + b2_ref[l]

    # ---- logits on main tokens only: one lane-dense (B*S, V=256) output store ----
    x_main = jnp.dot(e_main_ref[...], x, preferred_element_type=f32)              # (B*S, D)
    logits_ref[...] = lax.dot_general(x_main, emb, dims_nt, preferred_element_type=f32)

    # ---- updated memory: the (old + new) / 2 recurrence folded into the kernel ----
    new_mem = jnp.dot(e_mem_ref[...], x, preferred_element_type=f32)              # (B*M, D)
    newmem_ref[...] = 0.5 * (mem_ref[...] + new_mem)


# ----------------------------------------------------------------------------------
# pallas_call wrapper (single invocation, no grid: everything fits in VMEM)
# ----------------------------------------------------------------------------------
def block_forward(ids, memory_flat, params):
    BS = ids.shape[0]
    kernel = functools.partial(block_forward_kernel,
                               num_head=NUM_HEAD, num_layer=NUM_LAYER)
    s = params["stacked"]
    c = params["consts"]
    return pl.pallas_call(
        kernel,
        out_shape=(jax.ShapeDtypeStruct((BS, VOCAB), jnp.float32),
                   jax.ShapeDtypeStruct((BATCH * MEM_LEN, D_MODEL), jnp.float32)),
    )(ids, memory_flat, params["memory_token"], c["mask"], params["emb"],
      c["p_tok"], c["p_mem"], c["p_mt"], c["e_main"], c["e_mem"],
      s["ln1_w"], s["ln1_b"], s["wqkv_t"], s["bqkv"], s["wo_t"], s["bo"],
      s["ln2_w"], s["ln2_b"], s["w1_t"], s["b1"], s["w2_t"], s["b2"])


# ----------------------------------------------------------------------------------
# Host-side constants: attention mask + 0/1 placement / extraction matrices
# ----------------------------------------------------------------------------------
def build_consts(batch):
    a = MEM_LEN + 2
    # per-batch additive attention mask (same construction as the reference)
    causal = jnp.triu(jnp.full((MAX_LENS, MAX_LENS), NEG, jnp.float32), k=1)
    mm = jnp.zeros((T_FULL, T_FULL), jnp.float32)
    mm = mm.at[a:T_FULL - a, a:T_FULL - a].add(causal)
    mm = mm.at[:a, a:].set(NEG)
    mm = mm.at[a:a + MAX_LENS, T_FULL - a:].set(NEG)
    # block-diagonal over the flattened (B*T) axis: batches never attend each other
    mask = jnp.full((batch * T_FULL, batch * T_FULL), NEG, jnp.float32)
    for b in range(batch):
        mask = mask.at[b * T_FULL:(b + 1) * T_FULL,
                       b * T_FULL:(b + 1) * T_FULL].set(mm)

    BT, BSq, BM = batch * T_FULL, batch * MAX_LENS, batch * MEM_LEN
    p_tok = jnp.zeros((BT, BSq), jnp.float32)   # place embedded tokens
    p_mem = jnp.zeros((BT, BM), jnp.float32)    # place memory rows (both occurrences)
    p_mt = jnp.zeros((BT, 1), jnp.float32)      # place the memory_token rows
    e_main = jnp.zeros((BSq, BT), jnp.float32)  # extract main-token rows for the logits
    e_mem = jnp.zeros((BM, BT), jnp.float32)    # extract x[:, -1-M:-1, :] for new memory
    for b in range(batch):
        o = b * T_FULL
        for i in (0, MEM_LEN + 1, T_FULL - 2 - MEM_LEN, T_FULL - 1):
            p_mt = p_mt.at[o + i, 0].set(1.0)
        for j in range(MEM_LEN):
            p_mem = p_mem.at[o + 1 + j, b * MEM_LEN + j].set(1.0)
            p_mem = p_mem.at[o + T_FULL - 1 - MEM_LEN + j, b * MEM_LEN + j].set(1.0)
            e_mem = e_mem.at[b * MEM_LEN + j, o + T_FULL - 1 - MEM_LEN + j].set(1.0)
        for j in range(MAX_LENS):
            p_tok = p_tok.at[o + a + j, b * MAX_LENS + j].set(1.0)
            e_main = e_main.at[b * MAX_LENS + j, o + a + j].set(1.0)
    return dict(mask=mask, p_tok=p_tok, p_mem=p_mem, p_mt=p_mt,
                e_main=e_main, e_mem=e_mem)


def init_params(key):
    std = 0.02
    keys = jax.random.split(key, 2 + NUM_LAYER)
    emb = (jax.random.normal(keys[0], (VOCAB, D_MODEL), jnp.float32) * std
           ).astype(jnp.bfloat16)                      # embedding table stored in bf16
    # xavier_uniform on (1, 1, D): fan_in = fan_out = D
    bound = math.sqrt(6.0 / (2.0 * D_MODEL))
    memory_token = jax.random.uniform(keys[1], (1, D_MODEL), jnp.float32,
                                      minval=-bound, maxval=bound)

    per_layer = []
    for i in range(NUM_LAYER):
        lk = jax.random.split(keys[2 + i], 6)
        wq = jax.random.normal(lk[0], (D_MODEL, D_MODEL), jnp.float32) * std
        wk = jax.random.normal(lk[1], (D_MODEL, D_MODEL), jnp.float32) * std
        wv = jax.random.normal(lk[2], (D_MODEL, D_MODEL), jnp.float32) * std
        wo = jax.random.normal(lk[3], (D_MODEL, D_MODEL), jnp.float32) * std
        w1 = jax.random.normal(lk[4], (FFN_HIDDEN, D_MODEL), jnp.float32) * std
        w2 = jax.random.normal(lk[5], (D_MODEL, FFN_HIDDEN), jnp.float32) * std
        per_layer.append(dict(
            ln1_w=jnp.ones((1, D_MODEL), jnp.float32),
            ln1_b=jnp.zeros((1, D_MODEL), jnp.float32),
            # fused QKV: columns [0:D]=Q, [D:2D]=K, [2D:3D]=V; K's bias slice stays zero
            wqkv_t=jnp.concatenate([wq.T, wk.T, wv.T], axis=1),
            bqkv=jnp.zeros((1, 3 * D_MODEL), jnp.float32),
            wo_t=wo.T, bo=jnp.zeros((1, D_MODEL), jnp.float32),
            ln2_w=jnp.ones((1, D_MODEL), jnp.float32),
            ln2_b=jnp.zeros((1, D_MODEL), jnp.float32),
            w1_t=w1.T, b1=jnp.zeros((1, FFN_HIDDEN), jnp.float32),
            w2_t=w2.T, b2=jnp.zeros((1, D_MODEL), jnp.float32),
        ))
    stacked = {k: jnp.stack([layer[k] for layer in per_layer], axis=0)
               for k in per_layer[0]}
    return dict(emb=emb, memory_token=memory_token, stacked=stacked,
                consts=build_consts(BATCH))


# ----------------------------------------------------------------------------------
# Model forward: one fused kernel launch per chunk, memory recurrence threaded through
# ----------------------------------------------------------------------------------
def _model_forward(tokens, params):
    B, L = tokens.shape
    # TODO(synk): reference computes block_times = L // max_lens + 1 whose final chunk is
    # shorter than max_lens and breaks the fixed-size mask broadcast; full chunks only.
    block_times = L // MAX_LENS
    memory = jnp.full((B * MEM_LEN, D_MODEL), 0.001, jnp.float32)   # memory*0 + 0.001
    outs = []
    for i in range(block_times):
        chunk = tokens[:, i * MAX_LENS:(i + 1) * MAX_LENS]          # (B, S)
        ids = chunk.reshape(B * MAX_LENS, 1).astype(jnp.int32)      # (B*S, 1)
        logits, memory = block_forward(ids, memory, params)         # memory already averaged
        outs.append(logits.reshape(B, MAX_LENS, VOCAB))
    return jnp.concatenate(outs, axis=1)


model_forward = jax.jit(_model_forward)


# ----------------------------------------------------------------------------------
if __name__ == "__main__":
    key = jax.random.PRNGKey(0)
    params = init_params(key)
    tokens = jax.random.randint(jax.random.fold_in(key, 999),
                                (BATCH, SEQ_TOTAL), 0, VOCAB, dtype=jnp.int32)
    out = model_forward(tokens, params)
    out = jax.block_until_ready(out)
    assert out.shape == (BATCH, SEQ_TOTAL, VOCAB), out.shape
    assert bool(jnp.all(jnp.isfinite(out)))
    print("KERNEL_OK")
</pallas_src>

<mosaic_0001>
module attributes {stable_mosaic.version = 11 : i64} {
  func.func @block_forward_kernel(%arg0: memref<16x1xi32, #tpu.memory_space<vmem>>, %arg1: memref<4x64xf32, #tpu.memory_space<vmem>>, %arg2: memref<1x64xf32, #tpu.memory_space<vmem>>, %arg3: memref<32x32xf32, #tpu.memory_space<vmem>>, %arg4: memref<256x64xbf16, #tpu.memory_space<vmem>>, %arg5: memref<32x16xf32, #tpu.memory_space<vmem>>, %arg6: memref<32x4xf32, #tpu.memory_space<vmem>>, %arg7: memref<32x1xf32, #tpu.memory_space<vmem>>, %arg8: memref<16x32xf32, #tpu.memory_space<vmem>>, %arg9: memref<4x32xf32, #tpu.memory_space<vmem>>, %arg10: memref<2x1x64xf32, #tpu.memory_space<vmem>>, %arg11: memref<2x1x64xf32, #tpu.memory_space<vmem>>, %arg12: memref<2x64x192xf32, #tpu.memory_space<vmem>>, %arg13: memref<2x1x192xf32, #tpu.memory_space<vmem>>, %arg14: memref<2x64x64xf32, #tpu.memory_space<vmem>>, %arg15: memref<2x1x64xf32, #tpu.memory_space<vmem>>, %arg16: memref<2x1x64xf32, #tpu.memory_space<vmem>>, %arg17: memref<2x1x64xf32, #tpu.memory_space<vmem>>, %arg18: memref<2x64x256xf32, #tpu.memory_space<vmem>>, %arg19: memref<2x1x256xf32, #tpu.memory_space<vmem>>, %arg20: memref<2x256x64xf32, #tpu.memory_space<vmem>>, %arg21: memref<2x1x64xf32, #tpu.memory_space<vmem>>, %arg22: memref<16x256xf32, #tpu.memory_space<vmem>>, %arg23: memref<4x64xf32, #tpu.memory_space<vmem>>) attributes {dimension_semantics = [], scalar_prefetch = 0 : i64, scratch_operands = 0 : i64, tpu.core_type = #tpu.core_type<tc>} {
    %c0 = arith.constant 0 : index
    %c0_0 = arith.constant 0 : index
    %0 = vector.load %arg4[%c0, %c0_0] : memref<256x64xbf16, #tpu.memory_space<vmem>>, vector<256x64xbf16>
    %1 = arith.extf %0 : vector<256x64xbf16> to vector<256x64xf32>
    %2 = tpu.iota {dimensions = array<i32: 1>} : vector<16x256xi32>
    %c0_1 = arith.constant 0 : index
    %c0_2 = arith.constant 0 : index
    %3 = vector.load %arg0[%c0_1, %c0_2] : memref<16x1xi32, #tpu.memory_space<vmem>>, vector<16x1xi32>
    %4 = vector.broadcast %3 : vector<16x1xi32> to vector<16x256xi32>
    %5 = arith.cmpi eq, %4, %2 : vector<16x256xi32>
    %cst = arith.constant 1.000000e+00 : f32
    %cst_3 = arith.constant 0.000000e+00 : f32
    %6 = vector.broadcast %cst : f32 to vector<16x256xf32>
    %7 = vector.broadcast %cst_3 : f32 to vector<16x256xf32>
    %8 = arith.select %5, %6, %7 : vector<16x256xi1>, vector<16x256xf32>
    %cst_4 = arith.constant dense<0.000000e+00> : vector<16x64xf32>
    %9 = tpu.matmul %8, %1, %cst_4 {dimension_numbers = #tpu.dot_dimension_numbers<[1], [0], [0], [1], [0, 0, 1, 1], [], []>} : vector<16x256xf32>, vector<256x64xf32>, vector<16x64xf32> -> vector<16x64xf32>
    %c0_5 = arith.constant 0 : index
    %c0_6 = arith.constant 0 : index
    %10 = vector.load %arg5[%c0_5, %c0_6] : memref<32x16xf32, #tpu.memory_space<vmem>>, vector<32x16xf32>
    %cst_7 = arith.constant dense<0.000000e+00> : vector<32x64xf32>
    %11 = tpu.matmul %10, %9, %cst_7 {dimension_numbers = #tpu.dot_dimension_numbers<[1], [0], [0], [1], [0, 0, 1, 1], [], []>} : vector<32x16xf32>, vector<16x64xf32>, vector<32x64xf32> -> vector<32x64xf32>
    %c0_8 = arith.constant 0 : index
    %c0_9 = arith.constant 0 : index
    %12 = vector.load %arg6[%c0_8, %c0_9] : memref<32x4xf32, #tpu.memory_space<vmem>>, vector<32x4xf32>
    %c0_10 = arith.constant 0 : index
    %c0_11 = arith.constant 0 : index
    %13 = vector.load %arg1[%c0_10, %c0_11] : memref<4x64xf32, #tpu.memory_space<vmem>>, vector<4x64xf32>
    %cst_12 = arith.constant dense<0.000000e+00> : vector<32x64xf32>
    %14 = tpu.matmul %12, %13, %cst_12 {dimension_numbers = #tpu.dot_dimension_numbers<[1], [0], [0], [1], [0, 0, 1, 1], [], []>} : vector<32x4xf32>, vector<4x64xf32>, vector<32x64xf32> -> vector<32x64xf32>
    %15 = arith.addf %11, %14 : vector<32x64xf32>
    %c0_13 = arith.constant 0 : index
    %c0_14 = arith.constant 0 : index
    %16 = vector.load %arg7[%c0_13, %c0_14] : memref<32x1xf32, #tpu.memory_space<vmem>>, vector<32x1xf32>
    %c0_15 = arith.constant 0 : index
    %c0_16 = arith.constant 0 : index
    %17 = vector.load %arg2[%c0_15, %c0_16] : memref<1x64xf32, #tpu.memory_space<vmem>>, vector<1x64xf32>
    %18 = vector.broadcast %16 : vector<32x1xf32> to vector<32x64xf32>
    %19 = vector.broadcast %17 : vector<1x64xf32> to vector<32x64xf32>
    %20 = arith.mulf %18, %19 : vector<32x64xf32>
    %21 = arith.addf %15, %20 : vector<32x64xf32>
    %c0_17 = arith.constant 0 : index
    %c0_18 = arith.constant 0 : index
    %22 = vector.load %arg3[%c0_17, %c0_18] : memref<32x32xf32, #tpu.memory_space<vmem>>, vector<32x32xf32>
    %c0_19 = arith.constant 0 : index
    %c0_20 = arith.constant 0 : index
    %c0_21 = arith.constant 0 : index
    %23 = vector.load %arg10[%c0_19, %c0_20, %c0_21] : memref<2x1x64xf32, #tpu.memory_space<vmem>>, vector<1x1x64xf32>
    %24 = vector.shape_cast %23 : vector<1x1x64xf32> to vector<1x64xf32>
    %c0_22 = arith.constant 0 : index
    %c0_23 = arith.constant 0 : index
    %c0_24 = arith.constant 0 : index
    %25 = vector.load %arg11[%c0_22, %c0_23, %c0_24] : memref<2x1x64xf32, #tpu.memory_space<vmem>>, vector<1x1x64xf32>
    %26 = vector.shape_cast %25 : vector<1x1x64xf32> to vector<1x64xf32>
    %cst_25 = arith.constant dense<0.000000e+00> : vector<32xf32>
    %27 = vector.multi_reduction <add>, %21, %cst_25 [1] : vector<32x64xf32> to vector<32xf32>
    %28 = vector.shape_cast %27 : vector<32xf32> to vector<32x1xf32>
    %cst_26 = arith.constant 6.400000e+01 : f32
    %29 = vector.broadcast %cst_26 : f32 to vector<32x1xf32>
    %30 = arith.divf %28, %29 : vector<32x1xf32>
    %31 = vector.broadcast %30 : vector<32x1xf32> to vector<32x64xf32>
    %32 = arith.subf %21, %31 : vector<32x64xf32>
    %33 = arith.mulf %32, %32 : vector<32x64xf32>
    %cst_27 = arith.constant dense<0.000000e+00> : vector<32xf32>
    %34 = vector.multi_reduction <add>, %33, %cst_27 [1] : vector<32x64xf32> to vector<32xf32>
    %35 = vector.shape_cast %34 : vector<32xf32> to vector<32x1xf32>
    %cst_28 = arith.constant 6.400000e+01 : f32
    %36 = vector.broadcast %cst_28 : f32 to vector<32x1xf32>
    %37 = arith.divf %35, %36 : vector<32x1xf32>
    %38 = vector.broadcast %30 : vector<32x1xf32> to vector<32x64xf32>
    %39 = arith.subf %21, %38 : vector<32x64xf32>
    %cst_29 = arith.constant 9.99999974E-6 : f32
    %40 = vector.broadcast %cst_29 : f32 to vector<32x1xf32>
    %41 = arith.addf %37, %40 : vector<32x1xf32>
    %42 = math.rsqrt %41 : vector<32x1xf32>
    %43 = vector.broadcast %42 : vector<32x1xf32> to vector<32x64xf32>
    %44 = arith.mulf %39, %43 : vector<32x64xf32>
    %45 = vector.broadcast %24 : vector<1x64xf32> to vector<32x64xf32>
    %46 = arith.mulf %44, %45 : vector<32x64xf32>
    %47 = vector.broadcast %26 : vector<1x64xf32> to vector<32x64xf32>
    %48 = arith.addf %46, %47 : vector<32x64xf32>
    %c0_30 = arith.constant 0 : index
    %c0_31 = arith.constant 0 : index
    %c0_32 = arith.constant 0 : index
    %49 = vector.load %arg12[%c0_30, %c0_31, %c0_32] : memref<2x64x192xf32, #tpu.memory_space<vmem>>, vector<1x64x192xf32>
    %50 = vector.shape_cast %49 : vector<1x64x192xf32> to vector<64x192xf32>
    %cst_33 = arith.constant dense<0.000000e+00> : vector<32x192xf32>
    %51 = tpu.matmul %48, %50, %cst_33 {dimension_numbers = #tpu.dot_dimension_numbers<[1], [0], [0], [1], [0, 0, 1, 1], [], []>} : vector<32x64xf32>, vector<64x192xf32>, vector<32x192xf32> -> vector<32x192xf32>
    %c0_34 = arith.constant 0 : index
    %c0_35 = arith.constant 0 : index
    %c0_36 = arith.constant 0 : index
    %52 = vector.load %arg13[%c0_34, %c0_35, %c0_36] : memref<2x1x192xf32, #tpu.memory_space<vmem>>, vector<1x1x192xf32>
    %53 = vector.shape_cast %52 : vector<1x1x192xf32> to vector<1x192xf32>
    %54 = vector.broadcast %53 : vector<1x192xf32> to vector<32x192xf32>
    %55 = arith.addf %51, %54 : vector<32x192xf32>
    %56 = vector.extract_strided_slice %55 {offsets = [0, 0], sizes = [32, 32], strides = [1, 1]} : vector<32x192xf32> to vector<32x32xf32>
    %57 = vector.extract_strided_slice %55 {offsets = [0, 64], sizes = [32, 32], strides = [1, 1]} : vector<32x192xf32> to vector<32x32xf32>
    %58 = vector.extract_strided_slice %55 {offsets = [0, 128], sizes = [32, 32], strides = [1, 1]} : vector<32x192xf32> to vector<32x32xf32>
    %cst_37 = arith.constant dense<0.000000e+00> : vector<32x32xf32>
    %59 = tpu.matmul %56, %57, %cst_37 {dimension_numbers = #tpu.dot_dimension_numbers<[1], [1], [0], [0], [0, 0, 1, 0], [], []>} : vector<32x32xf32>, vector<32x32xf32>, vector<32x32xf32> -> vector<32x32xf32>
    %cst_38 = arith.constant 0.176776692 : f32
    %60 = vector.broadcast %cst_38 : f32 to vector<32x32xf32>
    %61 = arith.mulf %59, %60 : vector<32x32xf32>
    %62 = arith.addf %61, %22 : vector<32x32xf32>
    %cst_39 = arith.constant dense<0xFF800000> : vector<32xf32>
    %63 = vector.multi_reduction <maximumf>, %62, %cst_39 [1] : vector<32x32xf32> to vector<32xf32>
    %64 = vector.shape_cast %63 : vector<32xf32> to vector<32x1xf32>
    %65 = vector.broadcast %64 : vector<32x1xf32> to vector<32x32xf32>
    %66 = arith.subf %62, %65 : vector<32x32xf32>
    %67 = math.exp %66 : vector<32x32xf32>
    %cst_40 = arith.constant dense<0.000000e+00> : vector<32xf32>
    %68 = vector.multi_reduction <add>, %67, %cst_40 [1] : vector<32x32xf32> to vector<32xf32>
    %69 = vector.shape_cast %68 : vector<32xf32> to vector<32x1xf32>
    %cst_41 = arith.constant dense<0.000000e+00> : vector<32x32xf32>
    %70 = tpu.matmul %67, %58, %cst_41 {dimension_numbers = #tpu.dot_dimension_numbers<[1], [0], [0], [1], [0, 0, 1, 1], [], []>} : vector<32x32xf32>, vector<32x32xf32>, vector<32x32xf32> -> vector<32x32xf32>
    %71 = tpu.reciprocal %69 {approx = true} : vector<32x1xf32> -> vector<32x1xf32>
    %72 = vector.broadcast %71 : vector<32x1xf32> to vector<32x32xf32>
    %73 = arith.mulf %70, %72 : vector<32x32xf32>
    %74 = vector.extract_strided_slice %55 {offsets = [0, 32], sizes = [32, 32], strides = [1, 1]} : vector<32x192xf32> to vector<32x32xf32>
    %75 = vector.extract_strided_slice %55 {offsets = [0, 96], sizes = [32, 32], strides = [1, 1]} : vector<32x192xf32> to vector<32x32xf32>
    %76 = vector.extract_strided_slice %55 {offsets = [0, 160], sizes = [32, 32], strides = [1, 1]} : vector<32x192xf32> to vector<32x32xf32>
    %cst_42 = arith.constant dense<0.000000e+00> : vector<32x32xf32>
    %77 = tpu.matmul %74, %75, %cst_42 {dimension_numbers = #tpu.dot_dimension_numbers<[1], [1], [0], [0], [0, 0, 1, 0], [], []>} : vector<32x32xf32>, vector<32x32xf32>, vector<32x32xf32> -> vector<32x32xf32>
    %cst_43 = arith.constant 0.176776692 : f32
    %78 = vector.broadcast %cst_43 : f32 to vector<32x32xf32>
    %79 = arith.mulf %77, %78 : vector<32x32xf32>
    %80 = arith.addf %79, %22 : vector<32x32xf32>
    %cst_44 = arith.constant dense<0xFF800000> : vector<32xf32>
    %81 = vector.multi_reduction <maximumf>, %80, %cst_44 [1] : vector<32x32xf32> to vector<32xf32>
    %82 = vector.shape_cast %81 : vector<32xf32> to vector<32x1xf32>
    %83 = vector.broadcast %82 : vector<32x1xf32> to vector<32x32xf32>
    %84 = arith.subf %80, %83 : vector<32x32xf32>
    %85 = math.exp %84 : vector<32x32xf32>
    %cst_45 = arith.constant dense<0.000000e+00> : vector<32xf32>
    %86 = vector.multi_reduction <add>, %85, %cst_45 [1] : vector<32x32xf32> to vector<32xf32>
    %87 = vector.shape_cast %86 : vector<32xf32> to vector<32x1xf32>
    %cst_46 = arith.constant dense<0.000000e+00> : vector<32x32xf32>
    %88 = tpu.matmul %85, %76, %cst_46 {dimension_numbers = #tpu.dot_dimension_numbers<[1], [0], [0], [1], [0, 0, 1, 1], [], []>} : vector<32x32xf32>, vector<32x32xf32>, vector<32x32xf32> -> vector<32x32xf32>
    %89 = tpu.reciprocal %87 {approx = true} : vector<32x1xf32> -> vector<32x1xf32>
    %90 = vector.broadcast %89 : vector<32x1xf32> to vector<32x32xf32>
    %91 = arith.mulf %88, %90 : vector<32x32xf32>
    %92 = tpu.concatenate %73, %91 in 1 : vector<32x32xf32>, vector<32x32xf32> -> vector<32x64xf32>
    %c0_47 = arith.constant 0 : index
    %c0_48 = arith.constant 0 : index
    %c0_49 = arith.constant 0 : index
    %93 = vector.load %arg14[%c0_47, %c0_48, %c0_49] : memref<2x64x64xf32, #tpu.memory_space<vmem>>, vector<1x64x64xf32>
    %94 = vector.shape_cast %93 : vector<1x64x64xf32> to vector<64x64xf32>
    %cst_50 = arith.constant dense<0.000000e+00> : vector<32x64xf32>
    %95 = tpu.matmul %92, %94, %cst_50 {dimension_numbers = #tpu.dot_dimension_numbers<[1], [0], [0], [1], [0, 0, 1, 1], [], []>} : vector<32x64xf32>, vector<64x64xf32>, vector<32x64xf32> -> vector<32x64xf32>
    %96 = arith.addf %21, %95 : vector<32x64xf32>
    %c0_51 = arith.constant 0 : index
    %c0_52 = arith.constant 0 : index
    %c0_53 = arith.constant 0 : index
    %97 = vector.load %arg15[%c0_51, %c0_52, %c0_53] : memref<2x1x64xf32, #tpu.memory_space<vmem>>, vector<1x1x64xf32>
    %98 = vector.shape_cast %97 : vector<1x1x64xf32> to vector<1x64xf32>
    %99 = vector.broadcast %98 : vector<1x64xf32> to vector<32x64xf32>
    %100 = arith.addf %96, %99 : vector<32x64xf32>
    %c0_54 = arith.constant 0 : index
    %c0_55 = arith.constant 0 : index
    %c0_56 = arith.constant 0 : index
    %101 = vector.load %arg16[%c0_54, %c0_55, %c0_56] : memref<2x1x64xf32, #tpu.memory_space<vmem>>, vector<1x1x64xf32>
    %102 = vector.shape_cast %101 : vector<1x1x64xf32> to vector<1x64xf32>
    %c0_57 = arith.constant 0 : index
    %c0_58 = arith.constant 0 : index
    %c0_59 = arith.constant 0 : index
    %103 = vector.load %arg17[%c0_57, %c0_58, %c0_59] : memref<2x1x64xf32, #tpu.memory_space<vmem>>, vector<1x1x64xf32>
    %104 = vector.shape_cast %103 : vector<1x1x64xf32> to vector<1x64xf32>
    %cst_60 = arith.constant dense<0.000000e+00> : vector<32xf32>
    %105 = vector.multi_reduction <add>, %100, %cst_60 [1] : vector<32x64xf32> to vector<32xf32>
    %106 = vector.shape_cast %105 : vector<32xf32> to vector<32x1xf32>
    %cst_61 = arith.constant 6.400000e+01 : f32
    %107 = vector.broadcast %cst_61 : f32 to vector<32x1xf32>
    %108 = arith.divf %106, %107 : vector<32x1xf32>
    %109 = vector.broadcast %108 : vector<32x1xf32> to vector<32x64xf32>
    %110 = arith.subf %100, %109 : vector<32x64xf32>
    %111 = arith.mulf %110, %110 : vector<32x64xf32>
    %cst_62 = arith.constant dense<0.000000e+00> : vector<32xf32>
    %112 = vector.multi_reduction <add>, %111, %cst_62 [1] : vector<32x64xf32> to vector<32xf32>
    %113 = vector.shape_cast %112 : vector<32xf32> to vector<32x1xf32>
    %cst_63 = arith.constant 6.400000e+01 : f32
    %114 = vector.broadcast %cst_63 : f32 to vector<32x1xf32>
    %115 = arith.divf %113, %114 : vector<32x1xf32>
    %116 = vector.broadcast %108 : vector<32x1xf32> to vector<32x64xf32>
    %117 = arith.subf %100, %116 : vector<32x64xf32>
    %cst_64 = arith.constant 9.99999974E-6 : f32
    %118 = vector.broadcast %cst_64 : f32 to vector<32x1xf32>
    %119 = arith.addf %115, %118 : vector<32x1xf32>
    %120 = math.rsqrt %119 : vector<32x1xf32>
    %121 = vector.broadcast %120 : vector<32x1xf32> to vector<32x64xf32>
    %122 = arith.mulf %117, %121 : vector<32x64xf32>
    %123 = vector.broadcast %102 : vector<1x64xf32> to vector<32x64xf32>
    %124 = arith.mulf %122, %123 : vector<32x64xf32>
    %125 = vector.broadcast %104 : vector<1x64xf32> to vector<32x64xf32>
    %126 = arith.addf %124, %125 : vector<32x64xf32>
    %c0_65 = arith.constant 0 : index
    %c0_66 = arith.constant 0 : index
    %c0_67 = arith.constant 0 : index
    %127 = vector.load %arg18[%c0_65, %c0_66, %c0_67] : memref<2x64x256xf32, #tpu.memory_space<vmem>>, vector<1x64x256xf32>
    %128 = vector.shape_cast %127 : vector<1x64x256xf32> to vector<64x256xf32>
    %cst_68 = arith.constant dense<0.000000e+00> : vector<32x256xf32>
    %129 = tpu.matmul %126, %128, %cst_68 {dimension_numbers = #tpu.dot_dimension_numbers<[1], [0], [0], [1], [0, 0, 1, 1], [], []>} : vector<32x64xf32>, vector<64x256xf32>, vector<32x256xf32> -> vector<32x256xf32>
    %c0_69 = arith.constant 0 : index
    %c0_70 = arith.constant 0 : index
    %c0_71 = arith.constant 0 : index
    %130 = vector.load %arg19[%c0_69, %c0_70, %c0_71] : memref<2x1x256xf32, #tpu.memory_space<vmem>>, vector<1x1x256xf32>
    %131 = vector.shape_cast %130 : vector<1x1x256xf32> to vector<1x256xf32>
    %132 = vector.broadcast %131 : vector<1x256xf32> to vector<32x256xf32>
    %133 = arith.addf %129, %132 : vector<32x256xf32>
    %134 = arith.mulf %133, %133 : vector<32x256xf32>
    %135 = arith.mulf %133, %134 : vector<32x256xf32>
    %cst_72 = arith.constant 4.471500e-02 : f32
    %136 = vector.broadcast %cst_72 : f32 to vector<32x256xf32>
    %137 = arith.mulf %136, %135 : vector<32x256xf32>
    %138 = arith.addf %133, %137 : vector<32x256xf32>
    %cst_73 = arith.constant 0.797884583 : f32
    %139 = vector.broadcast %cst_73 : f32 to vector<32x256xf32>
    %140 = arith.mulf %139, %138 : vector<32x256xf32>
    %141 = math.tanh %140 : vector<32x256xf32>
    %cst_74 = arith.constant 1.000000e+00 : f32
    %142 = vector.broadcast %cst_74 : f32 to vector<32x256xf32>
    %143 = arith.addf %142, %141 : vector<32x256xf32>
    %cst_75 = arith.constant 5.000000e-01 : f32
    %144 = vector.broadcast %cst_75 : f32 to vector<32x256xf32>
    %145 = arith.mulf %144, %143 : vector<32x256xf32>
    %146 = arith.mulf %133, %145 : vector<32x256xf32>
    %c0_76 = arith.constant 0 : index
    %c0_77 = arith.constant 0 : index
    %c0_78 = arith.constant 0 : index
    %147 = vector.load %arg20[%c0_76, %c0_77, %c0_78] : memref<2x256x64xf32, #tpu.memory_space<vmem>>, vector<1x256x64xf32>
    %148 = vector.shape_cast %147 : vector<1x256x64xf32> to vector<256x64xf32>
    %cst_79 = arith.constant dense<0.000000e+00> : vector<32x64xf32>
    %149 = tpu.matmul %146, %148, %cst_79 {dimension_numbers = #tpu.dot_dimension_numbers<[1], [0], [0], [1], [0, 0, 1, 1], [], []>} : vector<32x256xf32>, vector<256x64xf32>, vector<32x64xf32> -> vector<32x64xf32>
    %150 = arith.addf %100, %149 : vector<32x64xf32>
    %c0_80 = arith.constant 0 : index
    %c0_81 = arith.constant 0 : index
    %c0_82 = arith.constant 0 : index
    %151 = vector.load %arg21[%c0_80, %c0_81, %c0_82] : memref<2x1x64xf32, #tpu.memory_space<vmem>>, vector<1x1x64xf32>
    %152 = vector.shape_cast %151 : vector<1x1x64xf32> to vector<1x64xf32>
    %153 = vector.broadcast %152 : vector<1x64xf32> to vector<32x64xf32>
    %154 = arith.addf %150, %153 : vector<32x64xf32>
    %c1 = arith.constant 1 : index
    %c0_83 = arith.constant 0 : index
    %c0_84 = arith.constant 0 : index
    %155 = vector.load %arg10[%c1, %c0_83, %c0_84] : memref<2x1x64xf32, #tpu.memory_space<vmem>>, vector<1x1x64xf32>
    %156 = vector.shape_cast %155 : vector<1x1x64xf32> to vector<1x64xf32>
    %c1_85 = arith.constant 1 : index
    %c0_86 = arith.constant 0 : index
    %c0_87 = arith.constant 0 : index
    %157 = vector.load %arg11[%c1_85, %c0_86, %c0_87] : memref<2x1x64xf32, #tpu.memory_space<vmem>>, vector<1x1x64xf32>
    %158 = vector.shape_cast %157 : vector<1x1x64xf32> to vector<1x64xf32>
    %cst_88 = arith.constant dense<0.000000e+00> : vector<32xf32>
    %159 = vector.multi_reduction <add>, %154, %cst_88 [1] : vector<32x64xf32> to vector<32xf32>
    %160 = vector.shape_cast %159 : vector<32xf32> to vector<32x1xf32>
    %cst_89 = arith.constant 6.400000e+01 : f32
    %161 = vector.broadcast %cst_89 : f32 to vector<32x1xf32>
    %162 = arith.divf %160, %161 : vector<32x1xf32>
    %163 = vector.broadcast %162 : vector<32x1xf32> to vector<32x64xf32>
    %164 = arith.subf %154, %163 : vector<32x64xf32>
    %165 = arith.mulf %164, %164 : vector<32x64xf32>
    %cst_90 = arith.constant dense<0.000000e+00> : vector<32xf32>
    %166 = vector.multi_reduction <add>, %165, %cst_90 [1] : vector<32x64xf32> to vector<32xf32>
    %167 = vector.shape_cast %166 : vector<32xf32> to vector<32x1xf32>
    %cst_91 = arith.constant 6.400000e+01 : f32
    %168 = vector.broadcast %cst_91 : f32 to vector<32x1xf32>
    %169 = arith.divf %167, %168 : vector<32x1xf32>
    %170 = vector.broadcast %162 : vector<32x1xf32> to vector<32x64xf32>
    %171 = arith.subf %154, %170 : vector<32x64xf32>
    %cst_92 = arith.constant 9.99999974E-6 : f32
    %172 = vector.broadcast %cst_92 : f32 to vector<32x1xf32>
    %173 = arith.addf %169, %172 : vector<32x1xf32>
    %174 = math.rsqrt %173 : vector<32x1xf32>
    %175 = vector.broadcast %174 : vector<32x1xf32> to vector<32x64xf32>
    %176 = arith.mulf %171, %175 : vector<32x64xf32>
    %177 = vector.broadcast %156 : vector<1x64xf32> to vector<32x64xf32>
    %178 = arith.mulf %176, %177 : vector<32x64xf32>
    %179 = vector.broadcast %158 : vector<1x64xf32> to vector<32x64xf32>
    %180 = arith.addf %178, %179 : vector<32x64xf32>
    %c1_93 = arith.constant 1 : index
    %c0_94 = arith.constant 0 : index
    %c0_95 = arith.constant 0 : index
    %181 = vector.load %arg12[%c1_93, %c0_94, %c0_95] : memref<2x64x192xf32, #tpu.memory_space<vmem>>, vector<1x64x192xf32>
    %182 = vector.shape_cast %181 : vector<1x64x192xf32> to vector<64x192xf32>
    %cst_96 = arith.constant dense<0.000000e+00> : vector<32x192xf32>
    %183 = tpu.matmul %180, %182, %cst_96 {dimension_numbers = #tpu.dot_dimension_numbers<[1], [0], [0], [1], [0, 0, 1, 1], [], []>} : vector<32x64xf32>, vector<64x192xf32>, vector<32x192xf32> -> vector<32x192xf32>
    %c1_97 = arith.constant 1 : index
    %c0_98 = arith.constant 0 : index
    %c0_99 = arith.constant 0 : index
    %184 = vector.load %arg13[%c1_97, %c0_98, %c0_99] : memref<2x1x192xf32, #tpu.memory_space<vmem>>, vector<1x1x192xf32>
    %185 = vector.shape_cast %184 : vector<1x1x192xf32> to vector<1x192xf32>
    %186 = vector.broadcast %185 : vector<1x192xf32> to vector<32x192xf32>
    %187 = arith.addf %183, %186 : vector<32x192xf32>
    %188 = vector.extract_strided_slice %187 {offsets = [0, 0], sizes = [32, 32], strides = [1, 1]} : vector<32x192xf32> to vector<32x32xf32>
    %189 = vector.extract_strided_slice %187 {offsets = [0, 64], sizes = [32, 32], strides = [1, 1]} : vector<32x192xf32> to vector<32x32xf32>
    %190 = vector.extract_strided_slice %187 {offsets = [0, 128], sizes = [32, 32], strides = [1, 1]} : vector<32x192xf32> to vector<32x32xf32>
    %cst_100 = arith.constant dense<0.000000e+00> : vector<32x32xf32>
    %191 = tpu.matmul %188, %189, %cst_100 {dimension_numbers = #tpu.dot_dimension_numbers<[1], [1], [0], [0], [0, 0, 1, 0], [], []>} : vector<32x32xf32>, vector<32x32xf32>, vector<32x32xf32> -> vector<32x32xf32>
    %cst_101 = arith.constant 0.176776692 : f32
    %192 = vector.broadcast %cst_101 : f32 to vector<32x32xf32>
    %193 = arith.mulf %191, %192 : vector<32x32xf32>
    %194 = arith.addf %193, %22 : vector<32x32xf32>
    %cst_102 = arith.constant dense<0xFF800000> : vector<32xf32>
    %195 = vector.multi_reduction <maximumf>, %194, %cst_102 [1] : vector<32x32xf32> to vector<32xf32>
    %196 = vector.shape_cast %195 : vector<32xf32> to vector<32x1xf32>
    %197 = vector.broadcast %196 : vector<32x1xf32> to vector<32x32xf32>
    %198 = arith.subf %194, %197 : vector<32x32xf32>
    %199 = math.exp %198 : vector<32x32xf32>
    %cst_103 = arith.constant dense<0.000000e+00> : vector<32xf32>
    %200 = vector.multi_reduction <add>, %199, %cst_103 [1] : vector<32x32xf32> to vector<32xf32>
    %201 = vector.shape_cast %200 : vector<32xf32> to vector<32x1xf32>
    %cst_104 = arith.constant dense<0.000000e+00> : vector<32x32xf32>
    %202 = tpu.matmul %199, %190, %cst_104 {dimension_numbers = #tpu.dot_dimension_numbers<[1], [0], [0], [1], [0, 0, 1, 1], [], []>} : vector<32x32xf32>, vector<32x32xf32>, vector<32x32xf32> -> vector<32x32xf32>
    %203 = tpu.reciprocal %201 {approx = true} : vector<32x1xf32> -> vector<32x1xf32>
    %204 = vector.broadcast %203 : vector<32x1xf32> to vector<32x32xf32>
    %205 = arith.mulf %202, %204 : vector<32x32xf32>
    %206 = vector.extract_strided_slice %187 {offsets = [0, 32], sizes = [32, 32], strides = [1, 1]} : vector<32x192xf32> to vector<32x32xf32>
    %207 = vector.extract_strided_slice %187 {offsets = [0, 96], sizes = [32, 32], strides = [1, 1]} : vector<32x192xf32> to vector<32x32xf32>
    %208 = vector.extract_strided_slice %187 {offsets = [0, 160], sizes = [32, 32], strides = [1, 1]} : vector<32x192xf32> to vector<32x32xf32>
    %cst_105 = arith.constant dense<0.000000e+00> : vector<32x32xf32>
    %209 = tpu.matmul %206, %207, %cst_105 {dimension_numbers = #tpu.dot_dimension_numbers<[1], [1], [0], [0], [0, 0, 1, 0], [], []>} : vector<32x32xf32>, vector<32x32xf32>, vector<32x32xf32> -> vector<32x32xf32>
    %cst_106 = arith.constant 0.176776692 : f32
    %210 = vector.broadcast %cst_106 : f32 to vector<32x32xf32>
    %211 = arith.mulf %209, %210 : vector<32x32xf32>
    %212 = arith.addf %211, %22 : vector<32x32xf32>
    %cst_107 = arith.constant dense<0xFF800000> : vector<32xf32>
    %213 = vector.multi_reduction <maximumf>, %212, %cst_107 [1] : vector<32x32xf32> to vector<32xf32>
    %214 = vector.shape_cast %213 : vector<32xf32> to vector<32x1xf32>
    %215 = vector.broadcast %214 : vector<32x1xf32> to vector<32x32xf32>
    %216 = arith.subf %212, %215 : vector<32x32xf32>
    %217 = math.exp %216 : vector<32x32xf32>
    %cst_108 = arith.constant dense<0.000000e+00> : vector<32xf32>
    %218 = vector.multi_reduction <add>, %217, %cst_108 [1] : vector<32x32xf32> to vector<32xf32>
    %219 = vector.shape_cast %218 : vector<32xf32> to vector<32x1xf32>
    %cst_109 = arith.constant dense<0.000000e+00> : vector<32x32xf32>
    %220 = tpu.matmul %217, %208, %cst_109 {dimension_numbers = #tpu.dot_dimension_numbers<[1], [0], [0], [1], [0, 0, 1, 1], [], []>} : vector<32x32xf32>, vector<32x32xf32>, vector<32x32xf32> -> vector<32x32xf32>
    %221 = tpu.reciprocal %219 {approx = true} : vector<32x1xf32> -> vector<32x1xf32>
    %222 = vector.broadcast %221 : vector<32x1xf32> to vector<32x32xf32>
    %223 = arith.mulf %220, %222 : vector<32x32xf32>
    %224 = tpu.concatenate %205, %223 in 1 : vector<32x32xf32>, vector<32x32xf32> -> vector<32x64xf32>
    %c1_110 = arith.constant 1 : index
    %c0_111 = arith.constant 0 : index
    %c0_112 = arith.constant 0 : index
    %225 = vector.load %arg14[%c1_110, %c0_111, %c0_112] : memref<2x64x64xf32, #tpu.memory_space<vmem>>, vector<1x64x64xf32>
    %226 = vector.shape_cast %225 : vector<1x64x64xf32> to vector<64x64xf32>
    %cst_113 = arith.constant dense<0.000000e+00> : vector<32x64xf32>
    %227 = tpu.matmul %224, %226, %cst_113 {dimension_numbers = #tpu.dot_dimension_numbers<[1], [0], [0], [1], [0, 0, 1, 1], [], []>} : vector<32x64xf32>, vector<64x64xf32>, vector<32x64xf32> -> vector<32x64xf32>
    %228 = arith.addf %154, %227 : vector<32x64xf32>
    %c1_114 = arith.constant 1 : index
    %c0_115 = arith.constant 0 : index
    %c0_116 = arith.constant 0 : index
    %229 = vector.load %arg15[%c1_114, %c0_115, %c0_116] : memref<2x1x64xf32, #tpu.memory_space<vmem>>, vector<1x1x64xf32>
    %230 = vector.shape_cast %229 : vector<1x1x64xf32> to vector<1x64xf32>
    %231 = vector.broadcast %230 : vector<1x64xf32> to vector<32x64xf32>
    %232 = arith.addf %228, %231 : vector<32x64xf32>
    %c1_117 = arith.constant 1 : index
    %c0_118 = arith.constant 0 : index
    %c0_119 = arith.constant 0 : index
    %233 = vector.load %arg16[%c1_117, %c0_118, %c0_119] : memref<2x1x64xf32, #tpu.memory_space<vmem>>, vector<1x1x64xf32>
    %234 = vector.shape_cast %233 : vector<1x1x64xf32> to vector<1x64xf32>
    %c1_120 = arith.constant 1 : index
    %c0_121 = arith.constant 0 : index
    %c0_122 = arith.constant 0 : index
    %235 = vector.load %arg17[%c1_120, %c0_121, %c0_122] : memref<2x1x64xf32, #tpu.memory_space<vmem>>, vector<1x1x64xf32>
    %236 = vector.shape_cast %235 : vector<1x1x64xf32> to vector<1x64xf32>
    %cst_123 = arith.constant dense<0.000000e+00> : vector<32xf32>
    %237 = vector.multi_reduction <add>, %232, %cst_123 [1] : vector<32x64xf32> to vector<32xf32>
    %238 = vector.shape_cast %237 : vector<32xf32> to vector<32x1xf32>
    %cst_124 = arith.constant 6.400000e+01 : f32
    %239 = vector.broadcast %cst_124 : f32 to vector<32x1xf32>
    %240 = arith.divf %238, %239 : vector<32x1xf32>
    %241 = vector.broadcast %240 : vector<32x1xf32> to vector<32x64xf32>
    %242 = arith.subf %232, %241 : vector<32x64xf32>
    %243 = arith.mulf %242, %242 : vector<32x64xf32>
    %cst_125 = arith.constant dense<0.000000e+00> : vector<32xf32>
    %244 = vector.multi_reduction <add>, %243, %cst_125 [1] : vector<32x64xf32> to vector<32xf32>
    %245 = vector.shape_cast %244 : vector<32xf32> to vector<32x1xf32>
    %cst_126 = arith.constant 6.400000e+01 : f32
    %246 = vector.broadcast %cst_126 : f32 to vector<32x1xf32>
    %247 = arith.divf %245, %246 : vector<32x1xf32>
    %248 = vector.broadcast %240 : vector<32x1xf32> to vector<32x64xf32>
    %249 = arith.subf %232, %248 : vector<32x64xf32>
    %cst_127 = arith.constant 9.99999974E-6 : f32
    %250 = vector.broadcast %cst_127 : f32 to vector<32x1xf32>
    %251 = arith.addf %247, %250 : vector<32x1xf32>
    %252 = math.rsqrt %251 : vector<32x1xf32>
    %253 = vector.broadcast %252 : vector<32x1xf32> to vector<32x64xf32>
    %254 = arith.mulf %249, %253 : vector<32x64xf32>
    %255 = vector.broadcast %234 : vector<1x64xf32> to vector<32x64xf32>
    %256 = arith.mulf %254, %255 : vector<32x64xf32>
    %257 = vector.broadcast %236 : vector<1x64xf32> to vector<32x64xf32>
    %258 = arith.addf %256, %257 : vector<32x64xf32>
    %c1_128 = arith.constant 1 : index
    %c0_129 = arith.constant 0 : index
    %c0_130 = arith.constant 0 : index
    %259 = vector.load %arg18[%c1_128, %c0_129, %c0_130] : memref<2x64x256xf32, #tpu.memory_space<vmem>>, vector<1x64x256xf32>
    %260 = vector.shape_cast %259 : vector<1x64x256xf32> to vector<64x256xf32>
    %cst_131 = arith.constant dense<0.000000e+00> : vector<32x256xf32>
    %261 = tpu.matmul %258, %260, %cst_131 {dimension_numbers = #tpu.dot_dimension_numbers<[1], [0], [0], [1], [0, 0, 1, 1], [], []>} : vector<32x64xf32>, vector<64x256xf32>, vector<32x256xf32> -> vector<32x256xf32>
    %c1_132 = arith.constant 1 : index
    %c0_133 = arith.constant 0 : index
    %c0_134 = arith.constant 0 : index
    %262 = vector.load %arg19[%c1_132, %c0_133, %c0_134] : memref<2x1x256xf32, #tpu.memory_space<vmem>>, vector<1x1x256xf32>
    %263 = vector.shape_cast %262 : vector<1x1x256xf32> to vector<1x256xf32>
    %264 = vector.broadcast %263 : vector<1x256xf32> to vector<32x256xf32>
    %265 = arith.addf %261, %264 : vector<32x256xf32>
    %266 = arith.mulf %265, %265 : vector<32x256xf32>
    %267 = arith.mulf %265, %266 : vector<32x256xf32>
    %cst_135 = arith.constant 4.471500e-02 : f32
    %268 = vector.broadcast %cst_135 : f32 to vector<32x256xf32>
    %269 = arith.mulf %268, %267 : vector<32x256xf32>
    %270 = arith.addf %265, %269 : vector<32x256xf32>
    %cst_136 = arith.constant 0.797884583 : f32
    %271 = vector.broadcast %cst_136 : f32 to vector<32x256xf32>
    %272 = arith.mulf %271, %270 : vector<32x256xf32>
    %273 = math.tanh %272 : vector<32x256xf32>
    %cst_137 = arith.constant 1.000000e+00 : f32
    %274 = vector.broadcast %cst_137 : f32 to vector<32x256xf32>
    %275 = arith.addf %274, %273 : vector<32x256xf32>
    %cst_138 = arith.constant 5.000000e-01 : f32
    %276 = vector.broadcast %cst_138 : f32 to vector<32x256xf32>
    %277 = arith.mulf %276, %275 : vector<32x256xf32>
    %278 = arith.mulf %265, %277 : vector<32x256xf32>
    %c1_139 = arith.constant 1 : index
    %c0_140 = arith.constant 0 : index
    %c0_141 = arith.constant 0 : index
    %279 = vector.load %arg20[%c1_139, %c0_140, %c0_141] : memref<2x256x64xf32, #tpu.memory_space<vmem>>, vector<1x256x64xf32>
    %280 = vector.shape_cast %279 : vector<1x256x64xf32> to vector<256x64xf32>
    %cst_142 = arith.constant dense<0.000000e+00> : vector<32x64xf32>
    %281 = tpu.matmul %278, %280, %cst_142 {dimension_numbers = #tpu.dot_dimension_numbers<[1], [0], [0], [1], [0, 0, 1, 1], [], []>} : vector<32x256xf32>, vector<256x64xf32>, vector<32x64xf32> -> vector<32x64xf32>
    %282 = arith.addf %232, %281 : vector<32x64xf32>
    %c1_143 = arith.constant 1 : index
    %c0_144 = arith.constant 0 : index
    %c0_145 = arith.constant 0 : index
    %283 = vector.load %arg21[%c1_143, %c0_144, %c0_145] : memref<2x1x64xf32, #tpu.memory_space<vmem>>, vector<1x1x64xf32>
    %284 = vector.shape_cast %283 : vector<1x1x64xf32> to vector<1x64xf32>
    %285 = vector.broadcast %284 : vector<1x64xf32> to vector<32x64xf32>
    %286 = arith.addf %282, %285 : vector<32x64xf32>
    %c0_146 = arith.constant 0 : index
    %c0_147 = arith.constant 0 : index
    %287 = vector.load %arg8[%c0_146, %c0_147] : memref<16x32xf32, #tpu.memory_space<vmem>>, vector<16x32xf32>
    %cst_148 = arith.constant dense<0.000000e+00> : vector<16x64xf32>
    %288 = tpu.matmul %287, %286, %cst_148 {dimension_numbers = #tpu.dot_dimension_numbers<[1], [0], [0], [1], [0, 0, 1, 1], [], []>} : vector<16x32xf32>, vector<32x64xf32>, vector<16x64xf32> -> vector<16x64xf32>
    %cst_149 = arith.constant dense<0.000000e+00> : vector<16x256xf32>
    %289 = tpu.matmul %288, %1, %cst_149 {dimension_numbers = #tpu.dot_dimension_numbers<[1], [1], [0], [0], [0, 0, 1, 0], [], []>} : vector<16x64xf32>, vector<256x64xf32>, vector<16x256xf32> -> vector<16x256xf32>
    %c0_150 = arith.constant 0 : index
    %c0_151 = arith.constant 0 : index
    %290 = vector.load %arg22[%c0_150, %c0_151] : memref<16x256xf32, #tpu.memory_space<vmem>>, vector<16x256xf32>
    tpu.vector_store %arg22[%c0_150, %c0_151], %289 {strides = array<i32>} : memref<16x256xf32, #tpu.memory_space<vmem>>, vector<16x256xf32>,
    %c0_152 = arith.constant 0 : index
    %c0_153 = arith.constant 0 : index
    %291 = vector.load %arg9[%c0_152, %c0_153] : memref<4x32xf32, #tpu.memory_space<vmem>>, vector<4x32xf32>
    %cst_154 = arith.constant dense<0.000000e+00> : vector<4x64xf32>
    %292 = tpu.matmul %291, %286, %cst_154 {dimension_numbers = #tpu.dot_dimension_numbers<[1], [0], [0], [1], [0, 0, 1, 1], [], []>} : vector<4x32xf32>, vector<32x64xf32>, vector<4x64xf32> -> vector<4x64xf32>
    %c0_155 = arith.constant 0 : index
    %c0_156 = arith.constant 0 : index
    %293 = vector.load %arg1[%c0_155, %c0_156] : memref<4x64xf32, #tpu.memory_space<vmem>>, vector<4x64xf32>
    %294 = arith.addf %293, %292 : vector<4x64xf32>
    %cst_157 = arith.constant 5.000000e-01 : f32
    %295 = vector.broadcast %cst_157 : f32 to vector<4x64xf32>
    %296 = arith.mulf %295, %294 : vector<4x64xf32>
    %c0_158 = arith.constant 0 : index
    %c0_159 = arith.constant 0 : index
    %297 = vector.load %arg23[%c0_158, %c0_159] : memref<4x64xf32, #tpu.memory_space<vmem>>, vector<4x64xf32>
    tpu.vector_store %arg23[%c0_158, %c0_159], %296 {strides = array<i32>} : memref<4x64xf32, #tpu.memory_space<vmem>>, vector<4x64xf32>,
    return
  }
}

module attributes {stable_mosaic.version = 11 : i64} {
  func.func @block_forward_kernel(%arg0: memref<16x1xi32, #tpu.memory_space<vmem>>, %arg1: memref<4x64xf32, #tpu.memory_space<vmem>>, %arg2: memref<1x64xf32, #tpu.memory_space<vmem>>, %arg3: memref<32x32xf32, #tpu.memory_space<vmem>>, %arg4: memref<256x64xbf16, #tpu.memory_space<vmem>>, %arg5: memref<32x16xf32, #tpu.memory_space<vmem>>, %arg6: memref<32x4xf32, #tpu.memory_space<vmem>>, %arg7: memref<32x1xf32, #tpu.memory_space<vmem>>, %arg8: memref<16x32xf32, #tpu.memory_space<vmem>>, %arg9: memref<4x32xf32, #tpu.memory_space<vmem>>, %arg10: memref<2x1x64xf32, #tpu.memory_space<vmem>>, %arg11: memref<2x1x64xf32, #tpu.memory_space<vmem>>, %arg12: memref<2x64x192xf32, #tpu.memory_space<vmem>>, %arg13: memref<2x1x192xf32, #tpu.memory_space<vmem>>, %arg14: memref<2x64x64xf32, #tpu.memory_space<vmem>>, %arg15: memref<2x1x64xf32, #tpu.memory_space<vmem>>, %arg16: memref<2x1x64xf32, #tpu.memory_space<vmem>>, %arg17: memref<2x1x64xf32, #tpu.memory_space<vmem>>, %arg18: memref<2x64x256xf32, #tpu.memory_space<vmem>>, %arg19: memref<2x1x256xf32, #tpu.memory_space<vmem>>, %arg20: memref<2x256x64xf32, #tpu.memory_space<vmem>>, %arg21: memref<2x1x64xf32, #tpu.memory_space<vmem>>, %arg22: memref<16x256xf32, #tpu.memory_space<vmem>>, %arg23: memref<4x64xf32, #tpu.memory_space<vmem>>) attributes {dimension_semantics = [], scalar_prefetch = 0 : i64, scratch_operands = 0 : i64, tpu.core_type = #tpu.core_type<tc>} {
    %c0 = arith.constant 0 : index
    %c0_0 = arith.constant 0 : index
    %0 = vector.load %arg4[%c0, %c0_0] : memref<256x64xbf16, #tpu.memory_space<vmem>>, vector<256x64xbf16>
    %1 = arith.extf %0 : vector<256x64xbf16> to vector<256x64xf32>
    %2 = tpu.iota {dimensions = array<i32: 1>} : vector<16x256xi32>
    %c0_1 = arith.constant 0 : index
    %c0_2 = arith.constant 0 : index
    %3 = vector.load %arg0[%c0_1, %c0_2] : memref<16x1xi32, #tpu.memory_space<vmem>>, vector<16x1xi32>
    %4 = vector.broadcast %3 : vector<16x1xi32> to vector<16x256xi32>
    %5 = arith.cmpi eq, %4, %2 : vector<16x256xi32>
    %cst = arith.constant 1.000000e+00 : f32
    %cst_3 = arith.constant 0.000000e+00 : f32
    %6 = vector.broadcast %cst : f32 to vector<16x256xf32>
    %7 = vector.broadcast %cst_3 : f32 to vector<16x256xf32>
    %8 = arith.select %5, %6, %7 : vector<16x256xi1>, vector<16x256xf32>
    %cst_4 = arith.constant dense<0.000000e+00> : vector<16x64xf32>
    %9 = tpu.matmul %8, %1, %cst_4 {dimension_numbers = #tpu.dot_dimension_numbers<[1], [0], [0], [1], [0, 0, 1, 1], [], []>} : vector<16x256xf32>, vector<256x64xf32>, vector<16x64xf32> -> vector<16x64xf32>
    %c0_5 = arith.constant 0 : index
    %c0_6 = arith.constant 0 : index
    %10 = vector.load %arg5[%c0_5, %c0_6] : memref<32x16xf32, #tpu.memory_space<vmem>>, vector<32x16xf32>
    %cst_7 = arith.constant dense<0.000000e+00> : vector<32x64xf32>
    %11 = tpu.matmul %10, %9, %cst_7 {dimension_numbers = #tpu.dot_dimension_numbers<[1], [0], [0], [1], [0, 0, 1, 1], [], []>} : vector<32x16xf32>, vector<16x64xf32>, vector<32x64xf32> -> vector<32x64xf32>
    %c0_8 = arith.constant 0 : index
    %c0_9 = arith.constant 0 : index
    %12 = vector.load %arg6[%c0_8, %c0_9] : memref<32x4xf32, #tpu.memory_space<vmem>>, vector<32x4xf32>
    %c0_10 = arith.constant 0 : index
    %c0_11 = arith.constant 0 : index
    %13 = vector.load %arg1[%c0_10, %c0_11] : memref<4x64xf32, #tpu.memory_space<vmem>>, vector<4x64xf32>
    %cst_12 = arith.constant dense<0.000000e+00> : vector<32x64xf32>
    %14 = tpu.matmul %12, %13, %cst_12 {dimension_numbers = #tpu.dot_dimension_numbers<[1], [0], [0], [1], [0, 0, 1, 1], [], []>} : vector<32x4xf32>, vector<4x64xf32>, vector<32x64xf32> -> vector<32x64xf32>
    %15 = arith.addf %11, %14 : vector<32x64xf32>
    %c0_13 = arith.constant 0 : index
    %c0_14 = arith.constant 0 : index
    %16 = vector.load %arg7[%c0_13, %c0_14] : memref<32x1xf32, #tpu.memory_space<vmem>>, vector<32x1xf32>
    %c0_15 = arith.constant 0 : index
    %c0_16 = arith.constant 0 : index
    %17 = vector.load %arg2[%c0_15, %c0_16] : memref<1x64xf32, #tpu.memory_space<vmem>>, vector<1x64xf32>
    %18 = vector.broadcast %16 : vector<32x1xf32> to vector<32x64xf32>
    %19 = vector.broadcast %17 : vector<1x64xf32> to vector<32x64xf32>
    %20 = arith.mulf %18, %19 : vector<32x64xf32>
    %21 = arith.addf %15, %20 : vector<32x64xf32>
    %c0_17 = arith.constant 0 : index
    %c0_18 = arith.constant 0 : index
    %22 = vector.load %arg3[%c0_17, %c0_18] : memref<32x32xf32, #tpu.memory_space<vmem>>, vector<32x32xf32>
    %c0_19 = arith.constant 0 : index
    %c0_20 = arith.constant 0 : index
    %c0_21 = arith.constant 0 : index
    %23 = vector.load %arg10[%c0_19, %c0_20, %c0_21] : memref<2x1x64xf32, #tpu.memory_space<vmem>>, vector<1x1x64xf32>
    %24 = vector.shape_cast %23 : vector<1x1x64xf32> to vector<1x64xf32>
    %c0_22 = arith.constant 0 : index
    %c0_23 = arith.constant 0 : index
    %c0_24 = arith.constant 0 : index
    %25 = vector.load %arg11[%c0_22, %c0_23, %c0_24] : memref<2x1x64xf32, #tpu.memory_space<vmem>>, vector<1x1x64xf32>
    %26 = vector.shape_cast %25 : vector<1x1x64xf32> to vector<1x64xf32>
    %cst_25 = arith.constant dense<0.000000e+00> : vector<32xf32>
    %27 = vector.multi_reduction <add>, %21, %cst_25 [1] : vector<32x64xf32> to vector<32xf32>
    %28 = vector.shape_cast %27 : vector<32xf32> to vector<32x1xf32>
    %cst_26 = arith.constant 6.400000e+01 : f32
    %29 = vector.broadcast %cst_26 : f32 to vector<32x1xf32>
    %30 = arith.divf %28, %29 : vector<32x1xf32>
    %31 = vector.broadcast %30 : vector<32x1xf32> to vector<32x64xf32>
    %32 = arith.subf %21, %31 : vector<32x64xf32>
    %33 = arith.mulf %32, %32 : vector<32x64xf32>
    %cst_27 = arith.constant dense<0.000000e+00> : vector<32xf32>
    %34 = vector.multi_reduction <add>, %33, %cst_27 [1] : vector<32x64xf32> to vector<32xf32>
    %35 = vector.shape_cast %34 : vector<32xf32> to vector<32x1xf32>
    %cst_28 = arith.constant 6.400000e+01 : f32
    %36 = vector.broadcast %cst_28 : f32 to vector<32x1xf32>
    %37 = arith.divf %35, %36 : vector<32x1xf32>
    %38 = vector.broadcast %30 : vector<32x1xf32> to vector<32x64xf32>
    %39 = arith.subf %21, %38 : vector<32x64xf32>
    %cst_29 = arith.constant 9.99999974E-6 : f32
    %40 = vector.broadcast %cst_29 : f32 to vector<32x1xf32>
    %41 = arith.addf %37, %40 : vector<32x1xf32>
    %42 = math.rsqrt %41 : vector<32x1xf32>
    %43 = vector.broadcast %42 : vector<32x1xf32> to vector<32x64xf32>
    %44 = arith.mulf %39, %43 : vector<32x64xf32>
    %45 = vector.broadcast %24 : vector<1x64xf32> to vector<32x64xf32>
    %46 = arith.mulf %44, %45 : vector<32x64xf32>
    %47 = vector.broadcast %26 : vector<1x64xf32> to vector<32x64xf32>
    %48 = arith.addf %46, %47 : vector<32x64xf32>
    %c0_30 = arith.constant 0 : index
    %c0_31 = arith.constant 0 : index
    %c0_32 = arith.constant 0 : index
    %49 = vector.load %arg12[%c0_30, %c0_31, %c0_32] : memref<2x64x192xf32, #tpu.memory_space<vmem>>, vector<1x64x192xf32>
    %50 = vector.shape_cast %49 : vector<1x64x192xf32> to vector<64x192xf32>
    %cst_33 = arith.constant dense<0.000000e+00> : vector<32x192xf32>
    %51 = tpu.matmul %48, %50, %cst_33 {dimension_numbers = #tpu.dot_dimension_numbers<[1], [0], [0], [1], [0, 0, 1, 1], [], []>} : vector<32x64xf32>, vector<64x192xf32>, vector<32x192xf32> -> vector<32x192xf32>
    %c0_34 = arith.constant 0 : index
    %c0_35 = arith.constant 0 : index
    %c0_36 = arith.constant 0 : index
    %52 = vector.load %arg13[%c0_34, %c0_35, %c0_36] : memref<2x1x192xf32, #tpu.memory_space<vmem>>, vector<1x1x192xf32>
    %53 = vector.shape_cast %52 : vector<1x1x192xf32> to vector<1x192xf32>
    %54 = vector.broadcast %53 : vector<1x192xf32> to vector<32x192xf32>
    %55 = arith.addf %51, %54 : vector<32x192xf32>
    %56 = vector.extract_strided_slice %55 {offsets = [0, 0], sizes = [32, 32], strides = [1, 1]} : vector<32x192xf32> to vector<32x32xf32>
    %57 = vector.extract_strided_slice %55 {offsets = [0, 64], sizes = [32, 32], strides = [1, 1]} : vector<32x192xf32> to vector<32x32xf32>
    %58 = vector.extract_strided_slice %55 {offsets = [0, 128], sizes = [32, 32], strides = [1, 1]} : vector<32x192xf32> to vector<32x32xf32>
    %cst_37 = arith.constant dense<0.000000e+00> : vector<32x32xf32>
    %59 = tpu.matmul %56, %57, %cst_37 {dimension_numbers = #tpu.dot_dimension_numbers<[1], [1], [0], [0], [0, 0, 1, 0], [], []>} : vector<32x32xf32>, vector<32x32xf32>, vector<32x32xf32> -> vector<32x32xf32>
    %cst_38 = arith.constant 0.176776692 : f32
    %60 = vector.broadcast %cst_38 : f32 to vector<32x32xf32>
    %61 = arith.mulf %59, %60 : vector<32x32xf32>
    %62 = arith.addf %61, %22 : vector<32x32xf32>
    %cst_39 = arith.constant dense<0xFF800000> : vector<32xf32>
    %63 = vector.multi_reduction <maximumf>, %62, %cst_39 [1] : vector<32x32xf32> to vector<32xf32>
    %64 = vector.shape_cast %63 : vector<32xf32> to vector<32x1xf32>
    %65 = vector.broadcast %64 : vector<32x1xf32> to vector<32x32xf32>
    %66 = arith.subf %62, %65 : vector<32x32xf32>
    %67 = math.exp %66 : vector<32x32xf32>
    %cst_40 = arith.constant dense<0.000000e+00> : vector<32xf32>
    %68 = vector.multi_reduction <add>, %67, %cst_40 [1] : vector<32x32xf32> to vector<32xf32>
    %69 = vector.shape_cast %68 : vector<32xf32> to vector<32x1xf32>
    %cst_41 = arith.constant dense<0.000000e+00> : vector<32x32xf32>
    %70 = tpu.matmul %67, %58, %cst_41 {dimension_numbers = #tpu.dot_dimension_numbers<[1], [0], [0], [1], [0, 0, 1, 1], [], []>} : vector<32x32xf32>, vector<32x32xf32>, vector<32x32xf32> -> vector<32x32xf32>
    %71 = tpu.reciprocal %69 {approx = true} : vector<32x1xf32> -> vector<32x1xf32>
    %72 = vector.broadcast %71 : vector<32x1xf32> to vector<32x32xf32>
    %73 = arith.mulf %70, %72 : vector<32x32xf32>
    %74 = vector.extract_strided_slice %55 {offsets = [0, 32], sizes = [32, 32], strides = [1, 1]} : vector<32x192xf32> to vector<32x32xf32>
    %75 = vector.extract_strided_slice %55 {offsets = [0, 96], sizes = [32, 32], strides = [1, 1]} : vector<32x192xf32> to vector<32x32xf32>
    %76 = vector.extract_strided_slice %55 {offsets = [0, 160], sizes = [32, 32], strides = [1, 1]} : vector<32x192xf32> to vector<32x32xf32>
    %cst_42 = arith.constant dense<0.000000e+00> : vector<32x32xf32>
    %77 = tpu.matmul %74, %75, %cst_42 {dimension_numbers = #tpu.dot_dimension_numbers<[1], [1], [0], [0], [0, 0, 1, 0], [], []>} : vector<32x32xf32>, vector<32x32xf32>, vector<32x32xf32> -> vector<32x32xf32>
    %cst_43 = arith.constant 0.176776692 : f32
    %78 = vector.broadcast %cst_43 : f32 to vector<32x32xf32>
    %79 = arith.mulf %77, %78 : vector<32x32xf32>
    %80 = arith.addf %79, %22 : vector<32x32xf32>
    %cst_44 = arith.constant dense<0xFF800000> : vector<32xf32>
    %81 = vector.multi_reduction <maximumf>, %80, %cst_44 [1] : vector<32x32xf32> to vector<32xf32>
    %82 = vector.shape_cast %81 : vector<32xf32> to vector<32x1xf32>
    %83 = vector.broadcast %82 : vector<32x1xf32> to vector<32x32xf32>
    %84 = arith.subf %80, %83 : vector<32x32xf32>
    %85 = math.exp %84 : vector<32x32xf32>
    %cst_45 = arith.constant dense<0.000000e+00> : vector<32xf32>
    %86 = vector.multi_reduction <add>, %85, %cst_45 [1] : vector<32x32xf32> to vector<32xf32>
    %87 = vector.shape_cast %86 : vector<32xf32> to vector<32x1xf32>
    %cst_46 = arith.constant dense<0.000000e+00> : vector<32x32xf32>
    %88 = tpu.matmul %85, %76, %cst_46 {dimension_numbers = #tpu.dot_dimension_numbers<[1], [0], [0], [1], [0, 0, 1, 1], [], []>} : vector<32x32xf32>, vector<32x32xf32>, vector<32x32xf32> -> vector<32x32xf32>
    %89 = tpu.reciprocal %87 {approx = true} : vector<32x1xf32> -> vector<32x1xf32>
    %90 = vector.broadcast %89 : vector<32x1xf32> to vector<32x32xf32>
    %91 = arith.mulf %88, %90 : vector<32x32xf32>
    %92 = tpu.concatenate %73, %91 in 1 : vector<32x32xf32>, vector<32x32xf32> -> vector<32x64xf32>
    %c0_47 = arith.constant 0 : index
    %c0_48 = arith.constant 0 : index
    %c0_49 = arith.constant 0 : index
    %93 = vector.load %arg14[%c0_47, %c0_48, %c0_49] : memref<2x64x64xf32, #tpu.memory_space<vmem>>, vector<1x64x64xf32>
    %94 = vector.shape_cast %93 : vector<1x64x64xf32> to vector<64x64xf32>
    %cst_50 = arith.constant dense<0.000000e+00> : vector<32x64xf32>
    %95 = tpu.matmul %92, %94, %cst_50 {dimension_numbers = #tpu.dot_dimension_numbers<[1], [0], [0], [1], [0, 0, 1, 1], [], []>} : vector<32x64xf32>, vector<64x64xf32>, vector<32x64xf32> -> vector<32x64xf32>
    %96 = arith.addf %21, %95 : vector<32x64xf32>
    %c0_51 = arith.constant 0 : index
    %c0_52 = arith.constant 0 : index
    %c0_53 = arith.constant 0 : index
    %97 = vector.load %arg15[%c0_51, %c0_52, %c0_53] : memref<2x1x64xf32, #tpu.memory_space<vmem>>, vector<1x1x64xf32>
    %98 = vector.shape_cast %97 : vector<1x1x64xf32> to vector<1x64xf32>
    %99 = vector.broadcast %98 : vector<1x64xf32> to vector<32x64xf32>
    %100 = arith.addf %96, %99 : vector<32x64xf32>
    %c0_54 = arith.constant 0 : index
    %c0_55 = arith.constant 0 : index
    %c0_56 = arith.constant 0 : index
    %101 = vector.load %arg16[%c0_54, %c0_55, %c0_56] : memref<2x1x64xf32, #tpu.memory_space<vmem>>, vector<1x1x64xf32>
    %102 = vector.shape_cast %101 : vector<1x1x64xf32> to vector<1x64xf32>
    %c0_57 = arith.constant 0 : index
    %c0_58 = arith.constant 0 : index
    %c0_59 = arith.constant 0 : index
    %103 = vector.load %arg17[%c0_57, %c0_58, %c0_59] : memref<2x1x64xf32, #tpu.memory_space<vmem>>, vector<1x1x64xf32>
    %104 = vector.shape_cast %103 : vector<1x1x64xf32> to vector<1x64xf32>
    %cst_60 = arith.constant dense<0.000000e+00> : vector<32xf32>
    %105 = vector.multi_reduction <add>, %100, %cst_60 [1] : vector<32x64xf32> to vector<32xf32>
    %106 = vector.shape_cast %105 : vector<32xf32> to vector<32x1xf32>
    %cst_61 = arith.constant 6.400000e+01 : f32
    %107 = vector.broadcast %cst_61 : f32 to vector<32x1xf32>
    %108 = arith.divf %106, %107 : vector<32x1xf32>
    %109 = vector.broadcast %108 : vector<32x1xf32> to vector<32x64xf32>
    %110 = arith.subf %100, %109 : vector<32x64xf32>
    %111 = arith.mulf %110, %110 : vector<32x64xf32>
    %cst_62 = arith.constant dense<0.000000e+00> : vector<32xf32>
    %112 = vector.multi_reduction <add>, %111, %cst_62 [1] : vector<32x64xf32> to vector<32xf32>
    %113 = vector.shape_cast %112 : vector<32xf32> to vector<32x1xf32>
    %cst_63 = arith.constant 6.400000e+01 : f32
    %114 = vector.broadcast %cst_63 : f32 to vector<32x1xf32>
    %115 = arith.divf %113, %114 : vector<32x1xf32>
    %116 = vector.broadcast %108 : vector<32x1xf32> to vector<32x64xf32>
    %117 = arith.subf %100, %116 : vector<32x64xf32>
    %cst_64 = arith.constant 9.99999974E-6 : f32
    %118 = vector.broadcast %cst_64 : f32 to vector<32x1xf32>
    %119 = arith.addf %115, %118 : vector<32x1xf32>
    %120 = math.rsqrt %119 : vector<32x1xf32>
    %121 = vector.broadcast %120 : vector<32x1xf32> to vector<32x64xf32>
    %122 = arith.mulf %117, %121 : vector<32x64xf32>
    %123 = vector.broadcast %102 : vector<1x64xf32> to vector<32x64xf32>
    %124 = arith.mulf %122, %123 : vector<32x64xf32>
    %125 = vector.broadcast %104 : vector<1x64xf32> to vector<32x64xf32>
    %126 = arith.addf %124, %125 : vector<32x64xf32>
    %c0_65 = arith.constant 0 : index
    %c0_66 = arith.constant 0 : index
    %c0_67 = arith.constant 0 : index
    %127 = vector.load %arg18[%c0_65, %c0_66, %c0_67] : memref<2x64x256xf32, #tpu.memory_space<vmem>>, vector<1x64x256xf32>
    %128 = vector.shape_cast %127 : vector<1x64x256xf32> to vector<64x256xf32>
    %cst_68 = arith.constant dense<0.000000e+00> : vector<32x256xf32>
    %129 = tpu.matmul %126, %128, %cst_68 {dimension_numbers = #tpu.dot_dimension_numbers<[1], [0], [0], [1], [0, 0, 1, 1], [], []>} : vector<32x64xf32>, vector<64x256xf32>, vector<32x256xf32> -> vector<32x256xf32>
    %c0_69 = arith.constant 0 : index
    %c0_70 = arith.constant 0 : index
    %c0_71 = arith.constant 0 : index
    %130 = vector.load %arg19[%c0_69, %c0_70, %c0_71] : memref<2x1x256xf32, #tpu.memory_space<vmem>>, vector<1x1x256xf32>
    %131 = vector.shape_cast %130 : vector<1x1x256xf32> to vector<1x256xf32>
    %132 = vector.broadcast %131 : vector<1x256xf32> to vector<32x256xf32>
    %133 = arith.addf %129, %132 : vector<32x256xf32>
    %134 = arith.mulf %133, %133 : vector<32x256xf32>
    %135 = arith.mulf %133, %134 : vector<32x256xf32>
    %cst_72 = arith.constant 4.471500e-02 : f32
    %136 = vector.broadcast %cst_72 : f32 to vector<32x256xf32>
    %137 = arith.mulf %136, %135 : vector<32x256xf32>
    %138 = arith.addf %133, %137 : vector<32x256xf32>
    %cst_73 = arith.constant 0.797884583 : f32
    %139 = vector.broadcast %cst_73 : f32 to vector<32x256xf32>
    %140 = arith.mulf %139, %138 : vector<32x256xf32>
    %141 = math.tanh %140 : vector<32x256xf32>
    %cst_74 = arith.constant 1.000000e+00 : f32
    %142 = vector.broadcast %cst_74 : f32 to vector<32x256xf32>
    %143 = arith.addf %142, %141 : vector<32x256xf32>
    %cst_75 = arith.constant 5.000000e-01 : f32
    %144 = vector.broadcast %cst_75 : f32 to vector<32x256xf32>
    %145 = arith.mulf %144, %143 : vector<32x256xf32>
    %146 = arith.mulf %133, %145 : vector<32x256xf32>
    %c0_76 = arith.constant 0 : index
    %c0_77 = arith.constant 0 : index
    %c0_78 = arith.constant 0 : index
    %147 = vector.load %arg20[%c0_76, %c0_77, %c0_78] : memref<2x256x64xf32, #tpu.memory_space<vmem>>, vector<1x256x64xf32>
    %148 = vector.shape_cast %147 : vector<1x256x64xf32> to vector<256x64xf32>
    %cst_79 = arith.constant dense<0.000000e+00> : vector<32x64xf32>
    %149 = tpu.matmul %146, %148, %cst_79 {dimension_numbers = #tpu.dot_dimension_numbers<[1], [0], [0], [1], [0, 0, 1, 1], [], []>} : vector<32x256xf32>, vector<256x64xf32>, vector<32x64xf32> -> vector<32x64xf32>
    %150 = arith.addf %100, %149 : vector<32x64xf32>
    %c0_80 = arith.constant 0 : index
    %c0_81 = arith.constant 0 : index
    %c0_82 = arith.constant 0 : index
    %151 = vector.load %arg21[%c0_80, %c0_81, %c0_82] : memref<2x1x64xf32, #tpu.memory_space<vmem>>, vector<1x1x64xf32>
    %152 = vector.shape_cast %151 : vector<1x1x64xf32> to vector<1x64xf32>
    %153 = vector.broadcast %152 : vector<1x64xf32> to vector<32x64xf32>
    %154 = arith.addf %150, %153 : vector<32x64xf32>
    %c1 = arith.constant 1 : index
    %c0_83 = arith.constant 0 : index
    %c0_84 = arith.constant 0 : index
    %155 = vector.load %arg10[%c1, %c0_83, %c0_84] : memref<2x1x64xf32, #tpu.memory_space<vmem>>, vector<1x1x64xf32>
    %156 = vector.shape_cast %155 : vector<1x1x64xf32> to vector<1x64xf32>
    %c1_85 = arith.constant 1 : index
    %c0_86 = arith.constant 0 : index
    %c0_87 = arith.constant 0 : index
    %157 = vector.load %arg11[%c1_85, %c0_86, %c0_87] : memref<2x1x64xf32, #tpu.memory_space<vmem>>, vector<1x1x64xf32>
    %158 = vector.shape_cast %157 : vector<1x1x64xf32> to vector<1x64xf32>
    %cst_88 = arith.constant dense<0.000000e+00> : vector<32xf32>
    %159 = vector.multi_reduction <add>, %154, %cst_88 [1] : vector<32x64xf32> to vector<32xf32>
    %160 = vector.shape_cast %159 : vector<32xf32> to vector<32x1xf32>
    %cst_89 = arith.constant 6.400000e+01 : f32
    %161 = vector.broadcast %cst_89 : f32 to vector<32x1xf32>
    %162 = arith.divf %160, %161 : vector<32x1xf32>
    %163 = vector.broadcast %162 : vector<32x1xf32> to vector<32x64xf32>
    %164 = arith.subf %154, %163 : vector<32x64xf32>
    %165 = arith.mulf %164, %164 : vector<32x64xf32>
    %cst_90 = arith.constant dense<0.000000e+00> : vector<32xf32>
    %166 = vector.multi_reduction <add>, %165, %cst_90 [1] : vector<32x64xf32> to vector<32xf32>
    %167 = vector.shape_cast %166 : vector<32xf32> to vector<32x1xf32>
    %cst_91 = arith.constant 6.400000e+01 : f32
    %168 = vector.broadcast %cst_91 : f32 to vector<32x1xf32>
    %169 = arith.divf %167, %168 : vector<32x1xf32>
    %170 = vector.broadcast %162 : vector<32x1xf32> to vector<32x64xf32>
    %171 = arith.subf %154, %170 : vector<32x64xf32>
    %cst_92 = arith.constant 9.99999974E-6 : f32
    %172 = vector.broadcast %cst_92 : f32 to vector<32x1xf32>
    %173 = arith.addf %169, %172 : vector<32x1xf32>
    %174 = math.rsqrt %173 : vector<32x1xf32>
    %175 = vector.broadcast %174 : vector<32x1xf32> to vector<32x64xf32>
    %176 = arith.mulf %171, %175 : vector<32x64xf32>
    %177 = vector.broadcast %156 : vector<1x64xf32> to vector<32x64xf32>
    %178 = arith.mulf %176, %177 : vector<32x64xf32>
    %179 = vector.broadcast %158 : vector<1x64xf32> to vector<32x64xf32>
    %180 = arith.addf %178, %179 : vector<32x64xf32>
    %c1_93 = arith.constant 1 : index
    %c0_94 = arith.constant 0 : index
    %c0_95 = arith.constant 0 : index
    %181 = vector.load %arg12[%c1_93, %c0_94, %c0_95] : memref<2x64x192xf32, #tpu.memory_space<vmem>>, vector<1x64x192xf32>
    %182 = vector.shape_cast %181 : vector<1x64x192xf32> to vector<64x192xf32>
    %cst_96 = arith.constant dense<0.000000e+00> : vector<32x192xf32>
    %183 = tpu.matmul %180, %182, %cst_96 {dimension_numbers = #tpu.dot_dimension_numbers<[1], [0], [0], [1], [0, 0, 1, 1], [], []>} : vector<32x64xf32>, vector<64x192xf32>, vector<32x192xf32> -> vector<32x192xf32>
    %c1_97 = arith.constant 1 : index
    %c0_98 = arith.constant 0 : index
    %c0_99 = arith.constant 0 : index
    %184 = vector.load %arg13[%c1_97, %c0_98, %c0_99] : memref<2x1x192xf32, #tpu.memory_space<vmem>>, vector<1x1x192xf32>
    %185 = vector.shape_cast %184 : vector<1x1x192xf32> to vector<1x192xf32>
    %186 = vector.broadcast %185 : vector<1x192xf32> to vector<32x192xf32>
    %187 = arith.addf %183, %186 : vector<32x192xf32>
    %188 = vector.extract_strided_slice %187 {offsets = [0, 0], sizes = [32, 32], strides = [1, 1]} : vector<32x192xf32> to vector<32x32xf32>
    %189 = vector.extract_strided_slice %187 {offsets = [0, 64], sizes = [32, 32], strides = [1, 1]} : vector<32x192xf32> to vector<32x32xf32>
    %190 = vector.extract_strided_slice %187 {offsets = [0, 128], sizes = [32, 32], strides = [1, 1]} : vector<32x192xf32> to vector<32x32xf32>
    %cst_100 = arith.constant dense<0.000000e+00> : vector<32x32xf32>
    %191 = tpu.matmul %188, %189, %cst_100 {dimension_numbers = #tpu.dot_dimension_numbers<[1], [1], [0], [0], [0, 0, 1, 0], [], []>} : vector<32x32xf32>, vector<32x32xf32>, vector<32x32xf32> -> vector<32x32xf32>
    %cst_101 = arith.constant 0.176776692 : f32
    %192 = vector.broadcast %cst_101 : f32 to vector<32x32xf32>
    %193 = arith.mulf %191, %192 : vector<32x32xf32>
    %194 = arith.addf %193, %22 : vector<32x32xf32>
    %cst_102 = arith.constant dense<0xFF800000> : vector<32xf32>
    %195 = vector.multi_reduction <maximumf>, %194, %cst_102 [1] : vector<32x32xf32> to vector<32xf32>
    %196 = vector.shape_cast %195 : vector<32xf32> to vector<32x1xf32>
    %197 = vector.broadcast %196 : vector<32x1xf32> to vector<32x32xf32>
    %198 = arith.subf %194, %197 : vector<32x32xf32>
    %199 = math.exp %198 : vector<32x32xf32>
    %cst_103 = arith.constant dense<0.000000e+00> : vector<32xf32>
    %200 = vector.multi_reduction <add>, %199, %cst_103 [1] : vector<32x32xf32> to vector<32xf32>
    %201 = vector.shape_cast %200 : vector<32xf32> to vector<32x1xf32>
    %cst_104 = arith.constant dense<0.000000e+00> : vector<32x32xf32>
    %202 = tpu.matmul %199, %190, %cst_104 {dimension_numbers = #tpu.dot_dimension_numbers<[1], [0], [0], [1], [0, 0, 1, 1], [], []>} : vector<32x32xf32>, vector<32x32xf32>, vector<32x32xf32> -> vector<32x32xf32>
    %203 = tpu.reciprocal %201 {approx = true} : vector<32x1xf32> -> vector<32x1xf32>
    %204 = vector.broadcast %203 : vector<32x1xf32> to vector<32x32xf32>
    %205 = arith.mulf %202, %204 : vector<32x32xf32>
    %206 = vector.extract_strided_slice %187 {offsets = [0, 32], sizes = [32, 32], strides = [1, 1]} : vector<32x192xf32> to vector<32x32xf32>
    %207 = vector.extract_strided_slice %187 {offsets = [0, 96], sizes = [32, 32], strides = [1, 1]} : vector<32x192xf32> to vector<32x32xf32>
    %208 = vector.extract_strided_slice %187 {offsets = [0, 160], sizes = [32, 32], strides = [1, 1]} : vector<32x192xf32> to vector<32x32xf32>
    %cst_105 = arith.constant dense<0.000000e+00> : vector<32x32xf32>
    %209 = tpu.matmul %206, %207, %cst_105 {dimension_numbers = #tpu.dot_dimension_numbers<[1], [1], [0], [0], [0, 0, 1, 0], [], []>} : vector<32x32xf32>, vector<32x32xf32>, vector<32x32xf32> -> vector<32x32xf32>
    %cst_106 = arith.constant 0.176776692 : f32
    %210 = vector.broadcast %cst_106 : f32 to vector<32x32xf32>
    %211 = arith.mulf %209, %210 : vector<32x32xf32>
    %212 = arith.addf %211, %22 : vector<32x32xf32>
    %cst_107 = arith.constant dense<0xFF800000> : vector<32xf32>
    %213 = vector.multi_reduction <maximumf>, %212, %cst_107 [1] : vector<32x32xf32> to vector<32xf32>
    %214 = vector.shape_cast %213 : vector<32xf32> to vector<32x1xf32>
    %215 = vector.broadcast %214 : vector<32x1xf32> to vector<32x32xf32>
    %216 = arith.subf %212, %215 : vector<32x32xf32>
    %217 = math.exp %216 : vector<32x32xf32>
    %cst_108 = arith.constant dense<0.000000e+00> : vector<32xf32>
    %218 = vector.multi_reduction <add>, %217, %cst_108 [1] : vector<32x32xf32> to vector<32xf32>
    %219 = vector.shape_cast %218 : vector<32xf32> to vector<32x1xf32>
    %cst_109 = arith.constant dense<0.000000e+00> : vector<32x32xf32>
    %220 = tpu.matmul %217, %208, %cst_109 {dimension_numbers = #tpu.dot_dimension_numbers<[1], [0], [0], [1], [0, 0, 1, 1], [], []>} : vector<32x32xf32>, vector<32x32xf32>, vector<32x32xf32> -> vector<32x32xf32>
    %221 = tpu.reciprocal %219 {approx = true} : vector<32x1xf32> -> vector<32x1xf32>
    %222 = vector.broadcast %221 : vector<32x1xf32> to vector<32x32xf32>
    %223 = arith.mulf %220, %222 : vector<32x32xf32>
    %224 = tpu.concatenate %205, %223 in 1 : vector<32x32xf32>, vector<32x32xf32> -> vector<32x64xf32>
    %c1_110 = arith.constant 1 : index
    %c0_111 = arith.constant 0 : index
    %c0_112 = arith.constant 0 : index
    %225 = vector.load %arg14[%c1_110, %c0_111, %c0_112] : memref<2x64x64xf32, #tpu.memory_space<vmem>>, vector<1x64x64xf32>
    %226 = vector.shape_cast %225 : vector<1x64x64xf32> to vector<64x64xf32>
    %cst_113 = arith.constant dense<0.000000e+00> : vector<32x64xf32>
    %227 = tpu.matmul %224, %226, %cst_113 {dimension_numbers = #tpu.dot_dimension_numbers<[1], [0], [0], [1], [0, 0, 1, 1], [], []>} : vector<32x64xf32>, vector<64x64xf32>, vector<32x64xf32> -> vector<32x64xf32>
    %228 = arith.addf %154, %227 : vector<32x64xf32>
    %c1_114 = arith.constant 1 : index
    %c0_115 = arith.constant 0 : index
    %c0_116 = arith.constant 0 : index
    %229 = vector.load %arg15[%c1_114, %c0_115, %c0_116] : memref<2x1x64xf32, #tpu.memory_space<vmem>>, vector<1x1x64xf32>
    %230 = vector.shape_cast %229 : vector<1x1x64xf32> to vector<1x64xf32>
    %231 = vector.broadcast %230 : vector<1x64xf32> to vector<32x64xf32>
    %232 = arith.addf %228, %231 : vector<32x64xf32>
    %c1_117 = arith.constant 1 : index
    %c0_118 = arith.constant 0 : index
    %c0_119 = arith.constant 0 : index
    %233 = vector.load %arg16[%c1_117, %c0_118, %c0_119] : memref<2x1x64xf32, #tpu.memory_space<vmem>>, vector<1x1x64xf32>
    %234 = vector.shape_cast %233 : vector<1x1x64xf32> to vector<1x64xf32>
    %c1_120 = arith.constant 1 : index
    %c0_121 = arith.constant 0 : index
    %c0_122 = arith.constant 0 : index
    %235 = vector.load %arg17[%c1_120, %c0_121, %c0_122] : memref<2x1x64xf32, #tpu.memory_space<vmem>>, vector<1x1x64xf32>
    %236 = vector.shape_cast %235 : vector<1x1x64xf32> to vector<1x64xf32>
    %cst_123 = arith.constant dense<0.000000e+00> : vector<32xf32>
    %237 = vector.multi_reduction <add>, %232, %cst_123 [1] : vector<32x64xf32> to vector<32xf32>
    %238 = vector.shape_cast %237 : vector<32xf32> to vector<32x1xf32>
    %cst_124 = arith.constant 6.400000e+01 : f32
    %239 = vector.broadcast %cst_124 : f32 to vector<32x1xf32>
    %240 = arith.divf %238, %239 : vector<32x1xf32>
    %241 = vector.broadcast %240 : vector<32x1xf32> to vector<32x64xf32>
    %242 = arith.subf %232, %241 : vector<32x64xf32>
    %243 = arith.mulf %242, %242 : vector<32x64xf32>
    %cst_125 = arith.constant dense<0.000000e+00> : vector<32xf32>
    %244 = vector.multi_reduction <add>, %243, %cst_125 [1] : vector<32x64xf32> to vector<32xf32>
    %245 = vector.shape_cast %244 : vector<32xf32> to vector<32x1xf32>
    %cst_126 = arith.constant 6.400000e+01 : f32
    %246 = vector.broadcast %cst_126 : f32 to vector<32x1xf32>
    %247 = arith.divf %245, %246 : vector<32x1xf32>
    %248 = vector.broadcast %240 : vector<32x1xf32> to vector<32x64xf32>
    %249 = arith.subf %232, %248 : vector<32x64xf32>
    %cst_127 = arith.constant 9.99999974E-6 : f32
    %250 = vector.broadcast %cst_127 : f32 to vector<32x1xf32>
    %251 = arith.addf %247, %250 : vector<32x1xf32>
    %252 = math.rsqrt %251 : vector<32x1xf32>
    %253 = vector.broadcast %252 : vector<32x1xf32> to vector<32x64xf32>
    %254 = arith.mulf %249, %253 : vector<32x64xf32>
    %255 = vector.broadcast %234 : vector<1x64xf32> to vector<32x64xf32>
    %256 = arith.mulf %254, %255 : vector<32x64xf32>
    %257 = vector.broadcast %236 : vector<1x64xf32> to vector<32x64xf32>
    %258 = arith.addf %256, %257 : vector<32x64xf32>
    %c1_128 = arith.constant 1 : index
    %c0_129 = arith.constant 0 : index
    %c0_130 = arith.constant 0 : index
    %259 = vector.load %arg18[%c1_128, %c0_129, %c0_130] : memref<2x64x256xf32, #tpu.memory_space<vmem>>, vector<1x64x256xf32>
    %260 = vector.shape_cast %259 : vector<1x64x256xf32> to vector<64x256xf32>
    %cst_131 = arith.constant dense<0.000000e+00> : vector<32x256xf32>
    %261 = tpu.matmul %258, %260, %cst_131 {dimension_numbers = #tpu.dot_dimension_numbers<[1], [0], [0], [1], [0, 0, 1, 1], [], []>} : vector<32x64xf32>, vector<64x256xf32>, vector<32x256xf32> -> vector<32x256xf32>
    %c1_132 = arith.constant 1 : index
    %c0_133 = arith.constant 0 : index
    %c0_134 = arith.constant 0 : index
    %262 = vector.load %arg19[%c1_132, %c0_133, %c0_134] : memref<2x1x256xf32, #tpu.memory_space<vmem>>, vector<1x1x256xf32>
    %263 = vector.shape_cast %262 : vector<1x1x256xf32> to vector<1x256xf32>
    %264 = vector.broadcast %263 : vector<1x256xf32> to vector<32x256xf32>
    %265 = arith.addf %261, %264 : vector<32x256xf32>
    %266 = arith.mulf %265, %265 : vector<32x256xf32>
    %267 = arith.mulf %265, %266 : vector<32x256xf32>
    %cst_135 = arith.constant 4.471500e-02 : f32
    %268 = vector.broadcast %cst_135 : f32 to vector<32x256xf32>
    %269 = arith.mulf %268, %267 : vector<32x256xf32>
    %270 = arith.addf %265, %269 : vector<32x256xf32>
    %cst_136 = arith.constant 0.797884583 : f32
    %271 = vector.broadcast %cst_136 : f32 to vector<32x256xf32>
    %272 = arith.mulf %271, %270 : vector<32x256xf32>
    %273 = math.tanh %272 : vector<32x256xf32>
    %cst_137 = arith.constant 1.000000e+00 : f32
    %274 = vector.broadcast %cst_137 : f32 to vector<32x256xf32>
    %275 = arith.addf %274, %273 : vector<32x256xf32>
    %cst_138 = arith.constant 5.000000e-01 : f32
    %276 = vector.broadcast %cst_138 : f32 to vector<32x256xf32>
    %277 = arith.mulf %276, %275 : vector<32x256xf32>
    %278 = arith.mulf %265, %277 : vector<32x256xf32>
    %c1_139 = arith.constant 1 : index
    %c0_140 = arith.constant 0 : index
    %c0_141 = arith.constant 0 : index
    %279 = vector.load %arg20[%c1_139, %c0_140, %c0_141] : memref<2x256x64xf32, #tpu.memory_space<vmem>>, vector<1x256x64xf32>
    %280 = vector.shape_cast %279 : vector<1x256x64xf32> to vector<256x64xf32>
    %cst_142 = arith.constant dense<0.000000e+00> : vector<32x64xf32>
    %281 = tpu.matmul %278, %280, %cst_142 {dimension_numbers = #tpu.dot_dimension_numbers<[1], [0], [0], [1], [0, 0, 1, 1], [], []>} : vector<32x256xf32>, vector<256x64xf32>, vector<32x64xf32> -> vector<32x64xf32>
    %282 = arith.addf %232, %281 : vector<32x64xf32>
    %c1_143 = arith.constant 1 : index
    %c0_144 = arith.constant 0 : index
    %c0_145 = arith.constant 0 : index
    %283 = vector.load %arg21[%c1_143, %c0_144, %c0_145] : memref<2x1x64xf32, #tpu.memory_space<vmem>>, vector<1x1x64xf32>
    %284 = vector.shape_cast %283 : vector<1x1x64xf32> to vector<1x64xf32>
    %285 = vector.broadcast %284 : vector<1x64xf32> to vector<32x64xf32>
    %286 = arith.addf %282, %285 : vector<32x64xf32>
    %c0_146 = arith.constant 0 : index
    %c0_147 = arith.constant 0 : index
    %287 = vector.load %arg8[%c0_146, %c0_147] : memref<16x32xf32, #tpu.memory_space<vmem>>, vector<16x32xf32>
    %cst_148 = arith.constant dense<0.000000e+00> : vector<16x64xf32>
    %288 = tpu.matmul %287, %286, %cst_148 {dimension_numbers = #tpu.dot_dimension_numbers<[1], [0], [0], [1], [0, 0, 1, 1], [], []>} : vector<16x32xf32>, vector<32x64xf32>, vector<16x64xf32> -> vector<16x64xf32>
    %cst_149 = arith.constant dense<0.000000e+00> : vector<16x256xf32>
    %289 = tpu.matmul %288, %1, %cst_149 {dimension_numbers = #tpu.dot_dimension_numbers<[1], [1], [0], [0], [0, 0, 1, 0], [], []>} : vector<16x64xf32>, vector<256x64xf32>, vector<16x256xf32> -> vector<16x256xf32>
    %c0_150 = arith.constant 0 : index
    %c0_151 = arith.constant 0 : index
    %290 = vector.load %arg22[%c0_150, %c0_151] : memref<16x256xf32, #tpu.memory_space<vmem>>, vector<16x256xf32>
    tpu.vector_store %arg22[%c0_150, %c0_151], %289 {strides = array<i32>} : memref<16x256xf32, #tpu.memory_space<vmem>>, vector<16x256xf32>,
    %c0_152 = arith.constant 0 : index
    %c0_153 = arith.constant 0 : index
    %291 = vector.load %arg9[%c0_152, %c0_153] : memref<4x32xf32, #tpu.memory_space<vmem>>, vector<4x32xf32>
    %cst_154 = arith.constant dense<0.000000e+00> : vector<4x64xf32>
    %292 = tpu.matmul %291, %286, %cst_154 {dimension_numbers = #tpu.dot_dimension_numbers<[1], [0], [0], [1], [0, 0, 1, 1], [], []>} : vector<4x32xf32>, vector<32x64xf32>, vector<4x64xf32> -> vector<4x64xf32>
    %c0_155 = arith.constant 0 : index
    %c0_156 = arith.constant 0 : index
    %293 = vector.load %arg1[%c0_155, %c0_156] : memref<4x64xf32, #tpu.memory_space<vmem>>, vector<4x64xf32>
    %294 = arith.addf %293, %292 : vector<4x64xf32>
    %cst_157 = arith.constant 5.000000e-01 : f32
    %295 = vector.broadcast %cst_157 : f32 to vector<4x64xf32>
    %296 = arith.mulf %295, %294 : vector<4x64xf32>
    %c0_158 = arith.constant 0 : index
    %c0_159 = arith.constant 0 : index
    %297 = vector.load %arg23[%c0_158, %c0_159] : memref<4x64xf32, #tpu.memory_space<vmem>>, vector<4x64xf32>
    tpu.vector_store %arg23[%c0_158, %c0_159], %296 {strides = array<i32>} : memref<4x64xf32, #tpu.memory_space<vmem>>, vector<4x64xf32>,
    return
  }
}

</mosaic_0001>

<bundles_post_ra>
// kernel: _model_forward.2
= control target key start
LH: loop header
LB: loop body
LE: loop exit
PB: predicated region body
PF: predicated region fallthrough
CT: control target
= control target key end

     0   :  { %v4761_v0 = vmov 0   ;;  %v137_v20 = vlaneseq  ;;  %v4762_v24 = vmov 1.0   ;;  %vm253_vm4 = vcmask 1043456   ;;  %s4764_s27 = smov 64   ;;  %s6194_s0 = inlined_call_operand.vmem [shape: s32[16,1], index: 0, kind: input, shape index: {}]   ;;  %s6195_s4 = inlined_call_operand.vmem [shape: bf16[256,64], index: 4, kind: input, shape index: {}]   ;;  %s6196_s7 = inlined_call_operand.vmem [shape: f32[32,1], index: 7, kind: input, shape index: {}]   ;;  %s6197_s1 = inlined_call_operand.vmem [shape: f32[4,64], index: 1, kind: input, shape index: {}]   ;;  %s6198_s6 = inlined_call_operand.vmem [shape: f32[32,4], index: 6, kind: input, shape index: {}]   ;;  %s6199_s5 = inlined_call_operand.vmem [shape: f32[32,16], index: 5, kind: input, shape index: {}]   ;;  %s6200_s2 = inlined_call_operand.vmem [shape: f32[1,64], index: 2, kind: input, shape index: {}]   ;;  %s6201_s12 = inlined_call_operand.vmem [shape: f32[2,64,192], index: 12, kind: input, shape index: {}]   ;;  %s6202_s10 = inlined_call_operand.vmem [shape: f32[2,1,64], index: 10, kind: input, shape index: {}]   ;;  %s6203_s11 = inlined_call_operand.vmem [shape: f32[2,1,64], index: 11, kind: input, shape index: {}]   ;;  %s6204_s13 = inlined_call_operand.vmem [shape: f32[2,1,192], index: 13, kind: input, shape index: {}]   ;;  %s6205_s3 = inlined_call_operand.vmem [shape: f32[32,32], index: 3, kind: input, shape index: {}]   ;;  %s6206_s14 = inlined_call_operand.vmem [shape: f32[2,64,64], index: 14, kind: input, shape index: {}]   ;;  %s6207_s15 = inlined_call_operand.vmem [shape: f32[2,1,64], index: 15, kind: input, shape index: {}]   ;;  %s6208_s18 = inlined_call_operand.vmem [shape: f32[2,64,256], index: 18, kind: input, shape index: {}]   ;;  %s6209_s16 = inlined_call_operand.vmem [shape: f32[2,1,64], index: 16, kind: input, shape index: {}]   ;;  %s6210_s17 = inlined_call_operand.vmem [shape: f32[2,1,64], index: 17, kind: input, shape index: {}]   ;;  %s6211_s20 = inlined_call_operand.vmem [shape: f32[2,256,64], index: 20, kind: input, shape index: {}]   ;;  %s6212_s19 = inlined_call_operand.vmem [shape: f32[2,1,256], index: 19, kind: input, shape index: {}]   ;;  %s6213_s21 = inlined_call_operand.vmem [shape: f32[2,1,64], index: 21, kind: input, shape index: {}]   ;;  %s6214_s8 = inlined_call_operand.vmem [shape: f32[16,32], index: 8, kind: input, shape index: {}]   ;;  %s6215_s9 = inlined_call_operand.vmem [shape: f32[4,32], index: 9, kind: input, shape index: {}]   ;;  %s6216_s23 = inlined_call_operand.vmem [shape: f32[4,64], index: 23, kind: output, shape index: {1}]   ;;  %s6217_s22 = inlined_call_operand.vmem [shape: f32[16,256], index: 22, kind: output, shape index: {0}]  }
   0x1   :  { %6227 = sst [smem:[#allocation2_spill]] %s6194_s0  ;;  %4551 = vset.pattern.permute.xlu0 %v4761_v0  ;;  %4552 = vset.pattern.permute.xlu1 %v4761_v0  ;;  %vm240_vm5 = vcmask 31744   ;;  %vm342_vm6 = vcmask 130048   ;;  %vm485_vm7 = vcmask 523264   ;;  %vm700_vm8 = vcmask 261120  }
   0x2   :  { %6228 = sst [smem:[#allocation3_spill]] %s6195_s4  ;;  %s6235_s24 = sld [smem:[#allocation2_spill]]  ;;  %v138_v21 = vand.u32 127, %v137_v20  ;;  %vm5135_vm9 = vmpackc.low %vm700_vm8, %vm700_vm8  ;;  %vm4768_vm11 = vmmov 0   ;;  %vm3429_vm12 = vcmask 519168  }
   0x3   :  { %6229 = sst [smem:[#allocation4_spill]] %s6196_s7  ;;  %s6236_s4 = sld [smem:[#allocation3_spill]]  ;;  %vm6079_vm10 = vmpackc.low %vm485_vm7, %vm485_vm7 }
   0x4   :  { %6230 = sst [smem:[#allocation5_spill]] %s6197_s1  ;;  %v139_v22 = vadd.s32 128, %v138_v21 }
   0x5   :  { %6231 = sst [smem:[#allocation6_spill]] %s6198_s6  ;;  %s6238_s30 = sld [smem:[#allocation5_spill]] }
   0x6   :  { %6232 = sst [smem:[#allocation7_spill]] %s6199_s5  ;;  %s6237_s5 = sld [smem:[#allocation4_spill]] }
   0x7   :  { %6233 = sst [smem:[#allocation8_spill]] %s6200_s2  ;;  %s6240_s6 = sld [smem:[#allocation7_spill]] }
   0x8   :  { %6234 = sst [smem:[#allocation9_spill]] %s6201_s12  ;;  %v140_v1 = vld [vmem:[%s6235_s24] sm:$0xff]  ;;  %v141_v5 = vld [vmem:[%s6235_s24 + $0x8] sm:$0xff]  ;;  %s6239_s24 = sld [smem:[#allocation6_spill]] }
   0x9   :  { %143 = vperm.xlu0 %4551, %v140_v1   ;;  %v3725_v2 = vld [vmem:[%s6236_s4 + $0x40] sm:$0xff]   ;;  %v3726_v4 = vld [vmem:[%s6236_s4 + $0x48] sm:$0xff]   ;;  %v3727_v7 = vld [vmem:[%s6236_s4 + $0x50] sm:$0xff]   ;;  %s6241_s26 = sld [smem:[#allocation8_spill]]  ;;  %s4765_s12 = smov 32  }
   0xa   :  { %v3655_v3 = vld [vmem:[%s6236_s4] sm:$0xff]   ;;  %4202 = vmatprep.subr.bf16.mxu0 %v3725_v2  ;;  %v3718_v6 = vld [vmem:[%s6236_s4 + $0x8] sm:$0xff]   ;;  %v3719_v9 = vld [vmem:[%s6236_s4 + $0x10] sm:$0xff]   ;;  %s6225_s2 = smov 96  }
   0xb   :  { %4204 = vmatpush3.bf16.msra.mxu0 %v3655_v3  ;;  %v3728_v10 = vld [vmem:[%s6236_s4 + $0x58] sm:$0xff]   ;;  %v3729_v12 = vld [vmem:[%s6236_s4 + $0x60] sm:$0xff]   ;;  %v3730_v14 = vld [vmem:[%s6236_s4 + $0x68] sm:$0xff]  }
   0xc   :  { %4206 = vmatprep.subr.bf16.mxu0 %v3726_v4  ;;  %v442_v8 = vld [vmem:[%s6237_s5 + $0x10] sm:$0xff]  ;;  %v3720_v11 = vld [vmem:[%s6236_s4 + $0x18] sm:$0xff]   ;;  %v3721_v13 = vld [vmem:[%s6236_s4 + $0x20] sm:$0xff]  }
   0xd   :  { %146 = vperm.xlu0 %4551, %v141_v5   ;;  %v3722_v15 = vld [vmem:[%s6236_s4 + $0x28] sm:$0xff]   ;;  %v3731_v16 = vld [vmem:[%s6236_s4 + $0x70] sm:$0xff]   ;;  %v3732_v18 = vld [vmem:[%s6236_s4 + $0x78] sm:$0xff]  }
   0xe   :  { %v3723_v17 = vld [vmem:[%s6236_s4 + $0x30] sm:$0xff]   ;;  %v3724_v19 = vld [vmem:[%s6236_s4 + $0x38] sm:$0xff]   ;;  %v239_v26 = vld [vmem:[%s6238_s30] sm:$0xf] }
   0xf   :  { %4208 = vmatpush3.bf16.msra.mxu0 %v3718_v6  ;;  %4005 = vmatprep.subr.msk.mxu1 %vm253_vm4, %v239_v26  ;;  %v235_v27 = vld [vmem:[%s6239_s24] sm:$0xff]  ;;  %v236_v28 = vld [vmem:[%s6239_s24 + $0x8] sm:$0xff]  ;;  %v237_v29 = vld [vmem:[%s6239_s24 + $0x10] sm:$0xff] }
  0x10   :  { %4210 = vmatprep.subr.bf16.mxu0 %v3727_v7  ;;  %4006 = vmatpush3.msk.msra.mxu1 %vm253_vm4, %v239_v26  ;;  %v238_v30 = vld [vmem:[%s6239_s24 + $0x18] sm:$0xff]  ;;  %v231_v31 = vld [vmem:[%s6240_s6] sm:$0xff]  ;;  %v441_v33 = vld [vmem:[%s6237_s5 + $0x8] sm:$0xff]  ;;  %s6242_s24 = sld [smem:[#allocation9_spill]] }
  0x11   :  { %457 = vperm.xlu0 %4551, %v442_v8   ;;  %4007 = vmatprep.mubr.msk.f32.mxu1 %vm240_vm5, %v235_v27  ;;  %v440_v32 = vld [vmem:[%s6237_s5] sm:$0xff]  ;;  %v443_v34 = vld [vmem:[%s6237_s5 + $0x18] sm:$0xff]  ;;  %v232_v42 = vld [vmem:[%s6240_s6 + $0x8] sm:$0xff] }
  0x12   :  { %4008 = vmatmul.mubr.msk.f32.vlgmr.msra.gmra.mrb[0].mxu1 %vm240_vm5, %v236_v28  ;;  %447 = vperm.xlu1 %4552, %v440_v32   ;;  %v233_v43 = vld [vmem:[%s6240_s6 + $0x10] sm:$0xff]  ;;  %v234_v44 = vld [vmem:[%s6240_s6 + $0x18] sm:$0xff]  ;;  %v3452_v46 = vld [vmem:[%s6241_s26] ss:$0 sm:$0xff] }
  0x13   :  { %4212 = vmatpush3.bf16.msra.mxu0 %v3719_v9  ;;  %4010 = vmatprep.mubr.msk.f32.mxu1 %vm240_vm5, %v237_v29 }
  0x14   :  { %4214 = vmatprep.subr.bf16.mxu0 %v3728_v10 }
  0x16   :  { %4011 = vmatmul.mubr.msk.f32.gmra.mrb[2].mxu1 %vm240_vm5, %v238_v30  ;;  %452 = vperm.xlu1 %4552, %v441_v33   ;;  %v559_v26 = vld [vmem:[%s6242_s24] sm:$0xff]  ;;  %v561_v27 = vld [vmem:[%s6242_s24 + $0x10] sm:$0xff]  ;;  %v564_v29 = vld [vmem:[%s6242_s24 + $0x28] sm:$0xff] }
  0x17   :  { %4216 = vmatpush3.bf16.msra.mxu0 %v3720_v11  ;;  %4017 = vmatprep.mubr.msk.f32.mxu1 %vm342_vm6, %v231_v31  ;;  %v4239_v28 = vpack.c.bf16 %v561_v27, %v559_v26  ;;  %v566_v30 = vld [vmem:[%s6242_s24 + $0x38] sm:$0xff]  ;;  %v563_v32 = vld [vmem:[%s6242_s24 + $0x20] sm:$0xff]  ;;  %v565_v33 = vld [vmem:[%s6242_s24 + $0x30] sm:$0xff] }
  0x18   :  { %4218 = vmatprep.subr.bf16.mxu0 %v3729_v12  ;;  %v4241_v31 = vpack.c.bf16 %v566_v30, %v564_v29 }
  0x1a   :  { %462 = vperm.xlu1 %4552, %v443_v34   ;;  %v4243_v34 = vpack.c.bf16 %v565_v33, %v563_v32 }
  0x1b   :  { %4220 = vmatpush3.bf16.msra.mxu0 %v3721_v13 }
  0x1c   :  { %4222 = vmatprep.subr.bf16.mxu0 %v3730_v14 }
  0x1f   :  { %4224 = vmatpush3.bf16.msra.mxu0 %v3722_v15 }
  0x20   :  { %4226 = vmatprep.subr.bf16.mxu0 %v3731_v16 }
  0x23   :  { %4228 = vmatpush3.bf16.msra.mxu0 %v3723_v17 }
  0x24   :  { %4230 = vmatprep.subr.bf16.mxu0 %v3732_v18 }
  0x27   :  { %4232 = vmatpush3.bf16.msra.mxu0 %v3724_v19 }
  0x88   :  { %v144_v23 = vpop.permute.xlu0 %143 }
  0x89   :  { %vm149_vm0 = vcmp.eq.s32.totalorder %v144_v23, %v139_v22  ;;  %vm148_vm1 = vcmp.eq.s32.totalorder %v144_v23, %v138_v21  ;;  %v560_v23 = vld [vmem:[%s6242_s24 + $0x8] sm:$0xff] }
  0x8a   :  { %3439 = vmatprep.mubr.msk.f32.mxu0 %vm149_vm0, %v4762_v24 }
  0x8b   :  { %3440 = vmatmul.mubr.msk.f32.vlgmr.msra.gmra.mrb[0].mxu0 %vm148_vm1, %v4762_v24 }
  0x8c   :  { %v147_v25 = vpop.permute.xlu0 %146 }
  0x8d   :  { %vm150_vm2 = vcmp.eq.s32.totalorder %v147_v25, %v138_v21  ;;  %vm151_vm3 = vcmp.eq.s32.totalorder %v147_v25, %v139_v22 }
  0x8e   :  { %3441 = vmatprep.mubr.msk.f32.mxu0 %vm151_vm3, %v4762_v24 }
  0x8f   :  { %3442 = vmatmul.mubr.msk.f32.gmra.mrb[2].mxu0 %vm150_vm2, %v4762_v24  ;;  %v562_v24 = vld [vmem:[%s6242_s24 + $0x18] sm:$0xff] }
  0x90   :  { %v458_v51 = vpop.permute.xlu0 %457  ;;  %v4237_v25 = vpack.c.bf16 %v562_v24, %v560_v23 }
  0x91   :  { %v448_v45 = vpop.permute.xlu1 %447  ;;  %v473_v57 = vmul.f32 %v3452_v46, %v458_v51 }
  0x92   :  { %v471_v49 = vmul.f32 %v3452_v46, %v448_v45  ;;  %v573_v45 = vld [vmem:[%s6242_s24 + $0x70] sm:$0xff] }
  0x95   :  { %v453_v47 = vpop.permute.xlu1 %452 }
  0x96   :  { %v472_v48 = vmul.f32 %v3452_v46, %v453_v47  ;;  %v4763_v47 = vmov 0.0  }
  0x99   :  { %v463_v55 = vpop.permute.xlu1 %462 }
  0x9a   :  { %v474_v61 = vmul.f32 %v3452_v46, %v463_v55 }
 0x15e   :  { %v3765_v35 = vpop.f32.mrb[0].mxu0 }
 0x15f   :  { %v3766_v36 = vpop.f32.mrb[1].mxu0 }
 0x160   :  { %v3767_v37 = vadd.f32 %v3766_v36, %v3765_v35  ;;  %v568_v35 = vld [vmem:[%s6242_s24 + $0x48] sm:$0xff]  ;;  %v570_v36 = vld [vmem:[%s6242_s24 + $0x58] sm:$0xff] }
 0x162   :  { %v3768_v38 = vpop.f32.mrb[2].mxu0 }
 0x163   :  { %v3769_v39 = vpop.f32.mrb[3].mxu0 }
 0x164   :  { %v3770_v40 = vadd.f32 %v3769_v39, %v3768_v38  ;;  %v567_v38 = vld [vmem:[%s6242_s24 + $0x40] sm:$0xff]  ;;  %v569_v39 = vld [vmem:[%s6242_s24 + $0x50] sm:$0xff] }
 0x166   :  { %v4233_v41 = vpack.c.bf16 %v3770_v40, %v3767_v37  ;;  %v4245_v37 = vpack.c.bf16 %v570_v36, %v568_v35  ;;  %v4247_v40 = vpack.c.bf16 %v569_v39, %v567_v38 }
 0x168   :  { %4234 = vmatprep.subr.bf16.mxu1 %v4233_v41 }
 0x169   :  { %4236 = vmatpush3.bf16.msra.mxu1 %v4233_v41  ;;  %v572_v41 = vld [vmem:[%s6242_s24 + $0x68] sm:$0xff] }
 0x16a   :  { %4238 = vmatprep.subr.bf16.mxu1 %v4237_v25 }
 0x16c   :  { %4018 = vmatmul.mubr.msk.f32.vlgmr.msra.gmra.mrb[0].mxu1 %vm342_vm6, %v232_v42  ;;  %v574_v42 = vld [vmem:[%s6242_s24 + $0x78] sm:$0xff] }
 0x16d   :  { %4020 = vmatprep.mubr.msk.f32.mxu1 %vm342_vm6, %v233_v43  ;;  %4240 = vmatpush1.bf16.msra.mxu1 %v4239_v28  ;;  %v4249_v43 = vpack.c.bf16 %v574_v42, %v572_v41 }
 0x16e   :  { %4242 = vmatprep.subr.bf16.mxu1 %v4241_v31 }
 0x170   :  { %4021 = vmatmul.mubr.msk.f32.gmra.mrb[2].mxu1 %vm342_vm6, %v234_v44  ;;  %v571_v44 = vld [vmem:[%s6242_s24 + $0x60] sm:$0xff] }
 0x171   :  { %4244 = vmatpush1.bf16.msra.mxu1 %v4243_v34  ;;  %v4251_v46 = vpack.c.bf16 %v573_v45, %v571_v44  ;;  %663 = vmatprep.mubr.f32.mxu1 %v4763_v47 }
 0x172   :  { %4246 = vmatprep.subr.bf16.mxu1 %v4245_v37 }
 0x175   :  { %4248 = vmatpush1.bf16.msra.mxu1 %v4247_v40 }
 0x176   :  { %4250 = vmatprep.subr.bf16.mxu1 %v4249_v43 }
 0x179   :  { %4252 = vmatpush1.bf16.msra.mxu1 %v4251_v46 }
 0x23f   :  { %v4019_v50 = vpop.f32.mrb[0].mxu1 }
 0x240   :  { %v4990_v52 = vadd.f32 %v4019_v50, %v472_v48  ;;  %v421_v53 = vpop.f32.mrb[1].mxu1 }
 0x241   :  { %v4992_v54 = vadd.f32 %v471_v49, %v421_v53 }
 0x242   :  { %v489_v56 = vsel %vm485_vm7, %v4990_v52, 0.0 }
 0x243   :  { %490 = vadd.xlane.f32.xlu1 %v489_v56  ;;  %v4022_v58 = vpop.f32.mrb[2].mxu1  ;;  %v486_v59 = vsel %vm485_vm7, %v4992_v54, 0.0 }
 0x244   :  { %487 = vadd.xlane.f32.xlu0 %v486_v59  ;;  %v431_v60 = vpop.f32.mrb[3].mxu1  ;;  %v5000_v63 = vadd.f32 %v4022_v58, %v474_v61 }
 0x245   :  { %v4998_v62 = vadd.f32 %v473_v57, %v431_v60 }
 0x246   :  { %v495_v1 = vsel %vm485_vm7, %v5000_v63, 0.0 }
 0x247   :  { %v492_v0 = vsel %vm485_vm7, %v4998_v62, 0.0 }
 0x248   :  { %493 = vadd.xlane.f32.xlu0 %v492_v0 }
 0x24c   :  { %496 = vadd.xlane.f32.xlu0 %v495_v1 }
 0x2d0   :  { %v491_v2 = vpop.xlane.xlu1 %490 }
 0x2d1   :  { %v500_v3 = vmul.f32 0.015625, %v491_v2  ;;  %v488_v4 = vpop.xlane.xlu0 %487  ;;  %v3453_v2 = vld [vmem:[%s6202_s10] ss:$0 sm:$0xff] }
 0x2d2   :  { %v499_v5 = vmul.f32 0.015625, %v488_v4 }
 0x2d3   :  { %v5007_v6 = vsub.f32 %v4990_v52, %v500_v3 }
 0x2d4   :  { %v5010_v7 = vsub.f32 %v4992_v54, %v499_v5  ;;  %v3454_v5 = vld [vmem:[%s6203_s11] ss:$0 sm:$0xff] }
 0x2d5   :  { %v494_v8 = vpop.xlane.xlu0 %493  ;;  %v508_v9 = vmul.f32 %v5007_v6, %v5007_v6 }
 0x2d6   :  { %v501_v10 = vmul.f32 0.015625, %v494_v8  ;;  %v507_v11 = vmul.f32 %v5010_v7, %v5010_v7 }
 0x2d7   :  { %v514_v12 = vsel %vm485_vm7, %v508_v9, 0.0 }
 0x2d8   :  { %v5018_v13 = vsub.f32 %v4998_v62, %v501_v10  ;;  %515 = vadd.xlane.f32.xlu0 %v514_v12  ;;  %v511_v14 = vsel %vm485_vm7, %v507_v11, 0.0 }
 0x2d9   :  { %512 = vadd.xlane.f32.xlu1 %v511_v14  ;;  %v497_v15 = vpop.xlane.xlu0 %496 }
 0x2da   :  { %v502_v16 = vmul.f32 0.015625, %v497_v15  ;;  %v509_v17 = vmul.f32 %v5018_v13, %v5018_v13 }
 0x2dc   :  { %v5024_v18 = vsub.f32 %v5000_v63, %v502_v16  ;;  %v517_v19 = vsel %vm485_vm7, %v509_v17, 0.0 }
 0x2dd   :  { %518 = vadd.xlane.f32.xlu1 %v517_v19  ;;  %v578_v19 = vshrl.u32 %v137_v20, 7 }
 0x2de   :  { %v510_v21 = vmul.f32 %v5024_v18, %v5024_v18 }
 0x2df   :  { %v5103_v23 = vsub.s32 1, %v578_v19 }
 0x2e0   :  { %v520_v22 = vsel %vm485_vm7, %v510_v21, 0.0  ;;  %v5097_v21 = vsub.s32 0, %v578_v19 }
 0x2e1   :  { %521 = vadd.xlane.f32.xlu0 %v520_v22 }
 0x365   :  { %v516_v48 = vpop.xlane.xlu0 %515 }
 0x366   :  { %v524_v49 = vmul.f32 0.015625, %v516_v48  ;;  %v513_v50 = vpop.xlane.xlu1 %512 }
 0x367   :  { %v523_v51 = vmul.f32 0.015625, %v513_v50 }
 0x368   :  { %v528_v53 = vadd.f32 1e-05, %v524_v49 }
 0x369   :  { %v527_v55 = vadd.f32 1e-05, %v523_v51 }
 0x36a   :  { %4613 = vrsqrt.f32 %v528_v53  ;;  %v519_v56 = vpop.xlane.xlu1 %518 }
 0x36b   :  { %4615 = vrsqrt.f32 %v527_v55  ;;  %v525_v57 = vmul.f32 0.015625, %v519_v56 }
 0x36d   :  { %v529_v58 = vadd.f32 1e-05, %v525_v57 }
 0x36e   :  { %v522_v59 = vpop.xlane.xlu0 %521 }
 0x36f   :  { %4617 = vrsqrt.f32 %v529_v58  ;;  %v526_v60 = vmul.f32 0.015625, %v522_v59 }
 0x371   :  { %v530_v61 = vadd.f32 1e-05, %v526_v60 }
 0x373   :  { %4619 = vrsqrt.f32 %v530_v61 }
 0x374   :  { %v4614_v0 = vpop.eup %4613 }
 0x375   :  { %v4616_v1 = vpop.eup %4615  ;;  %v536_v4 = vmul.f32 %v4614_v0, %v5007_v6 }
 0x376   :  { %v535_v3 = vmul.f32 %v4616_v1, %v5010_v7  ;;  %v5156_v1 = vld [vmem:[%s6205_s3 + $0x8] sm:$0xff] }
 0x377   :  { %v546_v11 = vmul.f32 %v3453_v2, %v536_v4  ;;  %v5161_v4 = vld [vmem:[%s6205_s3] sm:$0xff] }
 0x378   :  { %v545_v8 = vmul.f32 %v3453_v2, %v535_v3 }
 0x379   :  { %v4618_v9 = vpop.eup %4617  ;;  %v556_v15 = vadd.f32 %v3454_v5, %v546_v11  ;;  %v5168_v11 = vld [vmem:[%s6205_s3 + $0x18] sm:$0xff] }
 0x37a   :  { %v555_v10 = vadd.f32 %v3454_v5, %v545_v8  ;;  %v537_v12 = vmul.f32 %v4618_v9, %v5018_v13 }
 0x37c   :  { %3455 = vmatmul.mubr.msk.f32.vlgmr.msra.gmra.mrb[4].mxu1 %vm485_vm7, %v555_v10  ;;  %v547_v16 = vmul.f32 %v3453_v2, %v537_v12 }
 0x37d   :  { %v4620_v14 = vpop.eup %4619  ;;  %669 = vmatprep.mubr.f32.mxu1 %v4763_v47 }
 0x37e   :  { %v538_v7 = vmul.f32 %v4620_v14, %v5024_v18  ;;  %v557_v6 = vadd.f32 %v3454_v5, %v547_v16  ;;  %v575_v18 = vld [vmem:[%s6204_s13] sm:$0x3] }
 0x37f   :  { %v580_v22 = vrot.slane %v575_v18, %v5097_v21  ;;  %v584_v27 = vrot.slane %v575_v18, %v5103_v23 }
 0x380   :  { %3456 = vmatmul.mubr.msk.f32.gmra.mrb[6].mxu1 %vm485_vm7, %v556_v15  ;;  %v548_v17 = vmul.f32 %v3453_v2, %v538_v7 }
 0x381   :  { %675 = vmatprep.mubr.f32.mxu1 %v4763_v47 }
 0x382   :  { %v558_v13 = vadd.f32 %v3454_v5, %v548_v17 }
 0x384   :  { %3457 = vmatmul.mubr.msk.f32.gmra.mrb[8].mxu1 %vm485_vm7, %v557_v6 }
 0x385   :  { %681 = vmatprep.mubr.f32.mxu1 %v4763_v47 }
 0x388   :  { %3458 = vmatmul.mubr.msk.f32.gmra.mrb[10].mxu1 %vm485_vm7, %v558_v13  ;;  %v5181_v13 = vld [vmem:[%s6205_s3 + $0x10] sm:$0xff] }
 0x44f   :  { %v665_v24 = vpop.f32.mrb[4].mxu1 }
 0x450   :  { %v5105_v25 = vadd.f32 %v665_v24, %v580_v22  ;;  %v667_v26 = vpop.f32.mrb[5].mxu1 }
 0x451   :  { %v5112_v30 = vadd.f32 %v667_v26, %v584_v27 }
 0x452   :  { %4031 = vmatprep.mubr.msk.f32.mxu1 %vm700_vm8, %v5105_v25 }
 0x453   :  { %v671_v20 = vpop.f32.mrb[6].mxu1 }
 0x454   :  { %v5110_v28 = vadd.f32 %v671_v20, %v580_v22  ;;  %v673_v29 = vpop.f32.mrb[7].mxu1 }
 0x455   :  { %v5114_v31 = vadd.f32 %v673_v29, %v584_v27 }
 0x456   :  { %v4553_v32 = vpack.i.bf16 %v5110_v28, %v5105_v25 }
 0x457   :  { %v4573_v33 = vpack.i.bf16 %v5114_v31, %v5112_v30  ;;  %v4265_v34 = vpack.c.bf16 %v5114_v31, %v5112_v30  ;;  %v677_v35 = vpop.f32.mrb[8].mxu1 }
 0x458   :  { %v679_v36 = vpop.f32.mrb[9].mxu1  ;;  %4554 = vrot.lane.b32.xlu1 %v4553_v32, %s4764_s27  ;;  %v678_v38 = vadd.f32 %v677_v35, %v580_v22 }
 0x459   :  { %4266 = vmatprep.subr.bf16.mxu0 %v4265_v34  ;;  %v5124_v41 = vadd.f32 %v679_v36, %v584_v27 }
 0x45a   :  { %4268 = vmatpush3.bf16.msra.mxu0 %v4265_v34 }
 0x45b   :  { %v683_v37 = vpop.f32.mrb[10].mxu1 }
 0x45c   :  { %v684_v39 = vadd.f32 %v683_v37, %v580_v22  ;;  %4564 = vrot.lane.b32.xlu1 %v4553_v32, %s4765_s12  ;;  %v685_v40 = vpop.f32.mrb[11].mxu1 }
 0x45d   :  { %v5126_v42 = vadd.f32 %v685_v40, %v584_v27 }
 0x45e   :  { %v4558_v43 = vpack.i.bf16 %v684_v39, %v678_v38 }
 0x45f   :  { %v4578_v44 = vpack.i.bf16 %v5126_v42, %v5124_v41  ;;  %v4269_v45 = vpack.c.bf16 %v5126_v42, %v5124_v41 }
 0x460   :  { %4559 = vrot.lane.b32.xlu0 %v4558_v43, %s4764_s27 }
 0x461   :  { %4270 = vmatprep.subr.bf16.mxu0 %v4269_v45 }
 0x462   :  { %4272 = vmatpush3.bf16.msra.mxu0 %v4269_v45 }
 0x4ca   :  { %v4555_v46 = vpop.permute.xlu1 %4554 }
 0x4cb   :  { %v4557_v48 = vunpack.i.h.bf16 %v4555_v46  ;;  %v4556_v49 = vunpack.i.l.bf16 %v4555_v46 }
 0x4cd   :  { %v4253_v51 = vpack.c.bf16 %v4557_v48, %v4556_v49 }
 0x4ce   :  { %v4565_v53 = vpop.permute.xlu1 %4564 }
 0x4cf   :  { %v4567_v55 = vunpack.i.h.bf16 %v4565_v53  ;;  %v4566_v56 = vunpack.i.l.bf16 %v4565_v53  ;;  %4255 = vmatprep.subr.msk.bf16.mxu1 %vm5135_vm9, %v4253_v51 }
 0x4d0   :  { %4258 = vmatpush3.bf16.xpose.msk.msra.mxu1 %vm5135_vm9, %v4253_v51 }
 0x4d1   :  { %v4273_v57 = vpack.c.bf16 %v4567_v55, %v4566_v56 }
 0x4d2   :  { %v4560_v58 = vpop.permute.xlu0 %4559 }
 0x4d3   :  { %v4562_v59 = vunpack.i.h.bf16 %v4560_v58  ;;  %v4561_v60 = vunpack.i.l.bf16 %v4560_v58  ;;  %4275 = vmatprep.subr.msk.bf16.mxu0 %vm5135_vm9, %v4273_v57 }
 0x4d5   :  { %v4259_v61 = vpack.c.bf16 %v4562_v59, %v4561_v60 }
 0x4d7   :  { %4261 = vmatprep.subr.msk.bf16.mxu1 %vm5135_vm9, %v4259_v61 }
 0x4d8   :  { %4264 = vmatpush3.bf16.xpose.msk.msra.mxu1 %vm5135_vm9, %v4259_v61 }
 0x4df   :  { %4032 = vmatmul.mubr.msk.f32.vlgmr.msra.gmra.mrb[12].mxu1 %vm700_vm8, %v5110_v28 }
 0x4e0   :  { %4034 = vmatprep.mubr.msk.f32.mxu1 %vm700_vm8, %v678_v38 }
 0x4e3   :  { %4035 = vmatmul.mubr.msk.f32.gmra.mrb[14].mxu1 %vm700_vm8, %v684_v39 }
 0x5b2   :  { %v4033_v0 = vpop.f32.mrb[12].mxu1 }
 0x5b3   :  { %v803_v2 = vmul.f32 0.17677669, %v4033_v0  ;;  %v783_v3 = vpop.f32.mrb[13].mxu1 }
 0x5b4   :  { %v802_v5 = vmul.f32 0.17677669, %v783_v3 }
 0x5b5   :  { %v807_v8 = vadd.f32 %v803_v2, %v5156_v1 }
 0x5b6   :  { %v4036_v9 = vpop.f32.mrb[14].mxu1  ;;  %v806_v10 = vadd.f32 %v802_v5, %v5161_v4 }
 0x5b7   :  { %v805_v12 = vmul.f32 0.17677669, %v4036_v9  ;;  %v793_v14 = vpop.f32.mrb[15].mxu1  ;;  %v813_v15 = vsel %vm700_vm8, %v807_v8, -inf }
 0x5b8   :  { %814 = vmax.xlane.f32.xlu0 %v813_v15  ;;  %v810_v16 = vsel %vm700_vm8, %v806_v10, -inf  ;;  %v804_v17 = vmul.f32 0.17677669, %v793_v14 }
 0x5b9   :  { %811 = vmax.xlane.f32.xlu1 %v810_v16  ;;  %v809_v7 = vadd.f32 %v805_v12, %v5168_v11 }
 0x5ba   :  { %v808_v19 = vadd.f32 %v804_v17, %v5181_v13 }
 0x5bb   :  { %v819_v6 = vsel %vm700_vm8, %v809_v7, -inf }
 0x5bc   :  { %820 = vmax.xlane.f32.xlu0 %v819_v6  ;;  %v816_v18 = vsel %vm700_vm8, %v808_v19, -inf }
 0x5ca   :  { %951 = vrot.lane.b32.xlu1 %v5105_v25, %s6225_s2 }
 0x5d2   :  { %4569 = vrot.lane.b32.xlu0 %v4558_v43, %s4765_s12 }
 0x5d6   :  { %955 = vrot.lane.b32.xlu0 %v678_v38, %s6225_s2 }
 0x5ee   :  { %817 = vmax.xlane.f32.xlu1 %v816_v18 }
 0x5ff   :  { %953 = vrot.lane.b32.xlu1 %v5110_v28, %s6225_s2 }
 0x603   :  { %957 = vrot.lane.b32.xlu1 %v684_v39, %s6225_s2 }
 0x645   :  { %v815_v22 = vpop.xlane.xlu0 %814 }
 0x646   :  { %v823_v24 = vsub.f32 %v807_v8, %v815_v22  ;;  %v812_v25 = vpop.xlane.xlu1 %811 }
 0x647   :  { %v822_v26 = vsub.f32 %v806_v10, %v812_v25 }
 0x648   :  { %v828_v27 = vmul.f32 1.442695, %v823_v24 }
 0x649   :  { %v826_v20 = vmul.f32 1.442695, %v822_v26  ;;  %v821_v29 = vpop.xlane.xlu0 %820 }
 0x64a   :  { %v952_v38 = vpop.permute.xlu1 %951  ;;  %v825_v39 = vsub.f32 %v809_v7, %v821_v29 }
 0x64b   :  { %4621 = vpow2.f32 %v826_v20 }
 0x64c   :  { %4623 = vpow2.f32 %v828_v27  ;;  %v832_v45 = vmul.f32 1.442695, %v825_v39 }
 0x64d   :  { %v4570_v32 = vpop.permute.xlu0 %4569 }
 0x64e   :  { %v4572_v34 = vunpack.i.h.bf16 %v4570_v32  ;;  %v4571_v35 = vunpack.i.l.bf16 %v4570_v32 }
 0x650   :  { %v4279_v28 = vpack.c.bf16 %v4572_v34, %v4571_v35 }
 0x651   :  { %v956_v53 = vpop.permute.xlu0 %955 }
 0x655   :  { %v5188_v36 = vpop.eup %4621 }
 0x656   :  { %v5190_v37 = vpop.eup %4623  ;;  %4045 = vmatprep.mubr.msk.f32.mxu0 %vm700_vm8, %v5188_v36 }
 0x657   :  { %4046 = vmatmul.mubr.msk.f32.vlgmr.msra.gmra.mrb[4].mxu0 %vm700_vm8, %v5190_v37 }
 0x658   :  { %4278 = vmatpush3.bf16.xpose.msk.msra.mxu0 %vm5135_vm9, %v4273_v57 }
 0x659   :  { %4281 = vmatprep.subr.msk.bf16.mxu0 %vm5135_vm9, %v4279_v28 }
 0x660   :  { %4284 = vmatpush3.bf16.xpose.msk.msra.mxu0 %vm5135_vm9, %v4279_v28 }
 0x67b   :  { %v818_v40 = vpop.xlane.xlu1 %817 }
 0x67c   :  { %v824_v43 = vsub.f32 %v808_v19, %v818_v40 }
 0x67e   :  { %v830_v46 = vmul.f32 1.442695, %v824_v43 }
 0x67f   :  { %v954_v51 = vpop.permute.xlu1 %953 }
 0x680   :  { %4625 = vpow2.f32 %v830_v46  ;;  %v837_v46 = vsel %vm700_vm8, %v5190_v37, 0.0  ;;  %v1253_v37 = vld [vmem:[%s6206_s14] sm:$0xff] }
 0x681   :  { %4627 = vpow2.f32 %v832_v45 }
 0x683   :  { %v958_v55 = vpop.permute.xlu1 %957 }
 0x68a   :  { %v5202_v48 = vpop.eup %4625 }
 0x68b   :  { %v5204_v49 = vpop.eup %4627  ;;  %4048 = vmatprep.mubr.msk.f32.mxu0 %vm700_vm8, %v5202_v48 }
 0x68c   :  { %4049 = vmatmul.mubr.msk.f32.gmra.mrb[6].mxu0 %vm700_vm8, %v5204_v49 }
 0x68d   :  { %4059 = vmatprep.mubr.msk.f32.mxu0 %vm700_vm8, %v952_v38 }
 0x690   :  { %4060 = vmatmul.mubr.msk.f32.vlgmr.msra.gmra.mrb[8].mxu0 %vm700_vm8, %v954_v51  ;;  %v834_v51 = vsel %vm700_vm8, %v5188_v36, 0.0  ;;  %v1255_v36 = vld [vmem:[%s6206_s14 + $0x10] sm:$0xff] }
 0x691   :  { %4062 = vmatprep.mubr.msk.f32.mxu0 %vm700_vm8, %v956_v53  ;;  %v843_v53 = vsel %vm700_vm8, %v5204_v49, 0.0  ;;  %v1256_v49 = vld [vmem:[%s6206_s14 + $0x18] sm:$0xff] }
 0x694   :  { %4063 = vmatmul.mubr.msk.f32.gmra.mrb[10].mxu0 %vm700_vm8, %v958_v55  ;;  %v840_v55 = vsel %vm700_vm8, %v5202_v48, 0.0  ;;  %v1257_v48 = vld [vmem:[%s6206_s14 + $0x20] sm:$0xff] }
 0x695   :  { %1551 = vmatprep.mubr.f32.mxu0 %v4763_v47 }
 0x72a   :  { %v5215_v56 = vpop.f32.mrb[4].mxu0 }
 0x72b   :  { %v5217_v57 = vpop.f32.mrb[5].mxu0 }
 0x75f   :  { %v5219_v58 = vpop.f32.mrb[6].mxu0 }
 0x760   :  { %v5221_v59 = vpop.f32.mrb[7].mxu0 }
 0x763   :  { %v4061_v60 = vpop.f32.mrb[8].mxu0 }
 0x764   :  { %v1069_v61 = vmul.f32 0.17677669, %v4061_v60  ;;  %v1049_v0 = vpop.f32.mrb[9].mxu0  ;;  %v1254_v60 = vld [vmem:[%s6206_s14 + $0x8] sm:$0xff] }
 0x765   :  { %v1068_v2 = vmul.f32 0.17677669, %v1049_v0  ;;  %v4297_v0 = vpack.c.bf16 %v1256_v49, %v1255_v36 }
 0x766   :  { %v1073_v3 = vadd.f32 %v1069_v61, %v5156_v1  ;;  %v4293_v61 = vpack.c.bf16 %v1254_v60, %v1253_v37 }
 0x767   :  { %v4064_v5 = vpop.f32.mrb[10].mxu0  ;;  %v1072_v8 = vadd.f32 %v1068_v2, %v5161_v4  ;;  %v1258_v2 = vld [vmem:[%s6206_s14 + $0x28] sm:$0xff] }
 0x768   :  { %v1071_v9 = vmul.f32 0.17677669, %v4064_v5  ;;  %v1059_v10 = vpop.f32.mrb[11].mxu0  ;;  %v1079_v12 = vsel %vm700_vm8, %v1073_v3, -inf  ;;  %v1259_v5 = vld [vmem:[%s6206_s14 + $0x30] sm:$0xff] }
 0x769   :  { %v1070_v14 = vmul.f32 0.17677669, %v1059_v10  ;;  %1080 = vmax.xlane.f32.xlu1 %v1079_v12  ;;  %v1076_v15 = vsel %vm700_vm8, %v1072_v8, -inf }
 0x76a   :  { %1077 = vmax.xlane.f32.xlu0 %v1076_v15  ;;  %v1075_v16 = vadd.f32 %v1071_v9, %v5168_v11 }
 0x76b   :  { %v1074_v6 = vadd.f32 %v1070_v14, %v5181_v13 }
 0x76c   :  { %v1085_v7 = vsel %vm700_vm8, %v1075_v16, -inf }
 0x76d   :  { %v1082_v1 = vsel %vm700_vm8, %v1074_v6, -inf }
 0x76e   :  { %1086 = vmax.xlane.f32.xlu0 %v1085_v7 }
 0x772   :  { %1083 = vmax.xlane.f32.xlu0 %v1082_v1 }
 0x77a   :  { %4574 = vrot.lane.b32.xlu1 %v4573_v33, %s6225_s2 }
 0x788   :  { %4579 = vrot.lane.b32.xlu0 %v4578_v44, %s6225_s2 }
 0x7f6   :  { %v1081_v4 = vpop.xlane.xlu1 %1080 }
 0x7f7   :  { %v1089_v11 = vsub.f32 %v1073_v3, %v1081_v4  ;;  %v1078_v17 = vpop.xlane.xlu0 %1077  ;;  %v4301_v3 = vpack.c.bf16 %v1258_v2, %v1257_v48 }
 0x7f8   :  { %v1088_v19 = vsub.f32 %v1072_v8, %v1078_v17  ;;  %v1260_v8 = vld [vmem:[%s6206_s14 + $0x38] sm:$0xff] }
 0x7f9   :  { %v1094_v18 = vmul.f32 1.442695, %v1089_v11  ;;  %v4305_v9 = vpack.c.bf16 %v1260_v8, %v1259_v5 }
 0x7fa   :  { %v1092_v13 = vmul.f32 1.442695, %v1088_v19  ;;  %v4575_v22 = vpop.permute.xlu1 %4574 }
 0x7fb   :  { %4629 = vpow2.f32 %v1094_v18  ;;  %v4577_v24 = vunpack.i.h.bf16 %v4575_v22  ;;  %v4576_v25 = vunpack.i.l.bf16 %v4575_v22  ;;  %v1087_v26 = vpop.xlane.xlu0 %1086 }
 0x7fc   :  { %4631 = vpow2.f32 %v1092_v13  ;;  %v1091_v27 = vsub.f32 %v1075_v16, %v1087_v26 }
 0x7fd   :  { %v4285_v30 = vpack.c.bf16 %v4577_v24, %v4576_v25 }
 0x7fe   :  { %v1098_v31 = vmul.f32 1.442695, %v1091_v27 }
 0x7ff   :  { %v1084_v33 = vpop.xlane.xlu0 %1083  ;;  %4286 = vmatprep.subr.bf16.mxu1 %v4285_v30 }
 0x800   :  { %4633 = vpow2.f32 %v1098_v31  ;;  %v1090_v41 = vsub.f32 %v1074_v6, %v1084_v33  ;;  %4288 = vmatpush3.bf16.msra.mxu1 %v4285_v30 }
 0x802   :  { %v1096_v42 = vmul.f32 1.442695, %v1090_v41 }
 0x803   :  { %v4580_v44 = vpop.permute.xlu0 %4579 }
 0x804   :  { %4635 = vpow2.f32 %v1096_v42  ;;  %v4582_v20 = vunpack.i.h.bf16 %v4580_v44  ;;  %v4581_v29 = vunpack.i.l.bf16 %v4580_v44 }
 0x805   :  { %v4630_v32 = vpop.eup %4629 }
 0x806   :  { %v4632_v34 = vpop.eup %4631  ;;  %v4289_v35 = vpack.c.bf16 %v4582_v20, %v4581_v29  ;;  %v1103_v28 = vsel %vm700_vm8, %v4630_v32, 0.0 }
 0x807   :  { %4073 = vmatprep.mubr.msk.f32.mxu1 %vm700_vm8, %v4632_v34  ;;  %1104 = vadd.xlane.f32.xlu0 %v1103_v28  ;;  %v1100_v38 = vsel %vm700_vm8, %v4632_v34, 0.0 }
 0x808   :  { %1101 = vadd.xlane.f32.xlu1 %v1100_v38  ;;  %4290 = vmatprep.subr.bf16.mxu1 %v4289_v35 }
 0x809   :  { %4292 = vmatpush3.bf16.msra.mxu1 %v4289_v35 }
 0x80a   :  { %v4634_v39 = vpop.eup %4633  ;;  %4294 = vmatprep.subr.bf16.mxu1 %v4293_v61 }
 0x80b   :  { %v1109_v40 = vsel %vm700_vm8, %v4634_v39, 0.0 }
 0x80c   :  { %1110 = vadd.xlane.f32.xlu0 %v1109_v40  ;;  %4074 = vmatmul.mubr.msk.f32.vlgmr.msra.gmra.mrb[16].mxu1 %vm700_vm8, %v4630_v32 }
 0x80d   :  { %4296 = vmatpush3.bf16.msra.mxu1 %v4293_v61 }
 0x80e   :  { %v4636_v43 = vpop.eup %4635  ;;  %4298 = vmatprep.subr.bf16.mxu1 %v4297_v0 }
 0x80f   :  { %4076 = vmatprep.mubr.msk.f32.mxu1 %vm700_vm8, %v4636_v43  ;;  %v1106_v45 = vsel %vm700_vm8, %v4636_v43, 0.0 }
 0x810   :  { %1107 = vadd.xlane.f32.xlu1 %v1106_v45  ;;  %838 = vadd.xlane.f32.xlu0 %v837_v46  ;;  %v3487_v45 = vld [vmem:[%s6207_s15] ss:$0 sm:$0xff] }
 0x811   :  { %4077 = vmatmul.mubr.msk.f32.gmra.mrb[18].mxu1 %vm700_vm8, %v4634_v39 }
 0x812   :  { %4300 = vmatpush3.bf16.msra.mxu1 %v4297_v0 }
 0x813   :  { %4302 = vmatprep.subr.bf16.mxu1 %v4301_v3 }
 0x814   :  { %835 = vadd.xlane.f32.xlu1 %v834_v51  ;;  %844 = vadd.xlane.f32.xlu0 %v843_v53 }
 0x816   :  { %4304 = vmatpush3.bf16.msra.mxu1 %v4301_v3 }
 0x817   :  { %4306 = vmatprep.subr.bf16.mxu1 %v4305_v9 }
 0x818   :  { %841 = vadd.xlane.f32.xlu1 %v840_v55 }
 0x81a   :  { %4308 = vmatpush3.bf16.msra.mxu1 %v4305_v9 }
 0x894   :  { %v1105_v10 = vpop.xlane.xlu0 %1104 }
 0x895   :  { %v1102_v12 = vpop.xlane.xlu1 %1101  ;;  %4637 = vrcp.f32 %v1105_v10 }
 0x896   :  { %4639 = vrcp.f32 %v1102_v12 }
 0x899   :  { %v1111_v15 = vpop.xlane.xlu0 %1110 }
 0x89d   :  { %v1108_v14 = vpop.xlane.xlu1 %1107  ;;  %v839_v26 = vpop.xlane.xlu0 %838 }
 0x89e   :  { %4641 = vrcp.f32 %v1108_v14 }
 0x89f   :  { %v4638_v16 = vpop.eup %4637  ;;  %4643 = vrcp.f32 %v1111_v15 }
 0x8a0   :  { %v4640_v6 = vpop.eup %4639 }
 0x8a1   :  { %v836_v25 = vpop.xlane.xlu1 %835  ;;  %v845_v30 = vpop.xlane.xlu0 %844 }
 0x8a2   :  { %4645 = vrcp.f32 %v836_v25  ;;  %v1447_v25 = vld [vmem:[%s6208_s18] sm:$0xff] }
 0x8a3   :  { %4647 = vrcp.f32 %v839_v26  ;;  %v1449_v26 = vld [vmem:[%s6208_s18 + $0x10] sm:$0xff] }
 0x8a5   :  { %v842_v27 = vpop.xlane.xlu1 %841 }
 0x8a6   :  { %4649 = vrcp.f32 %v842_v27  ;;  %v4311_v27 = vpack.c.bf16 %v1449_v26, %v1447_v25  ;;  %v1666_v26 = vld [vmem:[%s6211_s20 + $0x90] sm:$0xff] }
 0x8a7   :  { %4651 = vrcp.f32 %v845_v30  ;;  %v1452_v30 = vld [vmem:[%s6208_s18 + $0x28] sm:$0xff] }
 0x8a8   :  { %v4642_v19 = vpop.eup %4641 }
 0x8a9   :  { %v4644_v22 = vpop.eup %4643 }
 0x8ac   :  { %v4646_v31 = vpop.eup %4645 }
 0x8ad   :  { %v4648_v33 = vpop.eup %4647  ;;  %v947_v42 = vmul.f32 %v4646_v31, %v5217_v57  ;;  %v1454_v31 = vld [vmem:[%s6208_s18 + $0x38] sm:$0xff] }
 0x8ae   :  { %v948_v44 = vmul.f32 %v4648_v33, %v5215_v56  ;;  %v4313_v33 = vpack.c.bf16 %v1454_v31, %v1452_v30  ;;  %v1650_v31 = vld [vmem:[%s6211_s20 + $0x10] sm:$0xff] }
 0x8b0   :  { %v4650_v29 = vpop.eup %4649 }
 0x8b1   :  { %v949_v35 = vmul.f32 %v4650_v29, %v5221_v59  ;;  %v4652_v28 = vpop.eup %4651  ;;  %v1458_v29 = vld [vmem:[%s6208_s18 + $0x58] sm:$0xff] }
 0x8b2   :  { %v950_v56 = vmul.f32 %v4652_v28, %v5219_v58 }
 0x8df   :  { %v4075_v7 = vpop.f32.mrb[16].mxu1 }
 0x8e0   :  { %v1230_v1 = vmul.f32 %v4638_v16, %v4075_v7  ;;  %v1206_v4 = vpop.f32.mrb[17].mxu1 }
 0x8e1   :  { %v1229_v11 = vmul.f32 %v4640_v6, %v1206_v4 }
 0x8e2   :  { %1239 = vrot.lane.b32.xlu0 %v1230_v1, %s4765_s12 }
 0x8e3   :  { %1237 = vrot.lane.b32.xlu1 %v1229_v11, %s4765_s12 }
 0x8e4   :  { %v4078_v17 = vpop.f32.mrb[18].mxu1 }
 0x8e5   :  { %v1216_v18 = vpop.f32.mrb[19].mxu1  ;;  %v1232_v24 = vmul.f32 %v4644_v22, %v4078_v17  ;;  %v1450_v22 = vld [vmem:[%s6208_s18 + $0x18] sm:$0xff] }
 0x8e6   :  { %v1231_v13 = vmul.f32 %v4642_v19, %v1216_v18 }
 0x8e8   :  { %1241 = vrot.lane.b32.xlu1 %v1231_v13, %s4765_s12  ;;  %v1448_v13 = vld [vmem:[%s6208_s18 + $0x8] sm:$0xff] }
 0x8ec   :  { %1243 = vrot.lane.b32.xlu1 %v1232_v24, %s4765_s12  ;;  %v4309_v24 = vpack.c.bf16 %v1450_v22, %v1448_v13  ;;  %v1665_v13 = vld [vmem:[%s6211_s20 + $0x88] sm:$0xff] }
 0x8ee   :  { %4310 = vmatprep.subr.bf16.mxu0 %v4309_v24  ;;  %v1649_v24 = vld [vmem:[%s6211_s20 + $0x8] sm:$0xff] }
 0x8ef   :  { %4312 = vmatpush1.bf16.msra.mxu0 %v4311_v27  ;;  %v1667_v27 = vld [vmem:[%s6211_s20 + $0x98] sm:$0xff] }
 0x8f0   :  { %4314 = vmatprep.subr.bf16.mxu0 %v4313_v33  ;;  %v4329_v30 = vpack.c.bf16 %v1667_v27, %v1666_v26  ;;  %v1651_v33 = vld [vmem:[%s6211_s20 + $0x18] sm:$0xff] }
 0x954   :  { %v1240_v41 = vpop.permute.xlu0 %1239 }
 0x955   :  { %v1238_v20 = vpop.permute.xlu1 %1237  ;;  %v1250_v34 = vsel %vm700_vm8, %v948_v44, %v1240_v41  ;;  %v1451_v41 = vld [vmem:[%s6208_s18 + $0x20] sm:$0xff] }
 0x956   :  { %v1249_v32 = vsel %vm700_vm8, %v947_v42, %v1238_v20  ;;  %v1453_v42 = vld [vmem:[%s6208_s18 + $0x30] sm:$0xff]  ;;  %v1456_v20 = vld [vmem:[%s6208_s18 + $0x48] sm:$0xff] }
 0x957   :  { %4095 = vmatprep.mubr.msk.f32.mxu1 %vm485_vm7, %v1249_v32  ;;  %v4315_v44 = vpack.c.bf16 %v1453_v42, %v1451_v41  ;;  %v4317_v32 = vpack.c.bf16 %v1458_v29, %v1456_v20  ;;  %v4331_v41 = vpack.c.bf16 %v1651_v33, %v1650_v31  ;;  %v1668_v42 = vld [vmem:[%s6211_s20 + $0xa0] sm:$0xff] }
 0x958   :  { %4096 = vmatmul.mubr.msk.f32.vlgmr.msra.gmra.mrb[20].mxu1 %vm485_vm7, %v1250_v34  ;;  %v1455_v34 = vld [vmem:[%s6208_s18 + $0x40] sm:$0xff] }
 0x959   :  { %4316 = vmatpush1.bf16.msra.mxu0 %v4315_v44  ;;  %v1669_v44 = vld [vmem:[%s6211_s20 + $0xa8] sm:$0xff]  ;;  %v1652_v29 = vld [vmem:[%s6211_s20 + $0x20] sm:$0xff] }
 0x95a   :  { %v1242_v38 = vpop.permute.xlu1 %1241  ;;  %4318 = vmatprep.subr.bf16.mxu0 %v4317_v32  ;;  %v4333_v20 = vpack.c.bf16 %v1669_v44, %v1668_v42  ;;  %v1653_v32 = vld [vmem:[%s6211_s20 + $0x28] sm:$0xff] }
 0x95b   :  { %v1251_v39 = vsel %vm700_vm8, %v949_v35, %v1242_v38  ;;  %v1457_v35 = vld [vmem:[%s6208_s18 + $0x50] sm:$0xff]  ;;  %v1460_v38 = vld [vmem:[%s6208_s18 + $0x68] sm:$0xff] }
 0x95c   :  { %4098 = vmatprep.mubr.msk.f32.mxu1 %vm485_vm7, %v1251_v39  ;;  %v4319_v28 = vpack.c.bf16 %v1457_v35, %v1455_v34  ;;  %v1462_v39 = vld [vmem:[%s6208_s18 + $0x78] sm:$0xff]  ;;  %v4335_v34 = vpack.c.bf16 %v1653_v32, %v1652_v29  ;;  %v1670_v35 = vld [vmem:[%s6211_s20 + $0xb0] sm:$0xff] }
 0x95e   :  { %v1244_v57 = vpop.permute.xlu1 %1243  ;;  %4320 = vmatpush1.bf16.msra.mxu0 %v4319_v28  ;;  %v1671_v28 = vld [vmem:[%s6211_s20 + $0xb8] sm:$0xff] }
 0x95f   :  { %v1252_v40 = vsel %vm700_vm8, %v950_v56, %v1244_v57  ;;  %v4321_v56 = vpack.c.bf16 %v1462_v39, %v1460_v38  ;;  %v1459_v57 = vld [vmem:[%s6208_s18 + $0x60] sm:$0xff]  ;;  %v4337_v38 = vpack.c.bf16 %v1671_v28, %v1670_v35  ;;  %v1654_v39 = vld [vmem:[%s6211_s20 + $0x30] sm:$0xff] }
 0x960   :  { %4099 = vmatmul.mubr.msk.f32.gmra.mrb[22].mxu1 %vm485_vm7, %v1252_v40  ;;  %v1461_v40 = vld [vmem:[%s6208_s18 + $0x70] sm:$0xff] }
 0x961   :  { %4322 = vmatprep.subr.bf16.mxu0 %v4321_v56  ;;  %v1655_v56 = vld [vmem:[%s6211_s20 + $0x38] sm:$0xff] }
 0xa2b   :  { %v4097_v43 = vpop.f32.mrb[20].mxu1 }
 0xa2c   :  { %v1359_v59 = vadd.f32 %v4097_v43, %v4990_v52  ;;  %v1339_v46 = vpop.f32.mrb[21].mxu1  ;;  %v4323_v43 = vpack.c.bf16 %v1461_v40, %v1459_v57  ;;  %v4339_v57 = vpack.c.bf16 %v1655_v56, %v1654_v39  ;;  %v1672_v40 = vld [vmem:[%s6211_s20 + $0xc0] sm:$0xff] }
 0xa2d   :  { %v1358_v51 = vadd.f32 %v1339_v46, %v4992_v54 }
 0xa2e   :  { %v5300_v53 = vadd.f32 %v3487_v45, %v1359_v59  ;;  %4324 = vmatpush1.bf16.msra.mxu0 %v4323_v43  ;;  %v1673_v43 = vld [vmem:[%s6211_s20 + $0xc8] sm:$0xff] }
 0xa2f   :  { %v5302_v55 = vadd.f32 %v3487_v45, %v1358_v51 }
 0xa30   :  { %v1378_v58 = vsel %vm485_vm7, %v5300_v53, 0.0 }
 0xa31   :  { %1379 = vadd.xlane.f32.xlu1 %v1378_v58  ;;  %v1375_v37 = vsel %vm485_vm7, %v5302_v55, 0.0 }
 0xa32   :  { %1376 = vadd.xlane.f32.xlu0 %v1375_v37 }
 0xa33   :  { %v4100_v60 = vpop.f32.mrb[22].mxu1 }
 0xa34   :  { %v1349_v36 = vpop.f32.mrb[23].mxu1  ;;  %v1361_v61 = vadd.f32 %v4100_v60, %v5000_v63 }
 0xa35   :  { %v1360_v52 = vadd.f32 %v1349_v36, %v4998_v62 }
 0xa36   :  { %v5312_v54 = vadd.f32 %v3487_v45, %v1361_v61 }
 0xa37   :  { %v5310_v49 = vadd.f32 %v3487_v45, %v1360_v52 }
 0xa38   :  { %v1384_v48 = vsel %vm485_vm7, %v5312_v54, 0.0 }
 0xa39   :  { %v1381_v0 = vsel %vm485_vm7, %v5310_v49, 0.0 }
 0xa3a   :  { %1382 = vadd.xlane.f32.xlu0 %v1381_v0 }
 0xa3e   :  { %1385 = vadd.xlane.f32.xlu0 %v1384_v48 }
 0xabe   :  { %v1380_v2 = vpop.xlane.xlu1 %1379 }
 0xabf   :  { %v1388_v3 = vmul.f32 0.015625, %v1380_v2  ;;  %v1377_v5 = vpop.xlane.xlu0 %1376 }
 0xac0   :  { %v1387_v8 = vmul.f32 0.015625, %v1377_v5 }
 0xac1   :  { %v5319_v63 = vsub.f32 %v5300_v53, %v1388_v3  ;;  %v3488_v3 = vld [vmem:[%s6209_s16] ss:$0 sm:$0xff] }
 0xac2   :  { %v5322_v62 = vsub.f32 %v5302_v55, %v1387_v8 }
 0xac3   :  { %v1396_v9 = vmul.f32 %v5319_v63, %v5319_v63 }
 0xac4   :  { %v1395_v10 = vmul.f32 %v5322_v62, %v5322_v62 }
 0xac5   :  { %v1402_v12 = vsel %vm485_vm7, %v1396_v9, 0.0 }
 0xac6   :  { %1403 = vadd.xlane.f32.xlu0 %v1402_v12  ;;  %v1399_v14 = vsel %vm485_vm7, %v1395_v10, 0.0  ;;  %v3489_v10 = vld [vmem:[%s6210_s17] ss:$0 sm:$0xff] }
 0xac7   :  { %v1383_v15 = vpop.xlane.xlu0 %1382  ;;  %1400 = vadd.xlane.f32.xlu1 %v1399_v14 }
 0xac8   :  { %v1389_v16 = vmul.f32 0.015625, %v1383_v15 }
 0xaca   :  { %v5331_v7 = vsub.f32 %v5310_v49, %v1389_v16 }
 0xacb   :  { %v1386_v6 = vpop.xlane.xlu0 %1385 }
 0xacc   :  { %v1390_v1 = vmul.f32 0.015625, %v1386_v6  ;;  %v1397_v4 = vmul.f32 %v5331_v7, %v5331_v7 }
 0xace   :  { %v5336_v11 = vsub.f32 %v5312_v54, %v1390_v1  ;;  %v1405_v17 = vsel %vm485_vm7, %v1397_v4, 0.0 }
 0xacf   :  { %1406 = vadd.xlane.f32.xlu1 %v1405_v17 }
 0xad0   :  { %v1398_v19 = vmul.f32 %v5336_v11, %v5336_v11 }
 0xad2   :  { %v1408_v18 = vsel %vm485_vm7, %v1398_v19, 0.0 }
 0xad3   :  { %1409 = vadd.xlane.f32.xlu0 %v1408_v18 }
 0xb53   :  { %v1404_v45 = vpop.xlane.xlu0 %1403 }
 0xb54   :  { %v1412_v59 = vmul.f32 0.015625, %v1404_v45  ;;  %v1401_v46 = vpop.xlane.xlu1 %1400  ;;  %v4341_v45 = vpack.c.bf16 %v1673_v43, %v1672_v40 }
 0xb55   :  { %v1411_v51 = vmul.f32 0.015625, %v1401_v46  ;;  %v1657_v46 = vld [vmem:[%s6211_s20 + $0x48] sm:$0xff] }
 0xb56   :  { %v1416_v58 = vadd.f32 1e-05, %v1412_v59  ;;  %v1656_v59 = vld [vmem:[%s6211_s20 + $0x40] sm:$0xff] }
 0xb57   :  { %v1415_v37 = vadd.f32 1e-05, %v1411_v51  ;;  %v4343_v51 = vpack.c.bf16 %v1657_v46, %v1656_v59 }
 0xb58   :  { %4653 = vrsqrt.f32 %v1416_v58  ;;  %v1674_v58 = vld [vmem:[%s6211_s20 + $0xd0] sm:$0xff] }
 0xb59   :  { %4655 = vrsqrt.f32 %v1415_v37  ;;  %v1675_v37 = vld [vmem:[%s6211_s20 + $0xd8] sm:$0xff] }
 0xb5c   :  { %v1407_v60 = vpop.xlane.xlu1 %1406 }
 0xb5d   :  { %v1413_v36 = vmul.f32 0.015625, %v1407_v60  ;;  %v4345_v60 = vpack.c.bf16 %v1675_v37, %v1674_v58 }
 0xb5f   :  { %v1417_v61 = vadd.f32 1e-05, %v1413_v36  ;;  %v1658_v36 = vld [vmem:[%s6211_s20 + $0x50] sm:$0xff] }
 0xb60   :  { %v1410_v52 = vpop.xlane.xlu0 %1409 }
 0xb61   :  { %4657 = vrsqrt.f32 %v1417_v61  ;;  %v1414_v0 = vmul.f32 0.015625, %v1410_v52  ;;  %v1659_v61 = vld [vmem:[%s6211_s20 + $0x58] sm:$0xff] }
 0xb62   :  { %v4654_v48 = vpop.eup %4653  ;;  %v4347_v52 = vpack.c.bf16 %v1659_v61, %v1658_v36 }
 0xb63   :  { %v4656_v2 = vpop.eup %4655  ;;  %v1418_v5 = vadd.f32 1e-05, %v1414_v0  ;;  %v1424_v9 = vmul.f32 %v4654_v48, %v5319_v63  ;;  %v1676_v0 = vld [vmem:[%s6211_s20 + $0xe0] sm:$0xff]  ;;  %v1677_v48 = vld [vmem:[%s6211_s20 + $0xe8] sm:$0xff] }
 0xb64   :  { %v1423_v8 = vmul.f32 %v4656_v2, %v5322_v62  ;;  %v4349_v2 = vpack.c.bf16 %v1677_v48, %v1676_v0 }
 0xb65   :  { %4659 = vrsqrt.f32 %v1418_v5  ;;  %v1434_v15 = vmul.f32 %v3488_v3, %v1424_v9  ;;  %v1661_v5 = vld [vmem:[%s6211_s20 + $0x68] sm:$0xff]  ;;  %v1678_v9 = vld [vmem:[%s6211_s20 + $0xf0] sm:$0xff] }
 0xb66   :  { %v1433_v12 = vmul.f32 %v3488_v3, %v1423_v8 }
 0xb67   :  { %v1444_v6 = vadd.f32 %v3489_v10, %v1434_v15  ;;  %v1663_v15 = vld [vmem:[%s6211_s20 + $0x78] sm:$0xff] }
 0xb68   :  { %v1443_v14 = vadd.f32 %v3489_v10, %v1433_v12 }
 0xb6a   :  { %3490 = vmatmul.mubr.msk.f32.vlgmr.msra.gmra.mrb[12].mxu0 %vm485_vm7, %v1443_v14  ;;  %v1662_v14 = vld [vmem:[%s6211_s20 + $0x70] sm:$0xff] }
 0xb6b   :  { %v4658_v16 = vpop.eup %4657  ;;  %1557 = vmatprep.mubr.f32.mxu0 %v4763_v47 }
 0xb6c   :  { %v1425_v1 = vmul.f32 %v4658_v16, %v5331_v7  ;;  %v1664_v7 = vld [vmem:[%s6211_s20 + $0x80] sm:$0xff]  ;;  %v4355_v16 = vpack.c.bf16 %v1663_v15, %v1662_v14 }
 0xb6d   :  { %v4325_v22 = vpack.c.bf16 %v1665_v13, %v1664_v7 }
 0xb6e   :  { %3491 = vmatmul.mubr.msk.f32.gmra.mrb[14].mxu0 %vm485_vm7, %v1444_v6  ;;  %v1435_v62 = vmul.f32 %v3488_v3, %v1425_v1  ;;  %v1463_v6 = vld [vmem:[%s6212_s19] sm:$0x3] }
 0xb6f   :  { %v4660_v63 = vpop.eup %4659  ;;  %1563 = vmatprep.mubr.f32.mxu0 %v4763_v47  ;;  %4326 = vmatprep.subr.bf16.mxu1 %v4325_v22  ;;  %v1468_v1 = vrot.slane %v1463_v6, %v5097_v21 }
 0xb70   :  { %v1445_v4 = vadd.f32 %v3489_v10, %v1435_v62  ;;  %v1426_v17 = vmul.f32 %v4660_v63, %v5336_v11  ;;  %v1648_v11 = vld [vmem:[%s6211_s20] sm:$0xff]  ;;  %v1472_v62 = vrot.slane %v1463_v6, %v5103_v23 }
 0xb71   :  { %v4327_v25 = vpack.c.bf16 %v1649_v24, %v1648_v11 }
 0xb72   :  { %3492 = vmatmul.mubr.msk.f32.gmra.mrb[16].mxu0 %vm485_vm7, %v1445_v4  ;;  %v1436_v19 = vmul.f32 %v3488_v3, %v1426_v17  ;;  %v1660_v3 = vld [vmem:[%s6211_s20 + $0x60] sm:$0xff] }
 0xb73   :  { %1569 = vmatprep.mubr.f32.mxu0 %v4763_v47  ;;  %4328 = vmatpush3.bf16.msra.mxu1 %v4327_v25  ;;  %v4351_v8 = vpack.c.bf16 %v1661_v5, %v1660_v3 }
 0xb74   :  { %v1446_v18 = vadd.f32 %v3489_v10, %v1436_v19  ;;  %4330 = vmatprep.subr.bf16.mxu1 %v4329_v30  ;;  %v1679_v10 = vld [vmem:[%s6211_s20 + $0xf8] sm:$0xff] }
 0xb75   :  { %v4353_v12 = vpack.c.bf16 %v1679_v10, %v1678_v9 }
 0xb76   :  { %3493 = vmatmul.mubr.msk.f32.gmra.mrb[18].mxu0 %vm485_vm7, %v1446_v18 }
 0xb77   :  { %1962 = vmatprep.mubr.f32.mxu0 %v4763_v47  ;;  %4332 = vmatpush3.bf16.msra.mxu1 %v4331_v41 }
 0xb78   :  { %4334 = vmatprep.subr.bf16.mxu1 %v4333_v20 }
 0xb7b   :  { %4336 = vmatpush3.bf16.msra.mxu1 %v4335_v34 }
 0xb7c   :  { %4338 = vmatprep.subr.bf16.mxu1 %v4337_v38 }
 0xb7f   :  { %4340 = vmatpush3.bf16.msra.mxu1 %v4339_v57 }
 0xb80   :  { %4342 = vmatprep.subr.bf16.mxu1 %v4341_v45 }
 0xb83   :  { %4344 = vmatpush3.bf16.msra.mxu1 %v4343_v51 }
 0xb84   :  { %4346 = vmatprep.subr.bf16.mxu1 %v4345_v60 }
 0xb87   :  { %4348 = vmatpush3.bf16.msra.mxu1 %v4347_v52 }
 0xb88   :  { %4350 = vmatprep.subr.bf16.mxu1 %v4349_v2 }
 0xb8b   :  { %4352 = vmatpush3.bf16.msra.mxu1 %v4351_v8 }
 0xb8c   :  { %4354 = vmatprep.subr.bf16.mxu1 %v4353_v12 }
 0xb8f   :  { %4356 = vmatpush3.bf16.msra.mxu1 %v4355_v16 }
 0xc3d   :  { %v1553_v63 = vpop.f32.mrb[12].mxu0 }
 0xc3e   :  { %v5509_v4 = vadd.f32 %v1553_v63, %v1468_v1  ;;  %v1555_v17 = vpop.f32.mrb[13].mxu0 }
 0xc3f   :  { %v5511_v19 = vadd.f32 %v1555_v17, %v1472_v62 }
 0xc40   :  { %v1576_v18 = vmul.f32 %v5509_v4, %v5509_v4 }
 0xc41   :  { %v1577_v7 = vmul.f32 %v5511_v19, %v5511_v19  ;;  %v1559_v13 = vpop.f32.mrb[14].mxu0 }
 0xc42   :  { %v1584_v22 = vmul.f32 %v1576_v18, %v5509_v4  ;;  %v5518_v11 = vadd.f32 %v1559_v13, %v1468_v1  ;;  %v1561_v24 = vpop.f32.mrb[15].mxu0 }
 0xc43   :  { %v1585_v25 = vmul.f32 %v1577_v7, %v5511_v19  ;;  %v5521_v26 = vadd.f32 %v1561_v24, %v1472_v62 }
 0xc44   :  { %v1592_v27 = vmul.f32 0.044715, %v1584_v22  ;;  %v1578_v30 = vmul.f32 %v5518_v11, %v5518_v11 }
 0xc45   :  { %v1593_v31 = vmul.f32 0.044715, %v1585_v25  ;;  %v1579_v33 = vmul.f32 %v5521_v26, %v5521_v26  ;;  %v1565_v41 = vpop.f32.mrb[16].mxu0 }
 0xc46   :  { %v1600_v42 = vadd.f32 %v1592_v27, %v5509_v4  ;;  %v1586_v44 = vmul.f32 %v1578_v30, %v5518_v11  ;;  %v5529_v20 = vadd.f32 %v1565_v41, %v1468_v1  ;;  %v1567_v29 = vpop.f32.mrb[17].mxu0 }
 0xc47   :  { %v1601_v32 = vadd.f32 %v1593_v31, %v5511_v19  ;;  %v1587_v34 = vmul.f32 %v1579_v33, %v5521_v26  ;;  %v5533_v35 = vadd.f32 %v1567_v29, %v1472_v62 }
 0xc48   :  { %v1608_v28 = vmul.f32 0.7978846, %v1600_v42  ;;  %v1594_v38 = vmul.f32 0.044715, %v1586_v44  ;;  %v1580_v39 = vmul.f32 %v5529_v20, %v5529_v20 }
 0xc49   :  { %v1609_v56 = vmul.f32 0.7978846, %v1601_v32  ;;  %v1595_v57 = vmul.f32 0.044715, %v1587_v34  ;;  %v1581_v40 = vmul.f32 %v5533_v35, %v5533_v35  ;;  %v1571_v43 = vpop.f32.mrb[18].mxu0 }
 0xc4a   :  { %4661 = vtanh.f32 %v1608_v28  ;;  %v1602_v45 = vadd.f32 %v1594_v38, %v5518_v11  ;;  %v1588_v59 = vmul.f32 %v1580_v39, %v5529_v20  ;;  %v5541_v46 = vadd.f32 %v1571_v43, %v1468_v1  ;;  %v1573_v51 = vpop.f32.mrb[19].mxu0 }
 0xc4b   :  { %v1603_v58 = vadd.f32 %v1595_v57, %v5521_v26  ;;  %v1589_v37 = vmul.f32 %v1581_v40, %v5533_v35  ;;  %v1574_v60 = vadd.f32 %v1573_v51, %v1472_v62  ;;  %4663 = vtanh.f32 %v1609_v56 }
 0xc4c   :  { %v1610_v36 = vmul.f32 0.7978846, %v1602_v45  ;;  %v1596_v61 = vmul.f32 0.044715, %v1588_v59  ;;  %v1582_v52 = vmul.f32 %v5541_v46, %v5541_v46 }
 0xc4d   :  { %v1611_v0 = vmul.f32 0.7978846, %v1603_v58  ;;  %v1597_v48 = vmul.f32 0.044715, %v1589_v37  ;;  %v1583_v2 = vmul.f32 %v1574_v60, %v1574_v60 }
 0xc4e   :  { %v1604_v3 = vadd.f32 %v1596_v61, %v5529_v20  ;;  %v1590_v5 = vmul.f32 %v1582_v52, %v5541_v46  ;;  %4665 = vtanh.f32 %v1610_v36  ;;  %v3494_v61 = vld [vmem:[%s6213_s21] ss:$0 sm:$0xff] }
 0xc4f   :  { %v1605_v8 = vadd.f32 %v1597_v48, %v5533_v35  ;;  %v1591_v9 = vmul.f32 %v1583_v2, %v1574_v60  ;;  %4667 = vtanh.f32 %v1611_v0 }
 0xc50   :  { %v1612_v10 = vmul.f32 0.7978846, %v1604_v3  ;;  %v1598_v12 = vmul.f32 0.044715, %v1590_v5 }
 0xc51   :  { %v1613_v14 = vmul.f32 0.7978846, %v1605_v8  ;;  %v1599_v15 = vmul.f32 0.044715, %v1591_v9 }
 0xc52   :  { %v1606_v16 = vadd.f32 %v1598_v12, %v5541_v46  ;;  %4669 = vtanh.f32 %v1612_v10 }
 0xc53   :  { %v1607_v6 = vadd.f32 %v1599_v15, %v1574_v60  ;;  %4671 = vtanh.f32 %v1613_v14 }
 0xc54   :  { %v4662_v1 = vpop.eup %4661  ;;  %v1614_v62 = vmul.f32 0.7978846, %v1606_v16 }
 0xc55   :  { %v4664_v63 = vpop.eup %4663  ;;  %v1624_v17 = vadd.f32 1.0, %v4662_v1  ;;  %v1615_v18 = vmul.f32 0.7978846, %v1607_v6 }
 0xc56   :  { %v1625_v7 = vadd.f32 1.0, %v4664_v63  ;;  %4673 = vtanh.f32 %v1614_v62 }
 0xc57   :  { %v1632_v13 = vmul.f32 0.5, %v1624_v17  ;;  %4675 = vtanh.f32 %v1615_v18 }
 0xc58   :  { %v4666_v22 = vpop.eup %4665  ;;  %v1633_v24 = vmul.f32 0.5, %v1625_v7 }
 0xc59   :  { %v4668_v25 = vpop.eup %4667  ;;  %v1626_v27 = vadd.f32 1.0, %v4666_v22  ;;  %v1640_v33 = vmul.f32 %v1632_v13, %v5509_v4 }
 0xc5a   :  { %v1641_v30 = vmul.f32 %v1633_v24, %v5511_v19  ;;  %v1627_v31 = vadd.f32 1.0, %v4668_v25 }
 0xc5b   :  { %v1634_v41 = vmul.f32 0.5, %v1626_v27 }
 0xc5c   :  { %v4670_v42 = vpop.eup %4669  ;;  %1744 = vmatprep.mubr.f32.mxu1 %v1641_v30  ;;  %v1635_v44 = vmul.f32 0.5, %v1627_v31 }
 0xc5d   :  { %v4672_v29 = vpop.eup %4671  ;;  %1745 = vmatmul.mubr.f32.vlgmr.msra.gmra.mrb[24].mxu1 %v1640_v33  ;;  %v1628_v32 = vadd.f32 1.0, %v4670_v42  ;;  %v1642_v38 = vmul.f32 %v1634_v41, %v5518_v11 }
 0xc5e   :  { %v1643_v34 = vmul.f32 %v1635_v44, %v5521_v26  ;;  %v1629_v28 = vadd.f32 1.0, %v4672_v29 }
 0xc5f   :  { %v1636_v39 = vmul.f32 0.5, %v1628_v32 }
 0xc60   :  { %v4674_v56 = vpop.eup %4673  ;;  %1749 = vmatprep.mubr.f32.mxu1 %v1643_v34  ;;  %v1637_v57 = vmul.f32 0.5, %v1629_v28  ;;  %v3500_v34 = vld [vmem:[%s6242_s24 + $0x88] sm:$0xff]  ;;  %v3502_v28 = vld [vmem:[%s6242_s24 + $0x98] sm:$0xff] }
 0xc61   :  { %v4676_v19 = vpop.eup %4675  ;;  %1750 = vmatmul.mubr.f32.gmra.mrb[26].mxu1 %v1642_v38  ;;  %v1630_v40 = vadd.f32 1.0, %v4674_v56  ;;  %v1644_v45 = vmul.f32 %v1636_v39, %v5529_v20  ;;  %v4357_v38 = vpack.c.bf16 %v3502_v28, %v3500_v34  ;;  %v3499_v39 = vld [vmem:[%s6242_s24 + $0x80] sm:$0xff]  ;;  %v3501_v56 = vld [vmem:[%s6242_s24 + $0x90] sm:$0xff] }
 0xc62   :  { %v1645_v4 = vmul.f32 %v1637_v57, %v5533_v35  ;;  %v1631_v43 = vadd.f32 1.0, %v4676_v19  ;;  %v4359_v57 = vpack.c.bf16 %v3501_v56, %v3499_v39  ;;  %v3504_v19 = vld [vmem:[%s6242_s24 + $0xa8] sm:$0xff] }
 0xc63   :  { %v1638_v59 = vmul.f32 0.5, %v1630_v40  ;;  %4358 = vmatprep.subr.bf16.mxu0 %v4357_v38  ;;  %v3506_v40 = vld [vmem:[%s6242_s24 + $0xb8] sm:$0xff] }
 0xc64   :  { %1754 = vmatprep.mubr.f32.mxu1 %v1645_v4  ;;  %v1639_v51 = vmul.f32 0.5, %v1631_v43  ;;  %4360 = vmatpush1.bf16.msra.mxu0 %v4359_v57  ;;  %v4361_v4 = vpack.c.bf16 %v3506_v40, %v3504_v19  ;;  %v3503_v43 = vld [vmem:[%s6242_s24 + $0xa0] sm:$0xff] }
 0xc65   :  { %1755 = vmatmul.mubr.f32.gmra.mrb[28].mxu1 %v1644_v45  ;;  %v1646_v58 = vmul.f32 %v1638_v59, %v5541_v46  ;;  %v3505_v45 = vld [vmem:[%s6242_s24 + $0xb0] sm:$0xff] }
 0xc66   :  { %v1647_v26 = vmul.f32 %v1639_v51, %v1574_v60  ;;  %v4363_v59 = vpack.c.bf16 %v3505_v45, %v3503_v43  ;;  %4362 = vmatprep.subr.bf16.mxu0 %v4361_v4  ;;  %v3508_v51 = vld [vmem:[%s6242_s24 + $0xc8] sm:$0xff] }
 0xc68   :  { %1759 = vmatprep.mubr.f32.mxu1 %v1647_v26  ;;  %4364 = vmatpush1.bf16.msra.mxu0 %v4363_v59  ;;  %v3510_v26 = vld [vmem:[%s6242_s24 + $0xd8] sm:$0xff] }
 0xc69   :  { %1760 = vmatmul.mubr.f32.gmra.mrb[30].mxu1 %v1646_v58  ;;  %v4365_v58 = vpack.c.bf16 %v3510_v26, %v3508_v51 }
 0xc6b   :  { %4366 = vmatprep.subr.bf16.mxu0 %v4365_v58 }
 0xd30   :  { %v3858_v11 = vpop.f32.mrb[24].mxu1 }
 0xd31   :  { %v3859_v37 = vpop.f32.mrb[25].mxu1 }
 0xd32   :  { %v3860_v36 = vadd.f32 %v3859_v37, %v3858_v11  ;;  %v3507_v11 = vld [vmem:[%s6242_s24 + $0xc0] sm:$0xff]  ;;  %v3509_v37 = vld [vmem:[%s6242_s24 + $0xd0] sm:$0xff] }
 0xd34   :  { %v1765_v35 = vadd.f32 %v3860_v36, %v5302_v55  ;;  %v3861_v52 = vpop.f32.mrb[26].mxu1  ;;  %v4367_v36 = vpack.c.bf16 %v3509_v37, %v3507_v11 }
 0xd35   :  { %v3862_v20 = vpop.f32.mrb[27].mxu1 }
 0xd36   :  { %v5562_v0 = vadd.f32 %v3494_v61, %v1765_v35  ;;  %v3863_v48 = vadd.f32 %v3862_v20, %v3861_v52  ;;  %4368 = vmatpush1.bf16.msra.mxu0 %v4367_v36  ;;  %v3514_v35 = vld [vmem:[%s6242_s24 + $0xf8] sm:$0xff]  ;;  %v3511_v20 = vld [vmem:[%s6242_s24 + $0xe0] sm:$0xff] }
 0xd38   :  { %v1766_v60 = vadd.f32 %v3863_v48, %v5300_v53  ;;  %v3864_v2 = vpop.f32.mrb[28].mxu1  ;;  %v1784_v46 = vsel %vm485_vm7, %v5562_v0, 0.0  ;;  %v3513_v48 = vld [vmem:[%s6242_s24 + $0xf0] sm:$0xff] }
 0xd39   :  { %1785 = vadd.xlane.f32.xlu1 %v1784_v46  ;;  %v3865_v3 = vpop.f32.mrb[29].mxu1 }
 0xd3a   :  { %v5567_v5 = vadd.f32 %v3494_v61, %v1766_v60  ;;  %v3866_v8 = vadd.f32 %v3865_v3, %v3864_v2  ;;  %v4371_v60 = vpack.c.bf16 %v3513_v48, %v3511_v20 }
 0xd3c   :  { %v1767_v9 = vadd.f32 %v3866_v8, %v5310_v49  ;;  %v3867_v10 = vpop.f32.mrb[30].mxu1  ;;  %v1787_v55 = vsel %vm485_vm7, %v5567_v5, 0.0 }
 0xd3d   :  { %1788 = vadd.xlane.f32.xlu0 %v1787_v55  ;;  %v3868_v12 = vpop.f32.mrb[31].mxu1 }
 0xd3e   :  { %v5572_v14 = vadd.f32 %v3494_v61, %v1767_v9  ;;  %v3869_v53 = vadd.f32 %v3868_v12, %v3867_v10 }
 0xd40   :  { %v1768_v15 = vadd.f32 %v3869_v53, %v5312_v54  ;;  %v1790_v16 = vsel %vm485_vm7, %v5572_v14, 0.0 }
 0xd41   :  { %1791 = vadd.xlane.f32.xlu1 %v1790_v16 }
 0xd42   :  { %v5577_v6 = vadd.f32 %v3494_v61, %v1768_v15  ;;  %v3512_v61 = vld [vmem:[%s6242_s24 + $0xe8] sm:$0xff] }
 0xd43   :  { %v4369_v52 = vpack.c.bf16 %v3514_v35, %v3512_v61 }
 0xd44   :  { %v1793_v49 = vsel %vm485_vm7, %v5577_v6, 0.0 }
 0xd45   :  { %1794 = vadd.xlane.f32.xlu0 %v1793_v49  ;;  %4370 = vmatprep.subr.bf16.mxu0 %v4369_v52 }
 0xd46   :  { %4372 = vmatpush1.bf16.msra.mxu0 %v4371_v60 }
 0xdc6   :  { %v1786_v1 = vpop.xlane.xlu1 %1785 }
 0xdc7   :  { %v1796_v62 = vmul.f32 0.015625, %v1786_v1  ;;  %v3497_v1 = vld [vmem:[%s6202_s10 + $0x1] ss:$0 sm:$0xff] }
 0xdc9   :  { %v5582_v63 = vsub.f32 %v5562_v0, %v1796_v62 }
 0xdca   :  { %v1789_v17 = vpop.xlane.xlu0 %1788 }
 0xdcb   :  { %v1797_v18 = vmul.f32 0.015625, %v1789_v17  ;;  %v1804_v54 = vmul.f32 %v5582_v63, %v5582_v63 }
 0xdcd   :  { %v5587_v7 = vsub.f32 %v5567_v5, %v1797_v18  ;;  %v1808_v13 = vsel %vm485_vm7, %v1804_v54, 0.0  ;;  %v3498_v18 = vld [vmem:[%s6203_s11 + $0x1] ss:$0 sm:$0xff] }
 0xdce   :  { %1809 = vadd.xlane.f32.xlu1 %v1808_v13  ;;  %v1792_v22 = vpop.xlane.xlu1 %1791 }
 0xdcf   :  { %v1798_v24 = vmul.f32 0.015625, %v1792_v22  ;;  %v1805_v25 = vmul.f32 %v5587_v7, %v5587_v7 }
 0xdd1   :  { %v5593_v27 = vsub.f32 %v5572_v14, %v1798_v24  ;;  %v1811_v30 = vsel %vm485_vm7, %v1805_v25, 0.0 }
 0xdd2   :  { %1812 = vadd.xlane.f32.xlu0 %v1811_v30  ;;  %v1795_v31 = vpop.xlane.xlu0 %1794 }
 0xdd3   :  { %v1799_v33 = vmul.f32 0.015625, %v1795_v31  ;;  %v1806_v41 = vmul.f32 %v5593_v27, %v5593_v27 }
 0xdd5   :  { %v5599_v42 = vsub.f32 %v5577_v6, %v1799_v33  ;;  %v1814_v44 = vsel %vm485_vm7, %v1806_v41, 0.0 }
 0xdd6   :  { %1815 = vadd.xlane.f32.xlu1 %v1814_v44 }
 0xdd7   :  { %v1807_v29 = vmul.f32 %v5599_v42, %v5599_v42 }
 0xdd9   :  { %v1817_v32 = vsel %vm485_vm7, %v1807_v29, 0.0 }
 0xdda   :  { %1818 = vadd.xlane.f32.xlu0 %v1817_v32 }
 0xe5b   :  { %v1810_v2 = vpop.xlane.xlu1 %1809 }
 0xe5c   :  { %v1820_v46 = vmul.f32 0.015625, %v1810_v2 }
 0xe5e   :  { %v1824_v3 = vadd.f32 1e-05, %v1820_v46 }
 0xe5f   :  { %v1813_v8 = vpop.xlane.xlu0 %1812 }
 0xe60   :  { %4677 = vrsqrt.f32 %v1824_v3  ;;  %v1821_v9 = vmul.f32 0.015625, %v1813_v8 }
 0xe62   :  { %v1825_v10 = vadd.f32 1e-05, %v1821_v9 }
 0xe63   :  { %v1816_v55 = vpop.xlane.xlu1 %1815 }
 0xe64   :  { %4679 = vrsqrt.f32 %v1825_v10  ;;  %v1822_v12 = vmul.f32 0.015625, %v1816_v55 }
 0xe66   :  { %v1826_v53 = vadd.f32 1e-05, %v1822_v12 }
 0xe67   :  { %v1819_v15 = vpop.xlane.xlu0 %1818 }
 0xe68   :  { %4681 = vrsqrt.f32 %v1826_v53  ;;  %v1823_v16 = vmul.f32 0.015625, %v1819_v15 }
 0xe6a   :  { %v4678_v49 = vpop.eup %4677  ;;  %v1827_v62 = vadd.f32 1e-05, %v1823_v16 }
 0xe6b   :  { %v1832_v17 = vmul.f32 %v4678_v49, %v5582_v63 }
 0xe6c   :  { %4683 = vrsqrt.f32 %v1827_v62 }
 0xe6d   :  { %v1842_v54 = vmul.f32 %v3497_v1, %v1832_v17 }
 0xe6e   :  { %v4680_v13 = vpop.eup %4679 }
 0xe6f   :  { %v1852_v22 = vadd.f32 %v3498_v18, %v1842_v54  ;;  %v1833_v24 = vmul.f32 %v4680_v13, %v5587_v7 }
 0xe71   :  { %3516 = vmatmul.mubr.msk.f32.vlgmr.msra.gmra.mrb[20].mxu0 %vm485_vm7, %v1852_v22  ;;  %v1843_v25 = vmul.f32 %v3497_v1, %v1833_v24 }
 0xe72   :  { %v4682_v30 = vpop.eup %4681  ;;  %1968 = vmatprep.mubr.f32.mxu0 %v4763_v47 }
 0xe73   :  { %v1853_v31 = vadd.f32 %v3498_v18, %v1843_v25  ;;  %v1834_v33 = vmul.f32 %v4682_v30, %v5593_v27  ;;  %v3515_v27 = vld [vmem:[%s6204_s13 + $0x2] sm:$0x3]  ;;  %s6245_s13 = smov 96   ;;  %v4741_v30 = vld [vmem:[%s6205_s3 + $0x8] sm:$0xff] }
 0xe74   :  { %v1879_v34 = vrot.slane %v3515_v27, %v5097_v21  ;;  %v1883_v56 = vrot.slane %v3515_v27, %v5103_v23 }
 0xe75   :  { %3517 = vmatmul.mubr.msk.f32.gmra.mrb[22].mxu0 %vm485_vm7, %v1853_v31  ;;  %v1844_v63 = vmul.f32 %v3497_v1, %v1834_v33 }
 0xe76   :  { %v4684_v41 = vpop.eup %4683  ;;  %1974 = vmatprep.mubr.f32.mxu0 %v4763_v47 }
 0xe77   :  { %v1854_v44 = vadd.f32 %v3498_v18, %v1844_v63  ;;  %v1835_v29 = vmul.f32 %v4684_v41, %v5599_v42 }
 0xe79   :  { %3518 = vmatmul.mubr.msk.f32.gmra.mrb[24].mxu0 %vm485_vm7, %v1854_v44  ;;  %v1845_v7 = vmul.f32 %v3497_v1, %v1835_v29 }
 0xe7a   :  { %1980 = vmatprep.mubr.f32.mxu0 %v4763_v47 }
 0xe7b   :  { %v1855_v32 = vadd.f32 %v3498_v18, %v1845_v7 }
 0xe7d   :  { %3519 = vmatmul.mubr.msk.f32.gmra.mrb[26].mxu0 %vm485_vm7, %v1855_v32 }
 0xf44   :  { %v1964_v28 = vpop.f32.mrb[20].mxu0 }
 0xf45   :  { %v1965_v38 = vadd.f32 %v1964_v28, %v1879_v34  ;;  %v1966_v39 = vpop.f32.mrb[21].mxu0 }
 0xf46   :  { %v5676_v40 = vadd.f32 %v1966_v39, %v1883_v56 }
 0xf47   :  { %4109 = vmatprep.mubr.msk.f32.mxu0 %vm700_vm8, %v1965_v38 }
 0xf48   :  { %v1970_v42 = vpop.f32.mrb[22].mxu0 }
 0xf49   :  { %v1971_v57 = vadd.f32 %v1970_v42, %v1879_v34  ;;  %v1972_v19 = vpop.f32.mrb[23].mxu0 }
 0xf4a   :  { %v5678_v4 = vadd.f32 %v1972_v19, %v1883_v56 }
 0xf4b   :  { %v4583_v43 = vpack.i.bf16 %v1971_v57, %v1965_v38 }
 0xf4c   :  { %v4603_v45 = vpack.i.bf16 %v5678_v4, %v5676_v40  ;;  %v4385_v59 = vpack.c.bf16 %v5678_v4, %v5676_v40  ;;  %v1976_v51 = vpop.f32.mrb[24].mxu0 }
 0xf4d   :  { %4584 = vrot.lane.b32.xlu1 %v4583_v43, %s4764_s27  ;;  %v1978_v26 = vpop.f32.mrb[25].mxu0  ;;  %v1977_v11 = vadd.f32 %v1976_v51, %v1879_v34  ;;  %v4743_v51 = vld [vmem:[%s6205_s3 + $0x10] sm:$0xff] }
 0xf4e   :  { %v5686_v61 = vadd.f32 %v1978_v26, %v1883_v56 }
 0xf50   :  { %v1982_v58 = vpop.f32.mrb[26].mxu0 }
 0xf51   :  { %v1983_v37 = vadd.f32 %v1982_v58, %v1879_v34  ;;  %4594 = vrot.lane.b32.xlu1 %v4583_v43, %s4765_s12  ;;  %v1984_v36 = vpop.f32.mrb[27].mxu0 }
 0xf52   :  { %v5688_v35 = vadd.f32 %v1984_v36, %v1883_v56 }
 0xf53   :  { %v4598_v52 = vpack.i.bf16 %v1983_v37, %v1977_v11 }
 0xf54   :  { %v4608_v20 = vpack.i.bf16 %v5688_v35, %v5686_v61  ;;  %v4389_v48 = vpack.c.bf16 %v5688_v35, %v5686_v61 }
 0xf55   :  { %4599 = vrot.lane.b32.xlu1 %v4598_v52, %s4765_s12  ;;  %4589 = vrot.lane.b32.xlu0 %v4598_v52, %s4764_s27 }
 0xf59   :  { %2251 = vrot.lane.b32.xlu1 %v1971_v57, %s6245_s13  ;;  %2249 = vrot.lane.b32.xlu0 %v1965_v38, %s6245_s13  ;;  %v4742_v38 = vld [vmem:[%s6205_s3] sm:$0xff] }
 0xf5d   :  { %2255 = vrot.lane.b32.xlu1 %v1983_v37, %s6245_s13  ;;  %2253 = vrot.lane.b32.xlu0 %v1977_v11, %s6245_s13 }
 0xfbf   :  { %v4585_v60 = vpop.permute.xlu1 %4584 }
 0xfc0   :  { %v4587_v2 = vunpack.i.h.bf16 %v4585_v60  ;;  %v4586_v46 = vunpack.i.l.bf16 %v4585_v60 }
 0xfc2   :  { %v4373_v3 = vpack.c.bf16 %v4587_v2, %v4586_v46 }
 0xfc3   :  { %v4595_v8 = vpop.permute.xlu1 %4594 }
 0xfc4   :  { %v4597_v9 = vunpack.i.h.bf16 %v4595_v8  ;;  %v4596_v10 = vunpack.i.l.bf16 %v4595_v8  ;;  %4375 = vmatprep.subr.msk.bf16.mxu0 %vm5135_vm9, %v4373_v3 }
 0xfc5   :  { %4378 = vmatpush3.bf16.xpose.msk.msra.mxu0 %vm5135_vm9, %v4373_v3 }
 0xfc6   :  { %v4393_v55 = vpack.c.bf16 %v4597_v9, %v4596_v10 }
 0xfc7   :  { %v4590_v12 = vpop.permute.xlu0 %4589  ;;  %v4600_v53 = vpop.permute.xlu1 %4599 }
 0xfc8   :  { %v4592_v15 = vunpack.i.h.bf16 %v4590_v12  ;;  %v4591_v16 = vunpack.i.l.bf16 %v4590_v12  ;;  %v4602_v49 = vunpack.i.h.bf16 %v4600_v53  ;;  %v4601_v1 = vunpack.i.l.bf16 %v4600_v53  ;;  %4395 = vmatprep.subr.msk.bf16.mxu1 %vm5135_vm9, %v4393_v55 }
 0xfc9   :  { %4398 = vmatpush3.bf16.xpose.msk.msra.mxu1 %vm5135_vm9, %v4393_v55 }
 0xfca   :  { %v4379_v62 = vpack.c.bf16 %v4592_v15, %v4591_v16  ;;  %v4399_v17 = vpack.c.bf16 %v4602_v49, %v4601_v1 }
 0xfcb   :  { %v2250_v18 = vpop.permute.xlu0 %2249  ;;  %v2252_v54 = vpop.permute.xlu1 %2251 }
 0xfcc   :  { %4381 = vmatprep.subr.msk.bf16.mxu0 %vm5135_vm9, %v4379_v62  ;;  %4401 = vmatprep.subr.msk.bf16.mxu1 %vm5135_vm9, %v4399_v17 }
 0xfcd   :  { %4137 = vmatprep.mubr.msk.f32.mxu1 %vm700_vm8, %v2250_v18  ;;  %4384 = vmatpush3.bf16.xpose.msk.msra.mxu0 %vm5135_vm9, %v4379_v62 }
 0xfce   :  { %4386 = vmatprep.subr.bf16.mxu0 %v4385_v59 }
 0xfcf   :  { %v2254_v13 = vpop.permute.xlu0 %2253  ;;  %v2256_v22 = vpop.permute.xlu1 %2255 }
 0xfd1   :  { %4404 = vmatpush3.bf16.xpose.msk.msra.mxu1 %vm5135_vm9, %v4399_v17 }
 0xfd4   :  { %4110 = vmatmul.mubr.msk.f32.vlgmr.msra.gmra.mrb[28].mxu0 %vm700_vm8, %v1971_v57 }
 0xfd5   :  { %4112 = vmatprep.mubr.msk.f32.mxu0 %vm700_vm8, %v1977_v11  ;;  %4388 = vmatpush3.bf16.msra.mxu0 %v4385_v59 }
 0xfd6   :  { %4390 = vmatprep.subr.bf16.mxu0 %v4389_v48 }
 0xfd8   :  { %4113 = vmatmul.mubr.msk.f32.gmra.mrb[30].mxu0 %vm700_vm8, %v1983_v37  ;;  %4138 = vmatmul.mubr.msk.f32.vlgmr.msra.gmra.mrb[32].mxu1 %vm700_vm8, %v2252_v54  ;;  %v4744_v37 = vld [vmem:[%s6205_s3 + $0x18] sm:$0xff] }
 0xfd9   :  { %4392 = vmatpush3.bf16.msra.mxu0 %v4389_v48  ;;  %4140 = vmatprep.mubr.msk.f32.mxu1 %vm700_vm8, %v2254_v13 }
 0xfdc   :  { %4141 = vmatmul.mubr.msk.f32.gmra.mrb[34].mxu1 %vm700_vm8, %v2256_v22 }
0x10a7   :  { %v4111_v50 = vpop.f32.mrb[28].mxu0 }
0x10a8   :  { %v2101_v24 = vmul.f32 0.17677669, %v4111_v50  ;;  %v2081_v25 = vpop.f32.mrb[29].mxu0 }
0x10a9   :  { %v2100_v41 = vmul.f32 0.17677669, %v2081_v25 }
0x10aa   :  { %v2105_v31 = vadd.f32 %v4741_v30, %v2101_v24 }
0x10ab   :  { %v4114_v33 = vpop.f32.mrb[30].mxu0  ;;  %v4139_v63 = vpop.f32.mrb[32].mxu1  ;;  %v2104_v19 = vadd.f32 %v4742_v38, %v2100_v41 }
0x10ac   :  { %v2367_v44 = vmul.f32 0.17677669, %v4139_v63  ;;  %v2091_v29 = vpop.f32.mrb[31].mxu0  ;;  %v2347_v7 = vpop.f32.mrb[33].mxu1  ;;  %v2111_v27 = vsel %vm700_vm8, %v2105_v31, -inf }
0x10ad   :  { %v2366_v32 = vmul.f32 0.17677669, %v2347_v7  ;;  %2112 = vmax.xlane.f32.xlu1 %v2111_v27  ;;  %v2103_v56 = vmul.f32 0.17677669, %v4114_v33  ;;  %v2108_v11 = vsel %vm700_vm8, %v2104_v19, -inf }
0x10ae   :  { %v2371_v34 = vadd.f32 %v4741_v30, %v2367_v44  ;;  %v2102_v48 = vmul.f32 0.17677669, %v2091_v29 }
0x10af   :  { %v4142_v28 = vpop.f32.mrb[34].mxu1  ;;  %v2370_v39 = vadd.f32 %v4742_v38, %v2366_v32  ;;  %v2107_v36 = vadd.f32 %v4744_v37, %v2103_v56 }
0x10b0   :  { %v2357_v42 = vpop.f32.mrb[35].mxu1  ;;  %v2377_v57 = vsel %vm700_vm8, %v2371_v34, -inf  ;;  %v2369_v58 = vmul.f32 0.17677669, %v4142_v28  ;;  %v2106_v3 = vadd.f32 %v4743_v51, %v2102_v48 }
0x10b1   :  { %v2368_v43 = vmul.f32 0.17677669, %v2357_v42  ;;  %2378 = vmax.xlane.f32.xlu0 %v2377_v57  ;;  %v2374_v59 = vsel %vm700_vm8, %v2370_v39, -inf  ;;  %v2117_v60 = vsel %vm700_vm8, %v2107_v36, -inf }
0x10b2   :  { %2375 = vmax.xlane.f32.xlu1 %v2374_v59  ;;  %v2373_v2 = vadd.f32 %v4744_v37, %v2369_v58  ;;  %v2114_v8 = vsel %vm700_vm8, %v2106_v3, -inf  ;;  %v3544_v37 = vld [vmem:[%s6206_s14 + $0x40] sm:$0xff] }
0x10b3   :  { %v2372_v26 = vadd.f32 %v4743_v51, %v2368_v43 }
0x10b4   :  { %v2383_v46 = vsel %vm700_vm8, %v2373_v2, -inf }
0x10b5   :  { %2109 = vmax.xlane.f32.xlu0 %v2108_v11  ;;  %v2380_v52 = vsel %vm700_vm8, %v2372_v26, -inf }
0x10b6   :  { %2381 = vmax.xlane.f32.xlu1 %v2380_v52  ;;  %v3546_v52 = vld [vmem:[%s6206_s14 + $0x50] sm:$0xff] }
0x10b9   :  { %2118 = vmax.xlane.f32.xlu0 %v2117_v60  ;;  %v3547_v60 = vld [vmem:[%s6206_s14 + $0x58] sm:$0xff] }
0x10bd   :  { %2384 = vmax.xlane.f32.xlu0 %v2383_v46  ;;  %v3548_v46 = vld [vmem:[%s6206_s14 + $0x60] sm:$0xff] }
0x10c1   :  { %2115 = vmax.xlane.f32.xlu0 %v2114_v8 }
0x10c7   :  { %4604 = vrot.lane.b32.xlu1 %v4603_v45, %s6245_s13 }
0x10d7   :  { %4609 = vrot.lane.b32.xlu0 %v4608_v20, %s6245_s13 }
0x113a   :  { %v2113_v9 = vpop.xlane.xlu1 %2112 }
0x113b   :  { %v2121_v10 = vsub.f32 %v2105_v31, %v2113_v9  ;;  %v3550_v9 = vld [vmem:[%s6206_s14 + $0x70] sm:$0xff] }
0x113d   :  { %v2126_v49 = vmul.f32 1.442695, %v2121_v10  ;;  %v3551_v10 = vld [vmem:[%s6206_s14 + $0x78] sm:$0xff] }
0x113e   :  { %v2379_v55 = vpop.xlane.xlu0 %2378 }
0x113f   :  { %v2387_v12 = vsub.f32 %v2371_v34, %v2379_v55  ;;  %v2376_v53 = vpop.xlane.xlu1 %2375  ;;  %v4425_v55 = vpack.c.bf16 %v3551_v10, %v3550_v9 }
0x1140   :  { %v2386_v15 = vsub.f32 %v2370_v39, %v2376_v53 }
0x1141   :  { %v2392_v16 = vmul.f32 1.442695, %v2387_v12 }
0x1142   :  { %v2390_v1 = vmul.f32 1.442695, %v2386_v15  ;;  %v2110_v62 = vpop.xlane.xlu0 %2109 }
0x1143   :  { %4685 = vpow2.f32 %v2392_v16  ;;  %v2120_v17 = vsub.f32 %v2104_v19, %v2110_v62  ;;  %v2382_v18 = vpop.xlane.xlu1 %2381 }
0x1144   :  { %4687 = vpow2.f32 %v2390_v1  ;;  %v2388_v40 = vsub.f32 %v2372_v26, %v2382_v18 }
0x1145   :  { %v2124_v4 = vmul.f32 1.442695, %v2120_v17  ;;  %4689 = vpow2.f32 %v2126_v49 }
0x1146   :  { %v2394_v45 = vmul.f32 1.442695, %v2388_v40  ;;  %v2119_v61 = vpop.xlane.xlu0 %2118 }
0x1147   :  { %4691 = vpow2.f32 %v2124_v4  ;;  %v4605_v35 = vpop.permute.xlu1 %4604  ;;  %v2123_v24 = vsub.f32 %v2107_v36, %v2119_v61  ;;  %v3545_v36 = vld [vmem:[%s6206_s14 + $0x48] sm:$0xff] }
0x1148   :  { %4693 = vpow2.f32 %v2394_v45  ;;  %v4607_v20 = vunpack.i.h.bf16 %v4605_v35  ;;  %v4606_v54 = vunpack.i.l.bf16 %v4605_v35  ;;  %v4413_v48 = vpack.c.bf16 %v3545_v36, %v3544_v37 }
0x1149   :  { %v2130_v7 = vmul.f32 1.442695, %v2123_v24 }
0x114a   :  { %v4405_v13 = vpack.c.bf16 %v4607_v20, %v4606_v54  ;;  %v2385_v22 = vpop.xlane.xlu0 %2384  ;;  %4414 = vmatprep.subr.bf16.mxu1 %v4413_v48 }
0x114b   :  { %v2389_v50 = vsub.f32 %v2373_v2, %v2385_v22  ;;  %v4417_v2 = vpack.c.bf16 %v3547_v60, %v3546_v52  ;;  %4416 = vmatpush3.bf16.msra.mxu1 %v4413_v48 }
0x114c   :  { %4406 = vmatprep.subr.bf16.mxu0 %v4405_v13 }
0x114d   :  { %v4686_v25 = vpop.eup %4685  ;;  %v2396_v30 = vmul.f32 1.442695, %v2389_v50  ;;  %4418 = vmatprep.subr.bf16.mxu1 %v4417_v2 }
0x114e   :  { %v4688_v31 = vpop.eup %4687  ;;  %v2116_v33 = vpop.xlane.xlu0 %2115  ;;  %v2401_v63 = vsel %vm700_vm8, %v4686_v25, 0.0 }
0x114f   :  { %4695 = vpow2.f32 %v2396_v30  ;;  %v2122_v41 = vsub.f32 %v2106_v3, %v2116_v33  ;;  %2402 = vadd.xlane.f32.xlu0 %v2401_v63  ;;  %v2398_v44 = vsel %vm700_vm8, %v4688_v31, 0.0  ;;  %v4690_v29 = vpop.eup %4689  ;;  %v3549_v3 = vld [vmem:[%s6206_s14 + $0x68] sm:$0xff]  ;;  %4420 = vmatpush3.bf16.msra.mxu1 %v4417_v2 }
0x1150   :  { %2399 = vadd.xlane.f32.xlu1 %v2398_v44  ;;  %v2135_v26 = vsel %vm700_vm8, %v4690_v29, 0.0  ;;  %v4421_v8 = vpack.c.bf16 %v3549_v3, %v3548_v46 }
0x1151   :  { %v4692_v32 = vpop.eup %4691  ;;  %v2128_v27 = vmul.f32 1.442695, %v2122_v41 }
0x1152   :  { %v4694_v34 = vpop.eup %4693  ;;  %4123 = vmatprep.mubr.msk.f32.mxu0 %vm700_vm8, %v4692_v32  ;;  %v4610_v28 = vpop.permute.xlu0 %4609  ;;  %v2132_v57 = vsel %vm700_vm8, %v4692_v32, 0.0  ;;  %4422 = vmatprep.subr.bf16.mxu1 %v4421_v8 }
0x1153   :  { %4697 = vpow2.f32 %v2128_v27  ;;  %v4612_v38 = vunpack.i.h.bf16 %v4610_v28  ;;  %v4611_v39 = vunpack.i.l.bf16 %v4610_v28  ;;  %4124 = vmatmul.mubr.msk.f32.vlgmr.msra.gmra.mrb[32].mxu0 %vm700_vm8, %v4690_v29  ;;  %v2404_v56 = vsel %vm700_vm8, %v4694_v34, 0.0  ;;  %4424 = vmatpush3.bf16.msra.mxu1 %v4421_v8 }
0x1154   :  { %4699 = vpow2.f32 %v2130_v7  ;;  %4408 = vmatpush3.bf16.msra.mxu0 %v4405_v13  ;;  %2405 = vadd.xlane.f32.xlu1 %v2404_v56 }
0x1155   :  { %v4409_v42 = vpack.c.bf16 %v4612_v38, %v4611_v39  ;;  %4426 = vmatprep.subr.bf16.mxu1 %v4425_v55 }
0x1157   :  { %4410 = vmatprep.subr.bf16.mxu0 %v4409_v42  ;;  %4428 = vmatpush3.bf16.msra.mxu1 %v4425_v55 }
0x1158   :  { %2133 = vadd.xlane.f32.xlu1 %v2132_v57  ;;  %4412 = vmatpush3.bf16.msra.mxu0 %v4409_v42 }
0x1159   :  { %v4696_v19 = vpop.eup %4695 }
0x115a   :  { %v2407_v43 = vsel %vm700_vm8, %v4696_v19, 0.0 }
0x115b   :  { %2408 = vadd.xlane.f32.xlu0 %v2407_v43 }
0x115d   :  { %v4698_v59 = vpop.eup %4697 }
0x115e   :  { %v4700_v51 = vpop.eup %4699  ;;  %4126 = vmatprep.mubr.msk.f32.mxu0 %vm700_vm8, %v4698_v59  ;;  %v2138_v58 = vsel %vm700_vm8, %v4698_v59, 0.0 }
0x115f   :  { %2136 = vadd.xlane.f32.xlu0 %v2135_v26  ;;  %4127 = vmatmul.mubr.msk.f32.gmra.mrb[34].mxu0 %vm700_vm8, %v4700_v51  ;;  %v2141_v11 = vsel %vm700_vm8, %v4700_v51, 0.0  ;;  %v3557_v51 = vld [vmem:[%s6207_s15 + $0x1] ss:$0 sm:$0xff] }
0x1160   :  { %2139 = vadd.xlane.f32.xlu1 %v2138_v58  ;;  %4151 = vmatprep.mubr.msk.f32.mxu0 %vm700_vm8, %v4688_v31 }
0x1163   :  { %2142 = vadd.xlane.f32.xlu0 %v2141_v11  ;;  %4152 = vmatmul.mubr.msk.f32.vlgmr.msra.gmra.mrb[36].mxu0 %vm700_vm8, %v4686_v25 }
0x1164   :  { %4154 = vmatprep.mubr.msk.f32.mxu0 %vm700_vm8, %v4694_v34 }
0x1167   :  { %4155 = vmatmul.mubr.msk.f32.gmra.mrb[38].mxu0 %vm700_vm8, %v4696_v19 }
0x11dc   :  { %v2403_v16 = vpop.xlane.xlu0 %2402 }
0x11dd   :  { %v2400_v15 = vpop.xlane.xlu1 %2399  ;;  %4701 = vrcp.f32 %v2403_v16 }
0x11de   :  { %4703 = vrcp.f32 %v2400_v15 }
0x11e1   :  { %v2406_v49 = vpop.xlane.xlu1 %2405 }
0x11e2   :  { %4705 = vrcp.f32 %v2406_v49 }
0x11e5   :  { %v2134_v25 = vpop.xlane.xlu1 %2133 }
0x11e7   :  { %v4702_v18 = vpop.eup %4701 }
0x11e8   :  { %v2409_v1 = vpop.xlane.xlu0 %2408  ;;  %v4704_v4 = vpop.eup %4703 }
0x11e9   :  { %4707 = vrcp.f32 %v2409_v1 }
0x11ea   :  { %4709 = vrcp.f32 %v2134_v25 }
0x11ec   :  { %v4706_v54 = vpop.eup %4705  ;;  %v2137_v30 = vpop.xlane.xlu0 %2136 }
0x11ed   :  { %v2140_v31 = vpop.xlane.xlu1 %2139  ;;  %4711 = vrcp.f32 %v2137_v30 }
0x11ee   :  { %4713 = vrcp.f32 %v2140_v31  ;;  %v3567_v31 = vld [vmem:[%s6208_s18 + $0xa8] sm:$0xff] }
0x11f0   :  { %v2143_v33 = vpop.xlane.xlu0 %2142 }
0x11f1   :  { %4715 = vrcp.f32 %v2143_v33  ;;  %v3569_v33 = vld [vmem:[%s6208_s18 + $0xb8] sm:$0xff] }
0x11f3   :  { %v4708_v50 = vpop.eup %4707 }
0x11f4   :  { %v4710_v63 = vpop.eup %4709 }
0x11f7   :  { %v4712_v41 = vpop.eup %4711 }
0x11f8   :  { %v4714_v34 = vpop.eup %4713 }
0x11fb   :  { %v4716_v42 = vpop.eup %4715 }
0x1226   :  { %v4125_v12 = vpop.f32.mrb[32].mxu0 }
0x1227   :  { %v2222_v53 = vpop.f32.mrb[33].mxu0  ;;  %v2246_v7 = vmul.f32 %v4712_v41, %v4125_v12  ;;  %v3566_v41 = vld [vmem:[%s6208_s18 + $0xa0] sm:$0xff] }
0x1228   :  { %v2245_v44 = vmul.f32 %v4710_v63, %v2222_v53  ;;  %v4433_v63 = vpack.c.bf16 %v3569_v33, %v3567_v31  ;;  %v3585_v31 = vld [vmem:[%s6211_s20 + $0x110] sm:$0xff]  ;;  %v3586_v33 = vld [vmem:[%s6211_s20 + $0x118] sm:$0xff] }
0x1232   :  { %v4128_v62 = vpop.f32.mrb[34].mxu0 }
0x1233   :  { %v2232_v17 = vpop.f32.mrb[35].mxu0  ;;  %v2248_v57 = vmul.f32 %v4716_v42, %v4128_v62 }
0x1234   :  { %v2247_v38 = vmul.f32 %v4714_v34, %v2232_v17  ;;  %v3570_v34 = vld [vmem:[%s6208_s18 + $0xc0] sm:$0xff] }
0x1236   :  { %v4153_v40 = vpop.f32.mrb[36].mxu0 }
0x1237   :  { %v2528_v45 = vmul.f32 %v4702_v18, %v4153_v40  ;;  %v2504_v61 = vpop.f32.mrb[37].mxu0 }
0x1238   :  { %v2527_v35 = vmul.f32 %v4704_v4, %v2504_v61 }
0x1239   :  { %2537 = vrot.lane.b32.xlu0 %v2528_v45, %s4765_s12 }
0x123a   :  { %2535 = vrot.lane.b32.xlu1 %v2527_v35, %s4765_s12  ;;  %v4156_v20 = vpop.f32.mrb[38].mxu0 }
0x123b   :  { %v2514_v13 = vpop.f32.mrb[39].mxu0  ;;  %v2530_v24 = vmul.f32 %v4708_v50, %v4156_v20  ;;  %v3562_v50 = vld [vmem:[%s6208_s18 + $0x80] sm:$0xff] }
0x123c   :  { %v2529_v22 = vmul.f32 %v4706_v54, %v2514_v13  ;;  %v3563_v13 = vld [vmem:[%s6208_s18 + $0x88] sm:$0xff] }
0x123e   :  { %2539 = vrot.lane.b32.xlu1 %v2529_v22, %s4765_s12  ;;  %v3565_v22 = vld [vmem:[%s6208_s18 + $0x98] sm:$0xff] }
0x123f   :  { %v4429_v25 = vpack.c.bf16 %v3565_v22, %v3563_v13  ;;  %v3584_v22 = vld [vmem:[%s6211_s20 + $0x108] sm:$0xff] }
0x1241   :  { %4430 = vmatprep.subr.bf16.mxu1 %v4429_v25  ;;  %v3602_v25 = vld [vmem:[%s6211_s20 + $0x198] sm:$0xff] }
0x1242   :  { %2541 = vrot.lane.b32.xlu1 %v2530_v24, %s4765_s12  ;;  %v3564_v24 = vld [vmem:[%s6208_s18 + $0x90] sm:$0xff] }
0x1243   :  { %v4431_v30 = vpack.c.bf16 %v3564_v24, %v3562_v50  ;;  %v3601_v24 = vld [vmem:[%s6211_s20 + $0x190] sm:$0xff] }
0x12ab   :  { %v2538_v29 = vpop.permute.xlu0 %2537 }
0x12ac   :  { %v2536_v32 = vpop.permute.xlu1 %2535  ;;  %v2548_v28 = vsel %vm700_vm8, %v2246_v7, %v2538_v29  ;;  %v3571_v7 = vld [vmem:[%s6208_s18 + $0xc8] sm:$0xff] }
0x12ad   :  { %v2547_v27 = vsel %vm700_vm8, %v2245_v44, %v2536_v32  ;;  %v3568_v44 = vld [vmem:[%s6208_s18 + $0xb0] sm:$0xff]  ;;  %v3573_v32 = vld [vmem:[%s6208_s18 + $0xd8] sm:$0xff] }
0x12ae   :  { %4173 = vmatprep.mubr.msk.f32.mxu1 %vm485_vm7, %v2547_v27  ;;  %v4435_v29 = vpack.c.bf16 %v3568_v44, %v3566_v41  ;;  %v4437_v27 = vpack.c.bf16 %v3573_v32, %v3571_v7  ;;  %v3603_v41 = vld [vmem:[%s6211_s20 + $0x1a0] sm:$0xff]  ;;  %v3604_v44 = vld [vmem:[%s6211_s20 + $0x1a8] sm:$0xff] }
0x12af   :  { %4174 = vmatmul.mubr.msk.f32.vlgmr.msra.gmra.mrb[36].mxu1 %vm485_vm7, %v2548_v28  ;;  %v3572_v28 = vld [vmem:[%s6208_s18 + $0xd0] sm:$0xff]  ;;  %v3587_v7 = vld [vmem:[%s6211_s20 + $0x120] sm:$0xff]  ;;  %v3588_v32 = vld [vmem:[%s6211_s20 + $0x128] sm:$0xff] }
0x12b0   :  { %v2540_v39 = vpop.permute.xlu1 %2539  ;;  %4432 = vmatpush1.bf16.msra.mxu1 %v4431_v30  ;;  %v4449_v30 = vpack.c.bf16 %v3602_v25, %v3601_v24 }
0x12b1   :  { %v2549_v56 = vsel %vm700_vm8, %v2247_v38, %v2540_v39  ;;  %4434 = vmatprep.subr.bf16.mxu1 %v4433_v63  ;;  %v4439_v38 = vpack.c.bf16 %v3572_v28, %v3570_v34  ;;  %v3575_v39 = vld [vmem:[%s6208_s18 + $0xe8] sm:$0xff]  ;;  %v4451_v63 = vpack.c.bf16 %v3586_v33, %v3585_v31  ;;  %v3605_v34 = vld [vmem:[%s6211_s20 + $0x1b0] sm:$0xff]  ;;  %v3606_v28 = vld [vmem:[%s6211_s20 + $0x1b8] sm:$0xff] }
0x12b2   :  { %4176 = vmatprep.mubr.msk.f32.mxu1 %vm485_vm7, %v2549_v56  ;;  %v3577_v56 = vld [vmem:[%s6208_s18 + $0xf8] sm:$0xff] }
0x12b3   :  { %v4441_v42 = vpack.c.bf16 %v3577_v56, %v3575_v39  ;;  %v3589_v39 = vld [vmem:[%s6211_s20 + $0x130] sm:$0xff]  ;;  %v3590_v56 = vld [vmem:[%s6211_s20 + $0x138] sm:$0xff] }
0x12b4   :  { %v2542_v19 = vpop.permute.xlu1 %2541  ;;  %4436 = vmatpush1.bf16.msra.mxu1 %v4435_v29  ;;  %v4453_v29 = vpack.c.bf16 %v3604_v44, %v3603_v41 }
0x12b5   :  { %v2550_v43 = vsel %vm700_vm8, %v2248_v57, %v2542_v19  ;;  %4438 = vmatprep.subr.bf16.mxu1 %v4437_v27  ;;  %v3574_v57 = vld [vmem:[%s6208_s18 + $0xe0] sm:$0xff]  ;;  %v3576_v19 = vld [vmem:[%s6208_s18 + $0xf0] sm:$0xff]  ;;  %v4455_v27 = vpack.c.bf16 %v3588_v32, %v3587_v7 }
0x12b6   :  { %4177 = vmatmul.mubr.msk.f32.gmra.mrb[38].mxu1 %vm485_vm7, %v2550_v43  ;;  %v4443_v43 = vpack.c.bf16 %v3576_v19, %v3574_v57  ;;  %v3607_v57 = vld [vmem:[%s6211_s20 + $0x1c0] sm:$0xff]  ;;  %v3608_v19 = vld [vmem:[%s6211_s20 + $0x1c8] sm:$0xff] }
0x12b7   :  { %2855 = vmatprep.mubr.f32.mxu1 %v4763_v47 }
0x12b8   :  { %4440 = vmatpush1.bf16.msra.mxu1 %v4439_v38  ;;  %v4457_v38 = vpack.c.bf16 %v3606_v28, %v3605_v34 }
0x12b9   :  { %4442 = vmatprep.subr.bf16.mxu1 %v4441_v42  ;;  %v4459_v42 = vpack.c.bf16 %v3590_v56, %v3589_v39 }
0x12bc   :  { %4444 = vmatpush1.bf16.msra.mxu1 %v4443_v43  ;;  %v4461_v43 = vpack.c.bf16 %v3608_v19, %v3607_v57 }
0x1382   :  { %v4175_v59 = vpop.f32.mrb[36].mxu1 }
0x1383   :  { %v2658_v26 = vadd.f32 %v4175_v59, %v5567_v5  ;;  %v2638_v58 = vpop.f32.mrb[37].mxu1 }
0x1384   :  { %v2657_v11 = vadd.f32 %v2638_v58, %v5562_v0 }
0x1385   :  { %v5809_v37 = vadd.f32 %v3557_v51, %v2658_v26 }
0x1386   :  { %v5811_v36 = vadd.f32 %v3557_v51, %v2657_v11 }
0x1387   :  { %v2680_v52 = vsel %vm485_vm7, %v5809_v37, 0.0 }
0x1388   :  { %2681 = vadd.xlane.f32.xlu1 %v2680_v52  ;;  %v2677_v48 = vsel %vm485_vm7, %v5811_v36, 0.0 }
0x1389   :  { %2678 = vadd.xlane.f32.xlu0 %v2677_v48  ;;  %v4178_v60 = vpop.f32.mrb[38].mxu1 }
0x138a   :  { %v2648_v2 = vpop.f32.mrb[39].mxu1  ;;  %v2660_v46 = vadd.f32 %v4178_v60, %v5577_v6 }
0x138b   :  { %v2659_v5 = vadd.f32 %v2648_v2, %v5572_v14 }
0x138c   :  { %v5821_v0 = vadd.f32 %v3557_v51, %v2660_v46 }
0x138d   :  { %v5819_v3 = vadd.f32 %v3557_v51, %v2659_v5 }
0x138e   :  { %v2686_v9 = vsel %vm485_vm7, %v5821_v0, 0.0 }
0x138f   :  { %v2683_v8 = vsel %vm485_vm7, %v5819_v3, 0.0 }
0x1390   :  { %2684 = vadd.xlane.f32.xlu0 %v2683_v8 }
0x1394   :  { %2687 = vadd.xlane.f32.xlu0 %v2686_v9 }
0x1415   :  { %v2682_v10 = vpop.xlane.xlu1 %2681 }
0x1416   :  { %v2690_v55 = vmul.f32 0.015625, %v2682_v10  ;;  %v2679_v12 = vpop.xlane.xlu0 %2678 }
0x1417   :  { %v2689_v53 = vmul.f32 0.015625, %v2679_v12 }
0x1418   :  { %v5828_v6 = vsub.f32 %v5809_v37, %v2690_v55  ;;  %v3560_v55 = vld [vmem:[%s6209_s16 + $0x1] ss:$0 sm:$0xff] }
0x1419   :  { %v5831_v14 = vsub.f32 %v5811_v36, %v2689_v53 }
0x141a   :  { %v2698_v15 = vmul.f32 %v5828_v6, %v5828_v6 }
0x141b   :  { %v2697_v16 = vmul.f32 %v5831_v14, %v5831_v14 }
0x141c   :  { %v2704_v49 = vsel %vm485_vm7, %v2698_v15, 0.0  ;;  %v3561_v15 = vld [vmem:[%s6210_s17 + $0x1] ss:$0 sm:$0xff] }
0x141d   :  { %v2685_v1 = vpop.xlane.xlu0 %2684  ;;  %2705 = vadd.xlane.f32.xlu0 %v2704_v49  ;;  %v2701_v62 = vsel %vm485_vm7, %v2697_v16, 0.0 }
0x141e   :  { %v2691_v17 = vmul.f32 0.015625, %v2685_v1  ;;  %2702 = vadd.xlane.f32.xlu1 %v2701_v62 }
0x1420   :  { %v5840_v18 = vsub.f32 %v5819_v3, %v2691_v17 }
0x1421   :  { %v2688_v40 = vpop.xlane.xlu0 %2687 }
0x1422   :  { %v2692_v4 = vmul.f32 0.015625, %v2688_v40  ;;  %v2699_v45 = vmul.f32 %v5840_v18, %v5840_v18 }
0x1424   :  { %v5845_v61 = vsub.f32 %v5821_v0, %v2692_v4  ;;  %v2707_v35 = vsel %vm485_vm7, %v2699_v45, 0.0 }
0x1425   :  { %2708 = vadd.xlane.f32.xlu1 %v2707_v35 }
0x1426   :  { %v2700_v20 = vmul.f32 %v5845_v61, %v5845_v61 }
0x1428   :  { %v2710_v54 = vsel %vm485_vm7, %v2700_v20, 0.0 }
0x1429   :  { %2711 = vadd.xlane.f32.xlu0 %v2710_v54  ;;  %v3600_v54 = vld [vmem:[%s6211_s20 + $0x188] sm:$0xff] }
0x14aa   :  { %v2706_v59 = vpop.xlane.xlu0 %2705 }
0x14ab   :  { %v2714_v51 = vmul.f32 0.015625, %v2706_v59  ;;  %v2703_v26 = vpop.xlane.xlu1 %2702  ;;  %v3591_v59 = vld [vmem:[%s6211_s20 + $0x140] sm:$0xff] }
0x14ac   :  { %v2713_v58 = vmul.f32 0.015625, %v2703_v26 }
0x14ad   :  { %v2718_v11 = vadd.f32 1e-05, %v2714_v51  ;;  %v3592_v51 = vld [vmem:[%s6211_s20 + $0x148] sm:$0xff] }
0x14ae   :  { %v2717_v52 = vadd.f32 1e-05, %v2713_v58  ;;  %v4463_v26 = vpack.c.bf16 %v3592_v51, %v3591_v59  ;;  %v3609_v58 = vld [vmem:[%s6211_s20 + $0x1d0] sm:$0xff] }
0x14af   :  { %4717 = vrsqrt.f32 %v2718_v11  ;;  %v3610_v11 = vld [vmem:[%s6211_s20 + $0x1d8] sm:$0xff] }
0x14b0   :  { %4719 = vrsqrt.f32 %v2717_v52  ;;  %v4465_v52 = vpack.c.bf16 %v3610_v11, %v3609_v58 }
0x14b2   :  { %v2709_v48 = vpop.xlane.xlu1 %2708 }
0x14b3   :  { %v2715_v60 = vmul.f32 0.015625, %v2709_v48  ;;  %v3593_v48 = vld [vmem:[%s6211_s20 + $0x150] sm:$0xff] }
0x14b5   :  { %v2719_v2 = vadd.f32 1e-05, %v2715_v60  ;;  %v3594_v60 = vld [vmem:[%s6211_s20 + $0x158] sm:$0xff] }
0x14b6   :  { %v2712_v46 = vpop.xlane.xlu0 %2711 }
0x14b7   :  { %4721 = vrsqrt.f32 %v2719_v2  ;;  %v2716_v5 = vmul.f32 0.015625, %v2712_v46  ;;  %v4467_v2 = vpack.c.bf16 %v3594_v60, %v3593_v48  ;;  %v3611_v46 = vld [vmem:[%s6211_s20 + $0x1e0] sm:$0xff] }
0x14b9   :  { %v4718_v8 = vpop.eup %4717  ;;  %v2720_v9 = vadd.f32 1e-05, %v2716_v5  ;;  %v3612_v5 = vld [vmem:[%s6211_s20 + $0x1e8] sm:$0xff] }
0x14ba   :  { %v4720_v10 = vpop.eup %4719  ;;  %v2726_v53 = vmul.f32 %v4718_v8, %v5828_v6  ;;  %v4469_v8 = vpack.c.bf16 %v3612_v5, %v3611_v46 }
0x14bb   :  { %v2725_v12 = vmul.f32 %v4720_v10, %v5831_v14  ;;  %4723 = vrsqrt.f32 %v2720_v9  ;;  %v3595_v9 = vld [vmem:[%s6211_s20 + $0x160] sm:$0xff]  ;;  %v3596_v10 = vld [vmem:[%s6211_s20 + $0x168] sm:$0xff] }
0x14bc   :  { %v2736_v1 = vmul.f32 %v3560_v55, %v2726_v53  ;;  %v3614_v53 = vld [vmem:[%s6211_s20 + $0x1f8] sm:$0xff] }
0x14bd   :  { %v2735_v16 = vmul.f32 %v3560_v55, %v2725_v12  ;;  %v3613_v12 = vld [vmem:[%s6211_s20 + $0x1f0] sm:$0xff] }
0x14be   :  { %v2746_v40 = vadd.f32 %v3561_v15, %v2736_v1 }
0x14bf   :  { %v2745_v49 = vadd.f32 %v3561_v15, %v2735_v16  ;;  %v3597_v16 = vld [vmem:[%s6211_s20 + $0x170] sm:$0xff] }
0x14c1   :  { %v4722_v62 = vpop.eup %4721  ;;  %3579 = vmatmul.mubr.msk.f32.vlgmr.msra.gmra.mrb[40].mxu1 %vm485_vm7, %v2745_v49  ;;  %v3598_v49 = vld [vmem:[%s6211_s20 + $0x178] sm:$0xff] }
0x14c2   :  { %2861 = vmatprep.mubr.f32.mxu1 %v4763_v47  ;;  %v2727_v17 = vmul.f32 %v4722_v62, %v5840_v18  ;;  %v3599_v18 = vld [vmem:[%s6211_s20 + $0x180] sm:$0xff]  ;;  %v4475_v1 = vpack.c.bf16 %v3598_v49, %v3597_v16 }
0x14c3   :  { %v4445_v13 = vpack.c.bf16 %v3600_v54, %v3599_v18  ;;  %v3578_v62 = vld [vmem:[%s6212_s19 + $0x2] sm:$0x3] }
0x14c4   :  { %v2737_v4 = vmul.f32 %v3560_v55, %v2727_v17  ;;  %v2772_v17 = vrot.slane %v3578_v62, %v5097_v21 }
0x14c5   :  { %v4724_v14 = vpop.eup %4723  ;;  %3580 = vmatmul.mubr.msk.f32.gmra.mrb[42].mxu1 %vm485_vm7, %v2746_v40  ;;  %4446 = vmatprep.subr.bf16.mxu1 %v4445_v13  ;;  %v2776_v40 = vrot.slane %v3578_v62, %v5103_v23 }
0x14c6   :  { %2867 = vmatprep.mubr.f32.mxu1 %v4763_v47  ;;  %v2747_v6 = vadd.f32 %v3561_v15, %v2737_v4  ;;  %v2728_v45 = vmul.f32 %v4724_v14, %v5845_v61  ;;  %v3583_v61 = vld [vmem:[%s6211_s20 + $0x100] sm:$0xff] }
0x14c7   :  { %v4447_v50 = vpack.c.bf16 %v3584_v22, %v3583_v61 }
0x14c8   :  { %v2738_v35 = vmul.f32 %v3560_v55, %v2728_v45  ;;  %v4471_v55 = vpack.c.bf16 %v3596_v10, %v3595_v9 }
0x14c9   :  { %3581 = vmatmul.mubr.msk.f32.gmra.mrb[44].mxu1 %vm485_vm7, %v2747_v6 }
0x14ca   :  { %2873 = vmatprep.mubr.f32.mxu1 %v4763_v47  ;;  %v2748_v20 = vadd.f32 %v3561_v15, %v2738_v35  ;;  %4448 = vmatpush3.bf16.msra.mxu1 %v4447_v50  ;;  %v4473_v15 = vpack.c.bf16 %v3614_v53, %v3613_v12 }
0x14cb   :  { %4450 = vmatprep.subr.bf16.mxu1 %v4449_v30 }
0x14cd   :  { %3582 = vmatmul.mubr.msk.f32.gmra.mrb[46].mxu1 %vm485_vm7, %v2748_v20 }
0x14ce   :  { %4452 = vmatpush3.bf16.msra.mxu1 %v4451_v63 }
0x14cf   :  { %4454 = vmatprep.subr.bf16.mxu1 %v4453_v29 }
0x14d2   :  { %4456 = vmatpush3.bf16.msra.mxu1 %v4455_v27 }
0x14d3   :  { %4458 = vmatprep.subr.bf16.mxu1 %v4457_v38 }
0x14d6   :  { %4460 = vmatpush3.bf16.msra.mxu1 %v4459_v42 }
0x14d7   :  { %4462 = vmatprep.subr.bf16.mxu1 %v4461_v43 }
0x14da   :  { %4464 = vmatpush3.bf16.msra.mxu1 %v4463_v26 }
0x14db   :  { %4466 = vmatprep.subr.bf16.mxu1 %v4465_v52 }
0x14de   :  { %4468 = vmatpush3.bf16.msra.mxu1 %v4467_v2 }
0x14df   :  { %4470 = vmatprep.subr.bf16.mxu1 %v4469_v8 }
0x14e2   :  { %4472 = vmatpush3.bf16.msra.mxu1 %v4471_v55 }
0x14e3   :  { %4474 = vmatprep.subr.bf16.mxu1 %v4473_v15 }
0x14e6   :  { %4476 = vmatpush3.bf16.msra.mxu1 %v4475_v1 }
0x1594   :  { %v2857_v4 = vpop.f32.mrb[40].mxu1 }
0x1595   :  { %v6017_v14 = vadd.f32 %v2857_v4, %v2772_v17  ;;  %v2859_v6 = vpop.f32.mrb[41].mxu1 }
0x1596   :  { %v6019_v45 = vadd.f32 %v2859_v6, %v2776_v40 }
0x1597   :  { %v2880_v35 = vmul.f32 %v6017_v14, %v6017_v14 }
0x1598   :  { %v2881_v20 = vmul.f32 %v6019_v45, %v6019_v45  ;;  %v2863_v18 = vpop.f32.mrb[42].mxu1 }
0x1599   :  { %v2888_v54 = vmul.f32 %v2880_v35, %v6017_v14  ;;  %v6026_v13 = vadd.f32 %v2863_v18, %v2772_v17  ;;  %v2865_v21 = vpop.f32.mrb[43].mxu1 }
0x159a   :  { %v2889_v23 = vmul.f32 %v2881_v20, %v6019_v45  ;;  %v6029_v61 = vadd.f32 %v2865_v21, %v2776_v40 }
0x159b   :  { %v2896_v22 = vmul.f32 0.044715, %v2888_v54  ;;  %v2882_v50 = vmul.f32 %v6026_v13, %v6026_v13 }
0x159c   :  { %v2897_v24 = vmul.f32 0.044715, %v2889_v23  ;;  %v2883_v25 = vmul.f32 %v6029_v61, %v6029_v61  ;;  %v2869_v30 = vpop.f32.mrb[44].mxu1 }
0x159d   :  { %v2904_v31 = vadd.f32 %v2896_v22, %v6017_v14  ;;  %v2890_v33 = vmul.f32 %v2882_v50, %v6026_v13  ;;  %v6037_v63 = vadd.f32 %v2869_v30, %v2772_v17  ;;  %v2871_v41 = vpop.f32.mrb[45].mxu1 }
0x159e   :  { %v2905_v44 = vadd.f32 %v2897_v24, %v6019_v45  ;;  %v2891_v29 = vmul.f32 %v2883_v25, %v6029_v61  ;;  %v6041_v7 = vadd.f32 %v2871_v41, %v2776_v40 }
0x159f   :  { %v2912_v32 = vmul.f32 0.7978846, %v2904_v31  ;;  %v2898_v27 = vmul.f32 0.044715, %v2890_v33  ;;  %v2884_v34 = vmul.f32 %v6037_v63, %v6037_v63 }
0x15a0   :  { %v2913_v28 = vmul.f32 0.7978846, %v2905_v44  ;;  %v2899_v38 = vmul.f32 0.044715, %v2891_v29  ;;  %v2885_v39 = vmul.f32 %v6041_v7, %v6041_v7  ;;  %v2875_v56 = vpop.f32.mrb[46].mxu1 }
0x15a1   :  { %4725 = vtanh.f32 %v2912_v32  ;;  %v2906_v42 = vadd.f32 %v2898_v27, %v6026_v13  ;;  %v2892_v57 = vmul.f32 %v2884_v34, %v6037_v63  ;;  %v6049_v19 = vadd.f32 %v2875_v56, %v2772_v17  ;;  %v2877_v43 = vpop.f32.mrb[47].mxu1 }
0x15a2   :  { %v2907_v59 = vadd.f32 %v2899_v38, %v6029_v61  ;;  %v2893_v51 = vmul.f32 %v2885_v39, %v6041_v7  ;;  %v2878_v26 = vadd.f32 %v2877_v43, %v2776_v40  ;;  %4727 = vtanh.f32 %v2913_v28 }
0x15a3   :  { %v2914_v58 = vmul.f32 0.7978846, %v2906_v42  ;;  %v2900_v11 = vmul.f32 0.044715, %v2892_v57  ;;  %v2886_v52 = vmul.f32 %v6049_v19, %v6049_v19  ;;  %v3086_v57 = vld [vmem:[%s6214_s8] sm:$0xff] }
0x15a4   :  { %v2915_v48 = vmul.f32 0.7978846, %v2907_v59  ;;  %v2901_v60 = vmul.f32 0.044715, %v2893_v51  ;;  %v2887_v2 = vmul.f32 %v2878_v26, %v2878_v26  ;;  %4187 = vmatprep.mubr.msk.f32.mxu0 %vm700_vm8, %v3086_v57 }
0x15a5   :  { %v2908_v46 = vadd.f32 %v2900_v11, %v6037_v63  ;;  %v2894_v5 = vmul.f32 %v2886_v52, %v6049_v19  ;;  %4729 = vtanh.f32 %v2914_v58 }
0x15a6   :  { %v2909_v8 = vadd.f32 %v2901_v60, %v6041_v7  ;;  %v2895_v9 = vmul.f32 %v2887_v2, %v2878_v26  ;;  %4731 = vtanh.f32 %v2915_v48 }
0x15a7   :  { %v2916_v10 = vmul.f32 0.7978846, %v2908_v46  ;;  %v2902_v55 = vmul.f32 0.044715, %v2894_v5 }
0x15a8   :  { %v2917_v12 = vmul.f32 0.7978846, %v2909_v8  ;;  %v2903_v53 = vmul.f32 0.044715, %v2895_v9 }
0x15a9   :  { %v2910_v15 = vadd.f32 %v2902_v55, %v6049_v19  ;;  %4733 = vtanh.f32 %v2916_v10 }
0x15aa   :  { %v2911_v16 = vadd.f32 %v2903_v53, %v2878_v26  ;;  %4735 = vtanh.f32 %v2917_v12 }
0x15ab   :  { %v4726_v49 = vpop.eup %4725  ;;  %v2918_v1 = vmul.f32 0.7978846, %v2910_v15 }
0x15ac   :  { %v4728_v62 = vpop.eup %4727  ;;  %v2928_v17 = vadd.f32 1.0, %v4726_v49  ;;  %v2919_v40 = vmul.f32 0.7978846, %v2911_v16  ;;  %v4746_v16 = vld [vmem:[%s6236_s4] sm:$0xff]   ;;  %v4747_v49 = vld [vmem:[%s6236_s4 + $0x48] sm:$0xff]  }
0x15ad   :  { %v2929_v4 = vadd.f32 1.0, %v4728_v62  ;;  %4737 = vtanh.f32 %v2918_v1  ;;  %v4748_v1 = vld [vmem:[%s6236_s4 + $0x8] sm:$0xff]   ;;  %v4749_v62 = vld [vmem:[%s6236_s4 + $0x50] sm:$0xff]  }
0x15ae   :  { %v2936_v6 = vmul.f32 0.5, %v2928_v17  ;;  %4739 = vtanh.f32 %v2919_v40  ;;  %v4750_v17 = vld [vmem:[%s6236_s4 + $0x10] sm:$0xff]   ;;  %v4751_v40 = vld [vmem:[%s6236_s4 + $0x58] sm:$0xff]  }
0x15af   :  { %v4730_v35 = vpop.eup %4729  ;;  %v2937_v20 = vmul.f32 0.5, %v2929_v4  ;;  %v4752_v4 = vld [vmem:[%s6236_s4 + $0x18] sm:$0xff]  }
0x15b0   :  { %v4732_v18 = vpop.eup %4731  ;;  %v2930_v54 = vadd.f32 1.0, %v4730_v35  ;;  %v2944_v22 = vmul.f32 %v2936_v6, %v6017_v14  ;;  %v4753_v6 = vld [vmem:[%s6236_s4 + $0x60] sm:$0xff]  }
0x15b1   :  { %v2945_v21 = vmul.f32 %v2937_v20, %v6019_v45  ;;  %v2931_v23 = vadd.f32 1.0, %v4732_v18  ;;  %v4754_v35 = vld [vmem:[%s6236_s4 + $0x20] sm:$0xff]   ;;  %v4755_v20 = vld [vmem:[%s6236_s4 + $0x68] sm:$0xff]  }
0x15b2   :  { %v2938_v50 = vmul.f32 0.5, %v2930_v54  ;;  %v4756_v18 = vld [vmem:[%s6236_s4 + $0x28] sm:$0xff]   ;;  %v4757_v54 = vld [vmem:[%s6236_s4 + $0x70] sm:$0xff]  }
0x15b3   :  { %v4734_v24 = vpop.eup %4733  ;;  %3049 = vmatprep.mubr.f32.mxu1 %v2945_v21  ;;  %v2939_v25 = vmul.f32 0.5, %v2931_v23  ;;  %v4758_v21 = vld [vmem:[%s6236_s4 + $0x30] sm:$0xff]   ;;  %v4759_v23 = vld [vmem:[%s6236_s4 + $0x78] sm:$0xff]  }
0x15b4   :  { %v4736_v30 = vpop.eup %4735  ;;  %3050 = vmatmul.mubr.f32.vlgmr.msra.gmra.mrb[48].mxu1 %v2944_v22  ;;  %v2932_v31 = vadd.f32 1.0, %v4734_v24  ;;  %v2946_v44 = vmul.f32 %v2938_v50, %v6026_v13  ;;  %v4767_v13 = vmov 0.0|0.0   ;;  %v4760_v22 = vld [vmem:[%s6236_s4 + $0x38] sm:$0xff]   ;;  %v3352_v50 = vld [vmem:[%s6215_s9] sm:$0xf] }
0x15b5   :  { %v2947_v33 = vmul.f32 %v2939_v25, %v6029_v61  ;;  %v2933_v41 = vadd.f32 1.0, %v4736_v30  ;;  %4533 = vmatprep.subr.bf16.mxu1 %v4767_v13 }
0x15b6   :  { %v2940_v29 = vmul.f32 0.5, %v2932_v31 }
0x15b7   :  { %v4738_v32 = vpop.eup %4737  ;;  %3054 = vmatprep.mubr.f32.mxu1 %v2947_v33  ;;  %v2941_v27 = vmul.f32 0.5, %v2933_v41 }
0x15b8   :  { %v4740_v45 = vpop.eup %4739  ;;  %3055 = vmatmul.mubr.f32.gmra.mrb[50].mxu1 %v2946_v44  ;;  %v2934_v34 = vadd.f32 1.0, %v4738_v32  ;;  %v2948_v38 = vmul.f32 %v2940_v29, %v6037_v63 }
0x15b9   :  { %v2949_v14 = vmul.f32 %v2941_v27, %v6041_v7  ;;  %v2935_v28 = vadd.f32 1.0, %v4740_v45 }
0x15ba   :  { %v2942_v39 = vmul.f32 0.5, %v2934_v34 }
0x15bb   :  { %3059 = vmatprep.mubr.f32.mxu1 %v2949_v14  ;;  %v2943_v56 = vmul.f32 0.5, %v2935_v28 }
0x15bc   :  { %3060 = vmatmul.mubr.f32.gmra.mrb[52].mxu1 %v2948_v38  ;;  %v2950_v42 = vmul.f32 %v2942_v39, %v6049_v19  ;;  %v3616_v19 = vld [vmem:[%s6213_s21 + $0x1] ss:$0 sm:$0xff] }
0x15bd   :  { %v2951_v61 = vmul.f32 %v2943_v56, %v2878_v26 }
0x15bf   :  { %3064 = vmatprep.mubr.f32.mxu1 %v2951_v61 }
0x15c0   :  { %3065 = vmatmul.mubr.f32.gmra.mrb[54].mxu1 %v2950_v42 }
0x15c1   :  { %4198 = vmatprep.mubr.msk.f32.mxu1 %vm4768_vm11, %v4763_v47  ;;  %v3426_v47 = vld [vmem:[%s6238_s30] sm:$0xf] }
0x1687   :  { %v3946_v7 = vpop.f32.mrb[48].mxu1 }
0x1688   :  { %v3947_v43 = vpop.f32.mrb[49].mxu1 }
0x1689   :  { %v3948_v63 = vadd.f32 %v3947_v43, %v3946_v7 }
0x168b   :  { %v3949_v59 = vpop.f32.mrb[50].mxu1  ;;  %v3070_v58 = vadd.f32 %v3948_v63, %v5811_v36 }
0x168c   :  { %v3950_v51 = vpop.f32.mrb[51].mxu1 }
0x168d   :  { %v3951_v26 = vadd.f32 %v3950_v51, %v3949_v59  ;;  %v3082_v60 = vadd.f32 %v3616_v19, %v3070_v58 }
0x168f   :  { %v3071_v11 = vadd.f32 %v3951_v26, %v5809_v37  ;;  %v3952_v52 = vpop.f32.mrb[52].mxu1 }
0x1690   :  { %v3953_v48 = vpop.f32.mrb[53].mxu1 }
0x1691   :  { %v3083_v2 = vadd.f32 %v3616_v19, %v3071_v11  ;;  %v3954_v46 = vadd.f32 %v3953_v48, %v3952_v52 }
0x1693   :  { %v3955_v5 = vpop.f32.mrb[54].mxu1  ;;  %v4477_v8 = vpack.c.bf16 %v3083_v2, %v3082_v60  ;;  %v3072_v10 = vadd.f32 %v3954_v46, %v5819_v3  ;;  %v3087_v3 = vld [vmem:[%s6214_s8 + $0x8] sm:$0xff] }
0x1694   :  { %v3956_v9 = vpop.f32.mrb[55].mxu1 }
0x1695   :  { %v3957_v55 = vadd.f32 %v3956_v9, %v3955_v5  ;;  %4478 = vmatprep.subr.bf16.mxu0 %v4477_v8  ;;  %4535 = vmatpush3.bf16.msra.mxu1 %v4477_v8  ;;  %v3084_v12 = vadd.f32 %v3616_v19, %v3072_v10 }
0x1696   :  { %4480 = vmatpush3.bf16.msra.mxu0 %v4477_v8  ;;  %4536 = vmatprep.subr.bf16.mxu1 %v4767_v13 }
0x1697   :  { %v3073_v36 = vadd.f32 %v3957_v55, %v5821_v0  ;;  %v4745_v0 = vld [vmem:[%s6236_s4 + $0x40] sm:$0xff]  }
0x1699   :  { %v3085_v53 = vadd.f32 %v3616_v19, %v3073_v36 }
0x169b   :  { %v4481_v37 = vpack.c.bf16 %v3085_v53, %v3084_v12 }
0x169d   :  { %4482 = vmatprep.subr.bf16.mxu0 %v4481_v37  ;;  %4538 = vmatpush3.bf16.msra.mxu1 %v4481_v37 }
0x169e   :  { %4484 = vmatpush3.bf16.msra.mxu0 %v4481_v37 }
0x169f   :  { %4487 = vmatprep.subr.msk.bf16.mxu0 %vm6079_vm10, %v4745_v0 }
0x16a0   :  { %4199 = vmatmul.mubr.msk.f32.vlgmr.msra.gmra.mrb[56].mxu1 %vm700_vm8, %v3352_v50 }
0x16a1   :  { %4188 = vmatmul.mubr.msk.f32.vlgmr.msra.gmra.mrb[40].mxu0 %vm700_vm8, %v3087_v3 }
0x16a7   :  { %4490 = vmatpush3.bf16.xpose.msk.msra.mxu0 %vm6079_vm10, %v4746_v16 }
0x16a8   :  { %4493 = vmatprep.subr.msk.bf16.mxu0 %vm6079_vm10, %v4747_v49 }
0x16af   :  { %4496 = vmatpush3.bf16.xpose.msk.msra.mxu0 %vm6079_vm10, %v4748_v1 }
0x16b0   :  { %4499 = vmatprep.subr.msk.bf16.mxu0 %vm6079_vm10, %v4749_v62 }
0x16b7   :  { %4502 = vmatpush3.bf16.xpose.msk.msra.mxu0 %vm6079_vm10, %v4750_v17 }
0x16b8   :  { %4505 = vmatprep.subr.msk.bf16.mxu0 %vm6079_vm10, %v4751_v40 }
0x16bf   :  { %4508 = vmatpush3.bf16.xpose.msk.msra.mxu0 %vm6079_vm10, %v4752_v4 }
0x16c0   :  { %4511 = vmatprep.subr.msk.bf16.mxu0 %vm6079_vm10, %v4753_v6 }
0x16c7   :  { %4514 = vmatpush3.bf16.xpose.msk.msra.mxu0 %vm6079_vm10, %v4754_v35 }
0x16c8   :  { %4517 = vmatprep.subr.msk.bf16.mxu0 %vm6079_vm10, %v4755_v20 }
0x16cf   :  { %4520 = vmatpush3.bf16.xpose.msk.msra.mxu0 %vm6079_vm10, %v4756_v18 }
0x16d0   :  { %4523 = vmatprep.subr.msk.bf16.mxu0 %vm6079_vm10, %v4757_v54 }
0x16d7   :  { %4526 = vmatpush3.bf16.xpose.msk.msra.mxu0 %vm6079_vm10, %v4758_v21 }
0x16d8   :  { %4529 = vmatprep.subr.msk.bf16.mxu0 %vm6079_vm10, %v4759_v23 }
0x16df   :  { %4532 = vmatpush3.bf16.xpose.msk.msra.mxu0 %vm6079_vm10, %v4760_v22 }
0x1773   :  { %v3422_v30 = vpop.f32.mrb[56].mxu1 }
0x1774   :  { %v4189_v24 = vpop.f32.mrb[40].mxu0  ;;  %v4200_v31 = vpop.f32.mrb[57].mxu1  ;;  %v3427_v33 = vadd.f32 %v3426_v47, %v3422_v30 }
0x1775   :  { %v3160_v25 = vpop.f32.mrb[41].mxu0 }
0x1776   :  { %3996 = vmatprep.mubr.msk.f32.mxu0 %vm485_vm7, %v3160_v25  ;;  %v3428_v41 = vmul.f32 0.5, %v3427_v33 }
0x1777   :  { %3997 = vmatmul.mubr.msk.f32.vlgmr.msra.gmra.mrb[42].mxu0 %vm485_vm7, %v3160_v25 }
0x1778   :  { %3998 = vmatprep.mubr.msk.f32.mxu0 %vm485_vm7, %v4189_v24  ;;  %3430 = vst.msk [vmem:[%s6216_s23] sm:$0xf] %vm3429_vm12, %v3428_v41 }
0x177b   :  { %3999 = vmatmul.mubr.msk.f32.gmra.mrb[44].mxu0 %vm485_vm7, %v4189_v24 }
0x184a   :  { %v3337_v44 = vpop.f32.mrb[42].mxu0 }
0x184b   :  { %3348 = vst [vmem:[%s6217_s22] sm:$0xff] %v3337_v44  ;;  %v3339_v29 = vpop.f32.mrb[43].mxu0 }
0x184c   :  { %3349 = vst [vmem:[%s6217_s22 + $0x8] sm:$0xff] %v3339_v29 }
0x184e   :  { %v3343_v32 = vpop.f32.mrb[44].mxu0 }
0x184f   :  { %3350 = vst [vmem:[%s6217_s22 + $0x10] sm:$0xff] %v3343_v32  ;;  %v3345_v27 = vpop.f32.mrb[45].mxu0 }
0x1850   :  { %3351 = vst [vmem:[%s6217_s22 + $0x18] sm:$0xff] %v3345_v27 }

// kernel: _model_forward.3
= control target key start
LH: loop header
LB: loop body
LE: loop exit
PB: predicated region body
PF: predicated region fallthrough
CT: control target
= control target key end

     0   :  { %s6240_s0 = inlined_call_operand.vmem [shape: s32[16,1], index: 0, kind: input, shape index: {}]   ;;  %s6241_s1 = inlined_call_operand.vmem [shape: f32[4,64], index: 1, kind: input, shape index: {}]   ;;  %s6242_s2 = inlined_call_operand.vmem [shape: f32[1,64], index: 2, kind: input, shape index: {}]   ;;  %s6243_s3 = inlined_call_operand.vmem [shape: f32[32,32], index: 3, kind: input, shape index: {}]   ;;  %s6244_s4 = inlined_call_operand.vmem [shape: bf16[256,64], index: 4, kind: input, shape index: {}]   ;;  %s6245_s5 = inlined_call_operand.vmem [shape: f32[32,16], index: 5, kind: input, shape index: {}]   ;;  %s6246_s6 = inlined_call_operand.vmem [shape: f32[32,4], index: 6, kind: input, shape index: {}]   ;;  %s6247_s7 = inlined_call_operand.vmem [shape: f32[32,1], index: 7, kind: input, shape index: {}]   ;;  %s6248_s8 = inlined_call_operand.vmem [shape: f32[16,32], index: 8, kind: input, shape index: {}]   ;;  %s6249_s9 = inlined_call_operand.vmem [shape: f32[4,32], index: 9, kind: input, shape index: {}]   ;;  %s6250_s10 = inlined_call_operand.vmem [shape: f32[2,1,64], index: 10, kind: input, shape index: {}]   ;;  %s6251_s11 = inlined_call_operand.vmem [shape: f32[2,1,64], index: 11, kind: input, shape index: {}]   ;;  %s6252_s12 = inlined_call_operand.vmem [shape: f32[2,64,192], index: 12, kind: input, shape index: {}]   ;;  %s6253_s13 = inlined_call_operand.vmem [shape: f32[2,1,192], index: 13, kind: input, shape index: {}]   ;;  %s6254_s14 = inlined_call_operand.vmem [shape: f32[2,64,64], index: 14, kind: input, shape index: {}]   ;;  %s6255_s15 = inlined_call_operand.vmem [shape: f32[2,1,64], index: 15, kind: input, shape index: {}]   ;;  %s6256_s16 = inlined_call_operand.vmem [shape: f32[2,1,64], index: 16, kind: input, shape index: {}]   ;;  %s6257_s17 = inlined_call_operand.vmem [shape: f32[2,1,64], index: 17, kind: input, shape index: {}]   ;;  %s6258_s18 = inlined_call_operand.vmem [shape: f32[2,64,256], index: 18, kind: input, shape index: {}]   ;;  %s6259_s19 = inlined_call_operand.vmem [shape: f32[2,1,256], index: 19, kind: input, shape index: {}]   ;;  %s6260_s20 = inlined_call_operand.vmem [shape: f32[2,256,64], index: 20, kind: input, shape index: {}]   ;;  %s6261_s21 = inlined_call_operand.vmem [shape: f32[2,1,64], index: 21, kind: input, shape index: {}]   ;;  %s6262_s22 = inlined_call_operand.vmem [shape: f32[16,256], index: 22, kind: output, shape index: {0}]   ;;  %s6263_s23 = inlined_call_operand.hbm [shape: f32[4,64], index: 23, kind: output, shape index: {1}]  }
   0x1   :  { %6273 = sst [smem:[#allocation5_spill]] %s6240_s0 }
   0x2   :  { %6274 = sst [smem:[#allocation6_spill]] %s6241_s1 }
   0x3   :  { %6275 = sst [smem:[#allocation7_spill]] %s6242_s2 }
   0x4   :  { %6276 = sst [smem:[#allocation8_spill]] %s6243_s3 }
   0x5   :  { %6277 = sst [smem:[#allocation9_spill]] %s6244_s4 }
   0x6   :  { %6278 = sst [smem:[#allocation10_spill]] %s6245_s5 }
   0x7   :  { %6279 = sst [smem:[#allocation11_spill]] %s6246_s6 }
   0x8   :  { %6280 = sst [smem:[#allocation12_spill]] %s6247_s7 }
   0x9   :  { %s6281_s24 = sld [smem:[#allocation5_spill]]  ;;  %v4797_v1 = vmov 0   ;;  %s6282_s1 = sld [smem:[#allocation9_spill]] }
   0xa   :  { %4563 = vset.pattern.permute.xlu0 %v4797_v1  ;;  %4564 = vset.pattern.permute.xlu1 %v4797_v1 }
   0xf   :  { %v141_v0 = vld [vmem:[%s6281_s24] sm:$0xff]  ;;  %v3737_v4 = vld [vmem:[%s6282_s1 + $0x48] sm:$0xff]   ;;  %v3738_v7 = vld [vmem:[%s6282_s1 + $0x50] sm:$0xff]  }
  0x10   :  { %v3736_v2 = vld [vmem:[%s6282_s1 + $0x40] sm:$0xff]   ;;  %144 = vperm.xlu0 %4563, %v141_v0   ;;  %v142_v5 = vld [vmem:[%s6281_s24 + $0x8] sm:$0xff] }
  0x11   :  { %v3666_v3 = vld [vmem:[%s6282_s1] sm:$0xff]   ;;  %4213 = vmatprep.subr.bf16.mxu0 %v3736_v2  ;;  %v3729_v6 = vld [vmem:[%s6282_s1 + $0x8] sm:$0xff]  }
  0x12   :  { %4215 = vmatpush3.bf16.msra.mxu0 %v3666_v3 }
  0x13   :  { %4217 = vmatprep.subr.bf16.mxu0 %v3737_v4 }
  0x14   :  { %147 = vperm.xlu0 %4563, %v142_v5  }
  0x15   :  { %29 = vsyncpa [#allocation3], 0  ;;  %s6283_s5 = sld [smem:[#allocation12_spill]]  ;;  %v3730_v9 = vld [vmem:[%s6282_s1 + $0x10] sm:$0xff]   ;;  %v3739_v10 = vld [vmem:[%s6282_s1 + $0x58] sm:$0xff]   ;;  %v138_v20 = vlaneseq  ;;  %v4798_v24 = vmov 1.0  }
  0x16   :  { %4219 = vmatpush3.bf16.msra.mxu0 %v3729_v6  ;;  %v3731_v11 = vld [vmem:[%s6282_s1 + $0x18] sm:$0xff]   ;;  %v3740_v12 = vld [vmem:[%s6282_s1 + $0x60] sm:$0xff]   ;;  %v3741_v14 = vld [vmem:[%s6282_s1 + $0x68] sm:$0xff]   ;;  %s6284_s30 = sld [smem:[#allocation6_spill]]  ;;  %vm254_vm4 = vcmask 1043456   ;;  %s6285_s24 = sld [smem:[#allocation11_spill]] }
  0x17   :  { %4221 = vmatprep.subr.bf16.mxu0 %v3738_v7  ;;  %v3732_v13 = vld [vmem:[%s6282_s1 + $0x20] sm:$0xff]   ;;  %v3733_v15 = vld [vmem:[%s6282_s1 + $0x28] sm:$0xff]   ;;  %v3742_v16 = vld [vmem:[%s6282_s1 + $0x70] sm:$0xff]   ;;  %v139_v21 = vand.u32 127, %v138_v20  ;;  %vm241_vm5 = vcmask 31744   ;;  %s6286_s4 = sld [smem:[#allocation10_spill]] }
  0x18   :  { %v3734_v17 = vld [vmem:[%s6282_s1 + $0x30] sm:$0xff]   ;;  %v3743_v18 = vld [vmem:[%s6282_s1 + $0x78] sm:$0xff]   ;;  %vm343_vm6 = vcmask 130048   ;;  %s6287_s2 = sld [smem:[#allocation7_spill]]  ;;  %vm486_vm7 = vcmask 523264   ;;  %vm701_vm8 = vcmask 261120  }
  0x19   :  { %v3735_v19 = vld [vmem:[%s6282_s1 + $0x38] sm:$0xff]   ;;  %v140_v22 = vadd.s32 128, %v139_v21  ;;  %vm5172_vm9 = vmpackc.low %vm701_vm8, %vm701_vm8  ;;  %s6290_s27 = sld [smem:[#allocation8_spill]]  ;;  %vm4804_vm11 = vmmov 0   ;;  %vm3430_vm12 = vcmask 519168  }
  0x1a   :  { %4223 = vmatpush3.bf16.msra.mxu0 %v3730_v9  ;;  %vm6116_vm10 = vmpackc.low %vm486_vm7, %vm486_vm7 }
  0x1b   :  { %v443_v8 = vld [vmem:[%s6283_s5 + $0x10] sm:$0xff]  ;;  %4225 = vmatprep.subr.bf16.mxu0 %v3739_v10  ;;  %v441_v32 = vld [vmem:[%s6283_s5] sm:$0xff]  ;;  %v442_v33 = vld [vmem:[%s6283_s5 + $0x8] sm:$0xff] }
  0x1c   :  { %458 = vperm.xlu0 %4563, %v443_v8   ;;  %v240_v26 = vld [vmem:[%s6284_s30] sm:$0xf]  ;;  %v237_v28 = vld [vmem:[%s6285_s24 + $0x8] sm:$0xff]  ;;  %v238_v29 = vld [vmem:[%s6285_s24 + $0x10] sm:$0xff]  ;;  %448 = vperm.xlu1 %4564, %v441_v32  }
  0x1d   :  { %4016 = vmatprep.subr.msk.mxu1 %vm254_vm4, %v240_v26  ;;  %v236_v27 = vld [vmem:[%s6285_s24] sm:$0xff]  ;;  %v239_v30 = vld [vmem:[%s6285_s24 + $0x18] sm:$0xff]  ;;  %v233_v42 = vld [vmem:[%s6286_s4 + $0x8] sm:$0xff] }
  0x1e   :  { %4227 = vmatpush3.bf16.msra.mxu0 %v3731_v11  ;;  %4017 = vmatpush3.msk.msra.mxu1 %vm254_vm4, %v240_v26  ;;  %v232_v31 = vld [vmem:[%s6286_s4] sm:$0xff]  ;;  %v444_v34 = vld [vmem:[%s6283_s5 + $0x18] sm:$0xff]  ;;  %v234_v43 = vld [vmem:[%s6286_s4 + $0x10] sm:$0xff]  ;;  %s6271_s5 = smov 96  }
  0x1f   :  { %4229 = vmatprep.subr.bf16.mxu0 %v3740_v12  ;;  %4018 = vmatprep.mubr.msk.f32.mxu1 %vm241_vm5, %v236_v27  ;;  %v235_v44 = vld [vmem:[%s6286_s4 + $0x18] sm:$0xff]  ;;  %v3463_v46 = vld [vmem:[%s6287_s2] ss:$0 sm:$0xff]  ;;  %v562_v27 = vld [vmem:[%s6252_s12 + $0x10] sm:$0xff]  ;;  %s4800_s2 = smov 64   ;;  %s4801_s4 = smov 32  }
  0x20   :  { %4019 = vmatmul.mubr.msk.f32.vlgmr.msra.gmra.mrb[0].mxu1 %vm241_vm5, %v237_v28  ;;  %453 = vperm.xlu1 %4564, %v442_v33   ;;  %v560_v26 = vld [vmem:[%s6252_s12] sm:$0xff]  ;;  %v566_v33 = vld [vmem:[%s6252_s12 + $0x30] sm:$0xff] }
  0x21   :  { %4021 = vmatprep.mubr.msk.f32.mxu1 %vm241_vm5, %v238_v29  ;;  %v4250_v28 = vpack.c.bf16 %v562_v27, %v560_v26  ;;  %v565_v29 = vld [vmem:[%s6252_s12 + $0x28] sm:$0xff]  ;;  %v564_v32 = vld [vmem:[%s6252_s12 + $0x20] sm:$0xff] }
  0x22   :  { %4231 = vmatpush3.bf16.msra.mxu0 %v3732_v13 }
  0x23   :  { %4233 = vmatprep.subr.bf16.mxu0 %v3741_v14 }
  0x24   :  { %4022 = vmatmul.mubr.msk.f32.gmra.mrb[2].mxu1 %vm241_vm5, %v239_v30  ;;  %463 = vperm.xlu1 %4564, %v444_v34   ;;  %v567_v30 = vld [vmem:[%s6252_s12 + $0x38] sm:$0xff]  ;;  %v4254_v34 = vpack.c.bf16 %v566_v33, %v564_v32 }
  0x25   :  { %4028 = vmatprep.mubr.msk.f32.mxu1 %vm343_vm6, %v232_v31  ;;  %v4252_v31 = vpack.c.bf16 %v567_v30, %v565_v29 }
  0x26   :  { %4235 = vmatpush3.bf16.msra.mxu0 %v3733_v15 }
  0x27   :  { %4237 = vmatprep.subr.bf16.mxu0 %v3742_v16 }
  0x2a   :  { %4239 = vmatpush3.bf16.msra.mxu0 %v3734_v17 }
  0x2b   :  { %4241 = vmatprep.subr.bf16.mxu0 %v3743_v18 }
  0x2e   :  { %4243 = vmatpush3.bf16.msra.mxu0 %v3735_v19 }
  0x8f   :  { %v145_v23 = vpop.permute.xlu0 %144 }
  0x90   :  { %vm150_vm0 = vcmp.eq.s32.totalorder %v145_v23, %v140_v22  ;;  %vm149_vm1 = vcmp.eq.s32.totalorder %v145_v23, %v139_v21  ;;  %v561_v23 = vld [vmem:[%s6252_s12 + $0x8] sm:$0xff] }
  0x91   :  { %3450 = vmatprep.mubr.msk.f32.mxu0 %vm150_vm0, %v4798_v24 }
  0x92   :  { %3451 = vmatmul.mubr.msk.f32.vlgmr.msra.gmra.mrb[0].mxu0 %vm149_vm1, %v4798_v24 }
  0x93   :  { %v148_v25 = vpop.permute.xlu0 %147 }
  0x94   :  { %vm151_vm2 = vcmp.eq.s32.totalorder %v148_v25, %v139_v21  ;;  %vm152_vm3 = vcmp.eq.s32.totalorder %v148_v25, %v140_v22 }
  0x95   :  { %3452 = vmatprep.mubr.msk.f32.mxu0 %vm152_vm3, %v4798_v24 }
  0x96   :  { %3453 = vmatmul.mubr.msk.f32.gmra.mrb[2].mxu0 %vm151_vm2, %v4798_v24  ;;  %v563_v24 = vld [vmem:[%s6252_s12 + $0x18] sm:$0xff] }
  0x97   :  { %v4248_v25 = vpack.c.bf16 %v563_v24, %v561_v23 }
  0x9b   :  { %v449_v45 = vpop.permute.xlu1 %448  ;;  %v459_v51 = vpop.permute.xlu0 %458 }
  0x9c   :  { %v472_v49 = vmul.f32 %v3463_v46, %v449_v45  ;;  %v474_v57 = vmul.f32 %v3463_v46, %v459_v51  ;;  %v574_v45 = vld [vmem:[%s6252_s12 + $0x70] sm:$0xff] }
  0x9f   :  { %v454_v47 = vpop.permute.xlu1 %453 }
  0xa0   :  { %v473_v48 = vmul.f32 %v3463_v46, %v454_v47  ;;  %v4799_v47 = vmov 0.0  }
  0xa3   :  { %v464_v55 = vpop.permute.xlu1 %463 }
  0xa4   :  { %v475_v61 = vmul.f32 %v3463_v46, %v464_v55 }
 0x165   :  { %v3776_v35 = vpop.f32.mrb[0].mxu0 }
 0x166   :  { %v3777_v36 = vpop.f32.mrb[1].mxu0 }
 0x167   :  { %v3778_v37 = vadd.f32 %v3777_v36, %v3776_v35  ;;  %v569_v35 = vld [vmem:[%s6252_s12 + $0x48] sm:$0xff]  ;;  %v571_v36 = vld [vmem:[%s6252_s12 + $0x58] sm:$0xff] }
 0x169   :  { %v3779_v38 = vpop.f32.mrb[2].mxu0 }
 0x16a   :  { %v3780_v39 = vpop.f32.mrb[3].mxu0 }
 0x16b   :  { %v3781_v40 = vadd.f32 %v3780_v39, %v3779_v38  ;;  %v568_v38 = vld [vmem:[%s6252_s12 + $0x40] sm:$0xff]  ;;  %v570_v39 = vld [vmem:[%s6252_s12 + $0x50] sm:$0xff] }
 0x16d   :  { %v4244_v41 = vpack.c.bf16 %v3781_v40, %v3778_v37  ;;  %v4256_v37 = vpack.c.bf16 %v571_v36, %v569_v35  ;;  %v4258_v40 = vpack.c.bf16 %v570_v39, %v568_v38 }
 0x16f   :  { %4245 = vmatprep.subr.bf16.mxu1 %v4244_v41 }
 0x170   :  { %4247 = vmatpush3.bf16.msra.mxu1 %v4244_v41  ;;  %v573_v41 = vld [vmem:[%s6252_s12 + $0x68] sm:$0xff] }
 0x171   :  { %4249 = vmatprep.subr.bf16.mxu1 %v4248_v25 }
 0x173   :  { %4029 = vmatmul.mubr.msk.f32.vlgmr.msra.gmra.mrb[0].mxu1 %vm343_vm6, %v233_v42  ;;  %v575_v42 = vld [vmem:[%s6252_s12 + $0x78] sm:$0xff] }
 0x174   :  { %4031 = vmatprep.mubr.msk.f32.mxu1 %vm343_vm6, %v234_v43  ;;  %4251 = vmatpush1.bf16.msra.mxu1 %v4250_v28  ;;  %v4260_v43 = vpack.c.bf16 %v575_v42, %v573_v41 }
 0x175   :  { %4253 = vmatprep.subr.bf16.mxu1 %v4252_v31 }
 0x177   :  { %4032 = vmatmul.mubr.msk.f32.gmra.mrb[2].mxu1 %vm343_vm6, %v235_v44  ;;  %v572_v44 = vld [vmem:[%s6252_s12 + $0x60] sm:$0xff] }
 0x178   :  { %4255 = vmatpush1.bf16.msra.mxu1 %v4254_v34  ;;  %v4262_v46 = vpack.c.bf16 %v574_v45, %v572_v44  ;;  %664 = vmatprep.mubr.f32.mxu1 %v4799_v47 }
 0x179   :  { %4257 = vmatprep.subr.bf16.mxu1 %v4256_v37 }
 0x17c   :  { %4259 = vmatpush1.bf16.msra.mxu1 %v4258_v40 }
 0x17d   :  { %4261 = vmatprep.subr.bf16.mxu1 %v4260_v43 }
 0x180   :  { %4263 = vmatpush1.bf16.msra.mxu1 %v4262_v46 }
 0x246   :  { %v4030_v50 = vpop.f32.mrb[0].mxu1 }
 0x247   :  { %v5027_v52 = vadd.f32 %v4030_v50, %v473_v48  ;;  %v422_v53 = vpop.f32.mrb[1].mxu1 }
 0x248   :  { %v5029_v54 = vadd.f32 %v472_v49, %v422_v53 }
 0x249   :  { %v490_v56 = vsel %vm486_vm7, %v5027_v52, 0.0 }
 0x24a   :  { %491 = vadd.xlane.f32.xlu1 %v490_v56  ;;  %v4033_v58 = vpop.f32.mrb[2].mxu1  ;;  %v487_v59 = vsel %vm486_vm7, %v5029_v54, 0.0 }
 0x24b   :  { %488 = vadd.xlane.f32.xlu0 %v487_v59  ;;  %v432_v60 = vpop.f32.mrb[3].mxu1  ;;  %v5037_v63 = vadd.f32 %v4033_v58, %v475_v61 }
 0x24c   :  { %v5035_v62 = vadd.f32 %v474_v57, %v432_v60 }
 0x24d   :  { %v496_v1 = vsel %vm486_vm7, %v5037_v63, 0.0 }
 0x24e   :  { %v493_v0 = vsel %vm486_vm7, %v5035_v62, 0.0 }
 0x24f   :  { %494 = vadd.xlane.f32.xlu0 %v493_v0 }
 0x253   :  { %497 = vadd.xlane.f32.xlu0 %v496_v1 }
 0x2d7   :  { %v492_v2 = vpop.xlane.xlu1 %491 }
 0x2d8   :  { %v501_v3 = vmul.f32 0.015625, %v492_v2  ;;  %v489_v4 = vpop.xlane.xlu0 %488  ;;  %v3464_v2 = vld [vmem:[%s6250_s10] ss:$0 sm:$0xff] }
 0x2d9   :  { %v500_v5 = vmul.f32 0.015625, %v489_v4 }
 0x2da   :  { %v5044_v6 = vsub.f32 %v5027_v52, %v501_v3 }
 0x2db   :  { %v5047_v7 = vsub.f32 %v5029_v54, %v500_v5  ;;  %v3465_v5 = vld [vmem:[%s6251_s11] ss:$0 sm:$0xff] }
 0x2dc   :  { %v495_v8 = vpop.xlane.xlu0 %494  ;;  %v509_v9 = vmul.f32 %v5044_v6, %v5044_v6 }
 0x2dd   :  { %v502_v10 = vmul.f32 0.015625, %v495_v8  ;;  %v508_v11 = vmul.f32 %v5047_v7, %v5047_v7 }
 0x2de   :  { %v515_v12 = vsel %vm486_vm7, %v509_v9, 0.0 }
 0x2df   :  { %v5055_v13 = vsub.f32 %v5035_v62, %v502_v10  ;;  %516 = vadd.xlane.f32.xlu0 %v515_v12  ;;  %v512_v14 = vsel %vm486_vm7, %v508_v11, 0.0 }
 0x2e0   :  { %513 = vadd.xlane.f32.xlu1 %v512_v14  ;;  %v498_v15 = vpop.xlane.xlu0 %497 }
 0x2e1   :  { %v503_v16 = vmul.f32 0.015625, %v498_v15  ;;  %v510_v17 = vmul.f32 %v5055_v13, %v5055_v13 }
 0x2e3   :  { %v5061_v18 = vsub.f32 %v5037_v63, %v503_v16  ;;  %v518_v19 = vsel %vm486_vm7, %v510_v17, 0.0 }
 0x2e4   :  { %519 = vadd.xlane.f32.xlu1 %v518_v19  ;;  %v579_v19 = vshrl.u32 %v138_v20, 7 }
 0x2e5   :  { %v511_v21 = vmul.f32 %v5061_v18, %v5061_v18 }
 0x2e6   :  { %v5140_v23 = vsub.s32 1, %v579_v19 }
 0x2e7   :  { %v521_v22 = vsel %vm486_vm7, %v511_v21, 0.0  ;;  %v5134_v21 = vsub.s32 0, %v579_v19 }
 0x2e8   :  { %522 = vadd.xlane.f32.xlu0 %v521_v22 }
 0x36c   :  { %v517_v48 = vpop.xlane.xlu0 %516 }
 0x36d   :  { %v525_v49 = vmul.f32 0.015625, %v517_v48  ;;  %v514_v50 = vpop.xlane.xlu1 %513 }
 0x36e   :  { %v524_v51 = vmul.f32 0.015625, %v514_v50 }
 0x36f   :  { %v529_v53 = vadd.f32 1e-05, %v525_v49 }
 0x370   :  { %v528_v55 = vadd.f32 1e-05, %v524_v51 }
 0x371   :  { %4625 = vrsqrt.f32 %v529_v53  ;;  %v520_v56 = vpop.xlane.xlu1 %519 }
 0x372   :  { %4627 = vrsqrt.f32 %v528_v55  ;;  %v526_v57 = vmul.f32 0.015625, %v520_v56 }
 0x374   :  { %v530_v58 = vadd.f32 1e-05, %v526_v57 }
 0x375   :  { %v523_v59 = vpop.xlane.xlu0 %522 }
 0x376   :  { %4629 = vrsqrt.f32 %v530_v58  ;;  %v527_v60 = vmul.f32 0.015625, %v523_v59 }
 0x378   :  { %v531_v61 = vadd.f32 1e-05, %v527_v60 }
 0x37a   :  { %4631 = vrsqrt.f32 %v531_v61 }
 0x37b   :  { %v4626_v0 = vpop.eup %4625 }
 0x37c   :  { %v4628_v1 = vpop.eup %4627  ;;  %v537_v4 = vmul.f32 %v4626_v0, %v5044_v6 }
 0x37d   :  { %v536_v3 = vmul.f32 %v4628_v1, %v5047_v7  ;;  %v5193_v1 = vld [vmem:[%s6290_s27 + $0x8] sm:$0xff] }
 0x37e   :  { %v547_v11 = vmul.f32 %v3464_v2, %v537_v4  ;;  %v5198_v4 = vld [vmem:[%s6290_s27] sm:$0xff] }
 0x37f   :  { %v546_v8 = vmul.f32 %v3464_v2, %v536_v3 }
 0x380   :  { %v4630_v9 = vpop.eup %4629  ;;  %v557_v15 = vadd.f32 %v3465_v5, %v547_v11  ;;  %v5205_v11 = vld [vmem:[%s6290_s27 + $0x18] sm:$0xff] }
 0x381   :  { %v556_v10 = vadd.f32 %v3465_v5, %v546_v8  ;;  %v538_v12 = vmul.f32 %v4630_v9, %v5055_v13 }
 0x383   :  { %3466 = vmatmul.mubr.msk.f32.vlgmr.msra.gmra.mrb[4].mxu1 %vm486_vm7, %v556_v10  ;;  %v548_v16 = vmul.f32 %v3464_v2, %v538_v12 }
 0x384   :  { %v4632_v14 = vpop.eup %4631  ;;  %670 = vmatprep.mubr.f32.mxu1 %v4799_v47 }
 0x385   :  { %v539_v7 = vmul.f32 %v4632_v14, %v5061_v18  ;;  %v558_v6 = vadd.f32 %v3465_v5, %v548_v16  ;;  %v576_v18 = vld [vmem:[%s6253_s13] sm:$0x3] }
 0x386   :  { %v581_v22 = vrot.slane %v576_v18, %v5134_v21  ;;  %v585_v27 = vrot.slane %v576_v18, %v5140_v23 }
 0x387   :  { %3467 = vmatmul.mubr.msk.f32.gmra.mrb[6].mxu1 %vm486_vm7, %v557_v15  ;;  %v549_v17 = vmul.f32 %v3464_v2, %v539_v7 }
 0x388   :  { %676 = vmatprep.mubr.f32.mxu1 %v4799_v47 }
 0x389   :  { %v559_v13 = vadd.f32 %v3465_v5, %v549_v17 }
 0x38b   :  { %3468 = vmatmul.mubr.msk.f32.gmra.mrb[8].mxu1 %vm486_vm7, %v558_v6 }
 0x38c   :  { %682 = vmatprep.mubr.f32.mxu1 %v4799_v47 }
 0x38f   :  { %3469 = vmatmul.mubr.msk.f32.gmra.mrb[10].mxu1 %vm486_vm7, %v559_v13  ;;  %v5218_v13 = vld [vmem:[%s6290_s27 + $0x10] sm:$0xff] }
 0x456   :  { %v666_v24 = vpop.f32.mrb[4].mxu1 }
 0x457   :  { %v5142_v25 = vadd.f32 %v666_v24, %v581_v22  ;;  %v668_v26 = vpop.f32.mrb[5].mxu1 }
 0x458   :  { %v5149_v30 = vadd.f32 %v668_v26, %v585_v27 }
 0x459   :  { %4042 = vmatprep.mubr.msk.f32.mxu1 %vm701_vm8, %v5142_v25 }
 0x45a   :  { %v672_v20 = vpop.f32.mrb[6].mxu1 }
 0x45b   :  { %v5147_v28 = vadd.f32 %v672_v20, %v581_v22  ;;  %v674_v29 = vpop.f32.mrb[7].mxu1 }
 0x45c   :  { %v5151_v31 = vadd.f32 %v674_v29, %v585_v27 }
 0x45d   :  { %v4565_v32 = vpack.i.bf16 %v5147_v28, %v5142_v25 }
 0x45e   :  { %v4585_v33 = vpack.i.bf16 %v5151_v31, %v5149_v30  ;;  %v4276_v34 = vpack.c.bf16 %v5151_v31, %v5149_v30  ;;  %v678_v35 = vpop.f32.mrb[8].mxu1 }
 0x45f   :  { %v680_v36 = vpop.f32.mrb[9].mxu1  ;;  %4566 = vrot.lane.b32.xlu1 %v4565_v32, %s4800_s2  ;;  %v679_v38 = vadd.f32 %v678_v35, %v581_v22 }
 0x460   :  { %4277 = vmatprep.subr.bf16.mxu0 %v4276_v34  ;;  %v5161_v41 = vadd.f32 %v680_v36, %v585_v27 }
 0x461   :  { %4279 = vmatpush3.bf16.msra.mxu0 %v4276_v34 }
 0x462   :  { %v684_v37 = vpop.f32.mrb[10].mxu1 }
 0x463   :  { %v685_v39 = vadd.f32 %v684_v37, %v581_v22  ;;  %4576 = vrot.lane.b32.xlu1 %v4565_v32, %s4801_s4  ;;  %v686_v40 = vpop.f32.mrb[11].mxu1 }
 0x464   :  { %v5163_v42 = vadd.f32 %v686_v40, %v585_v27 }
 0x465   :  { %v4570_v43 = vpack.i.bf16 %v685_v39, %v679_v38 }
 0x466   :  { %v4590_v44 = vpack.i.bf16 %v5163_v42, %v5161_v41  ;;  %v4280_v45 = vpack.c.bf16 %v5163_v42, %v5161_v41 }
 0x467   :  { %4571 = vrot.lane.b32.xlu0 %v4570_v43, %s4800_s2 }
 0x468   :  { %4281 = vmatprep.subr.bf16.mxu0 %v4280_v45 }
 0x469   :  { %4283 = vmatpush3.bf16.msra.mxu0 %v4280_v45 }
 0x4d1   :  { %v4567_v46 = vpop.permute.xlu1 %4566 }
 0x4d2   :  { %v4569_v48 = vunpack.i.h.bf16 %v4567_v46  ;;  %v4568_v49 = vunpack.i.l.bf16 %v4567_v46 }
 0x4d4   :  { %v4264_v51 = vpack.c.bf16 %v4569_v48, %v4568_v49 }
 0x4d5   :  { %v4577_v53 = vpop.permute.xlu1 %4576 }
 0x4d6   :  { %v4579_v55 = vunpack.i.h.bf16 %v4577_v53  ;;  %v4578_v56 = vunpack.i.l.bf16 %v4577_v53  ;;  %4266 = vmatprep.subr.msk.bf16.mxu1 %vm5172_vm9, %v4264_v51 }
 0x4d7   :  { %4269 = vmatpush3.bf16.xpose.msk.msra.mxu1 %vm5172_vm9, %v4264_v51 }
 0x4d8   :  { %v4284_v57 = vpack.c.bf16 %v4579_v55, %v4578_v56 }
 0x4d9   :  { %v4572_v58 = vpop.permute.xlu0 %4571 }
 0x4da   :  { %v4574_v59 = vunpack.i.h.bf16 %v4572_v58  ;;  %v4573_v60 = vunpack.i.l.bf16 %v4572_v58  ;;  %4286 = vmatprep.subr.msk.bf16.mxu0 %vm5172_vm9, %v4284_v57 }
 0x4dc   :  { %v4270_v61 = vpack.c.bf16 %v4574_v59, %v4573_v60 }
 0x4de   :  { %4272 = vmatprep.subr.msk.bf16.mxu1 %vm5172_vm9, %v4270_v61 }
 0x4df   :  { %4275 = vmatpush3.bf16.xpose.msk.msra.mxu1 %vm5172_vm9, %v4270_v61 }
 0x4e6   :  { %4043 = vmatmul.mubr.msk.f32.vlgmr.msra.gmra.mrb[12].mxu1 %vm701_vm8, %v5147_v28 }
 0x4e7   :  { %4045 = vmatprep.mubr.msk.f32.mxu1 %vm701_vm8, %v679_v38 }
 0x4ea   :  { %4046 = vmatmul.mubr.msk.f32.gmra.mrb[14].mxu1 %vm701_vm8, %v685_v39 }
 0x5b9   :  { %v4044_v0 = vpop.f32.mrb[12].mxu1 }
 0x5ba   :  { %v804_v2 = vmul.f32 0.17677669, %v4044_v0  ;;  %v784_v3 = vpop.f32.mrb[13].mxu1 }
 0x5bb   :  { %v803_v5 = vmul.f32 0.17677669, %v784_v3 }
 0x5bc   :  { %v808_v8 = vadd.f32 %v804_v2, %v5193_v1 }
 0x5bd   :  { %v4047_v9 = vpop.f32.mrb[14].mxu1  ;;  %v807_v10 = vadd.f32 %v803_v5, %v5198_v4 }
 0x5be   :  { %v806_v12 = vmul.f32 0.17677669, %v4047_v9  ;;  %v794_v14 = vpop.f32.mrb[15].mxu1  ;;  %v814_v15 = vsel %vm701_vm8, %v808_v8, -inf }
 0x5bf   :  { %815 = vmax.xlane.f32.xlu0 %v814_v15  ;;  %v811_v16 = vsel %vm701_vm8, %v807_v10, -inf  ;;  %v805_v17 = vmul.f32 0.17677669, %v794_v14 }
 0x5c0   :  { %812 = vmax.xlane.f32.xlu1 %v811_v16  ;;  %v810_v7 = vadd.f32 %v806_v12, %v5205_v11 }
 0x5c1   :  { %v809_v19 = vadd.f32 %v805_v17, %v5218_v13 }
 0x5c2   :  { %v820_v6 = vsel %vm701_vm8, %v810_v7, -inf }
 0x5c3   :  { %821 = vmax.xlane.f32.xlu0 %v820_v6  ;;  %v817_v18 = vsel %vm701_vm8, %v809_v19, -inf }
 0x5d1   :  { %952 = vrot.lane.b32.xlu1 %v5142_v25, %s6271_s5 }
 0x5d9   :  { %4581 = vrot.lane.b32.xlu0 %v4570_v43, %s4801_s4 }
 0x5dd   :  { %956 = vrot.lane.b32.xlu0 %v679_v38, %s6271_s5 }
 0x5f5   :  { %818 = vmax.xlane.f32.xlu1 %v817_v18 }
 0x606   :  { %954 = vrot.lane.b32.xlu1 %v5147_v28, %s6271_s5 }
 0x60a   :  { %958 = vrot.lane.b32.xlu1 %v685_v39, %s6271_s5 }
 0x64c   :  { %v816_v22 = vpop.xlane.xlu0 %815 }
 0x64d   :  { %v824_v24 = vsub.f32 %v808_v8, %v816_v22  ;;  %v813_v25 = vpop.xlane.xlu1 %812 }
 0x64e   :  { %v823_v26 = vsub.f32 %v807_v10, %v813_v25 }
 0x64f   :  { %v829_v27 = vmul.f32 1.442695, %v824_v24 }
 0x650   :  { %v827_v20 = vmul.f32 1.442695, %v823_v26  ;;  %v822_v29 = vpop.xlane.xlu0 %821 }
 0x651   :  { %v953_v38 = vpop.permute.xlu1 %952  ;;  %v826_v39 = vsub.f32 %v810_v7, %v822_v29 }
 0x652   :  { %4633 = vpow2.f32 %v827_v20 }
 0x653   :  { %4635 = vpow2.f32 %v829_v27  ;;  %v833_v45 = vmul.f32 1.442695, %v826_v39 }
 0x654   :  { %v4582_v32 = vpop.permute.xlu0 %4581 }
 0x655   :  { %v4584_v34 = vunpack.i.h.bf16 %v4582_v32  ;;  %v4583_v35 = vunpack.i.l.bf16 %v4582_v32 }
 0x657   :  { %v4290_v28 = vpack.c.bf16 %v4584_v34, %v4583_v35 }
 0x658   :  { %v957_v53 = vpop.permute.xlu0 %956 }
 0x65c   :  { %v5225_v36 = vpop.eup %4633 }
 0x65d   :  { %v5227_v37 = vpop.eup %4635  ;;  %4056 = vmatprep.mubr.msk.f32.mxu0 %vm701_vm8, %v5225_v36 }
 0x65e   :  { %4057 = vmatmul.mubr.msk.f32.vlgmr.msra.gmra.mrb[4].mxu0 %vm701_vm8, %v5227_v37 }
 0x65f   :  { %4289 = vmatpush3.bf16.xpose.msk.msra.mxu0 %vm5172_vm9, %v4284_v57 }
 0x660   :  { %4292 = vmatprep.subr.msk.bf16.mxu0 %vm5172_vm9, %v4290_v28 }
 0x667   :  { %4295 = vmatpush3.bf16.xpose.msk.msra.mxu0 %vm5172_vm9, %v4290_v28 }
 0x682   :  { %v819_v40 = vpop.xlane.xlu1 %818 }
 0x683   :  { %v825_v43 = vsub.f32 %v809_v19, %v819_v40 }
 0x685   :  { %v831_v46 = vmul.f32 1.442695, %v825_v43 }
 0x686   :  { %v955_v51 = vpop.permute.xlu1 %954 }
 0x687   :  { %4637 = vpow2.f32 %v831_v46  ;;  %v838_v46 = vsel %vm701_vm8, %v5227_v37, 0.0  ;;  %v1254_v37 = vld [vmem:[%s6254_s14] sm:$0xff] }
 0x688   :  { %4639 = vpow2.f32 %v833_v45 }
 0x68a   :  { %v959_v55 = vpop.permute.xlu1 %958 }
 0x691   :  { %v5239_v48 = vpop.eup %4637 }
 0x692   :  { %v5241_v49 = vpop.eup %4639  ;;  %4059 = vmatprep.mubr.msk.f32.mxu0 %vm701_vm8, %v5239_v48 }
 0x693   :  { %4060 = vmatmul.mubr.msk.f32.gmra.mrb[6].mxu0 %vm701_vm8, %v5241_v49 }
 0x694   :  { %4070 = vmatprep.mubr.msk.f32.mxu0 %vm701_vm8, %v953_v38 }
 0x697   :  { %4071 = vmatmul.mubr.msk.f32.vlgmr.msra.gmra.mrb[8].mxu0 %vm701_vm8, %v955_v51  ;;  %v835_v51 = vsel %vm701_vm8, %v5225_v36, 0.0  ;;  %v1256_v36 = vld [vmem:[%s6254_s14 + $0x10] sm:$0xff] }
 0x698   :  { %4073 = vmatprep.mubr.msk.f32.mxu0 %vm701_vm8, %v957_v53  ;;  %v844_v53 = vsel %vm701_vm8, %v5241_v49, 0.0  ;;  %v1257_v49 = vld [vmem:[%s6254_s14 + $0x18] sm:$0xff] }
 0x69b   :  { %4074 = vmatmul.mubr.msk.f32.gmra.mrb[10].mxu0 %vm701_vm8, %v959_v55  ;;  %v841_v55 = vsel %vm701_vm8, %v5239_v48, 0.0  ;;  %v1258_v48 = vld [vmem:[%s6254_s14 + $0x20] sm:$0xff] }
 0x69c   :  { %1552 = vmatprep.mubr.f32.mxu0 %v4799_v47 }
 0x731   :  { %v5252_v56 = vpop.f32.mrb[4].mxu0 }
 0x732   :  { %v5254_v57 = vpop.f32.mrb[5].mxu0 }
 0x766   :  { %v5256_v58 = vpop.f32.mrb[6].mxu0 }
 0x767   :  { %v5258_v59 = vpop.f32.mrb[7].mxu0 }
 0x76a   :  { %v4072_v60 = vpop.f32.mrb[8].mxu0 }
 0x76b   :  { %v1070_v61 = vmul.f32 0.17677669, %v4072_v60  ;;  %v1050_v0 = vpop.f32.mrb[9].mxu0  ;;  %v1255_v60 = vld [vmem:[%s6254_s14 + $0x8] sm:$0xff] }
 0x76c   :  { %v1069_v2 = vmul.f32 0.17677669, %v1050_v0  ;;  %v4308_v0 = vpack.c.bf16 %v1257_v49, %v1256_v36 }
 0x76d   :  { %v1074_v3 = vadd.f32 %v1070_v61, %v5193_v1  ;;  %v4304_v61 = vpack.c.bf16 %v1255_v60, %v1254_v37 }
 0x76e   :  { %v4075_v5 = vpop.f32.mrb[10].mxu0  ;;  %v1073_v8 = vadd.f32 %v1069_v2, %v5198_v4  ;;  %v1259_v2 = vld [vmem:[%s6254_s14 + $0x28] sm:$0xff] }
 0x76f   :  { %v1072_v9 = vmul.f32 0.17677669, %v4075_v5  ;;  %v1060_v10 = vpop.f32.mrb[11].mxu0  ;;  %v1080_v12 = vsel %vm701_vm8, %v1074_v3, -inf  ;;  %v1260_v5 = vld [vmem:[%s6254_s14 + $0x30] sm:$0xff] }
 0x770   :  { %v1071_v14 = vmul.f32 0.17677669, %v1060_v10  ;;  %1081 = vmax.xlane.f32.xlu1 %v1080_v12  ;;  %v1077_v15 = vsel %vm701_vm8, %v1073_v8, -inf }
 0x771   :  { %1078 = vmax.xlane.f32.xlu0 %v1077_v15  ;;  %v1076_v16 = vadd.f32 %v1072_v9, %v5205_v11 }
 0x772   :  { %v1075_v6 = vadd.f32 %v1071_v14, %v5218_v13 }
 0x773   :  { %v1086_v7 = vsel %vm701_vm8, %v1076_v16, -inf }
 0x774   :  { %v1083_v1 = vsel %vm701_vm8, %v1075_v6, -inf }
 0x775   :  { %1087 = vmax.xlane.f32.xlu0 %v1086_v7 }
 0x779   :  { %1084 = vmax.xlane.f32.xlu0 %v1083_v1 }
 0x781   :  { %4586 = vrot.lane.b32.xlu1 %v4585_v33, %s6271_s5 }
 0x78f   :  { %4591 = vrot.lane.b32.xlu0 %v4590_v44, %s6271_s5 }
 0x7fd   :  { %v1082_v4 = vpop.xlane.xlu1 %1081 }
 0x7fe   :  { %v1090_v11 = vsub.f32 %v1074_v3, %v1082_v4  ;;  %v1079_v17 = vpop.xlane.xlu0 %1078  ;;  %v4312_v3 = vpack.c.bf16 %v1259_v2, %v1258_v48 }
 0x7ff   :  { %v1089_v19 = vsub.f32 %v1073_v8, %v1079_v17  ;;  %v1261_v8 = vld [vmem:[%s6254_s14 + $0x38] sm:$0xff] }
 0x800   :  { %v1095_v18 = vmul.f32 1.442695, %v1090_v11  ;;  %v4316_v9 = vpack.c.bf16 %v1261_v8, %v1260_v5 }
 0x801   :  { %v1093_v13 = vmul.f32 1.442695, %v1089_v19  ;;  %v4587_v22 = vpop.permute.xlu1 %4586 }
 0x802   :  { %4641 = vpow2.f32 %v1095_v18  ;;  %v4589_v24 = vunpack.i.h.bf16 %v4587_v22  ;;  %v4588_v25 = vunpack.i.l.bf16 %v4587_v22  ;;  %v1088_v26 = vpop.xlane.xlu0 %1087 }
 0x803   :  { %4643 = vpow2.f32 %v1093_v13  ;;  %v1092_v27 = vsub.f32 %v1076_v16, %v1088_v26 }
 0x804   :  { %v4296_v30 = vpack.c.bf16 %v4589_v24, %v4588_v25 }
 0x805   :  { %v1099_v31 = vmul.f32 1.442695, %v1092_v27 }
 0x806   :  { %v1085_v33 = vpop.xlane.xlu0 %1084  ;;  %4297 = vmatprep.subr.bf16.mxu1 %v4296_v30 }
 0x807   :  { %4645 = vpow2.f32 %v1099_v31  ;;  %v1091_v41 = vsub.f32 %v1075_v6, %v1085_v33  ;;  %4299 = vmatpush3.bf16.msra.mxu1 %v4296_v30 }
 0x809   :  { %v1097_v42 = vmul.f32 1.442695, %v1091_v41 }
 0x80a   :  { %v4592_v44 = vpop.permute.xlu0 %4591 }
 0x80b   :  { %4647 = vpow2.f32 %v1097_v42  ;;  %v4594_v20 = vunpack.i.h.bf16 %v4592_v44  ;;  %v4593_v29 = vunpack.i.l.bf16 %v4592_v44 }
 0x80c   :  { %v4642_v32 = vpop.eup %4641 }
 0x80d   :  { %v4644_v34 = vpop.eup %4643  ;;  %v4300_v35 = vpack.c.bf16 %v4594_v20, %v4593_v29  ;;  %v1104_v28 = vsel %vm701_vm8, %v4642_v32, 0.0 }
 0x80e   :  { %4084 = vmatprep.mubr.msk.f32.mxu1 %vm701_vm8, %v4644_v34  ;;  %1105 = vadd.xlane.f32.xlu0 %v1104_v28  ;;  %v1101_v38 = vsel %vm701_vm8, %v4644_v34, 0.0 }
 0x80f   :  { %1102 = vadd.xlane.f32.xlu1 %v1101_v38  ;;  %4301 = vmatprep.subr.bf16.mxu1 %v4300_v35 }
 0x810   :  { %4303 = vmatpush3.bf16.msra.mxu1 %v4300_v35 }
 0x811   :  { %v4646_v39 = vpop.eup %4645  ;;  %4305 = vmatprep.subr.bf16.mxu1 %v4304_v61 }
 0x812   :  { %v1110_v40 = vsel %vm701_vm8, %v4646_v39, 0.0 }
 0x813   :  { %1111 = vadd.xlane.f32.xlu0 %v1110_v40  ;;  %4085 = vmatmul.mubr.msk.f32.vlgmr.msra.gmra.mrb[16].mxu1 %vm701_vm8, %v4642_v32 }
 0x814   :  { %4307 = vmatpush3.bf16.msra.mxu1 %v4304_v61 }
 0x815   :  { %v4648_v43 = vpop.eup %4647  ;;  %4309 = vmatprep.subr.bf16.mxu1 %v4308_v0 }
 0x816   :  { %4087 = vmatprep.mubr.msk.f32.mxu1 %vm701_vm8, %v4648_v43  ;;  %v1107_v45 = vsel %vm701_vm8, %v4648_v43, 0.0 }
 0x817   :  { %1108 = vadd.xlane.f32.xlu1 %v1107_v45  ;;  %839 = vadd.xlane.f32.xlu0 %v838_v46  ;;  %v3498_v45 = vld [vmem:[%s6255_s15] ss:$0 sm:$0xff] }
 0x818   :  { %4088 = vmatmul.mubr.msk.f32.gmra.mrb[18].mxu1 %vm701_vm8, %v4646_v39 }
 0x819   :  { %4311 = vmatpush3.bf16.msra.mxu1 %v4308_v0 }
 0x81a   :  { %4313 = vmatprep.subr.bf16.mxu1 %v4312_v3 }
 0x81b   :  { %836 = vadd.xlane.f32.xlu1 %v835_v51  ;;  %845 = vadd.xlane.f32.xlu0 %v844_v53 }
 0x81d   :  { %4315 = vmatpush3.bf16.msra.mxu1 %v4312_v3 }
 0x81e   :  { %4317 = vmatprep.subr.bf16.mxu1 %v4316_v9 }
 0x81f   :  { %842 = vadd.xlane.f32.xlu1 %v841_v55 }
 0x821   :  { %4319 = vmatpush3.bf16.msra.mxu1 %v4316_v9 }
 0x89b   :  { %v1106_v10 = vpop.xlane.xlu0 %1105 }
 0x89c   :  { %v1103_v12 = vpop.xlane.xlu1 %1102  ;;  %4649 = vrcp.f32 %v1106_v10 }
 0x89d   :  { %4651 = vrcp.f32 %v1103_v12 }
 0x8a0   :  { %v1112_v15 = vpop.xlane.xlu0 %1111 }
 0x8a4   :  { %v1109_v14 = vpop.xlane.xlu1 %1108  ;;  %v840_v26 = vpop.xlane.xlu0 %839 }
 0x8a5   :  { %4653 = vrcp.f32 %v1109_v14 }
 0x8a6   :  { %v4650_v16 = vpop.eup %4649  ;;  %4655 = vrcp.f32 %v1112_v15 }
 0x8a7   :  { %v4652_v6 = vpop.eup %4651 }
 0x8a8   :  { %v837_v25 = vpop.xlane.xlu1 %836  ;;  %v846_v30 = vpop.xlane.xlu0 %845 }
 0x8a9   :  { %4657 = vrcp.f32 %v837_v25  ;;  %v1450_v25 = vld [vmem:[%s6258_s18 + $0x10] sm:$0xff] }
 0x8aa   :  { %4659 = vrcp.f32 %v840_v26 }
 0x8ac   :  { %v843_v27 = vpop.xlane.xlu1 %842 }
 0x8ad   :  { %4661 = vrcp.f32 %v843_v27 }
 0x8ae   :  { %4663 = vrcp.f32 %v846_v30  ;;  %v1453_v30 = vld [vmem:[%s6258_s18 + $0x28] sm:$0xff] }
 0x8af   :  { %v4654_v19 = vpop.eup %4653 }
 0x8b0   :  { %v4656_v22 = vpop.eup %4655 }
 0x8b3   :  { %v4658_v31 = vpop.eup %4657 }
 0x8b4   :  { %v4660_v33 = vpop.eup %4659  ;;  %v948_v42 = vmul.f32 %v4658_v31, %v5254_v57  ;;  %v1455_v31 = vld [vmem:[%s6258_s18 + $0x38] sm:$0xff] }
 0x8b5   :  { %v949_v44 = vmul.f32 %v4660_v33, %v5252_v56  ;;  %v4324_v33 = vpack.c.bf16 %v1455_v31, %v1453_v30  ;;  %v1651_v31 = vld [vmem:[%s6260_s20 + $0x10] sm:$0xff] }
 0x8b7   :  { %v4662_v29 = vpop.eup %4661 }
 0x8b8   :  { %v950_v35 = vmul.f32 %v4662_v29, %v5258_v59  ;;  %v4664_v28 = vpop.eup %4663  ;;  %v1459_v29 = vld [vmem:[%s6258_s18 + $0x58] sm:$0xff] }
 0x8b9   :  { %v951_v56 = vmul.f32 %v4664_v28, %v5256_v58 }
 0x8e6   :  { %v4086_v7 = vpop.f32.mrb[16].mxu1 }
 0x8e7   :  { %v1231_v1 = vmul.f32 %v4650_v16, %v4086_v7  ;;  %v1207_v4 = vpop.f32.mrb[17].mxu1 }
 0x8e8   :  { %v1230_v11 = vmul.f32 %v4652_v6, %v1207_v4 }
 0x8e9   :  { %1240 = vrot.lane.b32.xlu0 %v1231_v1, %s4801_s4 }
 0x8ea   :  { %1238 = vrot.lane.b32.xlu1 %v1230_v11, %s4801_s4 }
 0x8eb   :  { %v4089_v17 = vpop.f32.mrb[18].mxu1 }
 0x8ec   :  { %v1217_v18 = vpop.f32.mrb[19].mxu1  ;;  %v1233_v24 = vmul.f32 %v4656_v22, %v4089_v17  ;;  %v1451_v22 = vld [vmem:[%s6258_s18 + $0x18] sm:$0xff] }
 0x8ed   :  { %v1232_v13 = vmul.f32 %v4654_v19, %v1217_v18 }
 0x8ef   :  { %1242 = vrot.lane.b32.xlu1 %v1232_v13, %s4801_s4  ;;  %v1449_v13 = vld [vmem:[%s6258_s18 + $0x8] sm:$0xff] }
 0x8f0   :  { %v4320_v26 = vpack.c.bf16 %v1451_v22, %v1449_v13  ;;  %v1666_v13 = vld [vmem:[%s6260_s20 + $0x88] sm:$0xff] }
 0x8f2   :  { %4321 = vmatprep.subr.bf16.mxu0 %v4320_v26  ;;  %v1667_v26 = vld [vmem:[%s6260_s20 + $0x90] sm:$0xff] }
 0x8f3   :  { %1244 = vrot.lane.b32.xlu1 %v1233_v24, %s4801_s4  ;;  %v1448_v24 = vld [vmem:[%s6258_s18] sm:$0xff] }
 0x8f4   :  { %v4322_v27 = vpack.c.bf16 %v1450_v25, %v1448_v24  ;;  %v1650_v24 = vld [vmem:[%s6260_s20 + $0x8] sm:$0xff] }
 0x8f6   :  { %4323 = vmatpush1.bf16.msra.mxu0 %v4322_v27  ;;  %v1668_v27 = vld [vmem:[%s6260_s20 + $0x98] sm:$0xff] }
 0x8f7   :  { %4325 = vmatprep.subr.bf16.mxu0 %v4324_v33  ;;  %v4340_v30 = vpack.c.bf16 %v1668_v27, %v1667_v26  ;;  %v1652_v33 = vld [vmem:[%s6260_s20 + $0x18] sm:$0xff] }
 0x95b   :  { %v1241_v41 = vpop.permute.xlu0 %1240 }
 0x95c   :  { %v1239_v20 = vpop.permute.xlu1 %1238  ;;  %v1251_v34 = vsel %vm701_vm8, %v949_v44, %v1241_v41  ;;  %v1452_v41 = vld [vmem:[%s6258_s18 + $0x20] sm:$0xff] }
 0x95d   :  { %v1250_v32 = vsel %vm701_vm8, %v948_v42, %v1239_v20  ;;  %v1454_v42 = vld [vmem:[%s6258_s18 + $0x30] sm:$0xff]  ;;  %v1457_v20 = vld [vmem:[%s6258_s18 + $0x48] sm:$0xff] }
 0x95e   :  { %4106 = vmatprep.mubr.msk.f32.mxu1 %vm486_vm7, %v1250_v32  ;;  %v4326_v44 = vpack.c.bf16 %v1454_v42, %v1452_v41  ;;  %v4328_v32 = vpack.c.bf16 %v1459_v29, %v1457_v20  ;;  %v4342_v41 = vpack.c.bf16 %v1652_v33, %v1651_v31  ;;  %v1669_v42 = vld [vmem:[%s6260_s20 + $0xa0] sm:$0xff] }
 0x95f   :  { %4107 = vmatmul.mubr.msk.f32.vlgmr.msra.gmra.mrb[20].mxu1 %vm486_vm7, %v1251_v34  ;;  %v1456_v34 = vld [vmem:[%s6258_s18 + $0x40] sm:$0xff] }
 0x960   :  { %4327 = vmatpush1.bf16.msra.mxu0 %v4326_v44  ;;  %v1670_v44 = vld [vmem:[%s6260_s20 + $0xa8] sm:$0xff]  ;;  %v1653_v29 = vld [vmem:[%s6260_s20 + $0x20] sm:$0xff] }
 0x961   :  { %v1243_v38 = vpop.permute.xlu1 %1242  ;;  %4329 = vmatprep.subr.bf16.mxu0 %v4328_v32  ;;  %v4344_v20 = vpack.c.bf16 %v1670_v44, %v1669_v42  ;;  %v1654_v32 = vld [vmem:[%s6260_s20 + $0x28] sm:$0xff] }
 0x962   :  { %v1252_v39 = vsel %vm701_vm8, %v950_v35, %v1243_v38  ;;  %v1458_v35 = vld [vmem:[%s6258_s18 + $0x50] sm:$0xff]  ;;  %v1461_v38 = vld [vmem:[%s6258_s18 + $0x68] sm:$0xff] }
 0x963   :  { %4109 = vmatprep.mubr.msk.f32.mxu1 %vm486_vm7, %v1252_v39  ;;  %v4330_v28 = vpack.c.bf16 %v1458_v35, %v1456_v34  ;;  %v1463_v39 = vld [vmem:[%s6258_s18 + $0x78] sm:$0xff]  ;;  %v4346_v34 = vpack.c.bf16 %v1654_v32, %v1653_v29  ;;  %v1671_v35 = vld [vmem:[%s6260_s20 + $0xb0] sm:$0xff] }
 0x965   :  { %v1245_v57 = vpop.permute.xlu1 %1244  ;;  %4331 = vmatpush1.bf16.msra.mxu0 %v4330_v28  ;;  %v1672_v28 = vld [vmem:[%s6260_s20 + $0xb8] sm:$0xff] }
 0x966   :  { %v1253_v40 = vsel %vm701_vm8, %v951_v56, %v1245_v57  ;;  %v4332_v56 = vpack.c.bf16 %v1463_v39, %v1461_v38  ;;  %v1460_v57 = vld [vmem:[%s6258_s18 + $0x60] sm:$0xff]  ;;  %v4348_v38 = vpack.c.bf16 %v1672_v28, %v1671_v35  ;;  %v1655_v39 = vld [vmem:[%s6260_s20 + $0x30] sm:$0xff] }
 0x967   :  { %4110 = vmatmul.mubr.msk.f32.gmra.mrb[22].mxu1 %vm486_vm7, %v1253_v40  ;;  %v1462_v40 = vld [vmem:[%s6258_s18 + $0x70] sm:$0xff] }
 0x968   :  { %4333 = vmatprep.subr.bf16.mxu0 %v4332_v56  ;;  %v1656_v56 = vld [vmem:[%s6260_s20 + $0x38] sm:$0xff] }
 0xa32   :  { %v4108_v43 = vpop.f32.mrb[20].mxu1 }
 0xa33   :  { %v1360_v59 = vadd.f32 %v4108_v43, %v5027_v52  ;;  %v1340_v46 = vpop.f32.mrb[21].mxu1  ;;  %v4334_v43 = vpack.c.bf16 %v1462_v40, %v1460_v57  ;;  %v4350_v57 = vpack.c.bf16 %v1656_v56, %v1655_v39  ;;  %v1673_v40 = vld [vmem:[%s6260_s20 + $0xc0] sm:$0xff] }
 0xa34   :  { %v1359_v51 = vadd.f32 %v1340_v46, %v5029_v54 }
 0xa35   :  { %v5337_v53 = vadd.f32 %v3498_v45, %v1360_v59  ;;  %4335 = vmatpush1.bf16.msra.mxu0 %v4334_v43  ;;  %v1674_v43 = vld [vmem:[%s6260_s20 + $0xc8] sm:$0xff] }
 0xa36   :  { %v5339_v55 = vadd.f32 %v3498_v45, %v1359_v51 }
 0xa37   :  { %v1379_v58 = vsel %vm486_vm7, %v5337_v53, 0.0 }
 0xa38   :  { %1380 = vadd.xlane.f32.xlu1 %v1379_v58  ;;  %v1376_v37 = vsel %vm486_vm7, %v5339_v55, 0.0 }
 0xa39   :  { %1377 = vadd.xlane.f32.xlu0 %v1376_v37 }
 0xa3a   :  { %v4111_v60 = vpop.f32.mrb[22].mxu1 }
 0xa3b   :  { %v1350_v36 = vpop.f32.mrb[23].mxu1  ;;  %v1362_v61 = vadd.f32 %v4111_v60, %v5037_v63 }
 0xa3c   :  { %v1361_v52 = vadd.f32 %v1350_v36, %v5035_v62 }
 0xa3d   :  { %v5349_v54 = vadd.f32 %v3498_v45, %v1362_v61 }
 0xa3e   :  { %v5347_v49 = vadd.f32 %v3498_v45, %v1361_v52 }
 0xa3f   :  { %v1385_v48 = vsel %vm486_vm7, %v5349_v54, 0.0 }
 0xa40   :  { %v1382_v0 = vsel %vm486_vm7, %v5347_v49, 0.0 }
 0xa41   :  { %1383 = vadd.xlane.f32.xlu0 %v1382_v0 }
 0xa45   :  { %1386 = vadd.xlane.f32.xlu0 %v1385_v48 }
 0xac5   :  { %v1381_v2 = vpop.xlane.xlu1 %1380 }
 0xac6   :  { %v1389_v3 = vmul.f32 0.015625, %v1381_v2  ;;  %v1378_v5 = vpop.xlane.xlu0 %1377 }
 0xac7   :  { %v1388_v8 = vmul.f32 0.015625, %v1378_v5 }
 0xac8   :  { %v5356_v63 = vsub.f32 %v5337_v53, %v1389_v3  ;;  %v3499_v3 = vld [vmem:[%s6256_s16] ss:$0 sm:$0xff] }
 0xac9   :  { %v5359_v62 = vsub.f32 %v5339_v55, %v1388_v8 }
 0xaca   :  { %v1397_v9 = vmul.f32 %v5356_v63, %v5356_v63 }
 0xacb   :  { %v1396_v10 = vmul.f32 %v5359_v62, %v5359_v62 }
 0xacc   :  { %v1403_v12 = vsel %vm486_vm7, %v1397_v9, 0.0 }
 0xacd   :  { %1404 = vadd.xlane.f32.xlu0 %v1403_v12  ;;  %v1400_v14 = vsel %vm486_vm7, %v1396_v10, 0.0  ;;  %v3500_v10 = vld [vmem:[%s6257_s17] ss:$0 sm:$0xff] }
 0xace   :  { %v1384_v15 = vpop.xlane.xlu0 %1383  ;;  %1401 = vadd.xlane.f32.xlu1 %v1400_v14 }
 0xacf   :  { %v1390_v16 = vmul.f32 0.015625, %v1384_v15 }
 0xad1   :  { %v5368_v7 = vsub.f32 %v5347_v49, %v1390_v16 }
 0xad2   :  { %v1387_v6 = vpop.xlane.xlu0 %1386 }
 0xad3   :  { %v1391_v1 = vmul.f32 0.015625, %v1387_v6  ;;  %v1398_v4 = vmul.f32 %v5368_v7, %v5368_v7 }
 0xad5   :  { %v5373_v11 = vsub.f32 %v5349_v54, %v1391_v1  ;;  %v1406_v17 = vsel %vm486_vm7, %v1398_v4, 0.0 }
 0xad6   :  { %1407 = vadd.xlane.f32.xlu1 %v1406_v17 }
 0xad7   :  { %v1399_v19 = vmul.f32 %v5373_v11, %v5373_v11 }
 0xad9   :  { %v1409_v18 = vsel %vm486_vm7, %v1399_v19, 0.0 }
 0xada   :  { %1410 = vadd.xlane.f32.xlu0 %v1409_v18 }
 0xb5a   :  { %v1405_v45 = vpop.xlane.xlu0 %1404 }
 0xb5b   :  { %v1413_v59 = vmul.f32 0.015625, %v1405_v45  ;;  %v1402_v46 = vpop.xlane.xlu1 %1401  ;;  %v4352_v45 = vpack.c.bf16 %v1674_v43, %v1673_v40 }
 0xb5c   :  { %v1412_v51 = vmul.f32 0.015625, %v1402_v46  ;;  %v1658_v46 = vld [vmem:[%s6260_s20 + $0x48] sm:$0xff] }
 0xb5d   :  { %v1417_v58 = vadd.f32 1e-05, %v1413_v59  ;;  %v1657_v59 = vld [vmem:[%s6260_s20 + $0x40] sm:$0xff] }
 0xb5e   :  { %v1416_v37 = vadd.f32 1e-05, %v1412_v51  ;;  %v4354_v51 = vpack.c.bf16 %v1658_v46, %v1657_v59 }
 0xb5f   :  { %4665 = vrsqrt.f32 %v1417_v58  ;;  %v1675_v58 = vld [vmem:[%s6260_s20 + $0xd0] sm:$0xff] }
 0xb60   :  { %4667 = vrsqrt.f32 %v1416_v37  ;;  %v1676_v37 = vld [vmem:[%s6260_s20 + $0xd8] sm:$0xff] }
 0xb63   :  { %v1408_v60 = vpop.xlane.xlu1 %1407 }
 0xb64   :  { %v1414_v36 = vmul.f32 0.015625, %v1408_v60  ;;  %v4356_v60 = vpack.c.bf16 %v1676_v37, %v1675_v58 }
 0xb66   :  { %v1418_v61 = vadd.f32 1e-05, %v1414_v36  ;;  %v1659_v36 = vld [vmem:[%s6260_s20 + $0x50] sm:$0xff] }
 0xb67   :  { %v1411_v52 = vpop.xlane.xlu0 %1410 }
 0xb68   :  { %4669 = vrsqrt.f32 %v1418_v61  ;;  %v1415_v0 = vmul.f32 0.015625, %v1411_v52  ;;  %v1660_v61 = vld [vmem:[%s6260_s20 + $0x58] sm:$0xff] }
 0xb69   :  { %v4666_v48 = vpop.eup %4665  ;;  %v4358_v52 = vpack.c.bf16 %v1660_v61, %v1659_v36 }
 0xb6a   :  { %v4668_v2 = vpop.eup %4667  ;;  %v1419_v5 = vadd.f32 1e-05, %v1415_v0  ;;  %v1425_v9 = vmul.f32 %v4666_v48, %v5356_v63  ;;  %v1677_v0 = vld [vmem:[%s6260_s20 + $0xe0] sm:$0xff]  ;;  %v1678_v48 = vld [vmem:[%s6260_s20 + $0xe8] sm:$0xff] }
 0xb6b   :  { %v1424_v8 = vmul.f32 %v4668_v2, %v5359_v62  ;;  %v4360_v2 = vpack.c.bf16 %v1678_v48, %v1677_v0 }
 0xb6c   :  { %4671 = vrsqrt.f32 %v1419_v5  ;;  %v1435_v15 = vmul.f32 %v3499_v3, %v1425_v9  ;;  %v1662_v5 = vld [vmem:[%s6260_s20 + $0x68] sm:$0xff]  ;;  %v1679_v9 = vld [vmem:[%s6260_s20 + $0xf0] sm:$0xff] }
 0xb6d   :  { %v1434_v12 = vmul.f32 %v3499_v3, %v1424_v8 }
 0xb6e   :  { %v1445_v6 = vadd.f32 %v3500_v10, %v1435_v15  ;;  %v1664_v15 = vld [vmem:[%s6260_s20 + $0x78] sm:$0xff] }
 0xb6f   :  { %v1444_v14 = vadd.f32 %v3500_v10, %v1434_v12 }
 0xb71   :  { %3501 = vmatmul.mubr.msk.f32.vlgmr.msra.gmra.mrb[12].mxu0 %vm486_vm7, %v1444_v14  ;;  %v1663_v14 = vld [vmem:[%s6260_s20 + $0x70] sm:$0xff] }
 0xb72   :  { %v4670_v16 = vpop.eup %4669  ;;  %1558 = vmatprep.mubr.f32.mxu0 %v4799_v47 }
 0xb73   :  { %v1426_v1 = vmul.f32 %v4670_v16, %v5368_v7  ;;  %v1665_v7 = vld [vmem:[%s6260_s20 + $0x80] sm:$0xff]  ;;  %v4366_v16 = vpack.c.bf16 %v1664_v15, %v1663_v14 }
 0xb74   :  { %v4336_v22 = vpack.c.bf16 %v1666_v13, %v1665_v7 }
 0xb75   :  { %3502 = vmatmul.mubr.msk.f32.gmra.mrb[14].mxu0 %vm486_vm7, %v1445_v6  ;;  %v1436_v62 = vmul.f32 %v3499_v3, %v1426_v1  ;;  %v1464_v6 = vld [vmem:[%s6259_s19] sm:$0x3] }
 0xb76   :  { %v4672_v63 = vpop.eup %4671  ;;  %1564 = vmatprep.mubr.f32.mxu0 %v4799_v47  ;;  %4337 = vmatprep.subr.bf16.mxu1 %v4336_v22  ;;  %v1469_v1 = vrot.slane %v1464_v6, %v5134_v21 }
 0xb77   :  { %v1446_v4 = vadd.f32 %v3500_v10, %v1436_v62  ;;  %v1427_v17 = vmul.f32 %v4672_v63, %v5373_v11  ;;  %v1649_v11 = vld [vmem:[%s6260_s20] sm:$0xff]  ;;  %v1473_v62 = vrot.slane %v1464_v6, %v5140_v23 }
 0xb78   :  { %v4338_v25 = vpack.c.bf16 %v1650_v24, %v1649_v11 }
 0xb79   :  { %3503 = vmatmul.mubr.msk.f32.gmra.mrb[16].mxu0 %vm486_vm7, %v1446_v4  ;;  %v1437_v19 = vmul.f32 %v3499_v3, %v1427_v17  ;;  %v1661_v3 = vld [vmem:[%s6260_s20 + $0x60] sm:$0xff] }
 0xb7a   :  { %1570 = vmatprep.mubr.f32.mxu0 %v4799_v47  ;;  %4339 = vmatpush3.bf16.msra.mxu1 %v4338_v25  ;;  %v4362_v8 = vpack.c.bf16 %v1662_v5, %v1661_v3 }
 0xb7b   :  { %v1447_v18 = vadd.f32 %v3500_v10, %v1437_v19  ;;  %4341 = vmatprep.subr.bf16.mxu1 %v4340_v30  ;;  %v1680_v10 = vld [vmem:[%s6260_s20 + $0xf8] sm:$0xff] }
 0xb7c   :  { %v4364_v12 = vpack.c.bf16 %v1680_v10, %v1679_v9 }
 0xb7d   :  { %3504 = vmatmul.mubr.msk.f32.gmra.mrb[18].mxu0 %vm486_vm7, %v1447_v18 }
 0xb7e   :  { %1963 = vmatprep.mubr.f32.mxu0 %v4799_v47  ;;  %4343 = vmatpush3.bf16.msra.mxu1 %v4342_v41 }
 0xb7f   :  { %4345 = vmatprep.subr.bf16.mxu1 %v4344_v20 }
 0xb82   :  { %4347 = vmatpush3.bf16.msra.mxu1 %v4346_v34 }
 0xb83   :  { %4349 = vmatprep.subr.bf16.mxu1 %v4348_v38 }
 0xb86   :  { %4351 = vmatpush3.bf16.msra.mxu1 %v4350_v57 }
 0xb87   :  { %4353 = vmatprep.subr.bf16.mxu1 %v4352_v45 }
 0xb8a   :  { %4355 = vmatpush3.bf16.msra.mxu1 %v4354_v51 }
 0xb8b   :  { %4357 = vmatprep.subr.bf16.mxu1 %v4356_v60 }
 0xb8e   :  { %4359 = vmatpush3.bf16.msra.mxu1 %v4358_v52 }
 0xb8f   :  { %4361 = vmatprep.subr.bf16.mxu1 %v4360_v2 }
 0xb92   :  { %4363 = vmatpush3.bf16.msra.mxu1 %v4362_v8 }
 0xb93   :  { %4365 = vmatprep.subr.bf16.mxu1 %v4364_v12 }
 0xb96   :  { %4367 = vmatpush3.bf16.msra.mxu1 %v4366_v16 }
 0xc44   :  { %v1554_v63 = vpop.f32.mrb[12].mxu0 }
 0xc45   :  { %v5546_v4 = vadd.f32 %v1554_v63, %v1469_v1  ;;  %v1556_v17 = vpop.f32.mrb[13].mxu0 }
 0xc46   :  { %v5548_v19 = vadd.f32 %v1556_v17, %v1473_v62 }
 0xc47   :  { %v1577_v18 = vmul.f32 %v5546_v4, %v5546_v4 }
 0xc48   :  { %v1578_v7 = vmul.f32 %v5548_v19, %v5548_v19  ;;  %v1560_v13 = vpop.f32.mrb[14].mxu0 }
 0xc49   :  { %v1585_v22 = vmul.f32 %v1577_v18, %v5546_v4  ;;  %v5555_v11 = vadd.f32 %v1560_v13, %v1469_v1  ;;  %v1562_v24 = vpop.f32.mrb[15].mxu0 }
 0xc4a   :  { %v1586_v25 = vmul.f32 %v1578_v7, %v5548_v19  ;;  %v5558_v26 = vadd.f32 %v1562_v24, %v1473_v62 }
 0xc4b   :  { %v1593_v27 = vmul.f32 0.044715, %v1585_v22  ;;  %v1579_v30 = vmul.f32 %v5555_v11, %v5555_v11 }
 0xc4c   :  { %v1594_v31 = vmul.f32 0.044715, %v1586_v25  ;;  %v1580_v33 = vmul.f32 %v5558_v26, %v5558_v26  ;;  %v1566_v41 = vpop.f32.mrb[16].mxu0 }
 0xc4d   :  { %v1601_v42 = vadd.f32 %v1593_v27, %v5546_v4  ;;  %v1587_v44 = vmul.f32 %v1579_v30, %v5555_v11  ;;  %v5566_v20 = vadd.f32 %v1566_v41, %v1469_v1  ;;  %v1568_v29 = vpop.f32.mrb[17].mxu0 }
 0xc4e   :  { %v1602_v32 = vadd.f32 %v1594_v31, %v5548_v19  ;;  %v1588_v34 = vmul.f32 %v1580_v33, %v5558_v26  ;;  %v5570_v35 = vadd.f32 %v1568_v29, %v1473_v62 }
 0xc4f   :  { %v1609_v28 = vmul.f32 0.7978846, %v1601_v42  ;;  %v1595_v38 = vmul.f32 0.044715, %v1587_v44  ;;  %v1581_v39 = vmul.f32 %v5566_v20, %v5566_v20 }
 0xc50   :  { %v1610_v56 = vmul.f32 0.7978846, %v1602_v32  ;;  %v1596_v57 = vmul.f32 0.044715, %v1588_v34  ;;  %v1582_v40 = vmul.f32 %v5570_v35, %v5570_v35  ;;  %v1572_v43 = vpop.f32.mrb[18].mxu0 }
 0xc51   :  { %4673 = vtanh.f32 %v1609_v28  ;;  %v1603_v45 = vadd.f32 %v1595_v38, %v5555_v11  ;;  %v1589_v59 = vmul.f32 %v1581_v39, %v5566_v20  ;;  %v5578_v46 = vadd.f32 %v1572_v43, %v1469_v1  ;;  %v1574_v51 = vpop.f32.mrb[19].mxu0 }
 0xc52   :  { %v1604_v58 = vadd.f32 %v1596_v57, %v5558_v26  ;;  %v1590_v37 = vmul.f32 %v1582_v40, %v5570_v35  ;;  %v1575_v60 = vadd.f32 %v1574_v51, %v1473_v62  ;;  %4675 = vtanh.f32 %v1610_v56 }
 0xc53   :  { %v1611_v36 = vmul.f32 0.7978846, %v1603_v45  ;;  %v1597_v61 = vmul.f32 0.044715, %v1589_v59  ;;  %v1583_v52 = vmul.f32 %v5578_v46, %v5578_v46 }
 0xc54   :  { %v1612_v0 = vmul.f32 0.7978846, %v1604_v58  ;;  %v1598_v48 = vmul.f32 0.044715, %v1590_v37  ;;  %v1584_v2 = vmul.f32 %v1575_v60, %v1575_v60 }
 0xc55   :  { %v1605_v3 = vadd.f32 %v1597_v61, %v5566_v20  ;;  %v1591_v5 = vmul.f32 %v1583_v52, %v5578_v46  ;;  %4677 = vtanh.f32 %v1611_v36  ;;  %v3505_v61 = vld [vmem:[%s6261_s21] ss:$0 sm:$0xff] }
 0xc56   :  { %v1606_v8 = vadd.f32 %v1598_v48, %v5570_v35  ;;  %v1592_v9 = vmul.f32 %v1584_v2, %v1575_v60  ;;  %4679 = vtanh.f32 %v1612_v0 }
 0xc57   :  { %v1613_v10 = vmul.f32 0.7978846, %v1605_v3  ;;  %v1599_v12 = vmul.f32 0.044715, %v1591_v5 }
 0xc58   :  { %v1614_v14 = vmul.f32 0.7978846, %v1606_v8  ;;  %v1600_v15 = vmul.f32 0.044715, %v1592_v9 }
 0xc59   :  { %v1607_v16 = vadd.f32 %v1599_v12, %v5578_v46  ;;  %4681 = vtanh.f32 %v1613_v10 }
 0xc5a   :  { %v1608_v6 = vadd.f32 %v1600_v15, %v1575_v60  ;;  %4683 = vtanh.f32 %v1614_v14 }
 0xc5b   :  { %v4674_v1 = vpop.eup %4673  ;;  %v1615_v62 = vmul.f32 0.7978846, %v1607_v16 }
 0xc5c   :  { %v4676_v63 = vpop.eup %4675  ;;  %v1625_v17 = vadd.f32 1.0, %v4674_v1  ;;  %v1616_v18 = vmul.f32 0.7978846, %v1608_v6 }
 0xc5d   :  { %v1626_v7 = vadd.f32 1.0, %v4676_v63  ;;  %4685 = vtanh.f32 %v1615_v62 }
 0xc5e   :  { %v1633_v13 = vmul.f32 0.5, %v1625_v17  ;;  %4687 = vtanh.f32 %v1616_v18 }
 0xc5f   :  { %v4678_v22 = vpop.eup %4677  ;;  %v1634_v24 = vmul.f32 0.5, %v1626_v7 }
 0xc60   :  { %v4680_v25 = vpop.eup %4679  ;;  %v1627_v27 = vadd.f32 1.0, %v4678_v22  ;;  %v1641_v33 = vmul.f32 %v1633_v13, %v5546_v4 }
 0xc61   :  { %v1642_v30 = vmul.f32 %v1634_v24, %v5548_v19  ;;  %v1628_v31 = vadd.f32 1.0, %v4680_v25 }
 0xc62   :  { %v1635_v41 = vmul.f32 0.5, %v1627_v27 }
 0xc63   :  { %v4682_v42 = vpop.eup %4681  ;;  %1745 = vmatprep.mubr.f32.mxu1 %v1642_v30  ;;  %v1636_v44 = vmul.f32 0.5, %v1628_v31 }
 0xc64   :  { %v4684_v29 = vpop.eup %4683  ;;  %1746 = vmatmul.mubr.f32.vlgmr.msra.gmra.mrb[24].mxu1 %v1641_v33  ;;  %v1629_v32 = vadd.f32 1.0, %v4682_v42  ;;  %v1643_v38 = vmul.f32 %v1635_v41, %v5555_v11 }
 0xc65   :  { %v1644_v34 = vmul.f32 %v1636_v44, %v5558_v26  ;;  %v1630_v28 = vadd.f32 1.0, %v4684_v29 }
 0xc66   :  { %v1637_v39 = vmul.f32 0.5, %v1629_v32 }
 0xc67   :  { %v4686_v56 = vpop.eup %4685  ;;  %1750 = vmatprep.mubr.f32.mxu1 %v1644_v34  ;;  %v1638_v57 = vmul.f32 0.5, %v1630_v28  ;;  %v3511_v34 = vld [vmem:[%s6252_s12 + $0x88] sm:$0xff]  ;;  %v3513_v28 = vld [vmem:[%s6252_s12 + $0x98] sm:$0xff] }
 0xc68   :  { %v4688_v19 = vpop.eup %4687  ;;  %1751 = vmatmul.mubr.f32.gmra.mrb[26].mxu1 %v1643_v38  ;;  %v1631_v40 = vadd.f32 1.0, %v4686_v56  ;;  %v1645_v45 = vmul.f32 %v1637_v39, %v5566_v20  ;;  %v4368_v38 = vpack.c.bf16 %v3513_v28, %v3511_v34  ;;  %v3510_v39 = vld [vmem:[%s6252_s12 + $0x80] sm:$0xff]  ;;  %v3512_v56 = vld [vmem:[%s6252_s12 + $0x90] sm:$0xff] }
 0xc69   :  { %v1646_v4 = vmul.f32 %v1638_v57, %v5570_v35  ;;  %v1632_v43 = vadd.f32 1.0, %v4688_v19  ;;  %v4370_v57 = vpack.c.bf16 %v3512_v56, %v3510_v39  ;;  %v3515_v19 = vld [vmem:[%s6252_s12 + $0xa8] sm:$0xff] }
 0xc6a   :  { %v1639_v59 = vmul.f32 0.5, %v1631_v40  ;;  %4369 = vmatprep.subr.bf16.mxu0 %v4368_v38  ;;  %v3517_v40 = vld [vmem:[%s6252_s12 + $0xb8] sm:$0xff] }
 0xc6b   :  { %1755 = vmatprep.mubr.f32.mxu1 %v1646_v4  ;;  %v1640_v51 = vmul.f32 0.5, %v1632_v43  ;;  %4371 = vmatpush1.bf16.msra.mxu0 %v4370_v57  ;;  %v4372_v4 = vpack.c.bf16 %v3517_v40, %v3515_v19  ;;  %v3514_v43 = vld [vmem:[%s6252_s12 + $0xa0] sm:$0xff] }
 0xc6c   :  { %1756 = vmatmul.mubr.f32.gmra.mrb[28].mxu1 %v1645_v45  ;;  %v1647_v58 = vmul.f32 %v1639_v59, %v5578_v46  ;;  %v3516_v45 = vld [vmem:[%s6252_s12 + $0xb0] sm:$0xff] }
 0xc6d   :  { %v1648_v26 = vmul.f32 %v1640_v51, %v1575_v60  ;;  %v4374_v59 = vpack.c.bf16 %v3516_v45, %v3514_v43  ;;  %4373 = vmatprep.subr.bf16.mxu0 %v4372_v4  ;;  %v3519_v51 = vld [vmem:[%s6252_s12 + $0xc8] sm:$0xff] }
 0xc6f   :  { %1760 = vmatprep.mubr.f32.mxu1 %v1648_v26  ;;  %4375 = vmatpush1.bf16.msra.mxu0 %v4374_v59  ;;  %v3521_v26 = vld [vmem:[%s6252_s12 + $0xd8] sm:$0xff] }
 0xc70   :  { %1761 = vmatmul.mubr.f32.gmra.mrb[30].mxu1 %v1647_v58  ;;  %v4376_v58 = vpack.c.bf16 %v3521_v26, %v3519_v51 }
 0xc72   :  { %4377 = vmatprep.subr.bf16.mxu0 %v4376_v58 }
 0xd37   :  { %v3869_v11 = vpop.f32.mrb[24].mxu1 }
 0xd38   :  { %v3870_v37 = vpop.f32.mrb[25].mxu1 }
 0xd39   :  { %v3871_v36 = vadd.f32 %v3870_v37, %v3869_v11  ;;  %v3518_v11 = vld [vmem:[%s6252_s12 + $0xc0] sm:$0xff]  ;;  %v3520_v37 = vld [vmem:[%s6252_s12 + $0xd0] sm:$0xff] }
 0xd3b   :  { %v1766_v35 = vadd.f32 %v3871_v36, %v5339_v55  ;;  %v3872_v52 = vpop.f32.mrb[26].mxu1  ;;  %v4378_v36 = vpack.c.bf16 %v3520_v37, %v3518_v11 }
 0xd3c   :  { %v3873_v20 = vpop.f32.mrb[27].mxu1 }
 0xd3d   :  { %v5599_v0 = vadd.f32 %v3505_v61, %v1766_v35  ;;  %v3874_v48 = vadd.f32 %v3873_v20, %v3872_v52  ;;  %4379 = vmatpush1.bf16.msra.mxu0 %v4378_v36  ;;  %v3525_v35 = vld [vmem:[%s6252_s12 + $0xf8] sm:$0xff]  ;;  %v3522_v20 = vld [vmem:[%s6252_s12 + $0xe0] sm:$0xff] }
 0xd3f   :  { %v1767_v60 = vadd.f32 %v3874_v48, %v5337_v53  ;;  %v3875_v2 = vpop.f32.mrb[28].mxu1  ;;  %v1785_v46 = vsel %vm486_vm7, %v5599_v0, 0.0  ;;  %v3524_v48 = vld [vmem:[%s6252_s12 + $0xf0] sm:$0xff] }
 0xd40   :  { %1786 = vadd.xlane.f32.xlu1 %v1785_v46  ;;  %v3876_v3 = vpop.f32.mrb[29].mxu1 }
 0xd41   :  { %v5604_v5 = vadd.f32 %v3505_v61, %v1767_v60  ;;  %v3877_v8 = vadd.f32 %v3876_v3, %v3875_v2  ;;  %v4382_v60 = vpack.c.bf16 %v3524_v48, %v3522_v20 }
 0xd43   :  { %v1768_v9 = vadd.f32 %v3877_v8, %v5347_v49  ;;  %v3878_v10 = vpop.f32.mrb[30].mxu1  ;;  %v1788_v55 = vsel %vm486_vm7, %v5604_v5, 0.0 }
 0xd44   :  { %1789 = vadd.xlane.f32.xlu0 %v1788_v55  ;;  %v3879_v12 = vpop.f32.mrb[31].mxu1 }
 0xd45   :  { %v5609_v14 = vadd.f32 %v3505_v61, %v1768_v9  ;;  %v3880_v53 = vadd.f32 %v3879_v12, %v3878_v10 }
 0xd47   :  { %v1769_v15 = vadd.f32 %v3880_v53, %v5349_v54  ;;  %v1791_v16 = vsel %vm486_vm7, %v5609_v14, 0.0 }
 0xd48   :  { %1792 = vadd.xlane.f32.xlu1 %v1791_v16 }
 0xd49   :  { %v5614_v6 = vadd.f32 %v3505_v61, %v1769_v15  ;;  %v3523_v61 = vld [vmem:[%s6252_s12 + $0xe8] sm:$0xff] }
 0xd4a   :  { %v4380_v52 = vpack.c.bf16 %v3525_v35, %v3523_v61 }
 0xd4b   :  { %v1794_v49 = vsel %vm486_vm7, %v5614_v6, 0.0 }
 0xd4c   :  { %1795 = vadd.xlane.f32.xlu0 %v1794_v49  ;;  %4381 = vmatprep.subr.bf16.mxu0 %v4380_v52 }
 0xd4d   :  { %4383 = vmatpush1.bf16.msra.mxu0 %v4382_v60 }
 0xdcd   :  { %v1787_v1 = vpop.xlane.xlu1 %1786 }
 0xdce   :  { %v1797_v62 = vmul.f32 0.015625, %v1787_v1  ;;  %v3508_v1 = vld [vmem:[%s6250_s10 + $0x1] ss:$0 sm:$0xff] }
 0xdd0   :  { %v5619_v63 = vsub.f32 %v5599_v0, %v1797_v62 }
 0xdd1   :  { %v1790_v17 = vpop.xlane.xlu0 %1789 }
 0xdd2   :  { %v1798_v18 = vmul.f32 0.015625, %v1790_v17  ;;  %v1805_v54 = vmul.f32 %v5619_v63, %v5619_v63 }
 0xdd4   :  { %v5624_v7 = vsub.f32 %v5604_v5, %v1798_v18  ;;  %v1809_v13 = vsel %vm486_vm7, %v1805_v54, 0.0  ;;  %v3509_v18 = vld [vmem:[%s6251_s11 + $0x1] ss:$0 sm:$0xff] }
 0xdd5   :  { %1810 = vadd.xlane.f32.xlu1 %v1809_v13  ;;  %v1793_v22 = vpop.xlane.xlu1 %1792 }
 0xdd6   :  { %v1799_v24 = vmul.f32 0.015625, %v1793_v22  ;;  %v1806_v25 = vmul.f32 %v5624_v7, %v5624_v7 }
 0xdd8   :  { %v5630_v27 = vsub.f32 %v5609_v14, %v1799_v24  ;;  %v1812_v30 = vsel %vm486_vm7, %v1806_v25, 0.0 }
 0xdd9   :  { %1813 = vadd.xlane.f32.xlu0 %v1812_v30  ;;  %v1796_v31 = vpop.xlane.xlu0 %1795 }
 0xdda   :  { %v1800_v33 = vmul.f32 0.015625, %v1796_v31  ;;  %v1807_v41 = vmul.f32 %v5630_v27, %v5630_v27 }
 0xddc   :  { %v5636_v42 = vsub.f32 %v5614_v6, %v1800_v33  ;;  %v1815_v44 = vsel %vm486_vm7, %v1807_v41, 0.0 }
 0xddd   :  { %1816 = vadd.xlane.f32.xlu1 %v1815_v44 }
 0xdde   :  { %v1808_v29 = vmul.f32 %v5636_v42, %v5636_v42 }
 0xde0   :  { %v1818_v32 = vsel %vm486_vm7, %v1808_v29, 0.0 }
 0xde1   :  { %1819 = vadd.xlane.f32.xlu0 %v1818_v32 }
 0xe62   :  { %v1811_v2 = vpop.xlane.xlu1 %1810 }
 0xe63   :  { %v1821_v46 = vmul.f32 0.015625, %v1811_v2 }
 0xe65   :  { %v1825_v3 = vadd.f32 1e-05, %v1821_v46 }
 0xe66   :  { %v1814_v8 = vpop.xlane.xlu0 %1813 }
 0xe67   :  { %4689 = vrsqrt.f32 %v1825_v3  ;;  %v1822_v9 = vmul.f32 0.015625, %v1814_v8 }
 0xe69   :  { %v1826_v10 = vadd.f32 1e-05, %v1822_v9 }
 0xe6a   :  { %v1817_v55 = vpop.xlane.xlu1 %1816 }
 0xe6b   :  { %4691 = vrsqrt.f32 %v1826_v10  ;;  %v1823_v12 = vmul.f32 0.015625, %v1817_v55 }
 0xe6d   :  { %v1827_v53 = vadd.f32 1e-05, %v1823_v12 }
 0xe6e   :  { %v1820_v15 = vpop.xlane.xlu0 %1819 }
 0xe6f   :  { %4693 = vrsqrt.f32 %v1827_v53  ;;  %v1824_v16 = vmul.f32 0.015625, %v1820_v15 }
 0xe71   :  { %v4690_v49 = vpop.eup %4689  ;;  %v1828_v62 = vadd.f32 1e-05, %v1824_v16 }
 0xe72   :  { %v1833_v17 = vmul.f32 %v4690_v49, %v5619_v63 }
 0xe73   :  { %4695 = vrsqrt.f32 %v1828_v62 }
 0xe74   :  { %v1843_v54 = vmul.f32 %v3508_v1, %v1833_v17 }
 0xe75   :  { %v4692_v13 = vpop.eup %4691 }
 0xe76   :  { %v1853_v22 = vadd.f32 %v3509_v18, %v1843_v54  ;;  %v1834_v24 = vmul.f32 %v4692_v13, %v5624_v7 }
 0xe78   :  { %3527 = vmatmul.mubr.msk.f32.vlgmr.msra.gmra.mrb[20].mxu0 %vm486_vm7, %v1853_v22  ;;  %v1844_v25 = vmul.f32 %v3508_v1, %v1834_v24 }
 0xe79   :  { %v4694_v30 = vpop.eup %4693  ;;  %1969 = vmatprep.mubr.f32.mxu0 %v4799_v47 }
 0xe7a   :  { %v1854_v31 = vadd.f32 %v3509_v18, %v1844_v25  ;;  %v1835_v33 = vmul.f32 %v4694_v30, %v5630_v27  ;;  %v3526_v27 = vld [vmem:[%s6253_s13 + $0x2] sm:$0x3]  ;;  %s6291_s13 = smov 96   ;;  %v4753_v30 = vld [vmem:[%s6290_s27 + $0x8] sm:$0xff] }
 0xe7b   :  { %v1880_v34 = vrot.slane %v3526_v27, %v5134_v21  ;;  %v1884_v56 = vrot.slane %v3526_v27, %v5140_v23 }
 0xe7c   :  { %3528 = vmatmul.mubr.msk.f32.gmra.mrb[22].mxu0 %vm486_vm7, %v1854_v31  ;;  %v1845_v63 = vmul.f32 %v3508_v1, %v1835_v33 }
 0xe7d   :  { %v4696_v41 = vpop.eup %4695  ;;  %1975 = vmatprep.mubr.f32.mxu0 %v4799_v47 }
 0xe7e   :  { %v1855_v44 = vadd.f32 %v3509_v18, %v1845_v63  ;;  %v1836_v29 = vmul.f32 %v4696_v41, %v5636_v42 }
 0xe80   :  { %3529 = vmatmul.mubr.msk.f32.gmra.mrb[24].mxu0 %vm486_vm7, %v1855_v44  ;;  %v1846_v7 = vmul.f32 %v3508_v1, %v1836_v29 }
 0xe81   :  { %1981 = vmatprep.mubr.f32.mxu0 %v4799_v47 }
 0xe82   :  { %v1856_v32 = vadd.f32 %v3509_v18, %v1846_v7 }
 0xe84   :  { %3530 = vmatmul.mubr.msk.f32.gmra.mrb[26].mxu0 %vm486_vm7, %v1856_v32 }
 0xf4b   :  { %v1965_v28 = vpop.f32.mrb[20].mxu0 }
 0xf4c   :  { %v1966_v38 = vadd.f32 %v1965_v28, %v1880_v34  ;;  %v1967_v39 = vpop.f32.mrb[21].mxu0 }
 0xf4d   :  { %v5713_v40 = vadd.f32 %v1967_v39, %v1884_v56 }
 0xf4e   :  { %4120 = vmatprep.mubr.msk.f32.mxu0 %vm701_vm8, %v1966_v38 }
 0xf4f   :  { %v1971_v42 = vpop.f32.mrb[22].mxu0 }
 0xf50   :  { %v1972_v57 = vadd.f32 %v1971_v42, %v1880_v34  ;;  %v1973_v19 = vpop.f32.mrb[23].mxu0 }
 0xf51   :  { %v5715_v4 = vadd.f32 %v1973_v19, %v1884_v56 }
 0xf52   :  { %v4595_v43 = vpack.i.bf16 %v1972_v57, %v1966_v38 }
 0xf53   :  { %v4615_v45 = vpack.i.bf16 %v5715_v4, %v5713_v40  ;;  %v4396_v59 = vpack.c.bf16 %v5715_v4, %v5713_v40  ;;  %v1977_v51 = vpop.f32.mrb[24].mxu0 }
 0xf54   :  { %4596 = vrot.lane.b32.xlu1 %v4595_v43, %s4800_s2  ;;  %v1979_v26 = vpop.f32.mrb[25].mxu0  ;;  %v1978_v11 = vadd.f32 %v1977_v51, %v1880_v34  ;;  %v4755_v51 = vld [vmem:[%s6290_s27 + $0x10] sm:$0xff] }
 0xf55   :  { %v5723_v61 = vadd.f32 %v1979_v26, %v1884_v56 }
 0xf57   :  { %v1983_v58 = vpop.f32.mrb[26].mxu0 }
 0xf58   :  { %v1984_v37 = vadd.f32 %v1983_v58, %v1880_v34  ;;  %4606 = vrot.lane.b32.xlu1 %v4595_v43, %s4801_s4  ;;  %v1985_v36 = vpop.f32.mrb[27].mxu0 }
 0xf59   :  { %v5725_v35 = vadd.f32 %v1985_v36, %v1884_v56 }
 0xf5a   :  { %v4610_v52 = vpack.i.bf16 %v1984_v37, %v1978_v11 }
 0xf5b   :  { %v4620_v20 = vpack.i.bf16 %v5725_v35, %v5723_v61  ;;  %v4400_v48 = vpack.c.bf16 %v5725_v35, %v5723_v61 }
 0xf5c   :  { %4611 = vrot.lane.b32.xlu1 %v4610_v52, %s4801_s4  ;;  %4601 = vrot.lane.b32.xlu0 %v4610_v52, %s4800_s2 }
 0xf60   :  { %2252 = vrot.lane.b32.xlu1 %v1972_v57, %s6291_s13  ;;  %2250 = vrot.lane.b32.xlu0 %v1966_v38, %s6291_s13  ;;  %v4754_v38 = vld [vmem:[%s6290_s27] sm:$0xff] }
 0xf64   :  { %2256 = vrot.lane.b32.xlu1 %v1984_v37, %s6291_s13  ;;  %2254 = vrot.lane.b32.xlu0 %v1978_v11, %s6291_s13 }
 0xfc6   :  { %v4597_v60 = vpop.permute.xlu1 %4596 }
 0xfc7   :  { %v4599_v2 = vunpack.i.h.bf16 %v4597_v60  ;;  %v4598_v46 = vunpack.i.l.bf16 %v4597_v60 }
 0xfc9   :  { %v4384_v3 = vpack.c.bf16 %v4599_v2, %v4598_v46 }
 0xfca   :  { %v4607_v8 = vpop.permute.xlu1 %4606 }
 0xfcb   :  { %v4609_v9 = vunpack.i.h.bf16 %v4607_v8  ;;  %v4608_v10 = vunpack.i.l.bf16 %v4607_v8  ;;  %4386 = vmatprep.subr.msk.bf16.mxu0 %vm5172_vm9, %v4384_v3 }
 0xfcc   :  { %4389 = vmatpush3.bf16.xpose.msk.msra.mxu0 %vm5172_vm9, %v4384_v3 }
 0xfcd   :  { %v4404_v55 = vpack.c.bf16 %v4609_v9, %v4608_v10 }
 0xfce   :  { %v4602_v12 = vpop.permute.xlu0 %4601  ;;  %v4612_v53 = vpop.permute.xlu1 %4611 }
 0xfcf   :  { %v4604_v15 = vunpack.i.h.bf16 %v4602_v12  ;;  %v4603_v16 = vunpack.i.l.bf16 %v4602_v12  ;;  %v4614_v49 = vunpack.i.h.bf16 %v4612_v53  ;;  %v4613_v1 = vunpack.i.l.bf16 %v4612_v53  ;;  %4406 = vmatprep.subr.msk.bf16.mxu1 %vm5172_vm9, %v4404_v55 }
 0xfd0   :  { %4409 = vmatpush3.bf16.xpose.msk.msra.mxu1 %vm5172_vm9, %v4404_v55 }
 0xfd1   :  { %v4390_v62 = vpack.c.bf16 %v4604_v15, %v4603_v16  ;;  %v4410_v17 = vpack.c.bf16 %v4614_v49, %v4613_v1 }
 0xfd2   :  { %v2251_v18 = vpop.permute.xlu0 %2250  ;;  %v2253_v54 = vpop.permute.xlu1 %2252 }
 0xfd3   :  { %4392 = vmatprep.subr.msk.bf16.mxu0 %vm5172_vm9, %v4390_v62  ;;  %4412 = vmatprep.subr.msk.bf16.mxu1 %vm5172_vm9, %v4410_v17 }
 0xfd4   :  { %4148 = vmatprep.mubr.msk.f32.mxu1 %vm701_vm8, %v2251_v18  ;;  %4395 = vmatpush3.bf16.xpose.msk.msra.mxu0 %vm5172_vm9, %v4390_v62 }
 0xfd5   :  { %4397 = vmatprep.subr.bf16.mxu0 %v4396_v59 }
 0xfd6   :  { %v2255_v13 = vpop.permute.xlu0 %2254  ;;  %v2257_v22 = vpop.permute.xlu1 %2256 }
 0xfd8   :  { %4415 = vmatpush3.bf16.xpose.msk.msra.mxu1 %vm5172_vm9, %v4410_v17 }
 0xfdb   :  { %4121 = vmatmul.mubr.msk.f32.vlgmr.msra.gmra.mrb[28].mxu0 %vm701_vm8, %v1972_v57 }
 0xfdc   :  { %4123 = vmatprep.mubr.msk.f32.mxu0 %vm701_vm8, %v1978_v11  ;;  %4399 = vmatpush3.bf16.msra.mxu0 %v4396_v59 }
 0xfdd   :  { %4401 = vmatprep.subr.bf16.mxu0 %v4400_v48 }
 0xfdf   :  { %4124 = vmatmul.mubr.msk.f32.gmra.mrb[30].mxu0 %vm701_vm8, %v1984_v37  ;;  %4149 = vmatmul.mubr.msk.f32.vlgmr.msra.gmra.mrb[32].mxu1 %vm701_vm8, %v2253_v54  ;;  %v4756_v37 = vld [vmem:[%s6290_s27 + $0x18] sm:$0xff] }
 0xfe0   :  { %4403 = vmatpush3.bf16.msra.mxu0 %v4400_v48  ;;  %4151 = vmatprep.mubr.msk.f32.mxu1 %vm701_vm8, %v2255_v13 }
 0xfe3   :  { %4152 = vmatmul.mubr.msk.f32.gmra.mrb[34].mxu1 %vm701_vm8, %v2257_v22 }
0x10ae   :  { %v4122_v50 = vpop.f32.mrb[28].mxu0 }
0x10af   :  { %v2102_v24 = vmul.f32 0.17677669, %v4122_v50  ;;  %v2082_v25 = vpop.f32.mrb[29].mxu0 }
0x10b0   :  { %v2101_v41 = vmul.f32 0.17677669, %v2082_v25 }
0x10b1   :  { %v2106_v31 = vadd.f32 %v4753_v30, %v2102_v24 }
0x10b2   :  { %v4125_v33 = vpop.f32.mrb[30].mxu0  ;;  %v4150_v63 = vpop.f32.mrb[32].mxu1  ;;  %v2105_v19 = vadd.f32 %v4754_v38, %v2101_v41 }
0x10b3   :  { %v2368_v44 = vmul.f32 0.17677669, %v4150_v63  ;;  %v2092_v29 = vpop.f32.mrb[31].mxu0  ;;  %v2348_v7 = vpop.f32.mrb[33].mxu1  ;;  %v2112_v27 = vsel %vm701_vm8, %v2106_v31, -inf }
0x10b4   :  { %v2367_v32 = vmul.f32 0.17677669, %v2348_v7  ;;  %2113 = vmax.xlane.f32.xlu1 %v2112_v27  ;;  %v2104_v56 = vmul.f32 0.17677669, %v4125_v33  ;;  %v2109_v11 = vsel %vm701_vm8, %v2105_v19, -inf }
0x10b5   :  { %v2372_v34 = vadd.f32 %v4753_v30, %v2368_v44  ;;  %v2103_v48 = vmul.f32 0.17677669, %v2092_v29 }
0x10b6   :  { %v4153_v28 = vpop.f32.mrb[34].mxu1  ;;  %v2371_v39 = vadd.f32 %v4754_v38, %v2367_v32  ;;  %v2108_v36 = vadd.f32 %v4756_v37, %v2104_v56 }
0x10b7   :  { %v2358_v42 = vpop.f32.mrb[35].mxu1  ;;  %v2378_v57 = vsel %vm701_vm8, %v2372_v34, -inf  ;;  %v2370_v58 = vmul.f32 0.17677669, %v4153_v28  ;;  %v2107_v3 = vadd.f32 %v4755_v51, %v2103_v48 }
0x10b8   :  { %v2369_v43 = vmul.f32 0.17677669, %v2358_v42  ;;  %2379 = vmax.xlane.f32.xlu0 %v2378_v57  ;;  %v2375_v59 = vsel %vm701_vm8, %v2371_v39, -inf  ;;  %v2118_v60 = vsel %vm701_vm8, %v2108_v36, -inf }
0x10b9   :  { %2376 = vmax.xlane.f32.xlu1 %v2375_v59  ;;  %v2374_v2 = vadd.f32 %v4756_v37, %v2370_v58  ;;  %v2115_v8 = vsel %vm701_vm8, %v2107_v3, -inf  ;;  %v3555_v37 = vld [vmem:[%s6254_s14 + $0x40] sm:$0xff] }
0x10ba   :  { %v2373_v26 = vadd.f32 %v4755_v51, %v2369_v43 }
0x10bb   :  { %v2384_v46 = vsel %vm701_vm8, %v2374_v2, -inf }
0x10bc   :  { %2110 = vmax.xlane.f32.xlu0 %v2109_v11  ;;  %v2381_v52 = vsel %vm701_vm8, %v2373_v26, -inf }
0x10bd   :  { %2382 = vmax.xlane.f32.xlu1 %v2381_v52  ;;  %v3557_v52 = vld [vmem:[%s6254_s14 + $0x50] sm:$0xff] }
0x10c0   :  { %2119 = vmax.xlane.f32.xlu0 %v2118_v60  ;;  %v3558_v60 = vld [vmem:[%s6254_s14 + $0x58] sm:$0xff] }
0x10c4   :  { %2385 = vmax.xlane.f32.xlu0 %v2384_v46  ;;  %v3559_v46 = vld [vmem:[%s6254_s14 + $0x60] sm:$0xff] }
0x10c8   :  { %2116 = vmax.xlane.f32.xlu0 %v2115_v8 }
0x10ce   :  { %4616 = vrot.lane.b32.xlu1 %v4615_v45, %s6291_s13 }
0x10de   :  { %4621 = vrot.lane.b32.xlu0 %v4620_v20, %s6291_s13 }
0x1141   :  { %v2114_v9 = vpop.xlane.xlu1 %2113 }
0x1142   :  { %v2122_v10 = vsub.f32 %v2106_v31, %v2114_v9  ;;  %v3561_v9 = vld [vmem:[%s6254_s14 + $0x70] sm:$0xff] }
0x1144   :  { %v2127_v49 = vmul.f32 1.442695, %v2122_v10  ;;  %v3562_v10 = vld [vmem:[%s6254_s14 + $0x78] sm:$0xff] }
0x1145   :  { %v2380_v55 = vpop.xlane.xlu0 %2379 }
0x1146   :  { %v2388_v12 = vsub.f32 %v2372_v34, %v2380_v55  ;;  %v2377_v53 = vpop.xlane.xlu1 %2376  ;;  %v4436_v55 = vpack.c.bf16 %v3562_v10, %v3561_v9 }
0x1147   :  { %v2387_v15 = vsub.f32 %v2371_v39, %v2377_v53 }
0x1148   :  { %v2393_v16 = vmul.f32 1.442695, %v2388_v12 }
0x1149   :  { %v2391_v1 = vmul.f32 1.442695, %v2387_v15  ;;  %v2111_v62 = vpop.xlane.xlu0 %2110 }
0x114a   :  { %4697 = vpow2.f32 %v2393_v16  ;;  %v2121_v17 = vsub.f32 %v2105_v19, %v2111_v62  ;;  %v2383_v18 = vpop.xlane.xlu1 %2382 }
0x114b   :  { %4699 = vpow2.f32 %v2391_v1  ;;  %v2389_v40 = vsub.f32 %v2373_v26, %v2383_v18 }
0x114c   :  { %v2125_v4 = vmul.f32 1.442695, %v2121_v17  ;;  %4701 = vpow2.f32 %v2127_v49 }
0x114d   :  { %v2395_v45 = vmul.f32 1.442695, %v2389_v40  ;;  %v2120_v61 = vpop.xlane.xlu0 %2119 }
0x114e   :  { %4703 = vpow2.f32 %v2125_v4  ;;  %v4617_v35 = vpop.permute.xlu1 %4616  ;;  %v2124_v24 = vsub.f32 %v2108_v36, %v2120_v61  ;;  %v3556_v36 = vld [vmem:[%s6254_s14 + $0x48] sm:$0xff] }
0x114f   :  { %4705 = vpow2.f32 %v2395_v45  ;;  %v4619_v20 = vunpack.i.h.bf16 %v4617_v35  ;;  %v4618_v54 = vunpack.i.l.bf16 %v4617_v35  ;;  %v4424_v48 = vpack.c.bf16 %v3556_v36, %v3555_v37 }
0x1150   :  { %v2131_v7 = vmul.f32 1.442695, %v2124_v24 }
0x1151   :  { %v4416_v13 = vpack.c.bf16 %v4619_v20, %v4618_v54  ;;  %v2386_v22 = vpop.xlane.xlu0 %2385  ;;  %4425 = vmatprep.subr.bf16.mxu1 %v4424_v48 }
0x1152   :  { %v2390_v50 = vsub.f32 %v2374_v2, %v2386_v22  ;;  %v4428_v2 = vpack.c.bf16 %v3558_v60, %v3557_v52  ;;  %4427 = vmatpush3.bf16.msra.mxu1 %v4424_v48 }
0x1153   :  { %4417 = vmatprep.subr.bf16.mxu0 %v4416_v13 }
0x1154   :  { %v4698_v25 = vpop.eup %4697  ;;  %v2397_v30 = vmul.f32 1.442695, %v2390_v50  ;;  %4429 = vmatprep.subr.bf16.mxu1 %v4428_v2 }
0x1155   :  { %v4700_v31 = vpop.eup %4699  ;;  %v2117_v33 = vpop.xlane.xlu0 %2116  ;;  %v2402_v63 = vsel %vm701_vm8, %v4698_v25, 0.0 }
0x1156   :  { %4707 = vpow2.f32 %v2397_v30  ;;  %v2123_v41 = vsub.f32 %v2107_v3, %v2117_v33  ;;  %2403 = vadd.xlane.f32.xlu0 %v2402_v63  ;;  %v2399_v44 = vsel %vm701_vm8, %v4700_v31, 0.0  ;;  %v4702_v29 = vpop.eup %4701  ;;  %v3560_v3 = vld [vmem:[%s6254_s14 + $0x68] sm:$0xff]  ;;  %4431 = vmatpush3.bf16.msra.mxu1 %v4428_v2 }
0x1157   :  { %2400 = vadd.xlane.f32.xlu1 %v2399_v44  ;;  %v2136_v26 = vsel %vm701_vm8, %v4702_v29, 0.0  ;;  %v4432_v8 = vpack.c.bf16 %v3560_v3, %v3559_v46 }
0x1158   :  { %v4704_v32 = vpop.eup %4703  ;;  %v2129_v27 = vmul.f32 1.442695, %v2123_v41 }
0x1159   :  { %v4706_v34 = vpop.eup %4705  ;;  %4134 = vmatprep.mubr.msk.f32.mxu0 %vm701_vm8, %v4704_v32  ;;  %v4622_v28 = vpop.permute.xlu0 %4621  ;;  %v2133_v57 = vsel %vm701_vm8, %v4704_v32, 0.0  ;;  %4433 = vmatprep.subr.bf16.mxu1 %v4432_v8 }
0x115a   :  { %4709 = vpow2.f32 %v2129_v27  ;;  %v4624_v38 = vunpack.i.h.bf16 %v4622_v28  ;;  %v4623_v39 = vunpack.i.l.bf16 %v4622_v28  ;;  %4135 = vmatmul.mubr.msk.f32.vlgmr.msra.gmra.mrb[32].mxu0 %vm701_vm8, %v4702_v29  ;;  %v2405_v56 = vsel %vm701_vm8, %v4706_v34, 0.0  ;;  %4435 = vmatpush3.bf16.msra.mxu1 %v4432_v8 }
0x115b   :  { %4711 = vpow2.f32 %v2131_v7  ;;  %4419 = vmatpush3.bf16.msra.mxu0 %v4416_v13  ;;  %2406 = vadd.xlane.f32.xlu1 %v2405_v56 }
0x115c   :  { %v4420_v42 = vpack.c.bf16 %v4624_v38, %v4623_v39  ;;  %4437 = vmatprep.subr.bf16.mxu1 %v4436_v55 }
0x115e   :  { %4421 = vmatprep.subr.bf16.mxu0 %v4420_v42  ;;  %4439 = vmatpush3.bf16.msra.mxu1 %v4436_v55 }
0x115f   :  { %2134 = vadd.xlane.f32.xlu1 %v2133_v57  ;;  %4423 = vmatpush3.bf16.msra.mxu0 %v4420_v42 }
0x1160   :  { %v4708_v19 = vpop.eup %4707 }
0x1161   :  { %v2408_v43 = vsel %vm701_vm8, %v4708_v19, 0.0 }
0x1162   :  { %2409 = vadd.xlane.f32.xlu0 %v2408_v43 }
0x1164   :  { %v4710_v59 = vpop.eup %4709 }
0x1165   :  { %v4712_v51 = vpop.eup %4711  ;;  %4137 = vmatprep.mubr.msk.f32.mxu0 %vm701_vm8, %v4710_v59  ;;  %v2139_v58 = vsel %vm701_vm8, %v4710_v59, 0.0 }
0x1166   :  { %2137 = vadd.xlane.f32.xlu0 %v2136_v26  ;;  %4138 = vmatmul.mubr.msk.f32.gmra.mrb[34].mxu0 %vm701_vm8, %v4712_v51  ;;  %v2142_v11 = vsel %vm701_vm8, %v4712_v51, 0.0  ;;  %v3568_v51 = vld [vmem:[%s6255_s15 + $0x1] ss:$0 sm:$0xff] }
0x1167   :  { %2140 = vadd.xlane.f32.xlu1 %v2139_v58  ;;  %4162 = vmatprep.mubr.msk.f32.mxu0 %vm701_vm8, %v4700_v31 }
0x116a   :  { %2143 = vadd.xlane.f32.xlu0 %v2142_v11  ;;  %4163 = vmatmul.mubr.msk.f32.vlgmr.msra.gmra.mrb[36].mxu0 %vm701_vm8, %v4698_v25 }
0x116b   :  { %4165 = vmatprep.mubr.msk.f32.mxu0 %vm701_vm8, %v4706_v34 }
0x116e   :  { %4166 = vmatmul.mubr.msk.f32.gmra.mrb[38].mxu0 %vm701_vm8, %v4708_v19 }
0x11e3   :  { %v2404_v16 = vpop.xlane.xlu0 %2403 }
0x11e4   :  { %v2401_v15 = vpop.xlane.xlu1 %2400  ;;  %4713 = vrcp.f32 %v2404_v16 }
0x11e5   :  { %4715 = vrcp.f32 %v2401_v15 }
0x11e8   :  { %v2407_v49 = vpop.xlane.xlu1 %2406 }
0x11e9   :  { %4717 = vrcp.f32 %v2407_v49 }
0x11ec   :  { %v2135_v25 = vpop.xlane.xlu1 %2134 }
0x11ee   :  { %v4714_v18 = vpop.eup %4713 }
0x11ef   :  { %v2410_v1 = vpop.xlane.xlu0 %2409  ;;  %v4716_v4 = vpop.eup %4715 }
0x11f0   :  { %4719 = vrcp.f32 %v2410_v1 }
0x11f1   :  { %4721 = vrcp.f32 %v2135_v25 }
0x11f3   :  { %v4718_v54 = vpop.eup %4717  ;;  %v2138_v30 = vpop.xlane.xlu0 %2137 }
0x11f4   :  { %v2141_v31 = vpop.xlane.xlu1 %2140  ;;  %4723 = vrcp.f32 %v2138_v30 }
0x11f5   :  { %4725 = vrcp.f32 %v2141_v31  ;;  %v3578_v31 = vld [vmem:[%s6258_s18 + $0xa8] sm:$0xff] }
0x11f7   :  { %v2144_v33 = vpop.xlane.xlu0 %2143 }
0x11f8   :  { %4727 = vrcp.f32 %v2144_v33  ;;  %v3580_v33 = vld [vmem:[%s6258_s18 + $0xb8] sm:$0xff] }
0x11fa   :  { %v4720_v50 = vpop.eup %4719 }
0x11fb   :  { %v4722_v63 = vpop.eup %4721 }
0x11fe   :  { %v4724_v41 = vpop.eup %4723 }
0x11ff   :  { %v4726_v34 = vpop.eup %4725 }
0x1202   :  { %v4728_v42 = vpop.eup %4727 }
0x122d   :  { %v4136_v12 = vpop.f32.mrb[32].mxu0 }
0x122e   :  { %v2223_v53 = vpop.f32.mrb[33].mxu0  ;;  %v2247_v7 = vmul.f32 %v4724_v41, %v4136_v12  ;;  %v3577_v41 = vld [vmem:[%s6258_s18 + $0xa0] sm:$0xff] }
0x122f   :  { %v2246_v44 = vmul.f32 %v4722_v63, %v2223_v53  ;;  %v4444_v63 = vpack.c.bf16 %v3580_v33, %v3578_v31  ;;  %v3596_v31 = vld [vmem:[%s6260_s20 + $0x110] sm:$0xff]  ;;  %v3597_v33 = vld [vmem:[%s6260_s20 + $0x118] sm:$0xff] }
0x1239   :  { %v4139_v62 = vpop.f32.mrb[34].mxu0 }
0x123a   :  { %v2233_v17 = vpop.f32.mrb[35].mxu0  ;;  %v2249_v57 = vmul.f32 %v4728_v42, %v4139_v62 }
0x123b   :  { %v2248_v38 = vmul.f32 %v4726_v34, %v2233_v17  ;;  %v3581_v34 = vld [vmem:[%s6258_s18 + $0xc0] sm:$0xff] }
0x123d   :  { %v4164_v40 = vpop.f32.mrb[36].mxu0 }
0x123e   :  { %v2529_v45 = vmul.f32 %v4714_v18, %v4164_v40  ;;  %v2505_v61 = vpop.f32.mrb[37].mxu0 }
0x123f   :  { %v2528_v35 = vmul.f32 %v4716_v4, %v2505_v61 }
0x1240   :  { %2538 = vrot.lane.b32.xlu0 %v2529_v45, %s4801_s4 }
0x1241   :  { %2536 = vrot.lane.b32.xlu1 %v2528_v35, %s4801_s4  ;;  %v4167_v20 = vpop.f32.mrb[38].mxu0 }
0x1242   :  { %v2515_v13 = vpop.f32.mrb[39].mxu0  ;;  %v2531_v24 = vmul.f32 %v4720_v50, %v4167_v20  ;;  %v3573_v50 = vld [vmem:[%s6258_s18 + $0x80] sm:$0xff] }
0x1243   :  { %v2530_v22 = vmul.f32 %v4718_v54, %v2515_v13  ;;  %v3574_v13 = vld [vmem:[%s6258_s18 + $0x88] sm:$0xff] }
0x1245   :  { %2540 = vrot.lane.b32.xlu1 %v2530_v22, %s4801_s4  ;;  %v3576_v22 = vld [vmem:[%s6258_s18 + $0x98] sm:$0xff] }
0x1246   :  { %v4440_v25 = vpack.c.bf16 %v3576_v22, %v3574_v13  ;;  %v3595_v22 = vld [vmem:[%s6260_s20 + $0x108] sm:$0xff] }
0x1248   :  { %4441 = vmatprep.subr.bf16.mxu1 %v4440_v25  ;;  %v3613_v25 = vld [vmem:[%s6260_s20 + $0x198] sm:$0xff] }
0x1249   :  { %2542 = vrot.lane.b32.xlu1 %v2531_v24, %s4801_s4  ;;  %v3575_v24 = vld [vmem:[%s6258_s18 + $0x90] sm:$0xff] }
0x124a   :  { %v4442_v30 = vpack.c.bf16 %v3575_v24, %v3573_v50  ;;  %v3612_v24 = vld [vmem:[%s6260_s20 + $0x190] sm:$0xff] }
0x12b2   :  { %v2539_v29 = vpop.permute.xlu0 %2538 }
0x12b3   :  { %v2537_v32 = vpop.permute.xlu1 %2536  ;;  %v2549_v28 = vsel %vm701_vm8, %v2247_v7, %v2539_v29  ;;  %v3582_v7 = vld [vmem:[%s6258_s18 + $0xc8] sm:$0xff] }
0x12b4   :  { %v2548_v27 = vsel %vm701_vm8, %v2246_v44, %v2537_v32  ;;  %v3579_v44 = vld [vmem:[%s6258_s18 + $0xb0] sm:$0xff]  ;;  %v3584_v32 = vld [vmem:[%s6258_s18 + $0xd8] sm:$0xff] }
0x12b5   :  { %4184 = vmatprep.mubr.msk.f32.mxu1 %vm486_vm7, %v2548_v27  ;;  %v4446_v29 = vpack.c.bf16 %v3579_v44, %v3577_v41  ;;  %v4448_v27 = vpack.c.bf16 %v3584_v32, %v3582_v7  ;;  %v3614_v41 = vld [vmem:[%s6260_s20 + $0x1a0] sm:$0xff]  ;;  %v3615_v44 = vld [vmem:[%s6260_s20 + $0x1a8] sm:$0xff] }
0x12b6   :  { %4185 = vmatmul.mubr.msk.f32.vlgmr.msra.gmra.mrb[36].mxu1 %vm486_vm7, %v2549_v28  ;;  %v3583_v28 = vld [vmem:[%s6258_s18 + $0xd0] sm:$0xff]  ;;  %v3598_v7 = vld [vmem:[%s6260_s20 + $0x120] sm:$0xff]  ;;  %v3599_v32 = vld [vmem:[%s6260_s20 + $0x128] sm:$0xff] }
0x12b7   :  { %v2541_v39 = vpop.permute.xlu1 %2540  ;;  %4443 = vmatpush1.bf16.msra.mxu1 %v4442_v30  ;;  %v4460_v30 = vpack.c.bf16 %v3613_v25, %v3612_v24 }
0x12b8   :  { %v2550_v56 = vsel %vm701_vm8, %v2248_v38, %v2541_v39  ;;  %4445 = vmatprep.subr.bf16.mxu1 %v4444_v63  ;;  %v4450_v38 = vpack.c.bf16 %v3583_v28, %v3581_v34  ;;  %v3586_v39 = vld [vmem:[%s6258_s18 + $0xe8] sm:$0xff]  ;;  %v4462_v63 = vpack.c.bf16 %v3597_v33, %v3596_v31  ;;  %v3616_v34 = vld [vmem:[%s6260_s20 + $0x1b0] sm:$0xff]  ;;  %v3617_v28 = vld [vmem:[%s6260_s20 + $0x1b8] sm:$0xff] }
0x12b9   :  { %4187 = vmatprep.mubr.msk.f32.mxu1 %vm486_vm7, %v2550_v56  ;;  %v3588_v56 = vld [vmem:[%s6258_s18 + $0xf8] sm:$0xff] }
0x12ba   :  { %v4452_v42 = vpack.c.bf16 %v3588_v56, %v3586_v39  ;;  %v3600_v39 = vld [vmem:[%s6260_s20 + $0x130] sm:$0xff]  ;;  %v3601_v56 = vld [vmem:[%s6260_s20 + $0x138] sm:$0xff] }
0x12bb   :  { %v2543_v19 = vpop.permute.xlu1 %2542  ;;  %4447 = vmatpush1.bf16.msra.mxu1 %v4446_v29  ;;  %v4464_v29 = vpack.c.bf16 %v3615_v44, %v3614_v41 }
0x12bc   :  { %v2551_v43 = vsel %vm701_vm8, %v2249_v57, %v2543_v19  ;;  %4449 = vmatprep.subr.bf16.mxu1 %v4448_v27  ;;  %v3585_v57 = vld [vmem:[%s6258_s18 + $0xe0] sm:$0xff]  ;;  %v3587_v19 = vld [vmem:[%s6258_s18 + $0xf0] sm:$0xff]  ;;  %v4466_v27 = vpack.c.bf16 %v3599_v32, %v3598_v7 }
0x12bd   :  { %4188 = vmatmul.mubr.msk.f32.gmra.mrb[38].mxu1 %vm486_vm7, %v2551_v43  ;;  %v4454_v43 = vpack.c.bf16 %v3587_v19, %v3585_v57  ;;  %v3618_v57 = vld [vmem:[%s6260_s20 + $0x1c0] sm:$0xff]  ;;  %v3619_v19 = vld [vmem:[%s6260_s20 + $0x1c8] sm:$0xff] }
0x12be   :  { %2856 = vmatprep.mubr.f32.mxu1 %v4799_v47 }
0x12bf   :  { %4451 = vmatpush1.bf16.msra.mxu1 %v4450_v38  ;;  %v4468_v38 = vpack.c.bf16 %v3617_v28, %v3616_v34 }
0x12c0   :  { %4453 = vmatprep.subr.bf16.mxu1 %v4452_v42  ;;  %v4470_v42 = vpack.c.bf16 %v3601_v56, %v3600_v39 }
0x12c3   :  { %4455 = vmatpush1.bf16.msra.mxu1 %v4454_v43  ;;  %v4472_v43 = vpack.c.bf16 %v3619_v19, %v3618_v57 }
0x1389   :  { %v4186_v59 = vpop.f32.mrb[36].mxu1 }
0x138a   :  { %v2659_v26 = vadd.f32 %v4186_v59, %v5604_v5  ;;  %v2639_v58 = vpop.f32.mrb[37].mxu1 }
0x138b   :  { %v2658_v11 = vadd.f32 %v2639_v58, %v5599_v0 }
0x138c   :  { %v5846_v37 = vadd.f32 %v3568_v51, %v2659_v26 }
0x138d   :  { %v5848_v36 = vadd.f32 %v3568_v51, %v2658_v11 }
0x138e   :  { %v2681_v52 = vsel %vm486_vm7, %v5846_v37, 0.0 }
0x138f   :  { %2682 = vadd.xlane.f32.xlu1 %v2681_v52  ;;  %v2678_v48 = vsel %vm486_vm7, %v5848_v36, 0.0 }
0x1390   :  { %2679 = vadd.xlane.f32.xlu0 %v2678_v48  ;;  %v4189_v60 = vpop.f32.mrb[38].mxu1 }
0x1391   :  { %v2649_v2 = vpop.f32.mrb[39].mxu1  ;;  %v2661_v46 = vadd.f32 %v4189_v60, %v5614_v6 }
0x1392   :  { %v2660_v5 = vadd.f32 %v2649_v2, %v5609_v14 }
0x1393   :  { %v5858_v0 = vadd.f32 %v3568_v51, %v2661_v46 }
0x1394   :  { %v5856_v3 = vadd.f32 %v3568_v51, %v2660_v5 }
0x1395   :  { %v2687_v9 = vsel %vm486_vm7, %v5858_v0, 0.0 }
0x1396   :  { %v2684_v8 = vsel %vm486_vm7, %v5856_v3, 0.0 }
0x1397   :  { %2685 = vadd.xlane.f32.xlu0 %v2684_v8 }
0x139b   :  { %2688 = vadd.xlane.f32.xlu0 %v2687_v9 }
0x141c   :  { %v2683_v10 = vpop.xlane.xlu1 %2682 }
0x141d   :  { %v2691_v55 = vmul.f32 0.015625, %v2683_v10  ;;  %v2680_v12 = vpop.xlane.xlu0 %2679 }
0x141e   :  { %v2690_v53 = vmul.f32 0.015625, %v2680_v12 }
0x141f   :  { %v5865_v6 = vsub.f32 %v5846_v37, %v2691_v55  ;;  %v3571_v55 = vld [vmem:[%s6256_s16 + $0x1] ss:$0 sm:$0xff] }
0x1420   :  { %v5868_v14 = vsub.f32 %v5848_v36, %v2690_v53 }
0x1421   :  { %v2699_v15 = vmul.f32 %v5865_v6, %v5865_v6 }
0x1422   :  { %v2698_v16 = vmul.f32 %v5868_v14, %v5868_v14 }
0x1423   :  { %v2705_v49 = vsel %vm486_vm7, %v2699_v15, 0.0  ;;  %v3572_v15 = vld [vmem:[%s6257_s17 + $0x1] ss:$0 sm:$0xff] }
0x1424   :  { %v2686_v1 = vpop.xlane.xlu0 %2685  ;;  %2706 = vadd.xlane.f32.xlu0 %v2705_v49  ;;  %v2702_v62 = vsel %vm486_vm7, %v2698_v16, 0.0 }
0x1425   :  { %v2692_v17 = vmul.f32 0.015625, %v2686_v1  ;;  %2703 = vadd.xlane.f32.xlu1 %v2702_v62 }
0x1427   :  { %v5877_v18 = vsub.f32 %v5856_v3, %v2692_v17 }
0x1428   :  { %v2689_v40 = vpop.xlane.xlu0 %2688 }
0x1429   :  { %v2693_v4 = vmul.f32 0.015625, %v2689_v40  ;;  %v2700_v45 = vmul.f32 %v5877_v18, %v5877_v18 }
0x142b   :  { %v5882_v61 = vsub.f32 %v5858_v0, %v2693_v4  ;;  %v2708_v35 = vsel %vm486_vm7, %v2700_v45, 0.0 }
0x142c   :  { %2709 = vadd.xlane.f32.xlu1 %v2708_v35 }
0x142d   :  { %v2701_v20 = vmul.f32 %v5882_v61, %v5882_v61 }
0x142f   :  { %v2711_v54 = vsel %vm486_vm7, %v2701_v20, 0.0 }
0x1430   :  { %2712 = vadd.xlane.f32.xlu0 %v2711_v54  ;;  %v3611_v54 = vld [vmem:[%s6260_s20 + $0x188] sm:$0xff] }
0x14b1   :  { %v2707_v59 = vpop.xlane.xlu0 %2706 }
0x14b2   :  { %v2715_v51 = vmul.f32 0.015625, %v2707_v59  ;;  %v2704_v26 = vpop.xlane.xlu1 %2703  ;;  %v3602_v59 = vld [vmem:[%s6260_s20 + $0x140] sm:$0xff] }
0x14b3   :  { %v2714_v58 = vmul.f32 0.015625, %v2704_v26 }
0x14b4   :  { %v2719_v11 = vadd.f32 1e-05, %v2715_v51  ;;  %v3603_v51 = vld [vmem:[%s6260_s20 + $0x148] sm:$0xff] }
0x14b5   :  { %v2718_v52 = vadd.f32 1e-05, %v2714_v58  ;;  %v4474_v26 = vpack.c.bf16 %v3603_v51, %v3602_v59  ;;  %v3620_v58 = vld [vmem:[%s6260_s20 + $0x1d0] sm:$0xff] }
0x14b6   :  { %4729 = vrsqrt.f32 %v2719_v11  ;;  %v3621_v11 = vld [vmem:[%s6260_s20 + $0x1d8] sm:$0xff] }
0x14b7   :  { %4731 = vrsqrt.f32 %v2718_v52  ;;  %v4476_v52 = vpack.c.bf16 %v3621_v11, %v3620_v58 }
0x14b9   :  { %v2710_v48 = vpop.xlane.xlu1 %2709 }
0x14ba   :  { %v2716_v60 = vmul.f32 0.015625, %v2710_v48  ;;  %v3604_v48 = vld [vmem:[%s6260_s20 + $0x150] sm:$0xff] }
0x14bc   :  { %v2720_v2 = vadd.f32 1e-05, %v2716_v60  ;;  %v3605_v60 = vld [vmem:[%s6260_s20 + $0x158] sm:$0xff] }
0x14bd   :  { %v2713_v46 = vpop.xlane.xlu0 %2712 }
0x14be   :  { %4733 = vrsqrt.f32 %v2720_v2  ;;  %v2717_v5 = vmul.f32 0.015625, %v2713_v46  ;;  %v4478_v2 = vpack.c.bf16 %v3605_v60, %v3604_v48  ;;  %v3622_v46 = vld [vmem:[%s6260_s20 + $0x1e0] sm:$0xff] }
0x14c0   :  { %v4730_v8 = vpop.eup %4729  ;;  %v2721_v9 = vadd.f32 1e-05, %v2717_v5  ;;  %v3623_v5 = vld [vmem:[%s6260_s20 + $0x1e8] sm:$0xff] }
0x14c1   :  { %v4732_v10 = vpop.eup %4731  ;;  %v2727_v53 = vmul.f32 %v4730_v8, %v5865_v6  ;;  %v4480_v8 = vpack.c.bf16 %v3623_v5, %v3622_v46 }
0x14c2   :  { %v2726_v12 = vmul.f32 %v4732_v10, %v5868_v14  ;;  %4735 = vrsqrt.f32 %v2721_v9  ;;  %v3606_v9 = vld [vmem:[%s6260_s20 + $0x160] sm:$0xff]  ;;  %v3607_v10 = vld [vmem:[%s6260_s20 + $0x168] sm:$0xff] }
0x14c3   :  { %v2737_v1 = vmul.f32 %v3571_v55, %v2727_v53  ;;  %v3625_v53 = vld [vmem:[%s6260_s20 + $0x1f8] sm:$0xff] }
0x14c4   :  { %v2736_v16 = vmul.f32 %v3571_v55, %v2726_v12  ;;  %v3624_v12 = vld [vmem:[%s6260_s20 + $0x1f0] sm:$0xff] }
0x14c5   :  { %v2747_v40 = vadd.f32 %v3572_v15, %v2737_v1 }
0x14c6   :  { %v2746_v49 = vadd.f32 %v3572_v15, %v2736_v16  ;;  %v3608_v16 = vld [vmem:[%s6260_s20 + $0x170] sm:$0xff] }
0x14c8   :  { %v4734_v62 = vpop.eup %4733  ;;  %3590 = vmatmul.mubr.msk.f32.vlgmr.msra.gmra.mrb[40].mxu1 %vm486_vm7, %v2746_v49  ;;  %v3609_v49 = vld [vmem:[%s6260_s20 + $0x178] sm:$0xff] }
0x14c9   :  { %2862 = vmatprep.mubr.f32.mxu1 %v4799_v47  ;;  %v2728_v17 = vmul.f32 %v4734_v62, %v5877_v18  ;;  %v3610_v18 = vld [vmem:[%s6260_s20 + $0x180] sm:$0xff]  ;;  %v4486_v1 = vpack.c.bf16 %v3609_v49, %v3608_v16 }
0x14ca   :  { %v4456_v13 = vpack.c.bf16 %v3611_v54, %v3610_v18  ;;  %v3589_v62 = vld [vmem:[%s6259_s19 + $0x2] sm:$0x3] }
0x14cb   :  { %v2738_v4 = vmul.f32 %v3571_v55, %v2728_v17  ;;  %v2773_v17 = vrot.slane %v3589_v62, %v5134_v21 }
0x14cc   :  { %v4736_v14 = vpop.eup %4735  ;;  %3591 = vmatmul.mubr.msk.f32.gmra.mrb[42].mxu1 %vm486_vm7, %v2747_v40  ;;  %4457 = vmatprep.subr.bf16.mxu1 %v4456_v13  ;;  %v2777_v40 = vrot.slane %v3589_v62, %v5140_v23 }
0x14cd   :  { %2868 = vmatprep.mubr.f32.mxu1 %v4799_v47  ;;  %v2748_v6 = vadd.f32 %v3572_v15, %v2738_v4  ;;  %v2729_v45 = vmul.f32 %v4736_v14, %v5882_v61  ;;  %v3594_v61 = vld [vmem:[%s6260_s20 + $0x100] sm:$0xff] }
0x14ce   :  { %v4458_v50 = vpack.c.bf16 %v3595_v22, %v3594_v61 }
0x14cf   :  { %v2739_v35 = vmul.f32 %v3571_v55, %v2729_v45  ;;  %v4482_v55 = vpack.c.bf16 %v3607_v10, %v3606_v9 }
0x14d0   :  { %3592 = vmatmul.mubr.msk.f32.gmra.mrb[44].mxu1 %vm486_vm7, %v2748_v6 }
0x14d1   :  { %2874 = vmatprep.mubr.f32.mxu1 %v4799_v47  ;;  %v2749_v20 = vadd.f32 %v3572_v15, %v2739_v35  ;;  %4459 = vmatpush3.bf16.msra.mxu1 %v4458_v50  ;;  %v4484_v15 = vpack.c.bf16 %v3625_v53, %v3624_v12 }
0x14d2   :  { %4461 = vmatprep.subr.bf16.mxu1 %v4460_v30 }
0x14d4   :  { %3593 = vmatmul.mubr.msk.f32.gmra.mrb[46].mxu1 %vm486_vm7, %v2749_v20 }
0x14d5   :  { %4463 = vmatpush3.bf16.msra.mxu1 %v4462_v63 }
0x14d6   :  { %4465 = vmatprep.subr.bf16.mxu1 %v4464_v29 }
0x14d9   :  { %4467 = vmatpush3.bf16.msra.mxu1 %v4466_v27 }
0x14da   :  { %4469 = vmatprep.subr.bf16.mxu1 %v4468_v38 }
0x14dd   :  { %4471 = vmatpush3.bf16.msra.mxu1 %v4470_v42 }
0x14de   :  { %4473 = vmatprep.subr.bf16.mxu1 %v4472_v43 }
0x14e1   :  { %4475 = vmatpush3.bf16.msra.mxu1 %v4474_v26 }
0x14e2   :  { %4477 = vmatprep.subr.bf16.mxu1 %v4476_v52 }
0x14e5   :  { %4479 = vmatpush3.bf16.msra.mxu1 %v4478_v2 }
0x14e6   :  { %4481 = vmatprep.subr.bf16.mxu1 %v4480_v8 }
0x14e9   :  { %4483 = vmatpush3.bf16.msra.mxu1 %v4482_v55 }
0x14ea   :  { %4485 = vmatprep.subr.bf16.mxu1 %v4484_v15 }
0x14ed   :  { %4487 = vmatpush3.bf16.msra.mxu1 %v4486_v1 }
0x159b   :  { %v2858_v4 = vpop.f32.mrb[40].mxu1 }
0x159c   :  { %v6054_v14 = vadd.f32 %v2858_v4, %v2773_v17  ;;  %v2860_v6 = vpop.f32.mrb[41].mxu1 }
0x159d   :  { %v6056_v45 = vadd.f32 %v2860_v6, %v2777_v40 }
0x159e   :  { %v2881_v35 = vmul.f32 %v6054_v14, %v6054_v14 }
0x159f   :  { %v2882_v20 = vmul.f32 %v6056_v45, %v6056_v45  ;;  %v2864_v18 = vpop.f32.mrb[42].mxu1 }
0x15a0   :  { %v2889_v54 = vmul.f32 %v2881_v35, %v6054_v14  ;;  %v6063_v13 = vadd.f32 %v2864_v18, %v2773_v17  ;;  %v2866_v21 = vpop.f32.mrb[43].mxu1 }
0x15a1   :  { %v2890_v23 = vmul.f32 %v2882_v20, %v6056_v45  ;;  %v6066_v61 = vadd.f32 %v2866_v21, %v2777_v40 }
0x15a2   :  { %v2897_v22 = vmul.f32 0.044715, %v2889_v54  ;;  %v2883_v50 = vmul.f32 %v6063_v13, %v6063_v13 }
0x15a3   :  { %v2898_v24 = vmul.f32 0.044715, %v2890_v23  ;;  %v2884_v25 = vmul.f32 %v6066_v61, %v6066_v61  ;;  %v2870_v30 = vpop.f32.mrb[44].mxu1 }
0x15a4   :  { %v2905_v31 = vadd.f32 %v2897_v22, %v6054_v14  ;;  %v2891_v33 = vmul.f32 %v2883_v50, %v6063_v13  ;;  %v6074_v63 = vadd.f32 %v2870_v30, %v2773_v17  ;;  %v2872_v41 = vpop.f32.mrb[45].mxu1 }
0x15a5   :  { %v2906_v44 = vadd.f32 %v2898_v24, %v6056_v45  ;;  %v2892_v29 = vmul.f32 %v2884_v25, %v6066_v61  ;;  %v6078_v7 = vadd.f32 %v2872_v41, %v2777_v40 }
0x15a6   :  { %v2913_v32 = vmul.f32 0.7978846, %v2905_v31  ;;  %v2899_v27 = vmul.f32 0.044715, %v2891_v33  ;;  %v2885_v34 = vmul.f32 %v6074_v63, %v6074_v63 }
0x15a7   :  { %v2914_v28 = vmul.f32 0.7978846, %v2906_v44  ;;  %v2900_v38 = vmul.f32 0.044715, %v2892_v29  ;;  %v2886_v39 = vmul.f32 %v6078_v7, %v6078_v7  ;;  %v2876_v56 = vpop.f32.mrb[46].mxu1 }
0x15a8   :  { %4737 = vtanh.f32 %v2913_v32  ;;  %v2907_v42 = vadd.f32 %v2899_v27, %v6063_v13  ;;  %v2893_v57 = vmul.f32 %v2885_v34, %v6074_v63  ;;  %v6086_v19 = vadd.f32 %v2876_v56, %v2773_v17  ;;  %v2878_v43 = vpop.f32.mrb[47].mxu1 }
0x15a9   :  { %v2908_v59 = vadd.f32 %v2900_v38, %v6066_v61  ;;  %v2894_v51 = vmul.f32 %v2886_v39, %v6078_v7  ;;  %v2879_v26 = vadd.f32 %v2878_v43, %v2777_v40  ;;  %4739 = vtanh.f32 %v2914_v28 }
0x15aa   :  { %v2915_v58 = vmul.f32 0.7978846, %v2907_v42  ;;  %v2901_v11 = vmul.f32 0.044715, %v2893_v57  ;;  %v2887_v52 = vmul.f32 %v6086_v19, %v6086_v19  ;;  %v3087_v57 = vld [vmem:[%s6248_s8] sm:$0xff] }
0x15ab   :  { %v2916_v48 = vmul.f32 0.7978846, %v2908_v59  ;;  %v2902_v60 = vmul.f32 0.044715, %v2894_v51  ;;  %v2888_v2 = vmul.f32 %v2879_v26, %v2879_v26  ;;  %4198 = vmatprep.mubr.msk.f32.mxu0 %vm701_vm8, %v3087_v57 }
0x15ac   :  { %v2909_v46 = vadd.f32 %v2901_v11, %v6074_v63  ;;  %v2895_v5 = vmul.f32 %v2887_v52, %v6086_v19  ;;  %4741 = vtanh.f32 %v2915_v58 }
0x15ad   :  { %v2910_v8 = vadd.f32 %v2902_v60, %v6078_v7  ;;  %v2896_v9 = vmul.f32 %v2888_v2, %v2879_v26  ;;  %4743 = vtanh.f32 %v2916_v48 }
0x15ae   :  { %v2917_v10 = vmul.f32 0.7978846, %v2909_v46  ;;  %v2903_v55 = vmul.f32 0.044715, %v2895_v5 }
0x15af   :  { %v2918_v12 = vmul.f32 0.7978846, %v2910_v8  ;;  %v2904_v53 = vmul.f32 0.044715, %v2896_v9 }
0x15b0   :  { %v2911_v15 = vadd.f32 %v2903_v55, %v6086_v19  ;;  %4745 = vtanh.f32 %v2917_v10 }
0x15b1   :  { %v2912_v16 = vadd.f32 %v2904_v53, %v2879_v26  ;;  %4747 = vtanh.f32 %v2918_v12 }
0x15b2   :  { %v4738_v49 = vpop.eup %4737  ;;  %v2919_v1 = vmul.f32 0.7978846, %v2911_v15 }
0x15b3   :  { %v4740_v62 = vpop.eup %4739  ;;  %v2929_v17 = vadd.f32 1.0, %v4738_v49  ;;  %v2920_v40 = vmul.f32 0.7978846, %v2912_v16  ;;  %v4758_v16 = vld [vmem:[%s6282_s1] sm:$0xff]   ;;  %v4759_v49 = vld [vmem:[%s6282_s1 + $0x48] sm:$0xff]  }
0x15b4   :  { %v2930_v4 = vadd.f32 1.0, %v4740_v62  ;;  %4749 = vtanh.f32 %v2919_v1  ;;  %v4760_v1 = vld [vmem:[%s6282_s1 + $0x8] sm:$0xff]   ;;  %v4761_v62 = vld [vmem:[%s6282_s1 + $0x50] sm:$0xff]  }
0x15b5   :  { %v2937_v6 = vmul.f32 0.5, %v2929_v17  ;;  %4751 = vtanh.f32 %v2920_v40  ;;  %v4762_v17 = vld [vmem:[%s6282_s1 + $0x10] sm:$0xff]   ;;  %v4763_v40 = vld [vmem:[%s6282_s1 + $0x58] sm:$0xff]  }
0x15b6   :  { %v4742_v35 = vpop.eup %4741  ;;  %v2938_v20 = vmul.f32 0.5, %v2930_v4  ;;  %v4764_v4 = vld [vmem:[%s6282_s1 + $0x18] sm:$0xff]  }
0x15b7   :  { %v4744_v18 = vpop.eup %4743  ;;  %v2931_v54 = vadd.f32 1.0, %v4742_v35  ;;  %v2945_v22 = vmul.f32 %v2937_v6, %v6054_v14  ;;  %v4765_v6 = vld [vmem:[%s6282_s1 + $0x60] sm:$0xff]  }
0x15b8   :  { %v2946_v21 = vmul.f32 %v2938_v20, %v6056_v45  ;;  %v2932_v23 = vadd.f32 1.0, %v4744_v18  ;;  %v4766_v35 = vld [vmem:[%s6282_s1 + $0x20] sm:$0xff]   ;;  %v4767_v20 = vld [vmem:[%s6282_s1 + $0x68] sm:$0xff]  }
0x15b9   :  { %v2939_v50 = vmul.f32 0.5, %v2931_v54  ;;  %v4768_v18 = vld [vmem:[%s6282_s1 + $0x28] sm:$0xff]   ;;  %v4769_v54 = vld [vmem:[%s6282_s1 + $0x70] sm:$0xff]  }
0x15ba   :  { %v4746_v24 = vpop.eup %4745  ;;  %3050 = vmatprep.mubr.f32.mxu1 %v2946_v21  ;;  %v2940_v25 = vmul.f32 0.5, %v2932_v23  ;;  %v4770_v21 = vld [vmem:[%s6282_s1 + $0x30] sm:$0xff]   ;;  %v4771_v23 = vld [vmem:[%s6282_s1 + $0x78] sm:$0xff]  }
0x15bb   :  { %v4748_v30 = vpop.eup %4747  ;;  %3051 = vmatmul.mubr.f32.vlgmr.msra.gmra.mrb[48].mxu1 %v2945_v22  ;;  %v2933_v31 = vadd.f32 1.0, %v4746_v24  ;;  %v2947_v44 = vmul.f32 %v2939_v50, %v6063_v13  ;;  %v4803_v13 = vmov 0.0|0.0   ;;  %v4772_v22 = vld [vmem:[%s6282_s1 + $0x38] sm:$0xff]   ;;  %v3353_v50 = vld [vmem:[%s6249_s9] sm:$0xf]  ;;  %s4805_s9 = smov [#allocation2]  }
0x15bc   :  { %v2948_v33 = vmul.f32 %v2940_v25, %v6066_v61  ;;  %v2934_v41 = vadd.f32 1.0, %v4748_v30  ;;  %4544 = vmatprep.subr.bf16.mxu1 %v4803_v13  ;;  %s3440_s10 = sshll.u32 %s4805_s9, 4  ;;  %s3441_s10 = int_to_ptr.vmem [resolvable:$true] %s3440_s10 }
0x15bd   :  { %v2941_v29 = vmul.f32 0.5, %v2933_v31  ;;  %s4773_s11 = scalar_lea.vmem %s3441_s10, 64  ;;  %p4778_p1 = scmp.lt.s32.totalorder %s3441_s10, %s3441_s10 }
0x15be   :  { %v4750_v32 = vpop.eup %4749  ;;  %3055 = vmatprep.mubr.f32.mxu1 %v2948_v33  ;;  %v2942_v27 = vmul.f32 0.5, %v2934_v41  ;;  %p4774_p0 = scmp.ne.s32.totalorder %s3441_s10, %s4773_s11  ;;  %p4779_p2 = scmp.lt.s32.totalorder %s4773_s11, %s4773_s11 }
0x15bf   :  { %v4752_v45 = vpop.eup %4751  ;;  %3056 = vmatmul.mubr.f32.gmra.mrb[50].mxu1 %v2947_v44  ;;  %v2935_v34 = vadd.f32 1.0, %v4750_v32  ;;  %v2949_v38 = vmul.f32 %v2941_v29, %v6074_v63 }
0x15c0   :  { %v2950_v14 = vmul.f32 %v2942_v27, %v6078_v7  ;;  %v2936_v28 = vadd.f32 1.0, %v4752_v45  ;;  %p4780_p3 = por %p4779_p2, %p4778_p1 }
0x15c1   :  { %v2943_v39 = vmul.f32 0.5, %v2935_v34 }
0x15c2   :  { %3060 = vmatprep.mubr.f32.mxu1 %v2950_v14  ;;  %v2944_v56 = vmul.f32 0.5, %v2936_v28  ;;  %p4781_p4 = pnand %p4780_p3, %p4774_p0 }
0x15c3   :  { %3061 = vmatmul.mubr.f32.gmra.mrb[52].mxu1 %v2949_v38  ;;  %v2951_v42 = vmul.f32 %v2943_v39, %v6086_v19  ;;  %v3627_v19 = vld [vmem:[%s6261_s21 + $0x1] ss:$0 sm:$0xff] }
0x15c4   :  { %v2952_v61 = vmul.f32 %v2944_v56, %v2879_v26 }
0x15c6   :  { %3065 = vmatprep.mubr.f32.mxu1 %v2952_v61 }
0x15c7   :  { %3066 = vmatmul.mubr.f32.gmra.mrb[54].mxu1 %v2951_v42 }
0x15c8   :  { %4209 = vmatprep.mubr.msk.f32.mxu1 %vm4804_vm11, %v4799_v47  ;;  %v3427_v47 = vld [vmem:[%s6284_s30] sm:$0xf] }
0x168e   :  { %v3957_v7 = vpop.f32.mrb[48].mxu1 }
0x168f   :  { %v3958_v43 = vpop.f32.mrb[49].mxu1 }
0x1690   :  { %v3959_v63 = vadd.f32 %v3958_v43, %v3957_v7 }
0x1692   :  { %v3960_v59 = vpop.f32.mrb[50].mxu1  ;;  %v3071_v58 = vadd.f32 %v3959_v63, %v5848_v36 }
0x1693   :  { %v3961_v51 = vpop.f32.mrb[51].mxu1 }
0x1694   :  { %v3962_v26 = vadd.f32 %v3961_v51, %v3960_v59  ;;  %v3083_v60 = vadd.f32 %v3627_v19, %v3071_v58 }
0x1696   :  { %v3072_v11 = vadd.f32 %v3962_v26, %v5846_v37  ;;  %v3963_v52 = vpop.f32.mrb[52].mxu1 }
0x1697   :  { %v3964_v48 = vpop.f32.mrb[53].mxu1 }
0x1698   :  { %v3084_v2 = vadd.f32 %v3627_v19, %v3072_v11  ;;  %v3965_v46 = vadd.f32 %v3964_v48, %v3963_v52 }
0x169a   :  { %v3966_v5 = vpop.f32.mrb[54].mxu1  ;;  %v4488_v8 = vpack.c.bf16 %v3084_v2, %v3083_v60  ;;  %v3073_v10 = vadd.f32 %v3965_v46, %v5856_v3  ;;  %v3088_v3 = vld [vmem:[%s6248_s8 + $0x8] sm:$0xff] }
0x169b   :  { %v3967_v9 = vpop.f32.mrb[55].mxu1 }
0x169c   :  { %v3968_v55 = vadd.f32 %v3967_v9, %v3966_v5  ;;  %4489 = vmatprep.subr.bf16.mxu0 %v4488_v8  ;;  %4546 = vmatpush3.bf16.msra.mxu1 %v4488_v8  ;;  %v3085_v12 = vadd.f32 %v3627_v19, %v3073_v10 }
0x169d   :  { %4491 = vmatpush3.bf16.msra.mxu0 %v4488_v8  ;;  %4547 = vmatprep.subr.bf16.mxu1 %v4803_v13 }
0x169e   :  { %v3074_v36 = vadd.f32 %v3968_v55, %v5858_v0  ;;  %v4757_v0 = vld [vmem:[%s6282_s1 + $0x40] sm:$0xff]  }
0x16a0   :  { %v3086_v53 = vadd.f32 %v3627_v19, %v3074_v36 }
0x16a2   :  { %v4492_v37 = vpack.c.bf16 %v3086_v53, %v3085_v12 }
0x16a4   :  { %4493 = vmatprep.subr.bf16.mxu0 %v4492_v37  ;;  %4549 = vmatpush3.bf16.msra.mxu1 %v4492_v37 }
0x16a5   :  { %4495 = vmatpush3.bf16.msra.mxu0 %v4492_v37 }
0x16a6   :  { %4498 = vmatprep.subr.msk.bf16.mxu0 %vm6116_vm10, %v4757_v0 }
0x16a7   :  { %4210 = vmatmul.mubr.msk.f32.vlgmr.msra.gmra.mrb[56].mxu1 %vm701_vm8, %v3353_v50 }
0x16a8   :  { %4199 = vmatmul.mubr.msk.f32.vlgmr.msra.gmra.mrb[40].mxu0 %vm701_vm8, %v3088_v3 }
0x16ae   :  { %4501 = vmatpush3.bf16.xpose.msk.msra.mxu0 %vm6116_vm10, %v4758_v16 }
0x16af   :  { %4504 = vmatprep.subr.msk.bf16.mxu0 %vm6116_vm10, %v4759_v49 }
0x16b6   :  { %4507 = vmatpush3.bf16.xpose.msk.msra.mxu0 %vm6116_vm10, %v4760_v1 }
0x16b7   :  { %4510 = vmatprep.subr.msk.bf16.mxu0 %vm6116_vm10, %v4761_v62 }
0x16be   :  { %4513 = vmatpush3.bf16.xpose.msk.msra.mxu0 %vm6116_vm10, %v4762_v17 }
0x16bf   :  { %4516 = vmatprep.subr.msk.bf16.mxu0 %vm6116_vm10, %v4763_v40 }
0x16c6   :  { %4519 = vmatpush3.bf16.xpose.msk.msra.mxu0 %vm6116_vm10, %v4764_v4 }
0x16c7   :  { %4522 = vmatprep.subr.msk.bf16.mxu0 %vm6116_vm10, %v4765_v6 }
0x16ce   :  { %4525 = vmatpush3.bf16.xpose.msk.msra.mxu0 %vm6116_vm10, %v4766_v35 }
0x16cf   :  { %4528 = vmatprep.subr.msk.bf16.mxu0 %vm6116_vm10, %v4767_v20 }
0x16d6   :  { %4531 = vmatpush3.bf16.xpose.msk.msra.mxu0 %vm6116_vm10, %v4768_v18 }
0x16d7   :  { %4534 = vmatprep.subr.msk.bf16.mxu0 %vm6116_vm10, %v4769_v54 }
0x16de   :  { %4537 = vmatpush3.bf16.xpose.msk.msra.mxu0 %vm6116_vm10, %v4770_v21 }
0x16df   :  { %4540 = vmatprep.subr.msk.bf16.mxu0 %vm6116_vm10, %v4771_v23 }
0x16e6   :  { %4543 = vmatpush3.bf16.xpose.msk.msra.mxu0 %vm6116_vm10, %v4772_v22 }
0x177a   :  { %v3423_v30 = vpop.f32.mrb[56].mxu1 }
0x177b   :  { %v4200_v24 = vpop.f32.mrb[40].mxu0  ;;  %v4211_v31 = vpop.f32.mrb[57].mxu1  ;;  %v3428_v33 = vadd.f32 %v3427_v47, %v3423_v30 }
0x177c   :  { %v3161_v25 = vpop.f32.mrb[41].mxu0 }
0x177d   :  { %4007 = vmatprep.mubr.msk.f32.mxu0 %vm486_vm7, %v3161_v25  ;;  %v3429_v41 = vmul.f32 0.5, %v3428_v33 }
0x177e   :  { %4008 = vmatmul.mubr.msk.f32.vlgmr.msra.gmra.mrb[42].mxu0 %vm486_vm7, %v3161_v25 }
0x177f   :  { %4009 = vmatprep.mubr.msk.f32.mxu0 %vm486_vm7, %v4200_v24  ;;  %3431 = vst.msk [vmem:[#allocation2] sm:$0xf] %vm3430_vm12, %v3429_v41 }
0x1782   :  { %4010 = vmatmul.mubr.msk.f32.gmra.mrb[44].mxu0 %vm486_vm7, %v4200_v24 }
0x1783   :  { %4784 = shalt.err (!%p4781_p4)
}
0x1784   :  { %s4785_s3 = scalar_lea.hbm %s6263_s23, 64 }
0x1785   :  { %p4786_p5 = scmp.ne.s32.totalorder %s6263_s23, %s4785_s3  ;;  %p4789_p6 = scmp.lt.u32.totalorder %s4785_s3, %s6263_s23 }
0x1787   :  { %p4791_p7 = pnand %p4789_p6, %p4786_p5 }
0x1789   :  { %4794 = shalt.err (!%p4791_p7)
}
0x178a   :  { %3443 = dma.vmem_to_hbm [thread:$0]  %s3441_s10, 64, %s6263_s23, [#allocation3]  }
0x1851   :  { %v3338_v44 = vpop.f32.mrb[42].mxu0 }
0x1852   :  { %3349 = vst [vmem:[%s6262_s22] sm:$0xff] %v3338_v44  ;;  %v3340_v29 = vpop.f32.mrb[43].mxu0 }
0x1853   :  { %3350 = vst [vmem:[%s6262_s22 + $0x8] sm:$0xff] %v3340_v29 }
0x1855   :  { %v3344_v32 = vpop.f32.mrb[44].mxu0 }
0x1856   :  { %3351 = vst [vmem:[%s6262_s22 + $0x10] sm:$0xff] %v3344_v32  ;;  %v3346_v27 = vpop.f32.mrb[45].mxu0 }
0x1857   :  { %3352 = vst [vmem:[%s6262_s22 + $0x18] sm:$0xff] %v3346_v27 }
0x1858   :  { %4795 = dma.done.wait [#allocation3], 64  }
0x1859   :  { %4796 = vsyncadd [#allocation3], 4294967232 }
0x185a   :  { %3449 = vsyncpa [#allocation3], 1 }

</bundles_post_ra>
